<compile_context>
chip_gen: v7x
topology: tpu7x:2x2x1
jax: 0.10.0
libtpu: 0.0.40
codegen_flags: <defaults>
</compile_context>

<pallas_src>
import functools

import jax
import jax.numpy as jnp
from jax import lax
from jax.experimental import pallas as pl
from jax.experimental.pallas import tpu as pltpu

EPS = 1e-5
NEG_SLOPE = 0.01
LANE = 128


def _round_up(x, m):
    return (x + m - 1) // m * m


def _largest_tile(total, cap=1024, mult=8):
    """Largest divisor of `total` that is <= cap and a multiple of `mult`."""
    for t in range(min(cap, total), 0, -1):
        if total % t == 0 and t % mult == 0:
            return t
    return total  # full-extent block (always legal)


def _make_conv_stats_kernel(sh, sw, Ho, Wo, Wq, cpad):
    """Fused 3x3x3 conv (27 taps, in-VMEM shifted slices) + per-plane BN partial sums.

    x{0,1,2}_ref : (sh, sw, R, Cin) bf16 -- the 3 padded depth planes (phase-split, flat H*W)
    w_ref        : (27, Cin, cpad)  bf16 -- per-tap weights, Cout padded to 128 lanes
    y_ref        : (Ho*Wq, cpad)    f32  -- raw conv output plane (lane-dense)
    st_ref       : (2, cpad)        f32  -- [sum, sum of squares] over the valid rows
    """
    mrow = Ho * Wq

    def kernel(x0_ref, x1_ref, x2_ref, w_ref, y_ref, st_ref):
        xrefs = (x0_ref, x1_ref, x2_ref)
        acc = jnp.zeros((mrow, cpad), jnp.float32)
        for kd in range(3):
            xk = xrefs[kd]
            for kh in range(3):
                ph, qh = kh % sh, kh // sh
                for kw in range(3):
                    pw, qw = kw % sw, kw // sw
                    start = qh * Wq + qw
                    # static, unit-stride slice of the VMEM block (no HBM im2col)
                    slab = xk[ph, pw, start:start + mrow, :]
                    t = kd * 9 + kh * 3 + kw
                    acc = acc + jnp.dot(slab, w_ref[t],
                                        preferred_element_type=jnp.float32)
        y_ref[...] = acc

        # Mask the (Wq - Wo) junk columns folded into the row axis before reducing,
        # so the BN statistics are exact.
        ridx = lax.broadcasted_iota(jnp.int32, (mrow, 1), 0)
        valid = (ridx % Wq) < Wo
        accv = jnp.where(valid, acc, 0.0)
        st_ref[0:1, :] = jnp.sum(accv, axis=0, keepdims=True)
        st_ref[1:2, :] = jnp.sum(accv * accv, axis=0, keepdims=True)

    return kernel


def _bn_lrelu_kernel(y_ref, scale_ref, shift_ref, o_ref, *, cout):
    """Tiled elementwise BatchNorm affine + LeakyReLU; slices Cpad -> Cout on store."""
    v = y_ref[...] * scale_ref[...] + shift_ref[...]
    v = jnp.where(v >= 0, v, NEG_SLOPE * v)
    o_ref[...] = v[:, :cout]


def _conv_bn_lrelu_stage(x, w, gamma, beta, stride):
    """x: (N, D, H, W, Cin) f32; w: (3,3,3,Cin,Cout).  Returns (N, Do, Ho, Wo, Cout) f32."""
    sd, sh, sw = stride
    N, D, H, W, Cin = x.shape
    Cout = w.shape[-1]
    Cpad = _round_up(Cout, LANE)
    assert D % sd == 0 and H % sh == 0 and W % sw == 0, "stride must divide spatial dims"

    Do, Ho, Wo = (D - 1) // sd + 1, (H - 1) // sh + 1, (W - 1) // sw + 1
    Dp, Hp, Wp = D + 2, H + 2, W + 2
    Hq, Wq = Hp // sh, Wp // sw
    mrow = Ho * Wq
    R = Hq * Wq + 2  # +2 slack rows so the last tap slab stays in bounds

    # ---- glue (pure data movement): pad, split H/W into stride phases, flatten ----
    xpad = jnp.pad(x, ((0, 0), (1, 1), (1, 1), (1, 1), (0, 0)))
    xph = xpad.reshape(N, Dp, Hq, sh, Wq, sw, Cin)
    xph = jnp.transpose(xph, (0, 1, 3, 5, 2, 4, 6))          # (N, Dp, sh, sw, Hq, Wq, Cin)
    xph = xph.reshape(N, Dp, sh, sw, Hq * Wq, Cin)
    xph = jnp.pad(xph, ((0, 0), (0, 0), (0, 0), (0, 0), (0, 2), (0, 0)))
    xph = xph.astype(jnp.bfloat16)

    w_pad = jnp.pad(w.reshape(27, Cin, Cout),
                    ((0, 0), (0, 0), (0, Cpad - Cout))).astype(jnp.bfloat16)
    # Conv3d bias is intentionally dropped: it is exactly cancelled by training-mode BN.

    kernel = _make_conv_stats_kernel(sh, sw, Ho, Wo, Wq, Cpad)

    def x_idx(kd):
        def idx(n, do):
            return (n, sd * do + kd, 0, 0, 0, 0)
        return idx

    x_specs = [pl.BlockSpec((None, None, sh, sw, R, Cin), x_idx(kd)) for kd in range(3)]
    w_spec = pl.BlockSpec((27, Cin, Cpad), lambda n, do: (0, 0, 0))
    y_spec = pl.BlockSpec((None, None, mrow, Cpad), lambda n, do: (n, do, 0, 0))
    st_spec = pl.BlockSpec((None, None, 2, Cpad), lambda n, do: (n, do, 0, 0))

    y_raw, stats = pl.pallas_call(
        kernel,
        grid=(N, Do),
        in_specs=x_specs + [w_spec],
        out_specs=[y_spec, st_spec],
        out_shape=[jax.ShapeDtypeStruct((N, Do, mrow, Cpad), jnp.float32),
                   jax.ShapeDtypeStruct((N, Do, 2, Cpad), jnp.float32)],
        compiler_params=pltpu.CompilerParams(
            dimension_semantics=("parallel", "parallel")),
    )(xph, xph, xph, w_pad)

    # ---- BatchNorm finalize (tiny, O(Cout)) ----
    cnt = jnp.float32(N * Do * Ho * Wo)
    s = jnp.sum(stats[:, :, 0, :], axis=(0, 1))
    ss = jnp.sum(stats[:, :, 1, :], axis=(0, 1))
    mean = s / cnt
    var = jnp.maximum(ss / cnt - mean * mean, 0.0)
    g = jnp.pad(gamma, (0, Cpad - Cout))
    b = jnp.pad(beta, (0, Cpad - Cout))
    rs = lax.rsqrt(var + EPS)
    scale = (g * rs).reshape(1, Cpad)
    shift = (b - mean * g * rs).reshape(1, Cpad)

    # ---- tiled elementwise BN affine + LeakyReLU pass ----
    Mtot = N * Do * mrow
    tm = _largest_tile(Mtot, cap=1024, mult=8)
    out2d = pl.pallas_call(
        functools.partial(_bn_lrelu_kernel, cout=Cout),
        grid=(Mtot // tm,),
        in_specs=[pl.BlockSpec((tm, Cpad), lambda i: (i, 0)),
                  pl.BlockSpec((1, Cpad), lambda i: (0, 0)),
                  pl.BlockSpec((1, Cpad), lambda i: (0, 0))],
        out_specs=pl.BlockSpec((tm, Cout), lambda i: (i, 0)),
        out_shape=jax.ShapeDtypeStruct((Mtot, Cout), jnp.float32),
        compiler_params=pltpu.CompilerParams(dimension_semantics=("parallel",)),
    )(y_raw.reshape(Mtot, Cpad), scale, shift)

    # Drop the (Wq - Wo) junk columns that were folded into the row axis.
    return out2d.reshape(N, Do, Ho, Wq, Cout)[:, :, :, :Wo, :]


@functools.partial(jax.jit, static_argnames=("reduce_depth",))
def down_forward(x_ncdhw, params, reduce_depth=False):
    """Down / DoubleConv_s2 forward.  x_ncdhw: (N, C_in, D, H, W) like PyTorch."""
    x = jnp.transpose(x_ncdhw, (0, 2, 3, 4, 1))  # NCDHW -> NDHWC
    s1 = (2, 2, 2) if reduce_depth else (1, 2, 2)
    y = _conv_bn_lrelu_stage(x, params["w1"], params["g1"], params["beta1"], s1)
    y = _conv_bn_lrelu_stage(y, params["w2"], params["g2"], params["beta2"], (1, 1, 1))
    return jnp.transpose(y, (0, 4, 1, 2, 3))  # NDHWC -> NCDHW


def _reference(x_ncdhw, params, reduce_depth=False):
    """Pure-JAX reference (keeps the conv bias; BN cancels it exactly)."""
    def stage(x, w, b, g, be, stride):
        y = lax.conv_general_dilated(
            x, w, window_strides=stride, padding=((1, 1), (1, 1), (1, 1)),
            dimension_numbers=("NDHWC", "DHWIO", "NDHWC"),
            precision=lax.Precision.HIGHEST,
        ) + b
        mean = jnp.mean(y, axis=(0, 1, 2, 3), keepdims=True)
        var = jnp.mean((y - mean) ** 2, axis=(0, 1, 2, 3), keepdims=True)
        y = (y - mean) * lax.rsqrt(var + EPS) * g + be
        return jnp.where(y >= 0, y, NEG_SLOPE * y)

    x = jnp.transpose(x_ncdhw, (0, 2, 3, 4, 1))
    s1 = (2, 2, 2) if reduce_depth else (1, 2, 2)
    y = stage(x, params["w1"], params["b1"], params["g1"], params["beta1"], s1)
    y = stage(y, params["w2"], params["b2"], params["g2"], params["beta2"], (1, 1, 1))
    return jnp.transpose(y, (0, 4, 1, 2, 3))


if __name__ == "__main__":
    # Down(in_channels=4, out_channels=8, reduce_depth=False): stride (1,2,2) then (1,1,1).
    N, C_IN, C_OUT, D, H, W = 2, 4, 8, 16, 16, 16

    key = jax.random.PRNGKey(0)
    k1, k2, k3, k4, kx = jax.random.split(key, 5)

    params = {
        # Conv weights in DHWIO layout (3,3,3,Cin,Cout); fresh-module BN init.
        "w1": 0.1 * jax.random.normal(k1, (3, 3, 3, C_IN, C_OUT), jnp.float32),
        "b1": 0.1 * jax.random.normal(k2, (C_OUT,), jnp.float32),
        "g1": jnp.ones((C_OUT,), jnp.float32),
        "beta1": jnp.zeros((C_OUT,), jnp.float32),
        "w2": 0.1 * jax.random.normal(k3, (3, 3, 3, C_OUT, C_OUT), jnp.float32),
        "b2": 0.1 * jax.random.normal(k4, (C_OUT,), jnp.float32),
        "g2": jnp.ones((C_OUT,), jnp.float32),
        "beta2": jnp.zeros((C_OUT,), jnp.float32),
    }

    x = jax.random.normal(kx, (N, C_IN, D, H, W), jnp.float32)  # NCDHW like PyTorch

    out = jax.block_until_ready(down_forward(x, params))
    ref = jax.block_until_ready(_reference(x, params))

    assert out.shape == (N, C_OUT, D, H // 2, W // 2), out.shape
    err = float(jnp.max(jnp.abs(out - ref)))
    assert jnp.allclose(out, ref, rtol=2e-2, atol=2e-2), err

    print("KERNEL_OK")
</pallas_src>

<mosaic_0001>
module attributes {stable_mosaic.version = 11 : i64} {
  func.func @kernel(%arg0: i32, %arg1: i32, %arg2: memref<1x1x2x2x83x4xbf16, #tpu.memory_space<vmem>>, %arg3: memref<1x1x2x2x83x4xbf16, #tpu.memory_space<vmem>>, %arg4: memref<1x1x2x2x83x4xbf16, #tpu.memory_space<vmem>>, %arg5: memref<27x4x128xbf16, #tpu.memory_space<vmem>>, %arg6: memref<1x1x72x128xf32, #tpu.memory_space<vmem>>, %arg7: memref<1x1x2x128xf32, #tpu.memory_space<vmem>>) attributes {dimension_semantics = [#tpu.dimension_semantics<parallel>, #tpu.dimension_semantics<parallel>], iteration_bounds = array<i64: 2, 16>, scalar_prefetch = 0 : i64, scratch_operands = 0 : i64, tpu.core_type = #tpu.core_type<tc>, window_params = [{transform_indices = @transform_0, window_bounds = array<i64: 1, 1, 2, 2, 83, 4>}, {transform_indices = @transform_1, window_bounds = array<i64: 1, 1, 2, 2, 83, 4>}, {transform_indices = @transform_2, window_bounds = array<i64: 1, 1, 2, 2, 83, 4>}, {pipeline_mode = #tpu.pipeline_mode<synchronous>, transform_indices = @transform_3, window_bounds = array<i64: 27, 4, 128>}, {transform_indices = @transform_4, window_bounds = array<i64: 1, 1, 72, 128>}, {transform_indices = @transform_5, window_bounds = array<i64: 1, 1, 2, 128>}]} {
    %cst = arith.constant 0.000000e+00 : f32
    %0 = vector.broadcast %cst : f32 to vector<72x128xf32>
    %c0 = arith.constant 0 : index
    %c0_0 = arith.constant 0 : index
    %c0_1 = arith.constant 0 : index
    %c0_2 = arith.constant 0 : index
    %c0_3 = arith.constant 0 : index
    %c0_4 = arith.constant 0 : index
    %1 = vector.load %arg2[%c0, %c0_0, %c0_1, %c0_2, %c0_3, %c0_4] : memref<1x1x2x2x83x4xbf16, #tpu.memory_space<vmem>>, vector<1x1x1x1x72x4xbf16>
    %2 = vector.shape_cast %1 : vector<1x1x1x1x72x4xbf16> to vector<72x4xbf16>
    %c0_5 = arith.constant 0 : index
    %c0_6 = arith.constant 0 : index
    %c0_7 = arith.constant 0 : index
    %3 = vector.load %arg5[%c0_5, %c0_6, %c0_7] : memref<27x4x128xbf16, #tpu.memory_space<vmem>>, vector<1x4x128xbf16>
    %4 = vector.shape_cast %3 : vector<1x4x128xbf16> to vector<4x128xbf16>
    %cst_8 = arith.constant dense<0.000000e+00> : vector<72x128xf32>
    %5 = tpu.matmul %2, %4, %cst_8 {dimension_numbers = #tpu.dot_dimension_numbers<[1], [0], [0], [1], [0, 0, 1, 1], [], []>} : vector<72x4xbf16>, vector<4x128xbf16>, vector<72x128xf32> -> vector<72x128xf32>
    %6 = arith.addf %0, %5 : vector<72x128xf32>
    %c0_9 = arith.constant 0 : index
    %c0_10 = arith.constant 0 : index
    %c0_11 = arith.constant 0 : index
    %c1 = arith.constant 1 : index
    %c0_12 = arith.constant 0 : index
    %c0_13 = arith.constant 0 : index
    %7 = vector.load %arg2[%c0_9, %c0_10, %c0_11, %c1, %c0_12, %c0_13] : memref<1x1x2x2x83x4xbf16, #tpu.memory_space<vmem>>, vector<1x1x1x1x72x4xbf16>
    %8 = vector.shape_cast %7 : vector<1x1x1x1x72x4xbf16> to vector<72x4xbf16>
    %c1_14 = arith.constant 1 : index
    %c0_15 = arith.constant 0 : index
    %c0_16 = arith.constant 0 : index
    %9 = vector.load %arg5[%c1_14, %c0_15, %c0_16] : memref<27x4x128xbf16, #tpu.memory_space<vmem>>, vector<1x4x128xbf16>
    %10 = vector.shape_cast %9 : vector<1x4x128xbf16> to vector<4x128xbf16>
    %cst_17 = arith.constant dense<0.000000e+00> : vector<72x128xf32>
    %11 = tpu.matmul %8, %10, %cst_17 {dimension_numbers = #tpu.dot_dimension_numbers<[1], [0], [0], [1], [0, 0, 1, 1], [], []>} : vector<72x4xbf16>, vector<4x128xbf16>, vector<72x128xf32> -> vector<72x128xf32>
    %12 = arith.addf %6, %11 : vector<72x128xf32>
    %c0_18 = arith.constant 0 : index
    %c0_19 = arith.constant 0 : index
    %c0_20 = arith.constant 0 : index
    %c0_21 = arith.constant 0 : index
    %c1_22 = arith.constant 1 : index
    %c0_23 = arith.constant 0 : index
    %13 = vector.load %arg2[%c0_18, %c0_19, %c0_20, %c0_21, %c1_22, %c0_23] : memref<1x1x2x2x83x4xbf16, #tpu.memory_space<vmem>>, vector<1x1x1x1x72x4xbf16>
    %14 = vector.shape_cast %13 : vector<1x1x1x1x72x4xbf16> to vector<72x4xbf16>
    %c2 = arith.constant 2 : index
    %c0_24 = arith.constant 0 : index
    %c0_25 = arith.constant 0 : index
    %15 = vector.load %arg5[%c2, %c0_24, %c0_25] : memref<27x4x128xbf16, #tpu.memory_space<vmem>>, vector<1x4x128xbf16>
    %16 = vector.shape_cast %15 : vector<1x4x128xbf16> to vector<4x128xbf16>
    %cst_26 = arith.constant dense<0.000000e+00> : vector<72x128xf32>
    %17 = tpu.matmul %14, %16, %cst_26 {dimension_numbers = #tpu.dot_dimension_numbers<[1], [0], [0], [1], [0, 0, 1, 1], [], []>} : vector<72x4xbf16>, vector<4x128xbf16>, vector<72x128xf32> -> vector<72x128xf32>
    %18 = arith.addf %12, %17 : vector<72x128xf32>
    %c0_27 = arith.constant 0 : index
    %c0_28 = arith.constant 0 : index
    %c1_29 = arith.constant 1 : index
    %c0_30 = arith.constant 0 : index
    %c0_31 = arith.constant 0 : index
    %c0_32 = arith.constant 0 : index
    %19 = vector.load %arg2[%c0_27, %c0_28, %c1_29, %c0_30, %c0_31, %c0_32] : memref<1x1x2x2x83x4xbf16, #tpu.memory_space<vmem>>, vector<1x1x1x1x72x4xbf16>
    %20 = vector.shape_cast %19 : vector<1x1x1x1x72x4xbf16> to vector<72x4xbf16>
    %c3 = arith.constant 3 : index
    %c0_33 = arith.constant 0 : index
    %c0_34 = arith.constant 0 : index
    %21 = vector.load %arg5[%c3, %c0_33, %c0_34] : memref<27x4x128xbf16, #tpu.memory_space<vmem>>, vector<1x4x128xbf16>
    %22 = vector.shape_cast %21 : vector<1x4x128xbf16> to vector<4x128xbf16>
    %cst_35 = arith.constant dense<0.000000e+00> : vector<72x128xf32>
    %23 = tpu.matmul %20, %22, %cst_35 {dimension_numbers = #tpu.dot_dimension_numbers<[1], [0], [0], [1], [0, 0, 1, 1], [], []>} : vector<72x4xbf16>, vector<4x128xbf16>, vector<72x128xf32> -> vector<72x128xf32>
    %24 = arith.addf %18, %23 : vector<72x128xf32>
    %c0_36 = arith.constant 0 : index
    %c0_37 = arith.constant 0 : index
    %c1_38 = arith.constant 1 : index
    %c1_39 = arith.constant 1 : index
    %c0_40 = arith.constant 0 : index
    %c0_41 = arith.constant 0 : index
    %25 = vector.load %arg2[%c0_36, %c0_37, %c1_38, %c1_39, %c0_40, %c0_41] : memref<1x1x2x2x83x4xbf16, #tpu.memory_space<vmem>>, vector<1x1x1x1x72x4xbf16>
    %26 = vector.shape_cast %25 : vector<1x1x1x1x72x4xbf16> to vector<72x4xbf16>
    %c4 = arith.constant 4 : index
    %c0_42 = arith.constant 0 : index
    %c0_43 = arith.constant 0 : index
    %27 = vector.load %arg5[%c4, %c0_42, %c0_43] : memref<27x4x128xbf16, #tpu.memory_space<vmem>>, vector<1x4x128xbf16>
    %28 = vector.shape_cast %27 : vector<1x4x128xbf16> to vector<4x128xbf16>
    %cst_44 = arith.constant dense<0.000000e+00> : vector<72x128xf32>
    %29 = tpu.matmul %26, %28, %cst_44 {dimension_numbers = #tpu.dot_dimension_numbers<[1], [0], [0], [1], [0, 0, 1, 1], [], []>} : vector<72x4xbf16>, vector<4x128xbf16>, vector<72x128xf32> -> vector<72x128xf32>
    %30 = arith.addf %24, %29 : vector<72x128xf32>
    %c0_45 = arith.constant 0 : index
    %c0_46 = arith.constant 0 : index
    %c1_47 = arith.constant 1 : index
    %c0_48 = arith.constant 0 : index
    %c1_49 = arith.constant 1 : index
    %c0_50 = arith.constant 0 : index
    %31 = vector.load %arg2[%c0_45, %c0_46, %c1_47, %c0_48, %c1_49, %c0_50] : memref<1x1x2x2x83x4xbf16, #tpu.memory_space<vmem>>, vector<1x1x1x1x72x4xbf16>
    %32 = vector.shape_cast %31 : vector<1x1x1x1x72x4xbf16> to vector<72x4xbf16>
    %c5 = arith.constant 5 : index
    %c0_51 = arith.constant 0 : index
    %c0_52 = arith.constant 0 : index
    %33 = vector.load %arg5[%c5, %c0_51, %c0_52] : memref<27x4x128xbf16, #tpu.memory_space<vmem>>, vector<1x4x128xbf16>
    %34 = vector.shape_cast %33 : vector<1x4x128xbf16> to vector<4x128xbf16>
    %cst_53 = arith.constant dense<0.000000e+00> : vector<72x128xf32>
    %35 = tpu.matmul %32, %34, %cst_53 {dimension_numbers = #tpu.dot_dimension_numbers<[1], [0], [0], [1], [0, 0, 1, 1], [], []>} : vector<72x4xbf16>, vector<4x128xbf16>, vector<72x128xf32> -> vector<72x128xf32>
    %36 = arith.addf %30, %35 : vector<72x128xf32>
    %c0_54 = arith.constant 0 : index
    %c0_55 = arith.constant 0 : index
    %c0_56 = arith.constant 0 : index
    %c0_57 = arith.constant 0 : index
    %c9 = arith.constant 9 : index
    %c0_58 = arith.constant 0 : index
    %37 = vector.load %arg2[%c0_54, %c0_55, %c0_56, %c0_57, %c9, %c0_58] : memref<1x1x2x2x83x4xbf16, #tpu.memory_space<vmem>>, vector<1x1x1x1x72x4xbf16>
    %38 = vector.shape_cast %37 : vector<1x1x1x1x72x4xbf16> to vector<72x4xbf16>
    %c6 = arith.constant 6 : index
    %c0_59 = arith.constant 0 : index
    %c0_60 = arith.constant 0 : index
    %39 = vector.load %arg5[%c6, %c0_59, %c0_60] : memref<27x4x128xbf16, #tpu.memory_space<vmem>>, vector<1x4x128xbf16>
    %40 = vector.shape_cast %39 : vector<1x4x128xbf16> to vector<4x128xbf16>
    %cst_61 = arith.constant dense<0.000000e+00> : vector<72x128xf32>
    %41 = tpu.matmul %38, %40, %cst_61 {dimension_numbers = #tpu.dot_dimension_numbers<[1], [0], [0], [1], [0, 0, 1, 1], [], []>} : vector<72x4xbf16>, vector<4x128xbf16>, vector<72x128xf32> -> vector<72x128xf32>
    %42 = arith.addf %36, %41 : vector<72x128xf32>
    %c0_62 = arith.constant 0 : index
    %c0_63 = arith.constant 0 : index
    %c0_64 = arith.constant 0 : index
    %c1_65 = arith.constant 1 : index
    %c9_66 = arith.constant 9 : index
    %c0_67 = arith.constant 0 : index
    %43 = vector.load %arg2[%c0_62, %c0_63, %c0_64, %c1_65, %c9_66, %c0_67] : memref<1x1x2x2x83x4xbf16, #tpu.memory_space<vmem>>, vector<1x1x1x1x72x4xbf16>
    %44 = vector.shape_cast %43 : vector<1x1x1x1x72x4xbf16> to vector<72x4xbf16>
    %c7 = arith.constant 7 : index
    %c0_68 = arith.constant 0 : index
    %c0_69 = arith.constant 0 : index
    %45 = vector.load %arg5[%c7, %c0_68, %c0_69] : memref<27x4x128xbf16, #tpu.memory_space<vmem>>, vector<1x4x128xbf16>
    %46 = vector.shape_cast %45 : vector<1x4x128xbf16> to vector<4x128xbf16>
    %cst_70 = arith.constant dense<0.000000e+00> : vector<72x128xf32>
    %47 = tpu.matmul %44, %46, %cst_70 {dimension_numbers = #tpu.dot_dimension_numbers<[1], [0], [0], [1], [0, 0, 1, 1], [], []>} : vector<72x4xbf16>, vector<4x128xbf16>, vector<72x128xf32> -> vector<72x128xf32>
    %48 = arith.addf %42, %47 : vector<72x128xf32>
    %c0_71 = arith.constant 0 : index
    %c0_72 = arith.constant 0 : index
    %c0_73 = arith.constant 0 : index
    %c0_74 = arith.constant 0 : index
    %c10 = arith.constant 10 : index
    %c0_75 = arith.constant 0 : index
    %49 = vector.load %arg2[%c0_71, %c0_72, %c0_73, %c0_74, %c10, %c0_75] : memref<1x1x2x2x83x4xbf16, #tpu.memory_space<vmem>>, vector<1x1x1x1x72x4xbf16>
    %50 = vector.shape_cast %49 : vector<1x1x1x1x72x4xbf16> to vector<72x4xbf16>
    %c8 = arith.constant 8 : index
    %c0_76 = arith.constant 0 : index
    %c0_77 = arith.constant 0 : index
    %51 = vector.load %arg5[%c8, %c0_76, %c0_77] : memref<27x4x128xbf16, #tpu.memory_space<vmem>>, vector<1x4x128xbf16>
    %52 = vector.shape_cast %51 : vector<1x4x128xbf16> to vector<4x128xbf16>
    %cst_78 = arith.constant dense<0.000000e+00> : vector<72x128xf32>
    %53 = tpu.matmul %50, %52, %cst_78 {dimension_numbers = #tpu.dot_dimension_numbers<[1], [0], [0], [1], [0, 0, 1, 1], [], []>} : vector<72x4xbf16>, vector<4x128xbf16>, vector<72x128xf32> -> vector<72x128xf32>
    %54 = arith.addf %48, %53 : vector<72x128xf32>
    %c0_79 = arith.constant 0 : index
    %c0_80 = arith.constant 0 : index
    %c0_81 = arith.constant 0 : index
    %c0_82 = arith.constant 0 : index
    %c0_83 = arith.constant 0 : index
    %c0_84 = arith.constant 0 : index
    %55 = vector.load %arg3[%c0_79, %c0_80, %c0_81, %c0_82, %c0_83, %c0_84] : memref<1x1x2x2x83x4xbf16, #tpu.memory_space<vmem>>, vector<1x1x1x1x72x4xbf16>
    %56 = vector.shape_cast %55 : vector<1x1x1x1x72x4xbf16> to vector<72x4xbf16>
    %c9_85 = arith.constant 9 : index
    %c0_86 = arith.constant 0 : index
    %c0_87 = arith.constant 0 : index
    %57 = vector.load %arg5[%c9_85, %c0_86, %c0_87] : memref<27x4x128xbf16, #tpu.memory_space<vmem>>, vector<1x4x128xbf16>
    %58 = vector.shape_cast %57 : vector<1x4x128xbf16> to vector<4x128xbf16>
    %cst_88 = arith.constant dense<0.000000e+00> : vector<72x128xf32>
    %59 = tpu.matmul %56, %58, %cst_88 {dimension_numbers = #tpu.dot_dimension_numbers<[1], [0], [0], [1], [0, 0, 1, 1], [], []>} : vector<72x4xbf16>, vector<4x128xbf16>, vector<72x128xf32> -> vector<72x128xf32>
    %60 = arith.addf %54, %59 : vector<72x128xf32>
    %c0_89 = arith.constant 0 : index
    %c0_90 = arith.constant 0 : index
    %c0_91 = arith.constant 0 : index
    %c1_92 = arith.constant 1 : index
    %c0_93 = arith.constant 0 : index
    %c0_94 = arith.constant 0 : index
    %61 = vector.load %arg3[%c0_89, %c0_90, %c0_91, %c1_92, %c0_93, %c0_94] : memref<1x1x2x2x83x4xbf16, #tpu.memory_space<vmem>>, vector<1x1x1x1x72x4xbf16>
    %62 = vector.shape_cast %61 : vector<1x1x1x1x72x4xbf16> to vector<72x4xbf16>
    %c10_95 = arith.constant 10 : index
    %c0_96 = arith.constant 0 : index
    %c0_97 = arith.constant 0 : index
    %63 = vector.load %arg5[%c10_95, %c0_96, %c0_97] : memref<27x4x128xbf16, #tpu.memory_space<vmem>>, vector<1x4x128xbf16>
    %64 = vector.shape_cast %63 : vector<1x4x128xbf16> to vector<4x128xbf16>
    %cst_98 = arith.constant dense<0.000000e+00> : vector<72x128xf32>
    %65 = tpu.matmul %62, %64, %cst_98 {dimension_numbers = #tpu.dot_dimension_numbers<[1], [0], [0], [1], [0, 0, 1, 1], [], []>} : vector<72x4xbf16>, vector<4x128xbf16>, vector<72x128xf32> -> vector<72x128xf32>
    %66 = arith.addf %60, %65 : vector<72x128xf32>
    %c0_99 = arith.constant 0 : index
    %c0_100 = arith.constant 0 : index
    %c0_101 = arith.constant 0 : index
    %c0_102 = arith.constant 0 : index
    %c1_103 = arith.constant 1 : index
    %c0_104 = arith.constant 0 : index
    %67 = vector.load %arg3[%c0_99, %c0_100, %c0_101, %c0_102, %c1_103, %c0_104] : memref<1x1x2x2x83x4xbf16, #tpu.memory_space<vmem>>, vector<1x1x1x1x72x4xbf16>
    %68 = vector.shape_cast %67 : vector<1x1x1x1x72x4xbf16> to vector<72x4xbf16>
    %c11 = arith.constant 11 : index
    %c0_105 = arith.constant 0 : index
    %c0_106 = arith.constant 0 : index
    %69 = vector.load %arg5[%c11, %c0_105, %c0_106] : memref<27x4x128xbf16, #tpu.memory_space<vmem>>, vector<1x4x128xbf16>
    %70 = vector.shape_cast %69 : vector<1x4x128xbf16> to vector<4x128xbf16>
    %cst_107 = arith.constant dense<0.000000e+00> : vector<72x128xf32>
    %71 = tpu.matmul %68, %70, %cst_107 {dimension_numbers = #tpu.dot_dimension_numbers<[1], [0], [0], [1], [0, 0, 1, 1], [], []>} : vector<72x4xbf16>, vector<4x128xbf16>, vector<72x128xf32> -> vector<72x128xf32>
    %72 = arith.addf %66, %71 : vector<72x128xf32>
    %c0_108 = arith.constant 0 : index
    %c0_109 = arith.constant 0 : index
    %c1_110 = arith.constant 1 : index
    %c0_111 = arith.constant 0 : index
    %c0_112 = arith.constant 0 : index
    %c0_113 = arith.constant 0 : index
    %73 = vector.load %arg3[%c0_108, %c0_109, %c1_110, %c0_111, %c0_112, %c0_113] : memref<1x1x2x2x83x4xbf16, #tpu.memory_space<vmem>>, vector<1x1x1x1x72x4xbf16>
    %74 = vector.shape_cast %73 : vector<1x1x1x1x72x4xbf16> to vector<72x4xbf16>
    %c12 = arith.constant 12 : index
    %c0_114 = arith.constant 0 : index
    %c0_115 = arith.constant 0 : index
    %75 = vector.load %arg5[%c12, %c0_114, %c0_115] : memref<27x4x128xbf16, #tpu.memory_space<vmem>>, vector<1x4x128xbf16>
    %76 = vector.shape_cast %75 : vector<1x4x128xbf16> to vector<4x128xbf16>
    %cst_116 = arith.constant dense<0.000000e+00> : vector<72x128xf32>
    %77 = tpu.matmul %74, %76, %cst_116 {dimension_numbers = #tpu.dot_dimension_numbers<[1], [0], [0], [1], [0, 0, 1, 1], [], []>} : vector<72x4xbf16>, vector<4x128xbf16>, vector<72x128xf32> -> vector<72x128xf32>
    %78 = arith.addf %72, %77 : vector<72x128xf32>
    %c0_117 = arith.constant 0 : index
    %c0_118 = arith.constant 0 : index
    %c1_119 = arith.constant 1 : index
    %c1_120 = arith.constant 1 : index
    %c0_121 = arith.constant 0 : index
    %c0_122 = arith.constant 0 : index
    %79 = vector.load %arg3[%c0_117, %c0_118, %c1_119, %c1_120, %c0_121, %c0_122] : memref<1x1x2x2x83x4xbf16, #tpu.memory_space<vmem>>, vector<1x1x1x1x72x4xbf16>
    %80 = vector.shape_cast %79 : vector<1x1x1x1x72x4xbf16> to vector<72x4xbf16>
    %c13 = arith.constant 13 : index
    %c0_123 = arith.constant 0 : index
    %c0_124 = arith.constant 0 : index
    %81 = vector.load %arg5[%c13, %c0_123, %c0_124] : memref<27x4x128xbf16, #tpu.memory_space<vmem>>, vector<1x4x128xbf16>
    %82 = vector.shape_cast %81 : vector<1x4x128xbf16> to vector<4x128xbf16>
    %cst_125 = arith.constant dense<0.000000e+00> : vector<72x128xf32>
    %83 = tpu.matmul %80, %82, %cst_125 {dimension_numbers = #tpu.dot_dimension_numbers<[1], [0], [0], [1], [0, 0, 1, 1], [], []>} : vector<72x4xbf16>, vector<4x128xbf16>, vector<72x128xf32> -> vector<72x128xf32>
    %84 = arith.addf %78, %83 : vector<72x128xf32>
    %c0_126 = arith.constant 0 : index
    %c0_127 = arith.constant 0 : index
    %c1_128 = arith.constant 1 : index
    %c0_129 = arith.constant 0 : index
    %c1_130 = arith.constant 1 : index
    %c0_131 = arith.constant 0 : index
    %85 = vector.load %arg3[%c0_126, %c0_127, %c1_128, %c0_129, %c1_130, %c0_131] : memref<1x1x2x2x83x4xbf16, #tpu.memory_space<vmem>>, vector<1x1x1x1x72x4xbf16>
    %86 = vector.shape_cast %85 : vector<1x1x1x1x72x4xbf16> to vector<72x4xbf16>
    %c14 = arith.constant 14 : index
    %c0_132 = arith.constant 0 : index
    %c0_133 = arith.constant 0 : index
    %87 = vector.load %arg5[%c14, %c0_132, %c0_133] : memref<27x4x128xbf16, #tpu.memory_space<vmem>>, vector<1x4x128xbf16>
    %88 = vector.shape_cast %87 : vector<1x4x128xbf16> to vector<4x128xbf16>
    %cst_134 = arith.constant dense<0.000000e+00> : vector<72x128xf32>
    %89 = tpu.matmul %86, %88, %cst_134 {dimension_numbers = #tpu.dot_dimension_numbers<[1], [0], [0], [1], [0, 0, 1, 1], [], []>} : vector<72x4xbf16>, vector<4x128xbf16>, vector<72x128xf32> -> vector<72x128xf32>
    %90 = arith.addf %84, %89 : vector<72x128xf32>
    %c0_135 = arith.constant 0 : index
    %c0_136 = arith.constant 0 : index
    %c0_137 = arith.constant 0 : index
    %c0_138 = arith.constant 0 : index
    %c9_139 = arith.constant 9 : index
    %c0_140 = arith.constant 0 : index
    %91 = vector.load %arg3[%c0_135, %c0_136, %c0_137, %c0_138, %c9_139, %c0_140] : memref<1x1x2x2x83x4xbf16, #tpu.memory_space<vmem>>, vector<1x1x1x1x72x4xbf16>
    %92 = vector.shape_cast %91 : vector<1x1x1x1x72x4xbf16> to vector<72x4xbf16>
    %c15 = arith.constant 15 : index
    %c0_141 = arith.constant 0 : index
    %c0_142 = arith.constant 0 : index
    %93 = vector.load %arg5[%c15, %c0_141, %c0_142] : memref<27x4x128xbf16, #tpu.memory_space<vmem>>, vector<1x4x128xbf16>
    %94 = vector.shape_cast %93 : vector<1x4x128xbf16> to vector<4x128xbf16>
    %cst_143 = arith.constant dense<0.000000e+00> : vector<72x128xf32>
    %95 = tpu.matmul %92, %94, %cst_143 {dimension_numbers = #tpu.dot_dimension_numbers<[1], [0], [0], [1], [0, 0, 1, 1], [], []>} : vector<72x4xbf16>, vector<4x128xbf16>, vector<72x128xf32> -> vector<72x128xf32>
    %96 = arith.addf %90, %95 : vector<72x128xf32>
    %c0_144 = arith.constant 0 : index
    %c0_145 = arith.constant 0 : index
    %c0_146 = arith.constant 0 : index
    %c1_147 = arith.constant 1 : index
    %c9_148 = arith.constant 9 : index
    %c0_149 = arith.constant 0 : index
    %97 = vector.load %arg3[%c0_144, %c0_145, %c0_146, %c1_147, %c9_148, %c0_149] : memref<1x1x2x2x83x4xbf16, #tpu.memory_space<vmem>>, vector<1x1x1x1x72x4xbf16>
    %98 = vector.shape_cast %97 : vector<1x1x1x1x72x4xbf16> to vector<72x4xbf16>
    %c16 = arith.constant 16 : index
    %c0_150 = arith.constant 0 : index
    %c0_151 = arith.constant 0 : index
    %99 = vector.load %arg5[%c16, %c0_150, %c0_151] : memref<27x4x128xbf16, #tpu.memory_space<vmem>>, vector<1x4x128xbf16>
    %100 = vector.shape_cast %99 : vector<1x4x128xbf16> to vector<4x128xbf16>
    %cst_152 = arith.constant dense<0.000000e+00> : vector<72x128xf32>
    %101 = tpu.matmul %98, %100, %cst_152 {dimension_numbers = #tpu.dot_dimension_numbers<[1], [0], [0], [1], [0, 0, 1, 1], [], []>} : vector<72x4xbf16>, vector<4x128xbf16>, vector<72x128xf32> -> vector<72x128xf32>
    %102 = arith.addf %96, %101 : vector<72x128xf32>
    %c0_153 = arith.constant 0 : index
    %c0_154 = arith.constant 0 : index
    %c0_155 = arith.constant 0 : index
    %c0_156 = arith.constant 0 : index
    %c10_157 = arith.constant 10 : index
    %c0_158 = arith.constant 0 : index
    %103 = vector.load %arg3[%c0_153, %c0_154, %c0_155, %c0_156, %c10_157, %c0_158] : memref<1x1x2x2x83x4xbf16, #tpu.memory_space<vmem>>, vector<1x1x1x1x72x4xbf16>
    %104 = vector.shape_cast %103 : vector<1x1x1x1x72x4xbf16> to vector<72x4xbf16>
    %c17 = arith.constant 17 : index
    %c0_159 = arith.constant 0 : index
    %c0_160 = arith.constant 0 : index
    %105 = vector.load %arg5[%c17, %c0_159, %c0_160] : memref<27x4x128xbf16, #tpu.memory_space<vmem>>, vector<1x4x128xbf16>
    %106 = vector.shape_cast %105 : vector<1x4x128xbf16> to vector<4x128xbf16>
    %cst_161 = arith.constant dense<0.000000e+00> : vector<72x128xf32>
    %107 = tpu.matmul %104, %106, %cst_161 {dimension_numbers = #tpu.dot_dimension_numbers<[1], [0], [0], [1], [0, 0, 1, 1], [], []>} : vector<72x4xbf16>, vector<4x128xbf16>, vector<72x128xf32> -> vector<72x128xf32>
    %108 = arith.addf %102, %107 : vector<72x128xf32>
    %c0_162 = arith.constant 0 : index
    %c0_163 = arith.constant 0 : index
    %c0_164 = arith.constant 0 : index
    %c0_165 = arith.constant 0 : index
    %c0_166 = arith.constant 0 : index
    %c0_167 = arith.constant 0 : index
    %109 = vector.load %arg4[%c0_162, %c0_163, %c0_164, %c0_165, %c0_166, %c0_167] : memref<1x1x2x2x83x4xbf16, #tpu.memory_space<vmem>>, vector<1x1x1x1x72x4xbf16>
    %110 = vector.shape_cast %109 : vector<1x1x1x1x72x4xbf16> to vector<72x4xbf16>
    %c18 = arith.constant 18 : index
    %c0_168 = arith.constant 0 : index
    %c0_169 = arith.constant 0 : index
    %111 = vector.load %arg5[%c18, %c0_168, %c0_169] : memref<27x4x128xbf16, #tpu.memory_space<vmem>>, vector<1x4x128xbf16>
    %112 = vector.shape_cast %111 : vector<1x4x128xbf16> to vector<4x128xbf16>
    %cst_170 = arith.constant dense<0.000000e+00> : vector<72x128xf32>
    %113 = tpu.matmul %110, %112, %cst_170 {dimension_numbers = #tpu.dot_dimension_numbers<[1], [0], [0], [1], [0, 0, 1, 1], [], []>} : vector<72x4xbf16>, vector<4x128xbf16>, vector<72x128xf32> -> vector<72x128xf32>
    %114 = arith.addf %108, %113 : vector<72x128xf32>
    %c0_171 = arith.constant 0 : index
    %c0_172 = arith.constant 0 : index
    %c0_173 = arith.constant 0 : index
    %c1_174 = arith.constant 1 : index
    %c0_175 = arith.constant 0 : index
    %c0_176 = arith.constant 0 : index
    %115 = vector.load %arg4[%c0_171, %c0_172, %c0_173, %c1_174, %c0_175, %c0_176] : memref<1x1x2x2x83x4xbf16, #tpu.memory_space<vmem>>, vector<1x1x1x1x72x4xbf16>
    %116 = vector.shape_cast %115 : vector<1x1x1x1x72x4xbf16> to vector<72x4xbf16>
    %c19 = arith.constant 19 : index
    %c0_177 = arith.constant 0 : index
    %c0_178 = arith.constant 0 : index
    %117 = vector.load %arg5[%c19, %c0_177, %c0_178] : memref<27x4x128xbf16, #tpu.memory_space<vmem>>, vector<1x4x128xbf16>
    %118 = vector.shape_cast %117 : vector<1x4x128xbf16> to vector<4x128xbf16>
    %cst_179 = arith.constant dense<0.000000e+00> : vector<72x128xf32>
    %119 = tpu.matmul %116, %118, %cst_179 {dimension_numbers = #tpu.dot_dimension_numbers<[1], [0], [0], [1], [0, 0, 1, 1], [], []>} : vector<72x4xbf16>, vector<4x128xbf16>, vector<72x128xf32> -> vector<72x128xf32>
    %120 = arith.addf %114, %119 : vector<72x128xf32>
    %c0_180 = arith.constant 0 : index
    %c0_181 = arith.constant 0 : index
    %c0_182 = arith.constant 0 : index
    %c0_183 = arith.constant 0 : index
    %c1_184 = arith.constant 1 : index
    %c0_185 = arith.constant 0 : index
    %121 = vector.load %arg4[%c0_180, %c0_181, %c0_182, %c0_183, %c1_184, %c0_185] : memref<1x1x2x2x83x4xbf16, #tpu.memory_space<vmem>>, vector<1x1x1x1x72x4xbf16>
    %122 = vector.shape_cast %121 : vector<1x1x1x1x72x4xbf16> to vector<72x4xbf16>
    %c20 = arith.constant 20 : index
    %c0_186 = arith.constant 0 : index
    %c0_187 = arith.constant 0 : index
    %123 = vector.load %arg5[%c20, %c0_186, %c0_187] : memref<27x4x128xbf16, #tpu.memory_space<vmem>>, vector<1x4x128xbf16>
    %124 = vector.shape_cast %123 : vector<1x4x128xbf16> to vector<4x128xbf16>
    %cst_188 = arith.constant dense<0.000000e+00> : vector<72x128xf32>
    %125 = tpu.matmul %122, %124, %cst_188 {dimension_numbers = #tpu.dot_dimension_numbers<[1], [0], [0], [1], [0, 0, 1, 1], [], []>} : vector<72x4xbf16>, vector<4x128xbf16>, vector<72x128xf32> -> vector<72x128xf32>
    %126 = arith.addf %120, %125 : vector<72x128xf32>
    %c0_189 = arith.constant 0 : index
    %c0_190 = arith.constant 0 : index
    %c1_191 = arith.constant 1 : index
    %c0_192 = arith.constant 0 : index
    %c0_193 = arith.constant 0 : index
    %c0_194 = arith.constant 0 : index
    %127 = vector.load %arg4[%c0_189, %c0_190, %c1_191, %c0_192, %c0_193, %c0_194] : memref<1x1x2x2x83x4xbf16, #tpu.memory_space<vmem>>, vector<1x1x1x1x72x4xbf16>
    %128 = vector.shape_cast %127 : vector<1x1x1x1x72x4xbf16> to vector<72x4xbf16>
    %c21 = arith.constant 21 : index
    %c0_195 = arith.constant 0 : index
    %c0_196 = arith.constant 0 : index
    %129 = vector.load %arg5[%c21, %c0_195, %c0_196] : memref<27x4x128xbf16, #tpu.memory_space<vmem>>, vector<1x4x128xbf16>
    %130 = vector.shape_cast %129 : vector<1x4x128xbf16> to vector<4x128xbf16>
    %cst_197 = arith.constant dense<0.000000e+00> : vector<72x128xf32>
    %131 = tpu.matmul %128, %130, %cst_197 {dimension_numbers = #tpu.dot_dimension_numbers<[1], [0], [0], [1], [0, 0, 1, 1], [], []>} : vector<72x4xbf16>, vector<4x128xbf16>, vector<72x128xf32> -> vector<72x128xf32>
    %132 = arith.addf %126, %131 : vector<72x128xf32>
    %c0_198 = arith.constant 0 : index
    %c0_199 = arith.constant 0 : index
    %c1_200 = arith.constant 1 : index
    %c1_201 = arith.constant 1 : index
    %c0_202 = arith.constant 0 : index
    %c0_203 = arith.constant 0 : index
    %133 = vector.load %arg4[%c0_198, %c0_199, %c1_200, %c1_201, %c0_202, %c0_203] : memref<1x1x2x2x83x4xbf16, #tpu.memory_space<vmem>>, vector<1x1x1x1x72x4xbf16>
    %134 = vector.shape_cast %133 : vector<1x1x1x1x72x4xbf16> to vector<72x4xbf16>
    %c22 = arith.constant 22 : index
    %c0_204 = arith.constant 0 : index
    %c0_205 = arith.constant 0 : index
    %135 = vector.load %arg5[%c22, %c0_204, %c0_205] : memref<27x4x128xbf16, #tpu.memory_space<vmem>>, vector<1x4x128xbf16>
    %136 = vector.shape_cast %135 : vector<1x4x128xbf16> to vector<4x128xbf16>
    %cst_206 = arith.constant dense<0.000000e+00> : vector<72x128xf32>
    %137 = tpu.matmul %134, %136, %cst_206 {dimension_numbers = #tpu.dot_dimension_numbers<[1], [0], [0], [1], [0, 0, 1, 1], [], []>} : vector<72x4xbf16>, vector<4x128xbf16>, vector<72x128xf32> -> vector<72x128xf32>
    %138 = arith.addf %132, %137 : vector<72x128xf32>
    %c0_207 = arith.constant 0 : index
    %c0_208 = arith.constant 0 : index
    %c1_209 = arith.constant 1 : index
    %c0_210 = arith.constant 0 : index
    %c1_211 = arith.constant 1 : index
    %c0_212 = arith.constant 0 : index
    %139 = vector.load %arg4[%c0_207, %c0_208, %c1_209, %c0_210, %c1_211, %c0_212] : memref<1x1x2x2x83x4xbf16, #tpu.memory_space<vmem>>, vector<1x1x1x1x72x4xbf16>
    %140 = vector.shape_cast %139 : vector<1x1x1x1x72x4xbf16> to vector<72x4xbf16>
    %c23 = arith.constant 23 : index
    %c0_213 = arith.constant 0 : index
    %c0_214 = arith.constant 0 : index
    %141 = vector.load %arg5[%c23, %c0_213, %c0_214] : memref<27x4x128xbf16, #tpu.memory_space<vmem>>, vector<1x4x128xbf16>
    %142 = vector.shape_cast %141 : vector<1x4x128xbf16> to vector<4x128xbf16>
    %cst_215 = arith.constant dense<0.000000e+00> : vector<72x128xf32>
    %143 = tpu.matmul %140, %142, %cst_215 {dimension_numbers = #tpu.dot_dimension_numbers<[1], [0], [0], [1], [0, 0, 1, 1], [], []>} : vector<72x4xbf16>, vector<4x128xbf16>, vector<72x128xf32> -> vector<72x128xf32>
    %144 = arith.addf %138, %143 : vector<72x128xf32>
    %c0_216 = arith.constant 0 : index
    %c0_217 = arith.constant 0 : index
    %c0_218 = arith.constant 0 : index
    %c0_219 = arith.constant 0 : index
    %c9_220 = arith.constant 9 : index
    %c0_221 = arith.constant 0 : index
    %145 = vector.load %arg4[%c0_216, %c0_217, %c0_218, %c0_219, %c9_220, %c0_221] : memref<1x1x2x2x83x4xbf16, #tpu.memory_space<vmem>>, vector<1x1x1x1x72x4xbf16>
    %146 = vector.shape_cast %145 : vector<1x1x1x1x72x4xbf16> to vector<72x4xbf16>
    %c24 = arith.constant 24 : index
    %c0_222 = arith.constant 0 : index
    %c0_223 = arith.constant 0 : index
    %147 = vector.load %arg5[%c24, %c0_222, %c0_223] : memref<27x4x128xbf16, #tpu.memory_space<vmem>>, vector<1x4x128xbf16>
    %148 = vector.shape_cast %147 : vector<1x4x128xbf16> to vector<4x128xbf16>
    %cst_224 = arith.constant dense<0.000000e+00> : vector<72x128xf32>
    %149 = tpu.matmul %146, %148, %cst_224 {dimension_numbers = #tpu.dot_dimension_numbers<[1], [0], [0], [1], [0, 0, 1, 1], [], []>} : vector<72x4xbf16>, vector<4x128xbf16>, vector<72x128xf32> -> vector<72x128xf32>
    %150 = arith.addf %144, %149 : vector<72x128xf32>
    %c0_225 = arith.constant 0 : index
    %c0_226 = arith.constant 0 : index
    %c0_227 = arith.constant 0 : index
    %c1_228 = arith.constant 1 : index
    %c9_229 = arith.constant 9 : index
    %c0_230 = arith.constant 0 : index
    %151 = vector.load %arg4[%c0_225, %c0_226, %c0_227, %c1_228, %c9_229, %c0_230] : memref<1x1x2x2x83x4xbf16, #tpu.memory_space<vmem>>, vector<1x1x1x1x72x4xbf16>
    %152 = vector.shape_cast %151 : vector<1x1x1x1x72x4xbf16> to vector<72x4xbf16>
    %c25 = arith.constant 25 : index
    %c0_231 = arith.constant 0 : index
    %c0_232 = arith.constant 0 : index
    %153 = vector.load %arg5[%c25, %c0_231, %c0_232] : memref<27x4x128xbf16, #tpu.memory_space<vmem>>, vector<1x4x128xbf16>
    %154 = vector.shape_cast %153 : vector<1x4x128xbf16> to vector<4x128xbf16>
    %cst_233 = arith.constant dense<0.000000e+00> : vector<72x128xf32>
    %155 = tpu.matmul %152, %154, %cst_233 {dimension_numbers = #tpu.dot_dimension_numbers<[1], [0], [0], [1], [0, 0, 1, 1], [], []>} : vector<72x4xbf16>, vector<4x128xbf16>, vector<72x128xf32> -> vector<72x128xf32>
    %156 = arith.addf %150, %155 : vector<72x128xf32>
    %c0_234 = arith.constant 0 : index
    %c0_235 = arith.constant 0 : index
    %c0_236 = arith.constant 0 : index
    %c0_237 = arith.constant 0 : index
    %c10_238 = arith.constant 10 : index
    %c0_239 = arith.constant 0 : index
    %157 = vector.load %arg4[%c0_234, %c0_235, %c0_236, %c0_237, %c10_238, %c0_239] : memref<1x1x2x2x83x4xbf16, #tpu.memory_space<vmem>>, vector<1x1x1x1x72x4xbf16>
    %158 = vector.shape_cast %157 : vector<1x1x1x1x72x4xbf16> to vector<72x4xbf16>
    %c26 = arith.constant 26 : index
    %c0_240 = arith.constant 0 : index
    %c0_241 = arith.constant 0 : index
    %159 = vector.load %arg5[%c26, %c0_240, %c0_241] : memref<27x4x128xbf16, #tpu.memory_space<vmem>>, vector<1x4x128xbf16>
    %160 = vector.shape_cast %159 : vector<1x4x128xbf16> to vector<4x128xbf16>
    %cst_242 = arith.constant dense<0.000000e+00> : vector<72x128xf32>
    %161 = tpu.matmul %158, %160, %cst_242 {dimension_numbers = #tpu.dot_dimension_numbers<[1], [0], [0], [1], [0, 0, 1, 1], [], []>} : vector<72x4xbf16>, vector<4x128xbf16>, vector<72x128xf32> -> vector<72x128xf32>
    %162 = arith.addf %156, %161 : vector<72x128xf32>
    %c0_243 = arith.constant 0 : index
    %c0_244 = arith.constant 0 : index
    %c0_245 = arith.constant 0 : index
    %c0_246 = arith.constant 0 : index
    %163 = vector.load %arg6[%c0_243, %c0_244, %c0_245, %c0_246] : memref<1x1x72x128xf32, #tpu.memory_space<vmem>>, vector<1x1x72x128xf32>
    %164 = vector.shape_cast %163 : vector<1x1x72x128xf32> to vector<72x128xf32>
    %165 = vector.shape_cast %162 : vector<72x128xf32> to vector<1x1x72x128xf32>
    tpu.vector_store %arg6[%c0_243, %c0_244, %c0_245, %c0_246], %165 {strides = array<i32>} : memref<1x1x72x128xf32, #tpu.memory_space<vmem>>, vector<1x1x72x128xf32>,
    %166 = tpu.iota {dimensions = array<i32: 0>} : vector<72x1xi32>
    %c9_i32 = arith.constant 9 : i32
    %c0_i32 = arith.constant 0 : i32
    %167 = arith.cmpi eq, %c9_i32, %c0_i32 : i32
    %c1_i32 = arith.constant 1 : i32
    %168 = arith.select %167, %c1_i32, %c9_i32 : i32
    %169 = vector.broadcast %168 : i32 to vector<72x1xi32>
    %170 = arith.remsi %166, %169 : vector<72x1xi32>
    %c0_i32_247 = arith.constant 0 : i32
    %171 = vector.broadcast %c0_i32_247 : i32 to vector<72x1xi32>
    %172 = arith.cmpi ne, %170, %171 : vector<72x1xi32>
    %c0_i32_248 = arith.constant 0 : i32
    %173 = vector.broadcast %c0_i32_248 : i32 to vector<72x1xi32>
    %174 = arith.cmpi slt, %170, %173 : vector<72x1xi32>
    %c0_i32_249 = arith.constant 0 : i32
    %175 = arith.cmpi slt, %168, %c0_i32_249 : i32
    %176 = vector.broadcast %175 : i1 to vector<72x1xi1>
    %177 = vector.broadcast %176 : vector<72x1xi1> to vector<72x1xi1>
    %178 = arith.xori %174, %177 : vector<72x1xi1>
    %179 = arith.andi %178, %172 : vector<72x1xi1>
    %180 = vector.broadcast %168 : i32 to vector<72x1xi32>
    %181 = arith.addi %170, %180 : vector<72x1xi32>
    %182 = arith.select %179, %181, %170 : vector<72x1xi1>, vector<72x1xi32>
    %c8_i32 = arith.constant 8 : i32
    %183 = vector.broadcast %c8_i32 : i32 to vector<72x1xi32>
    %184 = arith.cmpi slt, %182, %183 : vector<72x1xi32>
    %cst_250 = arith.constant 0.000000e+00 : f32
    %185 = vector.shape_cast %184 : vector<72x1xi1> to vector<72x1xi1>
    %186 = vector.broadcast %185 : vector<72x1xi1> to vector<72x128xi1>
    %187 = vector.broadcast %cst_250 : f32 to vector<72x128xf32>
    %188 = arith.select %186, %162, %187 : vector<72x128xi1>, vector<72x128xf32>
    %cst_251 = arith.constant dense<0.000000e+00> : vector<128xf32>
    %189 = vector.multi_reduction <add>, %188, %cst_251 [0] : vector<72x128xf32> to vector<128xf32>
    %190 = vector.shape_cast %189 : vector<128xf32> to vector<1x128xf32>
    %c0_252 = arith.constant 0 : index
    %c0_253 = arith.constant 0 : index
    %c0_254 = arith.constant 0 : index
    %c0_255 = arith.constant 0 : index
    %191 = vector.load %arg7[%c0_252, %c0_253, %c0_254, %c0_255] : memref<1x1x2x128xf32, #tpu.memory_space<vmem>>, vector<1x1x1x128xf32>
    %192 = vector.shape_cast %191 : vector<1x1x1x128xf32> to vector<1x128xf32>
    %193 = vector.shape_cast %190 : vector<1x128xf32> to vector<1x1x1x128xf32>
    tpu.vector_store %arg7[%c0_252, %c0_253, %c0_254, %c0_255], %193 {strides = array<i32>} : memref<1x1x2x128xf32, #tpu.memory_space<vmem>>, vector<1x1x1x128xf32>,
    %194 = arith.mulf %188, %188 : vector<72x128xf32>
    %cst_256 = arith.constant dense<0.000000e+00> : vector<128xf32>
    %195 = vector.multi_reduction <add>, %194, %cst_256 [0] : vector<72x128xf32> to vector<128xf32>
    %196 = vector.shape_cast %195 : vector<128xf32> to vector<1x128xf32>
    %c0_257 = arith.constant 0 : index
    %c0_258 = arith.constant 0 : index
    %c1_259 = arith.constant 1 : index
    %c0_260 = arith.constant 0 : index
    %197 = vector.load %arg7[%c0_257, %c0_258, %c1_259, %c0_260] : memref<1x1x2x128xf32, #tpu.memory_space<vmem>>, vector<1x1x1x128xf32>
    %198 = vector.shape_cast %197 : vector<1x1x1x128xf32> to vector<1x128xf32>
    %199 = vector.shape_cast %196 : vector<1x128xf32> to vector<1x1x1x128xf32>
    tpu.vector_store %arg7[%c0_257, %c0_258, %c1_259, %c0_260], %199 {strides = array<i32>} : memref<1x1x2x128xf32, #tpu.memory_space<vmem>>, vector<1x1x1x128xf32>,
    return
  }
  func.func @transform_0(%arg0: i32, %arg1: i32) -> (i32, i32, i32, i32, i32, i32) {
    %c1_i32 = arith.constant 1 : i32
    %0 = arith.muli %c1_i32, %arg1 : i32
    %c0_i32 = arith.constant 0 : i32
    %1 = arith.addi %0, %c0_i32 : i32
    %c0_i32_0 = arith.constant 0 : i32
    %c0_i32_1 = arith.constant 0 : i32
    %c0_i32_2 = arith.constant 0 : i32
    %c0_i32_3 = arith.constant 0 : i32
    %c0_i32_4 = arith.constant 0 : i32
    return %arg0, %1, %c0_i32_0, %c0_i32_1, %c0_i32_2, %c0_i32_3 : i32, i32, i32, i32, i32, i32
  }
  func.func @transform_1(%arg0: i32, %arg1: i32) -> (i32, i32, i32, i32, i32, i32) {
    %c1_i32 = arith.constant 1 : i32
    %0 = arith.muli %c1_i32, %arg1 : i32
    %c1_i32_0 = arith.constant 1 : i32
    %1 = arith.addi %0, %c1_i32_0 : i32
    %c0_i32 = arith.constant 0 : i32
    %c0_i32_1 = arith.constant 0 : i32
    %c0_i32_2 = arith.constant 0 : i32
    %c0_i32_3 = arith.constant 0 : i32
    %c0_i32_4 = arith.constant 0 : i32
    return %arg0, %1, %c0_i32, %c0_i32_1, %c0_i32_2, %c0_i32_3 : i32, i32, i32, i32, i32, i32
  }
  func.func @transform_2(%arg0: i32, %arg1: i32) -> (i32, i32, i32, i32, i32, i32) {
    %c1_i32 = arith.constant 1 : i32
    %0 = arith.muli %c1_i32, %arg1 : i32
    %c2_i32 = arith.constant 2 : i32
    %1 = arith.addi %0, %c2_i32 : i32
    %c0_i32 = arith.constant 0 : i32
    %c0_i32_0 = arith.constant 0 : i32
    %c0_i32_1 = arith.constant 0 : i32
    %c0_i32_2 = arith.constant 0 : i32
    %c0_i32_3 = arith.constant 0 : i32
    return %arg0, %1, %c0_i32, %c0_i32_0, %c0_i32_1, %c0_i32_2 : i32, i32, i32, i32, i32, i32
  }
  func.func @transform_3(%arg0: i32, %arg1: i32) -> (i32, i32, i32) {
    %c0_i32 = arith.constant 0 : i32
    %c0_i32_0 = arith.constant 0 : i32
    %c0_i32_1 = arith.constant 0 : i32
    %c0_i32_2 = arith.constant 0 : i32
    return %c0_i32, %c0_i32_0, %c0_i32_1 : i32, i32, i32
  }
  func.func @transform_4(%arg0: i32, %arg1: i32) -> (i32, i32, i32, i32) {
    %c0_i32 = arith.constant 0 : i32
    %c0_i32_0 = arith.constant 0 : i32
    %c0_i32_1 = arith.constant 0 : i32
    return %arg0, %arg1, %c0_i32, %c0_i32_0 : i32, i32, i32, i32
  }
  func.func @transform_5(%arg0: i32, %arg1: i32) -> (i32, i32, i32, i32) {
    %c0_i32 = arith.constant 0 : i32
    %c0_i32_0 = arith.constant 0 : i32
    %c0_i32_1 = arith.constant 0 : i32
    return %arg0, %arg1, %c0_i32, %c0_i32_0 : i32, i32, i32, i32
  }
}

module attributes {stable_mosaic.version = 11 : i64} {
  func.func @_bn_lrelu_kernel(%arg0: i32, %arg1: memref<768x128xf32, #tpu.memory_space<vmem>>, %arg2: memref<1x128xf32, #tpu.memory_space<vmem>>, %arg3: memref<1x128xf32, #tpu.memory_space<vmem>>, %arg4: memref<768x8xf32, #tpu.memory_space<vmem>>) attributes {dimension_semantics = [#tpu.dimension_semantics<parallel>], iteration_bounds = array<i64: 3>, scalar_prefetch = 0 : i64, scratch_operands = 0 : i64, tpu.core_type = #tpu.core_type<tc>, window_params = [{transform_indices = @transform_0, window_bounds = array<i64: 768, 128>}, {pipeline_mode = #tpu.pipeline_mode<synchronous>, transform_indices = @transform_1, window_bounds = array<i64: 1, 128>}, {pipeline_mode = #tpu.pipeline_mode<synchronous>, transform_indices = @transform_2, window_bounds = array<i64: 1, 128>}, {transform_indices = @transform_3, window_bounds = array<i64: 768, 8>}]} {
    %c0 = arith.constant 0 : index
    %c0_0 = arith.constant 0 : index
    %0 = vector.load %arg1[%c0, %c0_0] : memref<768x128xf32, #tpu.memory_space<vmem>>, vector<768x128xf32>
    %c0_1 = arith.constant 0 : index
    %c0_2 = arith.constant 0 : index
    %1 = vector.load %arg2[%c0_1, %c0_2] : memref<1x128xf32, #tpu.memory_space<vmem>>, vector<1x128xf32>
    %2 = vector.broadcast %1 : vector<1x128xf32> to vector<768x128xf32>
    %3 = arith.mulf %0, %2 : vector<768x128xf32>
    %c0_3 = arith.constant 0 : index
    %c0_4 = arith.constant 0 : index
    %4 = vector.load %arg3[%c0_3, %c0_4] : memref<1x128xf32, #tpu.memory_space<vmem>>, vector<1x128xf32>
    %5 = vector.broadcast %4 : vector<1x128xf32> to vector<768x128xf32>
    %6 = arith.addf %3, %5 : vector<768x128xf32>
    %cst = arith.constant 0.000000e+00 : f32
    %7 = vector.broadcast %cst : f32 to vector<768x128xf32>
    %8 = arith.cmpf oge, %6, %7 : vector<768x128xf32>
    %cst_5 = arith.constant 0.00999999977 : f32
    %9 = vector.broadcast %cst_5 : f32 to vector<768x128xf32>
    %10 = arith.mulf %9, %6 : vector<768x128xf32>
    %11 = arith.select %8, %6, %10 : vector<768x128xi1>, vector<768x128xf32>
    %12 = vector.extract_strided_slice %11 {offsets = [0, 0], sizes = [768, 8], strides = [1, 1]} : vector<768x128xf32> to vector<768x8xf32>
    %c0_6 = arith.constant 0 : index
    %c0_7 = arith.constant 0 : index
    %13 = vector.load %arg4[%c0_6, %c0_7] : memref<768x8xf32, #tpu.memory_space<vmem>>, vector<768x8xf32>
    tpu.vector_store %arg4[%c0_6, %c0_7], %12 {strides = array<i32>} : memref<768x8xf32, #tpu.memory_space<vmem>>, vector<768x8xf32>,
    return
  }
  func.func @transform_0(%arg0: i32) -> (i32, i32) {
    %c0_i32 = arith.constant 0 : i32
    %c0_i32_0 = arith.constant 0 : i32
    return %arg0, %c0_i32 : i32, i32
  }
  func.func @transform_1(%arg0: i32) -> (i32, i32) {
    %c0_i32 = arith.constant 0 : i32
    %c0_i32_0 = arith.constant 0 : i32
    %c0_i32_1 = arith.constant 0 : i32
    return %c0_i32, %c0_i32_0 : i32, i32
  }
  func.func @transform_2(%arg0: i32) -> (i32, i32) {
    %c0_i32 = arith.constant 0 : i32
    %c0_i32_0 = arith.constant 0 : i32
    %c0_i32_1 = arith.constant 0 : i32
    return %c0_i32, %c0_i32_0 : i32, i32
  }
  func.func @transform_3(%arg0: i32) -> (i32, i32) {
    %c0_i32 = arith.constant 0 : i32
    %c0_i32_0 = arith.constant 0 : i32
    return %arg0, %c0_i32 : i32, i32
  }
}

module attributes {stable_mosaic.version = 11 : i64} {
  func.func @kernel(%arg0: i32, %arg1: i32, %arg2: memref<1x1x1x1x102x8xbf16, #tpu.memory_space<vmem>>, %arg3: memref<1x1x1x1x102x8xbf16, #tpu.memory_space<vmem>>, %arg4: memref<1x1x1x1x102x8xbf16, #tpu.memory_space<vmem>>, %arg5: memref<27x8x128xbf16, #tpu.memory_space<vmem>>, %arg6: memref<1x1x80x128xf32, #tpu.memory_space<vmem>>, %arg7: memref<1x1x2x128xf32, #tpu.memory_space<vmem>>) attributes {dimension_semantics = [#tpu.dimension_semantics<parallel>, #tpu.dimension_semantics<parallel>], iteration_bounds = array<i64: 2, 16>, scalar_prefetch = 0 : i64, scratch_operands = 0 : i64, tpu.core_type = #tpu.core_type<tc>, window_params = [{transform_indices = @transform_0, window_bounds = array<i64: 1, 1, 1, 1, 102, 8>}, {transform_indices = @transform_1, window_bounds = array<i64: 1, 1, 1, 1, 102, 8>}, {transform_indices = @transform_2, window_bounds = array<i64: 1, 1, 1, 1, 102, 8>}, {pipeline_mode = #tpu.pipeline_mode<synchronous>, transform_indices = @transform_3, window_bounds = array<i64: 27, 8, 128>}, {transform_indices = @transform_4, window_bounds = array<i64: 1, 1, 80, 128>}, {transform_indices = @transform_5, window_bounds = array<i64: 1, 1, 2, 128>}]} {
    %cst = arith.constant 0.000000e+00 : f32
    %0 = vector.broadcast %cst : f32 to vector<80x128xf32>
    %c0 = arith.constant 0 : index
    %c0_0 = arith.constant 0 : index
    %c0_1 = arith.constant 0 : index
    %c0_2 = arith.constant 0 : index
    %c0_3 = arith.constant 0 : index
    %c0_4 = arith.constant 0 : index
    %1 = vector.load %arg2[%c0, %c0_0, %c0_1, %c0_2, %c0_3, %c0_4] : memref<1x1x1x1x102x8xbf16, #tpu.memory_space<vmem>>, vector<1x1x1x1x80x8xbf16>
    %2 = vector.shape_cast %1 : vector<1x1x1x1x80x8xbf16> to vector<80x8xbf16>
    %c0_5 = arith.constant 0 : index
    %c0_6 = arith.constant 0 : index
    %c0_7 = arith.constant 0 : index
    %3 = vector.load %arg5[%c0_5, %c0_6, %c0_7] : memref<27x8x128xbf16, #tpu.memory_space<vmem>>, vector<1x8x128xbf16>
    %4 = vector.shape_cast %3 : vector<1x8x128xbf16> to vector<8x128xbf16>
    %cst_8 = arith.constant dense<0.000000e+00> : vector<80x128xf32>
    %5 = tpu.matmul %2, %4, %cst_8 {dimension_numbers = #tpu.dot_dimension_numbers<[1], [0], [0], [1], [0, 0, 1, 1], [], []>} : vector<80x8xbf16>, vector<8x128xbf16>, vector<80x128xf32> -> vector<80x128xf32>
    %6 = arith.addf %0, %5 : vector<80x128xf32>
    %c0_9 = arith.constant 0 : index
    %c0_10 = arith.constant 0 : index
    %c0_11 = arith.constant 0 : index
    %c0_12 = arith.constant 0 : index
    %c1 = arith.constant 1 : index
    %c0_13 = arith.constant 0 : index
    %7 = vector.load %arg2[%c0_9, %c0_10, %c0_11, %c0_12, %c1, %c0_13] : memref<1x1x1x1x102x8xbf16, #tpu.memory_space<vmem>>, vector<1x1x1x1x80x8xbf16>
    %8 = vector.shape_cast %7 : vector<1x1x1x1x80x8xbf16> to vector<80x8xbf16>
    %c1_14 = arith.constant 1 : index
    %c0_15 = arith.constant 0 : index
    %c0_16 = arith.constant 0 : index
    %9 = vector.load %arg5[%c1_14, %c0_15, %c0_16] : memref<27x8x128xbf16, #tpu.memory_space<vmem>>, vector<1x8x128xbf16>
    %10 = vector.shape_cast %9 : vector<1x8x128xbf16> to vector<8x128xbf16>
    %cst_17 = arith.constant dense<0.000000e+00> : vector<80x128xf32>
    %11 = tpu.matmul %8, %10, %cst_17 {dimension_numbers = #tpu.dot_dimension_numbers<[1], [0], [0], [1], [0, 0, 1, 1], [], []>} : vector<80x8xbf16>, vector<8x128xbf16>, vector<80x128xf32> -> vector<80x128xf32>
    %12 = arith.addf %6, %11 : vector<80x128xf32>
    %c0_18 = arith.constant 0 : index
    %c0_19 = arith.constant 0 : index
    %c0_20 = arith.constant 0 : index
    %c0_21 = arith.constant 0 : index
    %c2 = arith.constant 2 : index
    %c0_22 = arith.constant 0 : index
    %13 = vector.load %arg2[%c0_18, %c0_19, %c0_20, %c0_21, %c2, %c0_22] : memref<1x1x1x1x102x8xbf16, #tpu.memory_space<vmem>>, vector<1x1x1x1x80x8xbf16>
    %14 = vector.shape_cast %13 : vector<1x1x1x1x80x8xbf16> to vector<80x8xbf16>
    %c2_23 = arith.constant 2 : index
    %c0_24 = arith.constant 0 : index
    %c0_25 = arith.constant 0 : index
    %15 = vector.load %arg5[%c2_23, %c0_24, %c0_25] : memref<27x8x128xbf16, #tpu.memory_space<vmem>>, vector<1x8x128xbf16>
    %16 = vector.shape_cast %15 : vector<1x8x128xbf16> to vector<8x128xbf16>
    %cst_26 = arith.constant dense<0.000000e+00> : vector<80x128xf32>
    %17 = tpu.matmul %14, %16, %cst_26 {dimension_numbers = #tpu.dot_dimension_numbers<[1], [0], [0], [1], [0, 0, 1, 1], [], []>} : vector<80x8xbf16>, vector<8x128xbf16>, vector<80x128xf32> -> vector<80x128xf32>
    %18 = arith.addf %12, %17 : vector<80x128xf32>
    %c0_27 = arith.constant 0 : index
    %c0_28 = arith.constant 0 : index
    %c0_29 = arith.constant 0 : index
    %c0_30 = arith.constant 0 : index
    %c10 = arith.constant 10 : index
    %c0_31 = arith.constant 0 : index
    %19 = vector.load %arg2[%c0_27, %c0_28, %c0_29, %c0_30, %c10, %c0_31] : memref<1x1x1x1x102x8xbf16, #tpu.memory_space<vmem>>, vector<1x1x1x1x80x8xbf16>
    %20 = vector.shape_cast %19 : vector<1x1x1x1x80x8xbf16> to vector<80x8xbf16>
    %c3 = arith.constant 3 : index
    %c0_32 = arith.constant 0 : index
    %c0_33 = arith.constant 0 : index
    %21 = vector.load %arg5[%c3, %c0_32, %c0_33] : memref<27x8x128xbf16, #tpu.memory_space<vmem>>, vector<1x8x128xbf16>
    %22 = vector.shape_cast %21 : vector<1x8x128xbf16> to vector<8x128xbf16>
    %cst_34 = arith.constant dense<0.000000e+00> : vector<80x128xf32>
    %23 = tpu.matmul %20, %22, %cst_34 {dimension_numbers = #tpu.dot_dimension_numbers<[1], [0], [0], [1], [0, 0, 1, 1], [], []>} : vector<80x8xbf16>, vector<8x128xbf16>, vector<80x128xf32> -> vector<80x128xf32>
    %24 = arith.addf %18, %23 : vector<80x128xf32>
    %c0_35 = arith.constant 0 : index
    %c0_36 = arith.constant 0 : index
    %c0_37 = arith.constant 0 : index
    %c0_38 = arith.constant 0 : index
    %c11 = arith.constant 11 : index
    %c0_39 = arith.constant 0 : index
    %25 = vector.load %arg2[%c0_35, %c0_36, %c0_37, %c0_38, %c11, %c0_39] : memref<1x1x1x1x102x8xbf16, #tpu.memory_space<vmem>>, vector<1x1x1x1x80x8xbf16>
    %26 = vector.shape_cast %25 : vector<1x1x1x1x80x8xbf16> to vector<80x8xbf16>
    %c4 = arith.constant 4 : index
    %c0_40 = arith.constant 0 : index
    %c0_41 = arith.constant 0 : index
    %27 = vector.load %arg5[%c4, %c0_40, %c0_41] : memref<27x8x128xbf16, #tpu.memory_space<vmem>>, vector<1x8x128xbf16>
    %28 = vector.shape_cast %27 : vector<1x8x128xbf16> to vector<8x128xbf16>
    %cst_42 = arith.constant dense<0.000000e+00> : vector<80x128xf32>
    %29 = tpu.matmul %26, %28, %cst_42 {dimension_numbers = #tpu.dot_dimension_numbers<[1], [0], [0], [1], [0, 0, 1, 1], [], []>} : vector<80x8xbf16>, vector<8x128xbf16>, vector<80x128xf32> -> vector<80x128xf32>
    %30 = arith.addf %24, %29 : vector<80x128xf32>
    %c0_43 = arith.constant 0 : index
    %c0_44 = arith.constant 0 : index
    %c0_45 = arith.constant 0 : index
    %c0_46 = arith.constant 0 : index
    %c12 = arith.constant 12 : index
    %c0_47 = arith.constant 0 : index
    %31 = vector.load %arg2[%c0_43, %c0_44, %c0_45, %c0_46, %c12, %c0_47] : memref<1x1x1x1x102x8xbf16, #tpu.memory_space<vmem>>, vector<1x1x1x1x80x8xbf16>
    %32 = vector.shape_cast %31 : vector<1x1x1x1x80x8xbf16> to vector<80x8xbf16>
    %c5 = arith.constant 5 : index
    %c0_48 = arith.constant 0 : index
    %c0_49 = arith.constant 0 : index
    %33 = vector.load %arg5[%c5, %c0_48, %c0_49] : memref<27x8x128xbf16, #tpu.memory_space<vmem>>, vector<1x8x128xbf16>
    %34 = vector.shape_cast %33 : vector<1x8x128xbf16> to vector<8x128xbf16>
    %cst_50 = arith.constant dense<0.000000e+00> : vector<80x128xf32>
    %35 = tpu.matmul %32, %34, %cst_50 {dimension_numbers = #tpu.dot_dimension_numbers<[1], [0], [0], [1], [0, 0, 1, 1], [], []>} : vector<80x8xbf16>, vector<8x128xbf16>, vector<80x128xf32> -> vector<80x128xf32>
    %36 = arith.addf %30, %35 : vector<80x128xf32>
    %c0_51 = arith.constant 0 : index
    %c0_52 = arith.constant 0 : index
    %c0_53 = arith.constant 0 : index
    %c0_54 = arith.constant 0 : index
    %c20 = arith.constant 20 : index
    %c0_55 = arith.constant 0 : index
    %37 = vector.load %arg2[%c0_51, %c0_52, %c0_53, %c0_54, %c20, %c0_55] : memref<1x1x1x1x102x8xbf16, #tpu.memory_space<vmem>>, vector<1x1x1x1x80x8xbf16>
    %38 = vector.shape_cast %37 : vector<1x1x1x1x80x8xbf16> to vector<80x8xbf16>
    %c6 = arith.constant 6 : index
    %c0_56 = arith.constant 0 : index
    %c0_57 = arith.constant 0 : index
    %39 = vector.load %arg5[%c6, %c0_56, %c0_57] : memref<27x8x128xbf16, #tpu.memory_space<vmem>>, vector<1x8x128xbf16>
    %40 = vector.shape_cast %39 : vector<1x8x128xbf16> to vector<8x128xbf16>
    %cst_58 = arith.constant dense<0.000000e+00> : vector<80x128xf32>
    %41 = tpu.matmul %38, %40, %cst_58 {dimension_numbers = #tpu.dot_dimension_numbers<[1], [0], [0], [1], [0, 0, 1, 1], [], []>} : vector<80x8xbf16>, vector<8x128xbf16>, vector<80x128xf32> -> vector<80x128xf32>
    %42 = arith.addf %36, %41 : vector<80x128xf32>
    %c0_59 = arith.constant 0 : index
    %c0_60 = arith.constant 0 : index
    %c0_61 = arith.constant 0 : index
    %c0_62 = arith.constant 0 : index
    %c21 = arith.constant 21 : index
    %c0_63 = arith.constant 0 : index
    %43 = vector.load %arg2[%c0_59, %c0_60, %c0_61, %c0_62, %c21, %c0_63] : memref<1x1x1x1x102x8xbf16, #tpu.memory_space<vmem>>, vector<1x1x1x1x80x8xbf16>
    %44 = vector.shape_cast %43 : vector<1x1x1x1x80x8xbf16> to vector<80x8xbf16>
    %c7 = arith.constant 7 : index
    %c0_64 = arith.constant 0 : index
    %c0_65 = arith.constant 0 : index
    %45 = vector.load %arg5[%c7, %c0_64, %c0_65] : memref<27x8x128xbf16, #tpu.memory_space<vmem>>, vector<1x8x128xbf16>
    %46 = vector.shape_cast %45 : vector<1x8x128xbf16> to vector<8x128xbf16>
    %cst_66 = arith.constant dense<0.000000e+00> : vector<80x128xf32>
    %47 = tpu.matmul %44, %46, %cst_66 {dimension_numbers = #tpu.dot_dimension_numbers<[1], [0], [0], [1], [0, 0, 1, 1], [], []>} : vector<80x8xbf16>, vector<8x128xbf16>, vector<80x128xf32> -> vector<80x128xf32>
    %48 = arith.addf %42, %47 : vector<80x128xf32>
    %c0_67 = arith.constant 0 : index
    %c0_68 = arith.constant 0 : index
    %c0_69 = arith.constant 0 : index
    %c0_70 = arith.constant 0 : index
    %c22 = arith.constant 22 : index
    %c0_71 = arith.constant 0 : index
    %49 = vector.load %arg2[%c0_67, %c0_68, %c0_69, %c0_70, %c22, %c0_71] : memref<1x1x1x1x102x8xbf16, #tpu.memory_space<vmem>>, vector<1x1x1x1x80x8xbf16>
    %50 = vector.shape_cast %49 : vector<1x1x1x1x80x8xbf16> to vector<80x8xbf16>
    %c8 = arith.constant 8 : index
    %c0_72 = arith.constant 0 : index
    %c0_73 = arith.constant 0 : index
    %51 = vector.load %arg5[%c8, %c0_72, %c0_73] : memref<27x8x128xbf16, #tpu.memory_space<vmem>>, vector<1x8x128xbf16>
    %52 = vector.shape_cast %51 : vector<1x8x128xbf16> to vector<8x128xbf16>
    %cst_74 = arith.constant dense<0.000000e+00> : vector<80x128xf32>
    %53 = tpu.matmul %50, %52, %cst_74 {dimension_numbers = #tpu.dot_dimension_numbers<[1], [0], [0], [1], [0, 0, 1, 1], [], []>} : vector<80x8xbf16>, vector<8x128xbf16>, vector<80x128xf32> -> vector<80x128xf32>
    %54 = arith.addf %48, %53 : vector<80x128xf32>
    %c0_75 = arith.constant 0 : index
    %c0_76 = arith.constant 0 : index
    %c0_77 = arith.constant 0 : index
    %c0_78 = arith.constant 0 : index
    %c0_79 = arith.constant 0 : index
    %c0_80 = arith.constant 0 : index
    %55 = vector.load %arg3[%c0_75, %c0_76, %c0_77, %c0_78, %c0_79, %c0_80] : memref<1x1x1x1x102x8xbf16, #tpu.memory_space<vmem>>, vector<1x1x1x1x80x8xbf16>
    %56 = vector.shape_cast %55 : vector<1x1x1x1x80x8xbf16> to vector<80x8xbf16>
    %c9 = arith.constant 9 : index
    %c0_81 = arith.constant 0 : index
    %c0_82 = arith.constant 0 : index
    %57 = vector.load %arg5[%c9, %c0_81, %c0_82] : memref<27x8x128xbf16, #tpu.memory_space<vmem>>, vector<1x8x128xbf16>
    %58 = vector.shape_cast %57 : vector<1x8x128xbf16> to vector<8x128xbf16>
    %cst_83 = arith.constant dense<0.000000e+00> : vector<80x128xf32>
    %59 = tpu.matmul %56, %58, %cst_83 {dimension_numbers = #tpu.dot_dimension_numbers<[1], [0], [0], [1], [0, 0, 1, 1], [], []>} : vector<80x8xbf16>, vector<8x128xbf16>, vector<80x128xf32> -> vector<80x128xf32>
    %60 = arith.addf %54, %59 : vector<80x128xf32>
    %c0_84 = arith.constant 0 : index
    %c0_85 = arith.constant 0 : index
    %c0_86 = arith.constant 0 : index
    %c0_87 = arith.constant 0 : index
    %c1_88 = arith.constant 1 : index
    %c0_89 = arith.constant 0 : index
    %61 = vector.load %arg3[%c0_84, %c0_85, %c0_86, %c0_87, %c1_88, %c0_89] : memref<1x1x1x1x102x8xbf16, #tpu.memory_space<vmem>>, vector<1x1x1x1x80x8xbf16>
    %62 = vector.shape_cast %61 : vector<1x1x1x1x80x8xbf16> to vector<80x8xbf16>
    %c10_90 = arith.constant 10 : index
    %c0_91 = arith.constant 0 : index
    %c0_92 = arith.constant 0 : index
    %63 = vector.load %arg5[%c10_90, %c0_91, %c0_92] : memref<27x8x128xbf16, #tpu.memory_space<vmem>>, vector<1x8x128xbf16>
    %64 = vector.shape_cast %63 : vector<1x8x128xbf16> to vector<8x128xbf16>
    %cst_93 = arith.constant dense<0.000000e+00> : vector<80x128xf32>
    %65 = tpu.matmul %62, %64, %cst_93 {dimension_numbers = #tpu.dot_dimension_numbers<[1], [0], [0], [1], [0, 0, 1, 1], [], []>} : vector<80x8xbf16>, vector<8x128xbf16>, vector<80x128xf32> -> vector<80x128xf32>
    %66 = arith.addf %60, %65 : vector<80x128xf32>
    %c0_94 = arith.constant 0 : index
    %c0_95 = arith.constant 0 : index
    %c0_96 = arith.constant 0 : index
    %c0_97 = arith.constant 0 : index
    %c2_98 = arith.constant 2 : index
    %c0_99 = arith.constant 0 : index
    %67 = vector.load %arg3[%c0_94, %c0_95, %c0_96, %c0_97, %c2_98, %c0_99] : memref<1x1x1x1x102x8xbf16, #tpu.memory_space<vmem>>, vector<1x1x1x1x80x8xbf16>
    %68 = vector.shape_cast %67 : vector<1x1x1x1x80x8xbf16> to vector<80x8xbf16>
    %c11_100 = arith.constant 11 : index
    %c0_101 = arith.constant 0 : index
    %c0_102 = arith.constant 0 : index
    %69 = vector.load %arg5[%c11_100, %c0_101, %c0_102] : memref<27x8x128xbf16, #tpu.memory_space<vmem>>, vector<1x8x128xbf16>
    %70 = vector.shape_cast %69 : vector<1x8x128xbf16> to vector<8x128xbf16>
    %cst_103 = arith.constant dense<0.000000e+00> : vector<80x128xf32>
    %71 = tpu.matmul %68, %70, %cst_103 {dimension_numbers = #tpu.dot_dimension_numbers<[1], [0], [0], [1], [0, 0, 1, 1], [], []>} : vector<80x8xbf16>, vector<8x128xbf16>, vector<80x128xf32> -> vector<80x128xf32>
    %72 = arith.addf %66, %71 : vector<80x128xf32>
    %c0_104 = arith.constant 0 : index
    %c0_105 = arith.constant 0 : index
    %c0_106 = arith.constant 0 : index
    %c0_107 = arith.constant 0 : index
    %c10_108 = arith.constant 10 : index
    %c0_109 = arith.constant 0 : index
    %73 = vector.load %arg3[%c0_104, %c0_105, %c0_106, %c0_107, %c10_108, %c0_109] : memref<1x1x1x1x102x8xbf16, #tpu.memory_space<vmem>>, vector<1x1x1x1x80x8xbf16>
    %74 = vector.shape_cast %73 : vector<1x1x1x1x80x8xbf16> to vector<80x8xbf16>
    %c12_110 = arith.constant 12 : index
    %c0_111 = arith.constant 0 : index
    %c0_112 = arith.constant 0 : index
    %75 = vector.load %arg5[%c12_110, %c0_111, %c0_112] : memref<27x8x128xbf16, #tpu.memory_space<vmem>>, vector<1x8x128xbf16>
    %76 = vector.shape_cast %75 : vector<1x8x128xbf16> to vector<8x128xbf16>
    %cst_113 = arith.constant dense<0.000000e+00> : vector<80x128xf32>
    %77 = tpu.matmul %74, %76, %cst_113 {dimension_numbers = #tpu.dot_dimension_numbers<[1], [0], [0], [1], [0, 0, 1, 1], [], []>} : vector<80x8xbf16>, vector<8x128xbf16>, vector<80x128xf32> -> vector<80x128xf32>
    %78 = arith.addf %72, %77 : vector<80x128xf32>
    %c0_114 = arith.constant 0 : index
    %c0_115 = arith.constant 0 : index
    %c0_116 = arith.constant 0 : index
    %c0_117 = arith.constant 0 : index
    %c11_118 = arith.constant 11 : index
    %c0_119 = arith.constant 0 : index
    %79 = vector.load %arg3[%c0_114, %c0_115, %c0_116, %c0_117, %c11_118, %c0_119] : memref<1x1x1x1x102x8xbf16, #tpu.memory_space<vmem>>, vector<1x1x1x1x80x8xbf16>
    %80 = vector.shape_cast %79 : vector<1x1x1x1x80x8xbf16> to vector<80x8xbf16>
    %c13 = arith.constant 13 : index
    %c0_120 = arith.constant 0 : index
    %c0_121 = arith.constant 0 : index
    %81 = vector.load %arg5[%c13, %c0_120, %c0_121] : memref<27x8x128xbf16, #tpu.memory_space<vmem>>, vector<1x8x128xbf16>
    %82 = vector.shape_cast %81 : vector<1x8x128xbf16> to vector<8x128xbf16>
    %cst_122 = arith.constant dense<0.000000e+00> : vector<80x128xf32>
    %83 = tpu.matmul %80, %82, %cst_122 {dimension_numbers = #tpu.dot_dimension_numbers<[1], [0], [0], [1], [0, 0, 1, 1], [], []>} : vector<80x8xbf16>, vector<8x128xbf16>, vector<80x128xf32> -> vector<80x128xf32>
    %84 = arith.addf %78, %83 : vector<80x128xf32>
    %c0_123 = arith.constant 0 : index
    %c0_124 = arith.constant 0 : index
    %c0_125 = arith.constant 0 : index
    %c0_126 = arith.constant 0 : index
    %c12_127 = arith.constant 12 : index
    %c0_128 = arith.constant 0 : index
    %85 = vector.load %arg3[%c0_123, %c0_124, %c0_125, %c0_126, %c12_127, %c0_128] : memref<1x1x1x1x102x8xbf16, #tpu.memory_space<vmem>>, vector<1x1x1x1x80x8xbf16>
    %86 = vector.shape_cast %85 : vector<1x1x1x1x80x8xbf16> to vector<80x8xbf16>
    %c14 = arith.constant 14 : index
    %c0_129 = arith.constant 0 : index
    %c0_130 = arith.constant 0 : index
    %87 = vector.load %arg5[%c14, %c0_129, %c0_130] : memref<27x8x128xbf16, #tpu.memory_space<vmem>>, vector<1x8x128xbf16>
    %88 = vector.shape_cast %87 : vector<1x8x128xbf16> to vector<8x128xbf16>
    %cst_131 = arith.constant dense<0.000000e+00> : vector<80x128xf32>
    %89 = tpu.matmul %86, %88, %cst_131 {dimension_numbers = #tpu.dot_dimension_numbers<[1], [0], [0], [1], [0, 0, 1, 1], [], []>} : vector<80x8xbf16>, vector<8x128xbf16>, vector<80x128xf32> -> vector<80x128xf32>
    %90 = arith.addf %84, %89 : vector<80x128xf32>
    %c0_132 = arith.constant 0 : index
    %c0_133 = arith.constant 0 : index
    %c0_134 = arith.constant 0 : index
    %c0_135 = arith.constant 0 : index
    %c20_136 = arith.constant 20 : index
    %c0_137 = arith.constant 0 : index
    %91 = vector.load %arg3[%c0_132, %c0_133, %c0_134, %c0_135, %c20_136, %c0_137] : memref<1x1x1x1x102x8xbf16, #tpu.memory_space<vmem>>, vector<1x1x1x1x80x8xbf16>
    %92 = vector.shape_cast %91 : vector<1x1x1x1x80x8xbf16> to vector<80x8xbf16>
    %c15 = arith.constant 15 : index
    %c0_138 = arith.constant 0 : index
    %c0_139 = arith.constant 0 : index
    %93 = vector.load %arg5[%c15, %c0_138, %c0_139] : memref<27x8x128xbf16, #tpu.memory_space<vmem>>, vector<1x8x128xbf16>
    %94 = vector.shape_cast %93 : vector<1x8x128xbf16> to vector<8x128xbf16>
    %cst_140 = arith.constant dense<0.000000e+00> : vector<80x128xf32>
    %95 = tpu.matmul %92, %94, %cst_140 {dimension_numbers = #tpu.dot_dimension_numbers<[1], [0], [0], [1], [0, 0, 1, 1], [], []>} : vector<80x8xbf16>, vector<8x128xbf16>, vector<80x128xf32> -> vector<80x128xf32>
    %96 = arith.addf %90, %95 : vector<80x128xf32>
    %c0_141 = arith.constant 0 : index
    %c0_142 = arith.constant 0 : index
    %c0_143 = arith.constant 0 : index
    %c0_144 = arith.constant 0 : index
    %c21_145 = arith.constant 21 : index
    %c0_146 = arith.constant 0 : index
    %97 = vector.load %arg3[%c0_141, %c0_142, %c0_143, %c0_144, %c21_145, %c0_146] : memref<1x1x1x1x102x8xbf16, #tpu.memory_space<vmem>>, vector<1x1x1x1x80x8xbf16>
    %98 = vector.shape_cast %97 : vector<1x1x1x1x80x8xbf16> to vector<80x8xbf16>
    %c16 = arith.constant 16 : index
    %c0_147 = arith.constant 0 : index
    %c0_148 = arith.constant 0 : index
    %99 = vector.load %arg5[%c16, %c0_147, %c0_148] : memref<27x8x128xbf16, #tpu.memory_space<vmem>>, vector<1x8x128xbf16>
    %100 = vector.shape_cast %99 : vector<1x8x128xbf16> to vector<8x128xbf16>
    %cst_149 = arith.constant dense<0.000000e+00> : vector<80x128xf32>
    %101 = tpu.matmul %98, %100, %cst_149 {dimension_numbers = #tpu.dot_dimension_numbers<[1], [0], [0], [1], [0, 0, 1, 1], [], []>} : vector<80x8xbf16>, vector<8x128xbf16>, vector<80x128xf32> -> vector<80x128xf32>
    %102 = arith.addf %96, %101 : vector<80x128xf32>
    %c0_150 = arith.constant 0 : index
    %c0_151 = arith.constant 0 : index
    %c0_152 = arith.constant 0 : index
    %c0_153 = arith.constant 0 : index
    %c22_154 = arith.constant 22 : index
    %c0_155 = arith.constant 0 : index
    %103 = vector.load %arg3[%c0_150, %c0_151, %c0_152, %c0_153, %c22_154, %c0_155] : memref<1x1x1x1x102x8xbf16, #tpu.memory_space<vmem>>, vector<1x1x1x1x80x8xbf16>
    %104 = vector.shape_cast %103 : vector<1x1x1x1x80x8xbf16> to vector<80x8xbf16>
    %c17 = arith.constant 17 : index
    %c0_156 = arith.constant 0 : index
    %c0_157 = arith.constant 0 : index
    %105 = vector.load %arg5[%c17, %c0_156, %c0_157] : memref<27x8x128xbf16, #tpu.memory_space<vmem>>, vector<1x8x128xbf16>
    %106 = vector.shape_cast %105 : vector<1x8x128xbf16> to vector<8x128xbf16>
    %cst_158 = arith.constant dense<0.000000e+00> : vector<80x128xf32>
    %107 = tpu.matmul %104, %106, %cst_158 {dimension_numbers = #tpu.dot_dimension_numbers<[1], [0], [0], [1], [0, 0, 1, 1], [], []>} : vector<80x8xbf16>, vector<8x128xbf16>, vector<80x128xf32> -> vector<80x128xf32>
    %108 = arith.addf %102, %107 : vector<80x128xf32>
    %c0_159 = arith.constant 0 : index
    %c0_160 = arith.constant 0 : index
    %c0_161 = arith.constant 0 : index
    %c0_162 = arith.constant 0 : index
    %c0_163 = arith.constant 0 : index
    %c0_164 = arith.constant 0 : index
    %109 = vector.load %arg4[%c0_159, %c0_160, %c0_161, %c0_162, %c0_163, %c0_164] : memref<1x1x1x1x102x8xbf16, #tpu.memory_space<vmem>>, vector<1x1x1x1x80x8xbf16>
    %110 = vector.shape_cast %109 : vector<1x1x1x1x80x8xbf16> to vector<80x8xbf16>
    %c18 = arith.constant 18 : index
    %c0_165 = arith.constant 0 : index
    %c0_166 = arith.constant 0 : index
    %111 = vector.load %arg5[%c18, %c0_165, %c0_166] : memref<27x8x128xbf16, #tpu.memory_space<vmem>>, vector<1x8x128xbf16>
    %112 = vector.shape_cast %111 : vector<1x8x128xbf16> to vector<8x128xbf16>
    %cst_167 = arith.constant dense<0.000000e+00> : vector<80x128xf32>
    %113 = tpu.matmul %110, %112, %cst_167 {dimension_numbers = #tpu.dot_dimension_numbers<[1], [0], [0], [1], [0, 0, 1, 1], [], []>} : vector<80x8xbf16>, vector<8x128xbf16>, vector<80x128xf32> -> vector<80x128xf32>
    %114 = arith.addf %108, %113 : vector<80x128xf32>
    %c0_168 = arith.constant 0 : index
    %c0_169 = arith.constant 0 : index
    %c0_170 = arith.constant 0 : index
    %c0_171 = arith.constant 0 : index
    %c1_172 = arith.constant 1 : index
    %c0_173 = arith.constant 0 : index
    %115 = vector.load %arg4[%c0_168, %c0_169, %c0_170, %c0_171, %c1_172, %c0_173] : memref<1x1x1x1x102x8xbf16, #tpu.memory_space<vmem>>, vector<1x1x1x1x80x8xbf16>
    %116 = vector.shape_cast %115 : vector<1x1x1x1x80x8xbf16> to vector<80x8xbf16>
    %c19 = arith.constant 19 : index
    %c0_174 = arith.constant 0 : index
    %c0_175 = arith.constant 0 : index
    %117 = vector.load %arg5[%c19, %c0_174, %c0_175] : memref<27x8x128xbf16, #tpu.memory_space<vmem>>, vector<1x8x128xbf16>
    %118 = vector.shape_cast %117 : vector<1x8x128xbf16> to vector<8x128xbf16>
    %cst_176 = arith.constant dense<0.000000e+00> : vector<80x128xf32>
    %119 = tpu.matmul %116, %118, %cst_176 {dimension_numbers = #tpu.dot_dimension_numbers<[1], [0], [0], [1], [0, 0, 1, 1], [], []>} : vector<80x8xbf16>, vector<8x128xbf16>, vector<80x128xf32> -> vector<80x128xf32>
    %120 = arith.addf %114, %119 : vector<80x128xf32>
    %c0_177 = arith.constant 0 : index
    %c0_178 = arith.constant 0 : index
    %c0_179 = arith.constant 0 : index
    %c0_180 = arith.constant 0 : index
    %c2_181 = arith.constant 2 : index
    %c0_182 = arith.constant 0 : index
    %121 = vector.load %arg4[%c0_177, %c0_178, %c0_179, %c0_180, %c2_181, %c0_182] : memref<1x1x1x1x102x8xbf16, #tpu.memory_space<vmem>>, vector<1x1x1x1x80x8xbf16>
    %122 = vector.shape_cast %121 : vector<1x1x1x1x80x8xbf16> to vector<80x8xbf16>
    %c20_183 = arith.constant 20 : index
    %c0_184 = arith.constant 0 : index
    %c0_185 = arith.constant 0 : index
    %123 = vector.load %arg5[%c20_183, %c0_184, %c0_185] : memref<27x8x128xbf16, #tpu.memory_space<vmem>>, vector<1x8x128xbf16>
    %124 = vector.shape_cast %123 : vector<1x8x128xbf16> to vector<8x128xbf16>
    %cst_186 = arith.constant dense<0.000000e+00> : vector<80x128xf32>
    %125 = tpu.matmul %122, %124, %cst_186 {dimension_numbers = #tpu.dot_dimension_numbers<[1], [0], [0], [1], [0, 0, 1, 1], [], []>} : vector<80x8xbf16>, vector<8x128xbf16>, vector<80x128xf32> -> vector<80x128xf32>
    %126 = arith.addf %120, %125 : vector<80x128xf32>
    %c0_187 = arith.constant 0 : index
    %c0_188 = arith.constant 0 : index
    %c0_189 = arith.constant 0 : index
    %c0_190 = arith.constant 0 : index
    %c10_191 = arith.constant 10 : index
    %c0_192 = arith.constant 0 : index
    %127 = vector.load %arg4[%c0_187, %c0_188, %c0_189, %c0_190, %c10_191, %c0_192] : memref<1x1x1x1x102x8xbf16, #tpu.memory_space<vmem>>, vector<1x1x1x1x80x8xbf16>
    %128 = vector.shape_cast %127 : vector<1x1x1x1x80x8xbf16> to vector<80x8xbf16>
    %c21_193 = arith.constant 21 : index
    %c0_194 = arith.constant 0 : index
    %c0_195 = arith.constant 0 : index
    %129 = vector.load %arg5[%c21_193, %c0_194, %c0_195] : memref<27x8x128xbf16, #tpu.memory_space<vmem>>, vector<1x8x128xbf16>
    %130 = vector.shape_cast %129 : vector<1x8x128xbf16> to vector<8x128xbf16>
    %cst_196 = arith.constant dense<0.000000e+00> : vector<80x128xf32>
    %131 = tpu.matmul %128, %130, %cst_196 {dimension_numbers = #tpu.dot_dimension_numbers<[1], [0], [0], [1], [0, 0, 1, 1], [], []>} : vector<80x8xbf16>, vector<8x128xbf16>, vector<80x128xf32> -> vector<80x128xf32>
    %132 = arith.addf %126, %131 : vector<80x128xf32>
    %c0_197 = arith.constant 0 : index
    %c0_198 = arith.constant 0 : index
    %c0_199 = arith.constant 0 : index
    %c0_200 = arith.constant 0 : index
    %c11_201 = arith.constant 11 : index
    %c0_202 = arith.constant 0 : index
    %133 = vector.load %arg4[%c0_197, %c0_198, %c0_199, %c0_200, %c11_201, %c0_202] : memref<1x1x1x1x102x8xbf16, #tpu.memory_space<vmem>>, vector<1x1x1x1x80x8xbf16>
    %134 = vector.shape_cast %133 : vector<1x1x1x1x80x8xbf16> to vector<80x8xbf16>
    %c22_203 = arith.constant 22 : index
    %c0_204 = arith.constant 0 : index
    %c0_205 = arith.constant 0 : index
    %135 = vector.load %arg5[%c22_203, %c0_204, %c0_205] : memref<27x8x128xbf16, #tpu.memory_space<vmem>>, vector<1x8x128xbf16>
    %136 = vector.shape_cast %135 : vector<1x8x128xbf16> to vector<8x128xbf16>
    %cst_206 = arith.constant dense<0.000000e+00> : vector<80x128xf32>
    %137 = tpu.matmul %134, %136, %cst_206 {dimension_numbers = #tpu.dot_dimension_numbers<[1], [0], [0], [1], [0, 0, 1, 1], [], []>} : vector<80x8xbf16>, vector<8x128xbf16>, vector<80x128xf32> -> vector<80x128xf32>
    %138 = arith.addf %132, %137 : vector<80x128xf32>
    %c0_207 = arith.constant 0 : index
    %c0_208 = arith.constant 0 : index
    %c0_209 = arith.constant 0 : index
    %c0_210 = arith.constant 0 : index
    %c12_211 = arith.constant 12 : index
    %c0_212 = arith.constant 0 : index
    %139 = vector.load %arg4[%c0_207, %c0_208, %c0_209, %c0_210, %c12_211, %c0_212] : memref<1x1x1x1x102x8xbf16, #tpu.memory_space<vmem>>, vector<1x1x1x1x80x8xbf16>
    %140 = vector.shape_cast %139 : vector<1x1x1x1x80x8xbf16> to vector<80x8xbf16>
    %c23 = arith.constant 23 : index
    %c0_213 = arith.constant 0 : index
    %c0_214 = arith.constant 0 : index
    %141 = vector.load %arg5[%c23, %c0_213, %c0_214] : memref<27x8x128xbf16, #tpu.memory_space<vmem>>, vector<1x8x128xbf16>
    %142 = vector.shape_cast %141 : vector<1x8x128xbf16> to vector<8x128xbf16>
    %cst_215 = arith.constant dense<0.000000e+00> : vector<80x128xf32>
    %143 = tpu.matmul %140, %142, %cst_215 {dimension_numbers = #tpu.dot_dimension_numbers<[1], [0], [0], [1], [0, 0, 1, 1], [], []>} : vector<80x8xbf16>, vector<8x128xbf16>, vector<80x128xf32> -> vector<80x128xf32>
    %144 = arith.addf %138, %143 : vector<80x128xf32>
    %c0_216 = arith.constant 0 : index
    %c0_217 = arith.constant 0 : index
    %c0_218 = arith.constant 0 : index
    %c0_219 = arith.constant 0 : index
    %c20_220 = arith.constant 20 : index
    %c0_221 = arith.constant 0 : index
    %145 = vector.load %arg4[%c0_216, %c0_217, %c0_218, %c0_219, %c20_220, %c0_221] : memref<1x1x1x1x102x8xbf16, #tpu.memory_space<vmem>>, vector<1x1x1x1x80x8xbf16>
    %146 = vector.shape_cast %145 : vector<1x1x1x1x80x8xbf16> to vector<80x8xbf16>
    %c24 = arith.constant 24 : index
    %c0_222 = arith.constant 0 : index
    %c0_223 = arith.constant 0 : index
    %147 = vector.load %arg5[%c24, %c0_222, %c0_223] : memref<27x8x128xbf16, #tpu.memory_space<vmem>>, vector<1x8x128xbf16>
    %148 = vector.shape_cast %147 : vector<1x8x128xbf16> to vector<8x128xbf16>
    %cst_224 = arith.constant dense<0.000000e+00> : vector<80x128xf32>
    %149 = tpu.matmul %146, %148, %cst_224 {dimension_numbers = #tpu.dot_dimension_numbers<[1], [0], [0], [1], [0, 0, 1, 1], [], []>} : vector<80x8xbf16>, vector<8x128xbf16>, vector<80x128xf32> -> vector<80x128xf32>
    %150 = arith.addf %144, %149 : vector<80x128xf32>
    %c0_225 = arith.constant 0 : index
    %c0_226 = arith.constant 0 : index
    %c0_227 = arith.constant 0 : index
    %c0_228 = arith.constant 0 : index
    %c21_229 = arith.constant 21 : index
    %c0_230 = arith.constant 0 : index
    %151 = vector.load %arg4[%c0_225, %c0_226, %c0_227, %c0_228, %c21_229, %c0_230] : memref<1x1x1x1x102x8xbf16, #tpu.memory_space<vmem>>, vector<1x1x1x1x80x8xbf16>
    %152 = vector.shape_cast %151 : vector<1x1x1x1x80x8xbf16> to vector<80x8xbf16>
    %c25 = arith.constant 25 : index
    %c0_231 = arith.constant 0 : index
    %c0_232 = arith.constant 0 : index
    %153 = vector.load %arg5[%c25, %c0_231, %c0_232] : memref<27x8x128xbf16, #tpu.memory_space<vmem>>, vector<1x8x128xbf16>
    %154 = vector.shape_cast %153 : vector<1x8x128xbf16> to vector<8x128xbf16>
    %cst_233 = arith.constant dense<0.000000e+00> : vector<80x128xf32>
    %155 = tpu.matmul %152, %154, %cst_233 {dimension_numbers = #tpu.dot_dimension_numbers<[1], [0], [0], [1], [0, 0, 1, 1], [], []>} : vector<80x8xbf16>, vector<8x128xbf16>, vector<80x128xf32> -> vector<80x128xf32>
    %156 = arith.addf %150, %155 : vector<80x128xf32>
    %c0_234 = arith.constant 0 : index
    %c0_235 = arith.constant 0 : index
    %c0_236 = arith.constant 0 : index
    %c0_237 = arith.constant 0 : index
    %c22_238 = arith.constant 22 : index
    %c0_239 = arith.constant 0 : index
    %157 = vector.load %arg4[%c0_234, %c0_235, %c0_236, %c0_237, %c22_238, %c0_239] : memref<1x1x1x1x102x8xbf16, #tpu.memory_space<vmem>>, vector<1x1x1x1x80x8xbf16>
    %158 = vector.shape_cast %157 : vector<1x1x1x1x80x8xbf16> to vector<80x8xbf16>
    %c26 = arith.constant 26 : index
    %c0_240 = arith.constant 0 : index
    %c0_241 = arith.constant 0 : index
    %159 = vector.load %arg5[%c26, %c0_240, %c0_241] : memref<27x8x128xbf16, #tpu.memory_space<vmem>>, vector<1x8x128xbf16>
    %160 = vector.shape_cast %159 : vector<1x8x128xbf16> to vector<8x128xbf16>
    %cst_242 = arith.constant dense<0.000000e+00> : vector<80x128xf32>
    %161 = tpu.matmul %158, %160, %cst_242 {dimension_numbers = #tpu.dot_dimension_numbers<[1], [0], [0], [1], [0, 0, 1, 1], [], []>} : vector<80x8xbf16>, vector<8x128xbf16>, vector<80x128xf32> -> vector<80x128xf32>
    %162 = arith.addf %156, %161 : vector<80x128xf32>
    %c0_243 = arith.constant 0 : index
    %c0_244 = arith.constant 0 : index
    %c0_245 = arith.constant 0 : index
    %c0_246 = arith.constant 0 : index
    %163 = vector.load %arg6[%c0_243, %c0_244, %c0_245, %c0_246] : memref<1x1x80x128xf32, #tpu.memory_space<vmem>>, vector<1x1x80x128xf32>
    %164 = vector.shape_cast %163 : vector<1x1x80x128xf32> to vector<80x128xf32>
    %165 = vector.shape_cast %162 : vector<80x128xf32> to vector<1x1x80x128xf32>
    tpu.vector_store %arg6[%c0_243, %c0_244, %c0_245, %c0_246], %165 {strides = array<i32>} : memref<1x1x80x128xf32, #tpu.memory_space<vmem>>, vector<1x1x80x128xf32>,
    %166 = tpu.iota {dimensions = array<i32: 0>} : vector<80x1xi32>
    %c10_i32 = arith.constant 10 : i32
    %c0_i32 = arith.constant 0 : i32
    %167 = arith.cmpi eq, %c10_i32, %c0_i32 : i32
    %c1_i32 = arith.constant 1 : i32
    %168 = arith.select %167, %c1_i32, %c10_i32 : i32
    %169 = vector.broadcast %168 : i32 to vector<80x1xi32>
    %170 = arith.remsi %166, %169 : vector<80x1xi32>
    %c0_i32_247 = arith.constant 0 : i32
    %171 = vector.broadcast %c0_i32_247 : i32 to vector<80x1xi32>
    %172 = arith.cmpi ne, %170, %171 : vector<80x1xi32>
    %c0_i32_248 = arith.constant 0 : i32
    %173 = vector.broadcast %c0_i32_248 : i32 to vector<80x1xi32>
    %174 = arith.cmpi slt, %170, %173 : vector<80x1xi32>
    %c0_i32_249 = arith.constant 0 : i32
    %175 = arith.cmpi slt, %168, %c0_i32_249 : i32
    %176 = vector.broadcast %175 : i1 to vector<80x1xi1>
    %177 = vector.broadcast %176 : vector<80x1xi1> to vector<80x1xi1>
    %178 = arith.xori %174, %177 : vector<80x1xi1>
    %179 = arith.andi %178, %172 : vector<80x1xi1>
    %180 = vector.broadcast %168 : i32 to vector<80x1xi32>
    %181 = arith.addi %170, %180 : vector<80x1xi32>
    %182 = arith.select %179, %181, %170 : vector<80x1xi1>, vector<80x1xi32>
    %c8_i32 = arith.constant 8 : i32
    %183 = vector.broadcast %c8_i32 : i32 to vector<80x1xi32>
    %184 = arith.cmpi slt, %182, %183 : vector<80x1xi32>
    %cst_250 = arith.constant 0.000000e+00 : f32
    %185 = vector.shape_cast %184 : vector<80x1xi1> to vector<80x1xi1>
    %186 = vector.broadcast %185 : vector<80x1xi1> to vector<80x128xi1>
    %187 = vector.broadcast %cst_250 : f32 to vector<80x128xf32>
    %188 = arith.select %186, %162, %187 : vector<80x128xi1>, vector<80x128xf32>
    %cst_251 = arith.constant dense<0.000000e+00> : vector<128xf32>
    %189 = vector.multi_reduction <add>, %188, %cst_251 [0] : vector<80x128xf32> to vector<128xf32>
    %190 = vector.shape_cast %189 : vector<128xf32> to vector<1x128xf32>
    %c0_252 = arith.constant 0 : index
    %c0_253 = arith.constant 0 : index
    %c0_254 = arith.constant 0 : index
    %c0_255 = arith.constant 0 : index
    %191 = vector.load %arg7[%c0_252, %c0_253, %c0_254, %c0_255] : memref<1x1x2x128xf32, #tpu.memory_space<vmem>>, vector<1x1x1x128xf32>
    %192 = vector.shape_cast %191 : vector<1x1x1x128xf32> to vector<1x128xf32>
    %193 = vector.shape_cast %190 : vector<1x128xf32> to vector<1x1x1x128xf32>
    tpu.vector_store %arg7[%c0_252, %c0_253, %c0_254, %c0_255], %193 {strides = array<i32>} : memref<1x1x2x128xf32, #tpu.memory_space<vmem>>, vector<1x1x1x128xf32>,
    %194 = arith.mulf %188, %188 : vector<80x128xf32>
    %cst_256 = arith.constant dense<0.000000e+00> : vector<128xf32>
    %195 = vector.multi_reduction <add>, %194, %cst_256 [0] : vector<80x128xf32> to vector<128xf32>
    %196 = vector.shape_cast %195 : vector<128xf32> to vector<1x128xf32>
    %c0_257 = arith.constant 0 : index
    %c0_258 = arith.constant 0 : index
    %c1_259 = arith.constant 1 : index
    %c0_260 = arith.constant 0 : index
    %197 = vector.load %arg7[%c0_257, %c0_258, %c1_259, %c0_260] : memref<1x1x2x128xf32, #tpu.memory_space<vmem>>, vector<1x1x1x128xf32>
    %198 = vector.shape_cast %197 : vector<1x1x1x128xf32> to vector<1x128xf32>
    %199 = vector.shape_cast %196 : vector<1x128xf32> to vector<1x1x1x128xf32>
    tpu.vector_store %arg7[%c0_257, %c0_258, %c1_259, %c0_260], %199 {strides = array<i32>} : memref<1x1x2x128xf32, #tpu.memory_space<vmem>>, vector<1x1x1x128xf32>,
    return
  }
  func.func @transform_0(%arg0: i32, %arg1: i32) -> (i32, i32, i32, i32, i32, i32) {
    %c1_i32 = arith.constant 1 : i32
    %0 = arith.muli %c1_i32, %arg1 : i32
    %c0_i32 = arith.constant 0 : i32
    %1 = arith.addi %0, %c0_i32 : i32
    %c0_i32_0 = arith.constant 0 : i32
    %c0_i32_1 = arith.constant 0 : i32
    %c0_i32_2 = arith.constant 0 : i32
    %c0_i32_3 = arith.constant 0 : i32
    %c0_i32_4 = arith.constant 0 : i32
    return %arg0, %1, %c0_i32_0, %c0_i32_1, %c0_i32_2, %c0_i32_3 : i32, i32, i32, i32, i32, i32
  }
  func.func @transform_1(%arg0: i32, %arg1: i32) -> (i32, i32, i32, i32, i32, i32) {
    %c1_i32 = arith.constant 1 : i32
    %0 = arith.muli %c1_i32, %arg1 : i32
    %c1_i32_0 = arith.constant 1 : i32
    %1 = arith.addi %0, %c1_i32_0 : i32
    %c0_i32 = arith.constant 0 : i32
    %c0_i32_1 = arith.constant 0 : i32
    %c0_i32_2 = arith.constant 0 : i32
    %c0_i32_3 = arith.constant 0 : i32
    %c0_i32_4 = arith.constant 0 : i32
    return %arg0, %1, %c0_i32, %c0_i32_1, %c0_i32_2, %c0_i32_3 : i32, i32, i32, i32, i32, i32
  }
  func.func @transform_2(%arg0: i32, %arg1: i32) -> (i32, i32, i32, i32, i32, i32) {
    %c1_i32 = arith.constant 1 : i32
    %0 = arith.muli %c1_i32, %arg1 : i32
    %c2_i32 = arith.constant 2 : i32
    %1 = arith.addi %0, %c2_i32 : i32
    %c0_i32 = arith.constant 0 : i32
    %c0_i32_0 = arith.constant 0 : i32
    %c0_i32_1 = arith.constant 0 : i32
    %c0_i32_2 = arith.constant 0 : i32
    %c0_i32_3 = arith.constant 0 : i32
    return %arg0, %1, %c0_i32, %c0_i32_0, %c0_i32_1, %c0_i32_2 : i32, i32, i32, i32, i32, i32
  }
  func.func @transform_3(%arg0: i32, %arg1: i32) -> (i32, i32, i32) {
    %c0_i32 = arith.constant 0 : i32
    %c0_i32_0 = arith.constant 0 : i32
    %c0_i32_1 = arith.constant 0 : i32
    %c0_i32_2 = arith.constant 0 : i32
    return %c0_i32, %c0_i32_0, %c0_i32_1 : i32, i32, i32
  }
  func.func @transform_4(%arg0: i32, %arg1: i32) -> (i32, i32, i32, i32) {
    %c0_i32 = arith.constant 0 : i32
    %c0_i32_0 = arith.constant 0 : i32
    %c0_i32_1 = arith.constant 0 : i32
    return %arg0, %arg1, %c0_i32, %c0_i32_0 : i32, i32, i32, i32
  }
  func.func @transform_5(%arg0: i32, %arg1: i32) -> (i32, i32, i32, i32) {
    %c0_i32 = arith.constant 0 : i32
    %c0_i32_0 = arith.constant 0 : i32
    %c0_i32_1 = arith.constant 0 : i32
    return %arg0, %arg1, %c0_i32, %c0_i32_0 : i32, i32, i32, i32
  }
}

module attributes {stable_mosaic.version = 11 : i64} {
  func.func @_bn_lrelu_kernel(%arg0: i32, %arg1: memref<640x128xf32, #tpu.memory_space<vmem>>, %arg2: memref<1x128xf32, #tpu.memory_space<vmem>>, %arg3: memref<1x128xf32, #tpu.memory_space<vmem>>, %arg4: memref<640x8xf32, #tpu.memory_space<vmem>>) attributes {dimension_semantics = [#tpu.dimension_semantics<parallel>], iteration_bounds = array<i64: 4>, scalar_prefetch = 0 : i64, scratch_operands = 0 : i64, tpu.core_type = #tpu.core_type<tc>, window_params = [{transform_indices = @transform_0, window_bounds = array<i64: 640, 128>}, {pipeline_mode = #tpu.pipeline_mode<synchronous>, transform_indices = @transform_1, window_bounds = array<i64: 1, 128>}, {pipeline_mode = #tpu.pipeline_mode<synchronous>, transform_indices = @transform_2, window_bounds = array<i64: 1, 128>}, {transform_indices = @transform_3, window_bounds = array<i64: 640, 8>}]} {
    %c0 = arith.constant 0 : index
    %c0_0 = arith.constant 0 : index
    %0 = vector.load %arg1[%c0, %c0_0] : memref<640x128xf32, #tpu.memory_space<vmem>>, vector<640x128xf32>
    %c0_1 = arith.constant 0 : index
    %c0_2 = arith.constant 0 : index
    %1 = vector.load %arg2[%c0_1, %c0_2] : memref<1x128xf32, #tpu.memory_space<vmem>>, vector<1x128xf32>
    %2 = vector.broadcast %1 : vector<1x128xf32> to vector<640x128xf32>
    %3 = arith.mulf %0, %2 : vector<640x128xf32>
    %c0_3 = arith.constant 0 : index
    %c0_4 = arith.constant 0 : index
    %4 = vector.load %arg3[%c0_3, %c0_4] : memref<1x128xf32, #tpu.memory_space<vmem>>, vector<1x128xf32>
    %5 = vector.broadcast %4 : vector<1x128xf32> to vector<640x128xf32>
    %6 = arith.addf %3, %5 : vector<640x128xf32>
    %cst = arith.constant 0.000000e+00 : f32
    %7 = vector.broadcast %cst : f32 to vector<640x128xf32>
    %8 = arith.cmpf oge, %6, %7 : vector<640x128xf32>
    %cst_5 = arith.constant 0.00999999977 : f32
    %9 = vector.broadcast %cst_5 : f32 to vector<640x128xf32>
    %10 = arith.mulf %9, %6 : vector<640x128xf32>
    %11 = arith.select %8, %6, %10 : vector<640x128xi1>, vector<640x128xf32>
    %12 = vector.extract_strided_slice %11 {offsets = [0, 0], sizes = [640, 8], strides = [1, 1]} : vector<640x128xf32> to vector<640x8xf32>
    %c0_6 = arith.constant 0 : index
    %c0_7 = arith.constant 0 : index
    %13 = vector.load %arg4[%c0_6, %c0_7] : memref<640x8xf32, #tpu.memory_space<vmem>>, vector<640x8xf32>
    tpu.vector_store %arg4[%c0_6, %c0_7], %12 {strides = array<i32>} : memref<640x8xf32, #tpu.memory_space<vmem>>, vector<640x8xf32>,
    return
  }
  func.func @transform_0(%arg0: i32) -> (i32, i32) {
    %c0_i32 = arith.constant 0 : i32
    %c0_i32_0 = arith.constant 0 : i32
    return %arg0, %c0_i32 : i32, i32
  }
  func.func @transform_1(%arg0: i32) -> (i32, i32) {
    %c0_i32 = arith.constant 0 : i32
    %c0_i32_0 = arith.constant 0 : i32
    %c0_i32_1 = arith.constant 0 : i32
    return %c0_i32, %c0_i32_0 : i32, i32
  }
  func.func @transform_2(%arg0: i32) -> (i32, i32) {
    %c0_i32 = arith.constant 0 : i32
    %c0_i32_0 = arith.constant 0 : i32
    %c0_i32_1 = arith.constant 0 : i32
    return %c0_i32, %c0_i32_0 : i32, i32
  }
  func.func @transform_3(%arg0: i32) -> (i32, i32) {
    %c0_i32 = arith.constant 0 : i32
    %c0_i32_0 = arith.constant 0 : i32
    return %arg0, %c0_i32 : i32, i32
  }
}

</mosaic_0001>

<bundles_post_ra>
// kernel: down_forward.5
= control target key start
LH: loop header
LB: loop body
LE: loop exit
PB: predicated region body
PF: predicated region fallthrough
CT: control target
= control target key end

     0   :  { %s966_s12 = smov 0   ;;  %s1490_s0 = inlined_call_operand.vmem [shape: f32[2304,128], index: 0, kind: input, shape index: {}]   ;;  %s1491_s1 = inlined_call_operand.vmem [shape: f32[1,128], index: 1, kind: input, shape index: {}]   ;;  %s1492_s2 = inlined_call_operand.vmem [shape: f32[1,128], index: 2, kind: input, shape index: {}]   ;;  %s1493_s3 = inlined_call_operand.vmem [shape: f32[2304,8], index: 3, kind: output, shape index: {}]  }
   0x1 LB: > { %s917_s13 = sadd.s32 4294967295, %s944_s12   ;;  %p921_p0 = scmp.ge.s32.totalorder %s944_s12, 1  ;;  %s944_s12 = sphi %s966_s12, %s13_s12  }
   0x2   : > { %p138_p1 = scmp.lt.s32.totalorder %s944_s12, 4 }
   0x4   : > { %p139_p2 = pnand %p921_p0, %p138_p1 }
   0x5   : > { %s162_s14 = smul.u32 (!%p139_p2), 96, %s917_s13  ;;  %v980_v0 = vld [vmem:[%s1491_s1] ss:$0 sm:$0xff] (!%p139_p2)  ;;  %vm764_vm0 = vcmask (!%p139_p2), 64512  }
   0x6   : > { %142 = sbr.rel (%p139_p2) target bundleno = 142 (0x8e), region = 32  ;;  %v990_v1 = vld [vmem:[%s1492_s2] ss:$0 sm:$0xff] (!%p139_p2) }
   0x7   : > { %p163_p3 = scmp.lt.s32.totalorder (!%p139_p2), %s162_s14, 287 }
   0xd   : > { %s1495_s14 = smov (!%p163_p3, %s162_s14), 287 }
   0xe   : > { %s922_s15 = sshll.u32 %s1495_s14, 3 }
   0xf   : > { %s985_s20 = scalar_lea.vmem %s1490_s0, %s922_s15  ;;  %s1018_s25 = scalar_lea.vmem %s1493_s3, %s922_s15 }
  0x10   : > { %v174_v2 = vld [vmem:[%s985_s20] sm:$0xff]  ;;  %v175_v3 = vld [vmem:[%s985_s20 + $0x8] sm:$0xff]  ;;  %v176_v4 = vld [vmem:[%s985_s20 + $0x10] sm:$0xff] }
  0x11   : > { %v277_v5 = vmul.f32 %v980_v0, %v174_v2  ;;  %v278_v6 = vmul.f32 %v980_v0, %v175_v3  ;;  %v279_v7 = vmul.f32 %v980_v0, %v176_v4  ;;  %v177_v8 = vld [vmem:[%s985_s20 + $0x18] sm:$0xff]  ;;  %v178_v9 = vld [vmem:[%s985_s20 + $0x20] sm:$0xff]  ;;  %v179_v10 = vld [vmem:[%s985_s20 + $0x28] sm:$0xff] }
  0x12   : > { %v280_v11 = vmul.f32 %v980_v0, %v177_v8  ;;  %v281_v12 = vmul.f32 %v980_v0, %v178_v9  ;;  %v282_v13 = vmul.f32 %v980_v0, %v179_v10  ;;  %v180_v14 = vld [vmem:[%s985_s20 + $0x30] sm:$0xff]  ;;  %v181_v15 = vld [vmem:[%s985_s20 + $0x38] sm:$0xff]  ;;  %v182_v24 = vld [vmem:[%s985_s20 + $0x40] sm:$0xff] }
  0x13   : > { %v380_v16 = vadd.f32 %v990_v1, %v277_v5  ;;  %v381_v17 = vadd.f32 %v990_v1, %v278_v6  ;;  %v382_v18 = vadd.f32 %v990_v1, %v279_v7  ;;  %v283_v19 = vmul.f32 %v980_v0, %v180_v14  ;;  %v183_v32 = vld [vmem:[%s985_s20 + $0x48] sm:$0xff]  ;;  %v184_v33 = vld [vmem:[%s985_s20 + $0x50] sm:$0xff]  ;;  %v185_v34 = vld [vmem:[%s985_s20 + $0x58] sm:$0xff] }
  0x14   : > { %v383_v20 = vadd.f32 %v990_v1, %v280_v11  ;;  %v384_v21 = vadd.f32 %v990_v1, %v281_v12  ;;  %v385_v22 = vadd.f32 %v990_v1, %v282_v13  ;;  %v284_v23 = vmul.f32 %v980_v0, %v181_v15  ;;  %v186_v46 = vld [vmem:[%s985_s20 + $0x60] sm:$0xff]  ;;  %v187_v47 = vld [vmem:[%s985_s20 + $0x68] sm:$0xff]  ;;  %v188_v58 = vld [vmem:[%s985_s20 + $0x70] sm:$0xff] }
  0x15   : > { %vm476_vm1 = vcmp.ge.f32.partialorder %v380_v16, 0.0  ;;  %v572_v25 = vmul.f32 0.01, %v380_v16  ;;  %vm477_vm2 = vcmp.ge.f32.partialorder %v381_v17, 0.0  ;;  %v573_v26 = vmul.f32 0.01, %v381_v17 }
  0x16   : > { %vm478_vm3 = vcmp.ge.f32.partialorder %v382_v18, 0.0  ;;  %v574_v27 = vmul.f32 0.01, %v382_v18  ;;  %vm479_vm4 = vcmp.ge.f32.partialorder %v383_v20, 0.0  ;;  %v575_v28 = vmul.f32 0.01, %v383_v20 }
  0x17   : > { %v668_v29 = vsel %vm476_vm1, %v380_v16, %v572_v25  ;;  %v669_v30 = vsel %vm477_vm2, %v381_v17, %v573_v26  ;;  %vm480_vm5 = vcmp.ge.f32.partialorder %v384_v21, 0.0  ;;  %v576_v31 = vmul.f32 0.01, %v384_v21  ;;  %v189_v59 = vld [vmem:[%s985_s20 + $0x78] sm:$0xff]  ;;  %v190_v6 = vld [vmem:[%s985_s20 + $0x80] sm:$0xff]  ;;  %v191_v7 = vld [vmem:[%s985_s20 + $0x88] sm:$0xff] }
  0x18   : > { %765 = vst.msk [vmem:[%s1018_s25] sm:$0xff] %vm764_vm0, %v668_v29  ;;  %766 = vst.msk [vmem:[%s1018_s25 + $0x8] sm:$0xff] %vm764_vm0, %v669_v30  ;;  %v670_v35 = vsel %vm478_vm3, %v382_v18, %v574_v27  ;;  %v671_v36 = vsel %vm479_vm4, %v383_v20, %v575_v28  ;;  %vm481_vm6 = vcmp.ge.f32.partialorder %v385_v22, 0.0  ;;  %v577_v37 = vmul.f32 0.01, %v385_v22  ;;  %v192_v12 = vld [vmem:[%s985_s20 + $0x90] sm:$0xff] }
  0x19   : > { %767 = vst.msk [vmem:[%s1018_s25 + $0x10] sm:$0xff] %vm764_vm0, %v670_v35  ;;  %768 = vst.msk [vmem:[%s1018_s25 + $0x18] sm:$0xff] %vm764_vm0, %v671_v36  ;;  %v672_v38 = vsel %vm480_vm5, %v384_v21, %v576_v31  ;;  %v386_v39 = vadd.f32 %v990_v1, %v283_v19  ;;  %v387_v40 = vadd.f32 %v990_v1, %v284_v23  ;;  %v193_v13 = vld [vmem:[%s985_s20 + $0x98] sm:$0xff]  ;;  %v195_v25 = vld [vmem:[%s985_s20 + $0xa8] sm:$0xff] }
  0x1a   : > { %v285_v41 = vmul.f32 %v980_v0, %v182_v24  ;;  %769 = vst.msk [vmem:[%s1018_s25 + $0x20] sm:$0xff] %vm764_vm0, %v672_v38  ;;  %v673_v42 = vsel %vm481_vm6, %v385_v22, %v577_v37  ;;  %v286_v43 = vmul.f32 %v980_v0, %v183_v32  ;;  %v287_v44 = vmul.f32 %v980_v0, %v184_v33  ;;  %v194_v24 = vld [vmem:[%s985_s20 + $0xa0] sm:$0xff]  ;;  %v196_v36 = vld [vmem:[%s985_s20 + $0xb0] sm:$0xff]  ;;  %v197_v37 = vld [vmem:[%s985_s20 + $0xb8] sm:$0xff] }
  0x1b   : > { %v288_v45 = vmul.f32 %v980_v0, %v185_v34  ;;  %770 = vst.msk [vmem:[%s1018_s25 + $0x28] sm:$0xff] %vm764_vm0, %v673_v42  ;;  %vm482_vm7 = vcmp.ge.f32.partialorder %v386_v39, 0.0  ;;  %v578_v48 = vmul.f32 0.01, %v386_v39  ;;  %vm483_vm8 = vcmp.ge.f32.partialorder %v387_v40, 0.0 }
  0x1c   : > { %v579_v49 = vmul.f32 0.01, %v387_v40  ;;  %v388_v50 = vadd.f32 %v990_v1, %v285_v41  ;;  %v389_v51 = vadd.f32 %v990_v1, %v286_v43  ;;  %v390_v52 = vadd.f32 %v990_v1, %v287_v44 }
  0x1d   : > { %v391_v53 = vadd.f32 %v990_v1, %v288_v45  ;;  %v674_v54 = vsel %vm482_vm7, %v386_v39, %v578_v48  ;;  %v289_v56 = vmul.f32 %v980_v0, %v186_v46  ;;  %v290_v57 = vmul.f32 %v980_v0, %v187_v47  ;;  %v198_v46 = vld [vmem:[%s985_s20 + $0xc0] sm:$0xff]  ;;  %v199_v47 = vld [vmem:[%s985_s20 + $0xc8] sm:$0xff] }
  0x1e   : > { %v675_v55 = vsel %vm483_vm8, %v387_v40, %v579_v49  ;;  %771 = vst.msk [vmem:[%s1018_s25 + $0x30] sm:$0xff] %vm764_vm0, %v674_v54  ;;  %vm484_vm9 = vcmp.ge.f32.partialorder %v388_v50, 0.0  ;;  %v580_v60 = vmul.f32 0.01, %v388_v50  ;;  %vm485_vm10 = vcmp.ge.f32.partialorder %v389_v51, 0.0 }
  0x1f   : > { %772 = vst.msk [vmem:[%s1018_s25 + $0x38] sm:$0xff] %vm764_vm0, %v675_v55  ;;  %v581_v61 = vmul.f32 0.01, %v389_v51  ;;  %vm486_vm11 = vcmp.ge.f32.partialorder %v390_v52, 0.0  ;;  %v582_v62 = vmul.f32 0.01, %v390_v52  ;;  %v392_v4 = vadd.f32 %v990_v1, %v289_v56 }
  0x20   : > { %vm487_vm12 = vcmp.ge.f32.partialorder %v391_v53, 0.0  ;;  %v583_v63 = vmul.f32 0.01, %v391_v53  ;;  %v676_v2 = vsel %vm484_vm9, %v388_v50, %v580_v60  ;;  %v393_v5 = vadd.f32 %v990_v1, %v290_v57 }
  0x21   : > { %v677_v3 = vsel %vm485_vm10, %v389_v51, %v581_v61  ;;  %773 = vst.msk [vmem:[%s1018_s25 + $0x40] sm:$0xff] %vm764_vm0, %v676_v2  ;;  %v678_v8 = vsel %vm486_vm11, %v390_v52, %v582_v62  ;;  %v291_v10 = vmul.f32 %v980_v0, %v188_v58  ;;  %v292_v11 = vmul.f32 %v980_v0, %v189_v59  ;;  %v200_v52 = vld [vmem:[%s985_s20 + $0xd0] sm:$0xff]  ;;  %v202_v2 = vld [vmem:[%s985_s20 + $0xe0] sm:$0xff] }
  0x22   : > { %774 = vst.msk [vmem:[%s1018_s25 + $0x48] sm:$0xff] %vm764_vm0, %v677_v3  ;;  %v679_v9 = vsel %vm487_vm12, %v391_v53, %v583_v63  ;;  %775 = vst.msk [vmem:[%s1018_s25 + $0x50] sm:$0xff] %vm764_vm0, %v678_v8  ;;  %vm488_vm13 = vcmp.ge.f32.partialorder %v392_v4, 0.0  ;;  %v584_v14 = vmul.f32 0.01, %v392_v4  ;;  %vm489_vm14 = vcmp.ge.f32.partialorder %v393_v5, 0.0 }
  0x23   : > { %776 = vst.msk [vmem:[%s1018_s25 + $0x58] sm:$0xff] %vm764_vm0, %v679_v9  ;;  %v585_v15 = vmul.f32 0.01, %v393_v5  ;;  %v394_v16 = vadd.f32 %v990_v1, %v291_v10  ;;  %v395_v17 = vadd.f32 %v990_v1, %v292_v11  ;;  %v293_v18 = vmul.f32 %v980_v0, %v190_v6  ;;  %v201_v53 = vld [vmem:[%s985_s20 + $0xd8] sm:$0xff]  ;;  %v203_v3 = vld [vmem:[%s985_s20 + $0xe8] sm:$0xff] }
  0x24   : > { %v294_v19 = vmul.f32 %v980_v0, %v191_v7  ;;  %v680_v20 = vsel %vm488_vm13, %v392_v4, %v584_v14  ;;  %v295_v22 = vmul.f32 %v980_v0, %v192_v12  ;;  %v296_v23 = vmul.f32 %v980_v0, %v193_v13  ;;  %v204_v14 = vld [vmem:[%s985_s20 + $0xf0] sm:$0xff] }
  0x25   : > { %v681_v21 = vsel %vm489_vm14, %v393_v5, %v585_v15  ;;  %777 = vst.msk [vmem:[%s1018_s25 + $0x60] sm:$0xff] %vm764_vm0, %v680_v20  ;;  %vm490_vm15 = vcmp.ge.f32.partialorder %v394_v16, 0.0  ;;  %v586_v26 = vmul.f32 0.01, %v394_v16  ;;  %vm491_vm1 = vcmp.ge.f32.partialorder %v395_v17, 0.0  ;;  %v205_v15 = vld [vmem:[%s985_s20 + $0xf8] sm:$0xff] }
  0x26   : > { %778 = vst.msk [vmem:[%s1018_s25 + $0x68] sm:$0xff] %vm764_vm0, %v681_v21  ;;  %v587_v27 = vmul.f32 0.01, %v395_v17  ;;  %v396_v28 = vadd.f32 %v990_v1, %v293_v18  ;;  %v397_v29 = vadd.f32 %v990_v1, %v294_v19  ;;  %v398_v30 = vadd.f32 %v990_v1, %v295_v22 }
  0x27   : > { %v399_v31 = vadd.f32 %v990_v1, %v296_v23  ;;  %v682_v32 = vsel %vm490_vm15, %v394_v16, %v586_v26  ;;  %v297_v34 = vmul.f32 %v980_v0, %v194_v24  ;;  %v298_v35 = vmul.f32 %v980_v0, %v195_v25  ;;  %v206_v24 = vld [vmem:[%s985_s20 + $0x100] sm:$0xff]  ;;  %v207_v25 = vld [vmem:[%s985_s20 + $0x108] sm:$0xff] }
  0x28   : > { %v683_v33 = vsel %vm491_vm1, %v395_v17, %v587_v27  ;;  %779 = vst.msk [vmem:[%s1018_s25 + $0x70] sm:$0xff] %vm764_vm0, %v682_v32  ;;  %vm492_vm2 = vcmp.ge.f32.partialorder %v396_v28, 0.0  ;;  %v588_v38 = vmul.f32 0.01, %v396_v28  ;;  %vm493_vm3 = vcmp.ge.f32.partialorder %v397_v29, 0.0 }
  0x29   : > { %780 = vst.msk [vmem:[%s1018_s25 + $0x78] sm:$0xff] %vm764_vm0, %v683_v33  ;;  %v589_v39 = vmul.f32 0.01, %v397_v29  ;;  %vm494_vm4 = vcmp.ge.f32.partialorder %v398_v30, 0.0  ;;  %v590_v40 = vmul.f32 0.01, %v398_v30  ;;  %v400_v44 = vadd.f32 %v990_v1, %v297_v34 }
  0x2a   : > { %vm495_vm5 = vcmp.ge.f32.partialorder %v399_v31, 0.0  ;;  %v591_v41 = vmul.f32 0.01, %v399_v31  ;;  %v684_v42 = vsel %vm492_vm2, %v396_v28, %v588_v38  ;;  %v401_v45 = vadd.f32 %v990_v1, %v298_v35 }
  0x2b   : > { %v685_v43 = vsel %vm493_vm3, %v397_v29, %v589_v39  ;;  %781 = vst.msk [vmem:[%s1018_s25 + $0x80] sm:$0xff] %vm764_vm0, %v684_v42  ;;  %v686_v48 = vsel %vm494_vm4, %v398_v30, %v590_v40  ;;  %v299_v50 = vmul.f32 %v980_v0, %v196_v36  ;;  %v300_v51 = vmul.f32 %v980_v0, %v197_v37  ;;  %v208_v30 = vld [vmem:[%s985_s20 + $0x110] sm:$0xff]  ;;  %v210_v42 = vld [vmem:[%s985_s20 + $0x120] sm:$0xff] }
  0x2c   : > { %782 = vst.msk [vmem:[%s1018_s25 + $0x88] sm:$0xff] %vm764_vm0, %v685_v43  ;;  %v687_v49 = vsel %vm495_vm5, %v399_v31, %v591_v41  ;;  %783 = vst.msk [vmem:[%s1018_s25 + $0x90] sm:$0xff] %vm764_vm0, %v686_v48  ;;  %vm496_vm6 = vcmp.ge.f32.partialorder %v400_v44, 0.0  ;;  %v592_v54 = vmul.f32 0.01, %v400_v44  ;;  %vm497_vm7 = vcmp.ge.f32.partialorder %v401_v45, 0.0 }
  0x2d   : > { %784 = vst.msk [vmem:[%s1018_s25 + $0x98] sm:$0xff] %vm764_vm0, %v687_v49  ;;  %v593_v55 = vmul.f32 0.01, %v401_v45  ;;  %v402_v56 = vadd.f32 %v990_v1, %v299_v50  ;;  %v403_v57 = vadd.f32 %v990_v1, %v300_v51  ;;  %v301_v58 = vmul.f32 %v980_v0, %v198_v46  ;;  %v209_v31 = vld [vmem:[%s985_s20 + $0x118] sm:$0xff]  ;;  %v211_v43 = vld [vmem:[%s985_s20 + $0x128] sm:$0xff] }
  0x2e   : > { %v302_v59 = vmul.f32 %v980_v0, %v199_v47  ;;  %v688_v60 = vsel %vm496_vm6, %v400_v44, %v592_v54  ;;  %v303_v62 = vmul.f32 %v980_v0, %v200_v52  ;;  %v304_v63 = vmul.f32 %v980_v0, %v201_v53  ;;  %v212_v54 = vld [vmem:[%s985_s20 + $0x130] sm:$0xff] }
  0x2f   : > { %v689_v61 = vsel %vm497_vm7, %v401_v45, %v593_v55  ;;  %785 = vst.msk [vmem:[%s1018_s25 + $0xa0] sm:$0xff] %vm764_vm0, %v688_v60  ;;  %vm498_vm8 = vcmp.ge.f32.partialorder %v402_v56, 0.0  ;;  %v594_v4 = vmul.f32 0.01, %v402_v56  ;;  %vm499_vm9 = vcmp.ge.f32.partialorder %v403_v57, 0.0  ;;  %v213_v55 = vld [vmem:[%s985_s20 + $0x138] sm:$0xff] }
  0x30   : > { %786 = vst.msk [vmem:[%s1018_s25 + $0xa8] sm:$0xff] %vm764_vm0, %v689_v61  ;;  %v595_v5 = vmul.f32 0.01, %v403_v57  ;;  %v404_v6 = vadd.f32 %v990_v1, %v301_v58  ;;  %v405_v7 = vadd.f32 %v990_v1, %v302_v59  ;;  %v406_v8 = vadd.f32 %v990_v1, %v303_v62 }
  0x31   : > { %v407_v9 = vadd.f32 %v990_v1, %v304_v63  ;;  %v690_v10 = vsel %vm498_vm8, %v402_v56, %v594_v4  ;;  %v305_v12 = vmul.f32 %v980_v0, %v202_v2  ;;  %v306_v13 = vmul.f32 %v980_v0, %v203_v3  ;;  %v214_v2 = vld [vmem:[%s985_s20 + $0x140] sm:$0xff]  ;;  %v215_v3 = vld [vmem:[%s985_s20 + $0x148] sm:$0xff] }
  0x32   : > { %v691_v11 = vsel %vm499_vm9, %v403_v57, %v595_v5  ;;  %787 = vst.msk [vmem:[%s1018_s25 + $0xb0] sm:$0xff] %vm764_vm0, %v690_v10  ;;  %vm500_vm10 = vcmp.ge.f32.partialorder %v404_v6, 0.0  ;;  %v596_v16 = vmul.f32 0.01, %v404_v6  ;;  %vm501_vm11 = vcmp.ge.f32.partialorder %v405_v7, 0.0 }
  0x33   : > { %788 = vst.msk [vmem:[%s1018_s25 + $0xb8] sm:$0xff] %vm764_vm0, %v691_v11  ;;  %v597_v17 = vmul.f32 0.01, %v405_v7  ;;  %vm502_vm12 = vcmp.ge.f32.partialorder %v406_v8, 0.0  ;;  %v598_v18 = vmul.f32 0.01, %v406_v8  ;;  %v408_v22 = vadd.f32 %v990_v1, %v305_v12 }
  0x34   : > { %vm503_vm13 = vcmp.ge.f32.partialorder %v407_v9, 0.0  ;;  %v599_v19 = vmul.f32 0.01, %v407_v9  ;;  %v692_v20 = vsel %vm500_vm10, %v404_v6, %v596_v16  ;;  %v409_v23 = vadd.f32 %v990_v1, %v306_v13 }
  0x35   : > { %v693_v21 = vsel %vm501_vm11, %v405_v7, %v597_v17  ;;  %789 = vst.msk [vmem:[%s1018_s25 + $0xc0] sm:$0xff] %vm764_vm0, %v692_v20  ;;  %v694_v26 = vsel %vm502_vm12, %v406_v8, %v598_v18  ;;  %v307_v28 = vmul.f32 %v980_v0, %v204_v14  ;;  %v308_v29 = vmul.f32 %v980_v0, %v205_v15  ;;  %v216_v8 = vld [vmem:[%s985_s20 + $0x150] sm:$0xff]  ;;  %v218_v20 = vld [vmem:[%s985_s20 + $0x160] sm:$0xff] }
  0x36   : > { %790 = vst.msk [vmem:[%s1018_s25 + $0xc8] sm:$0xff] %vm764_vm0, %v693_v21  ;;  %v695_v27 = vsel %vm503_vm13, %v407_v9, %v599_v19  ;;  %791 = vst.msk [vmem:[%s1018_s25 + $0xd0] sm:$0xff] %vm764_vm0, %v694_v26  ;;  %vm504_vm14 = vcmp.ge.f32.partialorder %v408_v22, 0.0  ;;  %v600_v32 = vmul.f32 0.01, %v408_v22  ;;  %vm505_vm15 = vcmp.ge.f32.partialorder %v409_v23, 0.0 }
  0x37   : > { %792 = vst.msk [vmem:[%s1018_s25 + $0xd8] sm:$0xff] %vm764_vm0, %v695_v27  ;;  %v601_v33 = vmul.f32 0.01, %v409_v23  ;;  %v410_v34 = vadd.f32 %v990_v1, %v307_v28  ;;  %v411_v35 = vadd.f32 %v990_v1, %v308_v29  ;;  %v309_v36 = vmul.f32 %v980_v0, %v206_v24  ;;  %v217_v9 = vld [vmem:[%s985_s20 + $0x158] sm:$0xff]  ;;  %v219_v21 = vld [vmem:[%s985_s20 + $0x168] sm:$0xff] }
  0x38   : > { %v310_v37 = vmul.f32 %v980_v0, %v207_v25  ;;  %v696_v38 = vsel %vm504_vm14, %v408_v22, %v600_v32  ;;  %v311_v40 = vmul.f32 %v980_v0, %v208_v30  ;;  %v312_v41 = vmul.f32 %v980_v0, %v209_v31  ;;  %v220_v32 = vld [vmem:[%s985_s20 + $0x170] sm:$0xff] }
  0x39   : > { %v697_v39 = vsel %vm505_vm15, %v409_v23, %v601_v33  ;;  %793 = vst.msk [vmem:[%s1018_s25 + $0xe0] sm:$0xff] %vm764_vm0, %v696_v38  ;;  %vm506_vm1 = vcmp.ge.f32.partialorder %v410_v34, 0.0  ;;  %v602_v44 = vmul.f32 0.01, %v410_v34  ;;  %vm507_vm2 = vcmp.ge.f32.partialorder %v411_v35, 0.0  ;;  %v221_v33 = vld [vmem:[%s985_s20 + $0x178] sm:$0xff] }
  0x3a   : > { %794 = vst.msk [vmem:[%s1018_s25 + $0xe8] sm:$0xff] %vm764_vm0, %v697_v39  ;;  %v603_v45 = vmul.f32 0.01, %v411_v35  ;;  %v412_v46 = vadd.f32 %v990_v1, %v309_v36  ;;  %v413_v47 = vadd.f32 %v990_v1, %v310_v37  ;;  %v414_v48 = vadd.f32 %v990_v1, %v311_v40 }
  0x3b   : > { %v415_v49 = vadd.f32 %v990_v1, %v312_v41  ;;  %v698_v50 = vsel %vm506_vm1, %v410_v34, %v602_v44  ;;  %v313_v52 = vmul.f32 %v980_v0, %v210_v42  ;;  %v314_v53 = vmul.f32 %v980_v0, %v211_v43  ;;  %v222_v42 = vld [vmem:[%s985_s20 + $0x180] sm:$0xff]  ;;  %v223_v43 = vld [vmem:[%s985_s20 + $0x188] sm:$0xff] }
  0x3c   : > { %v699_v51 = vsel %vm507_vm2, %v411_v35, %v603_v45  ;;  %795 = vst.msk [vmem:[%s1018_s25 + $0xf0] sm:$0xff] %vm764_vm0, %v698_v50  ;;  %vm508_vm3 = vcmp.ge.f32.partialorder %v412_v46, 0.0  ;;  %v604_v56 = vmul.f32 0.01, %v412_v46  ;;  %vm509_vm4 = vcmp.ge.f32.partialorder %v413_v47, 0.0 }
  0x3d   : > { %796 = vst.msk [vmem:[%s1018_s25 + $0xf8] sm:$0xff] %vm764_vm0, %v699_v51  ;;  %v605_v57 = vmul.f32 0.01, %v413_v47  ;;  %vm510_vm5 = vcmp.ge.f32.partialorder %v414_v48, 0.0  ;;  %v606_v58 = vmul.f32 0.01, %v414_v48  ;;  %v416_v62 = vadd.f32 %v990_v1, %v313_v52 }
  0x3e   : > { %vm511_vm6 = vcmp.ge.f32.partialorder %v415_v49, 0.0  ;;  %v607_v59 = vmul.f32 0.01, %v415_v49  ;;  %v700_v60 = vsel %vm508_vm3, %v412_v46, %v604_v56  ;;  %v417_v63 = vadd.f32 %v990_v1, %v314_v53 }
  0x3f   : > { %v701_v61 = vsel %vm509_vm4, %v413_v47, %v605_v57  ;;  %797 = vst.msk [vmem:[%s1018_s25 + $0x100] sm:$0xff] %vm764_vm0, %v700_v60  ;;  %v702_v4 = vsel %vm510_vm5, %v414_v48, %v606_v58  ;;  %v315_v6 = vmul.f32 %v980_v0, %v212_v54  ;;  %v316_v7 = vmul.f32 %v980_v0, %v213_v55  ;;  %v224_v48 = vld [vmem:[%s985_s20 + $0x190] sm:$0xff]  ;;  %v226_v60 = vld [vmem:[%s985_s20 + $0x1a0] sm:$0xff] }
  0x40   : > { %798 = vst.msk [vmem:[%s1018_s25 + $0x108] sm:$0xff] %vm764_vm0, %v701_v61  ;;  %v703_v5 = vsel %vm511_vm6, %v415_v49, %v607_v59  ;;  %799 = vst.msk [vmem:[%s1018_s25 + $0x110] sm:$0xff] %vm764_vm0, %v702_v4  ;;  %vm512_vm7 = vcmp.ge.f32.partialorder %v416_v62, 0.0  ;;  %v608_v10 = vmul.f32 0.01, %v416_v62  ;;  %vm513_vm8 = vcmp.ge.f32.partialorder %v417_v63, 0.0 }
  0x41   : > { %800 = vst.msk [vmem:[%s1018_s25 + $0x118] sm:$0xff] %vm764_vm0, %v703_v5  ;;  %v609_v11 = vmul.f32 0.01, %v417_v63  ;;  %v418_v12 = vadd.f32 %v990_v1, %v315_v6  ;;  %v419_v13 = vadd.f32 %v990_v1, %v316_v7  ;;  %v317_v14 = vmul.f32 %v980_v0, %v214_v2  ;;  %v225_v49 = vld [vmem:[%s985_s20 + $0x198] sm:$0xff]  ;;  %v227_v61 = vld [vmem:[%s985_s20 + $0x1a8] sm:$0xff] }
  0x42   : > { %v318_v15 = vmul.f32 %v980_v0, %v215_v3  ;;  %v704_v16 = vsel %vm512_vm7, %v416_v62, %v608_v10  ;;  %v319_v18 = vmul.f32 %v980_v0, %v216_v8  ;;  %v320_v19 = vmul.f32 %v980_v0, %v217_v9  ;;  %v228_v10 = vld [vmem:[%s985_s20 + $0x1b0] sm:$0xff] }
  0x43   : > { %v705_v17 = vsel %vm513_vm8, %v417_v63, %v609_v11  ;;  %801 = vst.msk [vmem:[%s1018_s25 + $0x120] sm:$0xff] %vm764_vm0, %v704_v16  ;;  %vm514_vm9 = vcmp.ge.f32.partialorder %v418_v12, 0.0  ;;  %v610_v22 = vmul.f32 0.01, %v418_v12  ;;  %vm515_vm10 = vcmp.ge.f32.partialorder %v419_v13, 0.0  ;;  %v229_v11 = vld [vmem:[%s985_s20 + $0x1b8] sm:$0xff] }
  0x44   : > { %802 = vst.msk [vmem:[%s1018_s25 + $0x128] sm:$0xff] %vm764_vm0, %v705_v17  ;;  %v611_v23 = vmul.f32 0.01, %v419_v13  ;;  %v420_v24 = vadd.f32 %v990_v1, %v317_v14  ;;  %v421_v25 = vadd.f32 %v990_v1, %v318_v15  ;;  %v422_v26 = vadd.f32 %v990_v1, %v319_v18 }
  0x45   : > { %v423_v27 = vadd.f32 %v990_v1, %v320_v19  ;;  %v706_v28 = vsel %vm514_vm9, %v418_v12, %v610_v22  ;;  %v321_v30 = vmul.f32 %v980_v0, %v218_v20  ;;  %v322_v31 = vmul.f32 %v980_v0, %v219_v21  ;;  %v230_v20 = vld [vmem:[%s985_s20 + $0x1c0] sm:$0xff]  ;;  %v231_v21 = vld [vmem:[%s985_s20 + $0x1c8] sm:$0xff] }
  0x46   : > { %v707_v29 = vsel %vm515_vm10, %v419_v13, %v611_v23  ;;  %803 = vst.msk [vmem:[%s1018_s25 + $0x130] sm:$0xff] %vm764_vm0, %v706_v28  ;;  %vm516_vm11 = vcmp.ge.f32.partialorder %v420_v24, 0.0  ;;  %v612_v34 = vmul.f32 0.01, %v420_v24  ;;  %vm517_vm12 = vcmp.ge.f32.partialorder %v421_v25, 0.0 }
  0x47   : > { %804 = vst.msk [vmem:[%s1018_s25 + $0x138] sm:$0xff] %vm764_vm0, %v707_v29  ;;  %v613_v35 = vmul.f32 0.01, %v421_v25  ;;  %vm518_vm13 = vcmp.ge.f32.partialorder %v422_v26, 0.0  ;;  %v614_v36 = vmul.f32 0.01, %v422_v26  ;;  %v424_v40 = vadd.f32 %v990_v1, %v321_v30 }
  0x48   : > { %vm519_vm14 = vcmp.ge.f32.partialorder %v423_v27, 0.0  ;;  %v615_v37 = vmul.f32 0.01, %v423_v27  ;;  %v708_v38 = vsel %vm516_vm11, %v420_v24, %v612_v34  ;;  %v425_v41 = vadd.f32 %v990_v1, %v322_v31 }
  0x49   : > { %v709_v39 = vsel %vm517_vm12, %v421_v25, %v613_v35  ;;  %805 = vst.msk [vmem:[%s1018_s25 + $0x140] sm:$0xff] %vm764_vm0, %v708_v38  ;;  %v710_v44 = vsel %vm518_vm13, %v422_v26, %v614_v36  ;;  %v323_v46 = vmul.f32 %v980_v0, %v220_v32  ;;  %v324_v47 = vmul.f32 %v980_v0, %v221_v33  ;;  %v232_v26 = vld [vmem:[%s985_s20 + $0x1d0] sm:$0xff]  ;;  %v234_v38 = vld [vmem:[%s985_s20 + $0x1e0] sm:$0xff] }
  0x4a   : > { %806 = vst.msk [vmem:[%s1018_s25 + $0x148] sm:$0xff] %vm764_vm0, %v709_v39  ;;  %v711_v45 = vsel %vm519_vm14, %v423_v27, %v615_v37  ;;  %807 = vst.msk [vmem:[%s1018_s25 + $0x150] sm:$0xff] %vm764_vm0, %v710_v44  ;;  %vm520_vm15 = vcmp.ge.f32.partialorder %v424_v40, 0.0  ;;  %v616_v50 = vmul.f32 0.01, %v424_v40  ;;  %vm521_vm1 = vcmp.ge.f32.partialorder %v425_v41, 0.0 }
  0x4b   : > { %808 = vst.msk [vmem:[%s1018_s25 + $0x158] sm:$0xff] %vm764_vm0, %v711_v45  ;;  %v617_v51 = vmul.f32 0.01, %v425_v41  ;;  %v426_v52 = vadd.f32 %v990_v1, %v323_v46  ;;  %v427_v53 = vadd.f32 %v990_v1, %v324_v47  ;;  %v325_v54 = vmul.f32 %v980_v0, %v222_v42  ;;  %v233_v27 = vld [vmem:[%s985_s20 + $0x1d8] sm:$0xff]  ;;  %v235_v39 = vld [vmem:[%s985_s20 + $0x1e8] sm:$0xff] }
  0x4c   : > { %v326_v55 = vmul.f32 %v980_v0, %v223_v43  ;;  %v712_v56 = vsel %vm520_vm15, %v424_v40, %v616_v50  ;;  %v327_v58 = vmul.f32 %v980_v0, %v224_v48  ;;  %v328_v59 = vmul.f32 %v980_v0, %v225_v49  ;;  %v236_v50 = vld [vmem:[%s985_s20 + $0x1f0] sm:$0xff] }
  0x4d   : > { %v713_v57 = vsel %vm521_vm1, %v425_v41, %v617_v51  ;;  %809 = vst.msk [vmem:[%s1018_s25 + $0x160] sm:$0xff] %vm764_vm0, %v712_v56  ;;  %vm522_vm2 = vcmp.ge.f32.partialorder %v426_v52, 0.0  ;;  %v618_v62 = vmul.f32 0.01, %v426_v52  ;;  %vm523_vm3 = vcmp.ge.f32.partialorder %v427_v53, 0.0  ;;  %v237_v51 = vld [vmem:[%s985_s20 + $0x1f8] sm:$0xff] }
  0x4e   : > { %810 = vst.msk [vmem:[%s1018_s25 + $0x168] sm:$0xff] %vm764_vm0, %v713_v57  ;;  %v619_v63 = vmul.f32 0.01, %v427_v53  ;;  %v428_v2 = vadd.f32 %v990_v1, %v325_v54  ;;  %v429_v3 = vadd.f32 %v990_v1, %v326_v55  ;;  %v430_v4 = vadd.f32 %v990_v1, %v327_v58 }
  0x4f   : > { %v431_v5 = vadd.f32 %v990_v1, %v328_v59  ;;  %v714_v6 = vsel %vm522_vm2, %v426_v52, %v618_v62  ;;  %v329_v8 = vmul.f32 %v980_v0, %v226_v60  ;;  %v330_v9 = vmul.f32 %v980_v0, %v227_v61  ;;  %v238_v60 = vld [vmem:[%s985_s20 + $0x200] sm:$0xff]  ;;  %v239_v61 = vld [vmem:[%s985_s20 + $0x208] sm:$0xff] }
  0x50   : > { %v715_v7 = vsel %vm523_vm3, %v427_v53, %v619_v63  ;;  %811 = vst.msk [vmem:[%s1018_s25 + $0x170] sm:$0xff] %vm764_vm0, %v714_v6  ;;  %vm524_vm4 = vcmp.ge.f32.partialorder %v428_v2, 0.0  ;;  %v620_v12 = vmul.f32 0.01, %v428_v2  ;;  %vm525_vm5 = vcmp.ge.f32.partialorder %v429_v3, 0.0 }
  0x51   : > { %812 = vst.msk [vmem:[%s1018_s25 + $0x178] sm:$0xff] %vm764_vm0, %v715_v7  ;;  %v621_v13 = vmul.f32 0.01, %v429_v3  ;;  %vm526_vm6 = vcmp.ge.f32.partialorder %v430_v4, 0.0  ;;  %v622_v14 = vmul.f32 0.01, %v430_v4  ;;  %v432_v18 = vadd.f32 %v990_v1, %v329_v8 }
  0x52   : > { %vm527_vm7 = vcmp.ge.f32.partialorder %v431_v5, 0.0  ;;  %v623_v15 = vmul.f32 0.01, %v431_v5  ;;  %v716_v16 = vsel %vm524_vm4, %v428_v2, %v620_v12  ;;  %v433_v19 = vadd.f32 %v990_v1, %v330_v9 }
  0x53   : > { %v717_v17 = vsel %vm525_vm5, %v429_v3, %v621_v13  ;;  %813 = vst.msk [vmem:[%s1018_s25 + $0x180] sm:$0xff] %vm764_vm0, %v716_v16  ;;  %v718_v22 = vsel %vm526_vm6, %v430_v4, %v622_v14  ;;  %v331_v24 = vmul.f32 %v980_v0, %v228_v10  ;;  %v332_v25 = vmul.f32 %v980_v0, %v229_v11  ;;  %v240_v4 = vld [vmem:[%s985_s20 + $0x210] sm:$0xff]  ;;  %v242_v16 = vld [vmem:[%s985_s20 + $0x220] sm:$0xff] }
  0x54   : > { %814 = vst.msk [vmem:[%s1018_s25 + $0x188] sm:$0xff] %vm764_vm0, %v717_v17  ;;  %v719_v23 = vsel %vm527_vm7, %v431_v5, %v623_v15  ;;  %815 = vst.msk [vmem:[%s1018_s25 + $0x190] sm:$0xff] %vm764_vm0, %v718_v22  ;;  %vm528_vm8 = vcmp.ge.f32.partialorder %v432_v18, 0.0  ;;  %v624_v28 = vmul.f32 0.01, %v432_v18  ;;  %vm529_vm9 = vcmp.ge.f32.partialorder %v433_v19, 0.0 }
  0x55   : > { %816 = vst.msk [vmem:[%s1018_s25 + $0x198] sm:$0xff] %vm764_vm0, %v719_v23  ;;  %v625_v29 = vmul.f32 0.01, %v433_v19  ;;  %v434_v30 = vadd.f32 %v990_v1, %v331_v24  ;;  %v435_v31 = vadd.f32 %v990_v1, %v332_v25  ;;  %v333_v32 = vmul.f32 %v980_v0, %v230_v20  ;;  %v241_v5 = vld [vmem:[%s985_s20 + $0x218] sm:$0xff]  ;;  %v243_v17 = vld [vmem:[%s985_s20 + $0x228] sm:$0xff] }
  0x56   : > { %v334_v33 = vmul.f32 %v980_v0, %v231_v21  ;;  %v720_v34 = vsel %vm528_vm8, %v432_v18, %v624_v28  ;;  %v335_v36 = vmul.f32 %v980_v0, %v232_v26  ;;  %v336_v37 = vmul.f32 %v980_v0, %v233_v27  ;;  %v244_v28 = vld [vmem:[%s985_s20 + $0x230] sm:$0xff] }
  0x57   : > { %v721_v35 = vsel %vm529_vm9, %v433_v19, %v625_v29  ;;  %817 = vst.msk [vmem:[%s1018_s25 + $0x1a0] sm:$0xff] %vm764_vm0, %v720_v34  ;;  %vm530_vm10 = vcmp.ge.f32.partialorder %v434_v30, 0.0  ;;  %v626_v40 = vmul.f32 0.01, %v434_v30  ;;  %vm531_vm11 = vcmp.ge.f32.partialorder %v435_v31, 0.0  ;;  %v245_v29 = vld [vmem:[%s985_s20 + $0x238] sm:$0xff] }
  0x58   : > { %818 = vst.msk [vmem:[%s1018_s25 + $0x1a8] sm:$0xff] %vm764_vm0, %v721_v35  ;;  %v627_v41 = vmul.f32 0.01, %v435_v31  ;;  %v436_v42 = vadd.f32 %v990_v1, %v333_v32  ;;  %v437_v43 = vadd.f32 %v990_v1, %v334_v33  ;;  %v438_v44 = vadd.f32 %v990_v1, %v335_v36 }
  0x59   : > { %v439_v45 = vadd.f32 %v990_v1, %v336_v37  ;;  %v722_v46 = vsel %vm530_vm10, %v434_v30, %v626_v40  ;;  %v337_v48 = vmul.f32 %v980_v0, %v234_v38  ;;  %v338_v49 = vmul.f32 %v980_v0, %v235_v39  ;;  %v246_v38 = vld [vmem:[%s985_s20 + $0x240] sm:$0xff]  ;;  %v247_v39 = vld [vmem:[%s985_s20 + $0x248] sm:$0xff] }
  0x5a   : > { %v723_v47 = vsel %vm531_vm11, %v435_v31, %v627_v41  ;;  %819 = vst.msk [vmem:[%s1018_s25 + $0x1b0] sm:$0xff] %vm764_vm0, %v722_v46  ;;  %vm532_vm12 = vcmp.ge.f32.partialorder %v436_v42, 0.0  ;;  %v628_v52 = vmul.f32 0.01, %v436_v42  ;;  %vm533_vm13 = vcmp.ge.f32.partialorder %v437_v43, 0.0 }
  0x5b   : > { %820 = vst.msk [vmem:[%s1018_s25 + $0x1b8] sm:$0xff] %vm764_vm0, %v723_v47  ;;  %v629_v53 = vmul.f32 0.01, %v437_v43  ;;  %vm534_vm14 = vcmp.ge.f32.partialorder %v438_v44, 0.0  ;;  %v630_v54 = vmul.f32 0.01, %v438_v44  ;;  %v440_v58 = vadd.f32 %v990_v1, %v337_v48 }
  0x5c   : > { %vm535_vm15 = vcmp.ge.f32.partialorder %v439_v45, 0.0  ;;  %v631_v55 = vmul.f32 0.01, %v439_v45  ;;  %v724_v56 = vsel %vm532_vm12, %v436_v42, %v628_v52  ;;  %v441_v59 = vadd.f32 %v990_v1, %v338_v49 }
  0x5d   : > { %v725_v57 = vsel %vm533_vm13, %v437_v43, %v629_v53  ;;  %821 = vst.msk [vmem:[%s1018_s25 + $0x1c0] sm:$0xff] %vm764_vm0, %v724_v56  ;;  %v726_v62 = vsel %vm534_vm14, %v438_v44, %v630_v54  ;;  %v339_v2 = vmul.f32 %v980_v0, %v236_v50  ;;  %v340_v3 = vmul.f32 %v980_v0, %v237_v51  ;;  %v248_v44 = vld [vmem:[%s985_s20 + $0x250] sm:$0xff]  ;;  %v250_v56 = vld [vmem:[%s985_s20 + $0x260] sm:$0xff] }
  0x5e   : > { %822 = vst.msk [vmem:[%s1018_s25 + $0x1c8] sm:$0xff] %vm764_vm0, %v725_v57  ;;  %v727_v63 = vsel %vm535_vm15, %v439_v45, %v631_v55  ;;  %823 = vst.msk [vmem:[%s1018_s25 + $0x1d0] sm:$0xff] %vm764_vm0, %v726_v62  ;;  %vm536_vm1 = vcmp.ge.f32.partialorder %v440_v58, 0.0  ;;  %v632_v6 = vmul.f32 0.01, %v440_v58  ;;  %vm537_vm2 = vcmp.ge.f32.partialorder %v441_v59, 0.0 }
  0x5f   : > { %824 = vst.msk [vmem:[%s1018_s25 + $0x1d8] sm:$0xff] %vm764_vm0, %v727_v63  ;;  %v633_v7 = vmul.f32 0.01, %v441_v59  ;;  %v442_v8 = vadd.f32 %v990_v1, %v339_v2  ;;  %v443_v9 = vadd.f32 %v990_v1, %v340_v3  ;;  %v341_v10 = vmul.f32 %v980_v0, %v238_v60  ;;  %v249_v45 = vld [vmem:[%s985_s20 + $0x258] sm:$0xff]  ;;  %v251_v57 = vld [vmem:[%s985_s20 + $0x268] sm:$0xff] }
  0x60   : > { %v342_v11 = vmul.f32 %v980_v0, %v239_v61  ;;  %v728_v12 = vsel %vm536_vm1, %v440_v58, %v632_v6  ;;  %v343_v14 = vmul.f32 %v980_v0, %v240_v4  ;;  %v344_v15 = vmul.f32 %v980_v0, %v241_v5  ;;  %v1375_v3 = vld [vmem:[%s1491_s1] ss:$0 sm:$0xff]  ;;  %v252_v6 = vld [vmem:[%s985_s20 + $0x270] sm:$0xff] }
  0x61   : > { %v729_v13 = vsel %vm537_vm2, %v441_v59, %v633_v7  ;;  %825 = vst.msk [vmem:[%s1018_s25 + $0x1e0] sm:$0xff] %vm764_vm0, %v728_v12  ;;  %vm538_vm3 = vcmp.ge.f32.partialorder %v442_v8, 0.0  ;;  %v634_v18 = vmul.f32 0.01, %v442_v8  ;;  %vm539_vm4 = vcmp.ge.f32.partialorder %v443_v9, 0.0  ;;  %v253_v7 = vld [vmem:[%s985_s20 + $0x278] sm:$0xff] }
  0x62   : > { %826 = vst.msk [vmem:[%s1018_s25 + $0x1e8] sm:$0xff] %vm764_vm0, %v729_v13  ;;  %v635_v19 = vmul.f32 0.01, %v443_v9  ;;  %v444_v20 = vadd.f32 %v990_v1, %v341_v10  ;;  %v445_v21 = vadd.f32 %v990_v1, %v342_v11  ;;  %v446_v22 = vadd.f32 %v990_v1, %v343_v14  ;;  %v1366_v59 = vld [vmem:[%s1492_s2] ss:$0 sm:$0xff] }
  0x63   : > { %v447_v23 = vadd.f32 %v990_v1, %v344_v15  ;;  %v730_v24 = vsel %vm538_vm3, %v442_v8, %v634_v18  ;;  %v345_v26 = vmul.f32 %v980_v0, %v242_v16  ;;  %v346_v27 = vmul.f32 %v980_v0, %v243_v17  ;;  %v254_v16 = vld [vmem:[%s985_s20 + $0x280] sm:$0xff]  ;;  %v255_v17 = vld [vmem:[%s985_s20 + $0x288] sm:$0xff] }
  0x64   : > { %v731_v25 = vsel %vm539_vm4, %v443_v9, %v635_v19  ;;  %827 = vst.msk [vmem:[%s1018_s25 + $0x1f0] sm:$0xff] %vm764_vm0, %v730_v24  ;;  %vm540_vm5 = vcmp.ge.f32.partialorder %v444_v20, 0.0  ;;  %v636_v30 = vmul.f32 0.01, %v444_v20  ;;  %vm541_vm6 = vcmp.ge.f32.partialorder %v445_v21, 0.0 }
  0x65   : > { %828 = vst.msk [vmem:[%s1018_s25 + $0x1f8] sm:$0xff] %vm764_vm0, %v731_v25  ;;  %v637_v31 = vmul.f32 0.01, %v445_v21  ;;  %vm542_vm7 = vcmp.ge.f32.partialorder %v446_v22, 0.0  ;;  %v638_v32 = vmul.f32 0.01, %v446_v22  ;;  %v448_v36 = vadd.f32 %v990_v1, %v345_v26 }
  0x66   : > { %vm543_vm8 = vcmp.ge.f32.partialorder %v447_v23, 0.0  ;;  %v639_v33 = vmul.f32 0.01, %v447_v23  ;;  %v732_v34 = vsel %vm540_vm5, %v444_v20, %v636_v30  ;;  %v449_v37 = vadd.f32 %v990_v1, %v346_v27 }
  0x67   : > { %v733_v35 = vsel %vm541_vm6, %v445_v21, %v637_v31  ;;  %829 = vst.msk [vmem:[%s1018_s25 + $0x200] sm:$0xff] %vm764_vm0, %v732_v34  ;;  %v734_v40 = vsel %vm542_vm7, %v446_v22, %v638_v32  ;;  %v347_v42 = vmul.f32 %v980_v0, %v244_v28  ;;  %v348_v43 = vmul.f32 %v980_v0, %v245_v29  ;;  %v256_v22 = vld [vmem:[%s985_s20 + $0x290] sm:$0xff]  ;;  %v258_v34 = vld [vmem:[%s985_s20 + $0x2a0] sm:$0xff] }
  0x68   : > { %830 = vst.msk [vmem:[%s1018_s25 + $0x208] sm:$0xff] %vm764_vm0, %v733_v35  ;;  %v735_v41 = vsel %vm543_vm8, %v447_v23, %v639_v33  ;;  %831 = vst.msk [vmem:[%s1018_s25 + $0x210] sm:$0xff] %vm764_vm0, %v734_v40  ;;  %vm544_vm9 = vcmp.ge.f32.partialorder %v448_v36, 0.0  ;;  %v640_v46 = vmul.f32 0.01, %v448_v36  ;;  %vm545_vm10 = vcmp.ge.f32.partialorder %v449_v37, 0.0 }
  0x69   : > { %832 = vst.msk [vmem:[%s1018_s25 + $0x218] sm:$0xff] %vm764_vm0, %v735_v41  ;;  %v641_v47 = vmul.f32 0.01, %v449_v37  ;;  %v450_v48 = vadd.f32 %v990_v1, %v347_v42  ;;  %v451_v49 = vadd.f32 %v990_v1, %v348_v43  ;;  %v349_v50 = vmul.f32 %v980_v0, %v246_v38  ;;  %v257_v23 = vld [vmem:[%s985_s20 + $0x298] sm:$0xff]  ;;  %v259_v35 = vld [vmem:[%s985_s20 + $0x2a8] sm:$0xff] }
  0x6a   : > { %v350_v51 = vmul.f32 %v980_v0, %v247_v39  ;;  %v736_v52 = vsel %vm544_vm9, %v448_v36, %v640_v46  ;;  %v351_v54 = vmul.f32 %v980_v0, %v248_v44  ;;  %v352_v55 = vmul.f32 %v980_v0, %v249_v45  ;;  %v260_v46 = vld [vmem:[%s985_s20 + $0x2b0] sm:$0xff] }
  0x6b   : > { %v737_v53 = vsel %vm545_vm10, %v449_v37, %v641_v47  ;;  %833 = vst.msk [vmem:[%s1018_s25 + $0x220] sm:$0xff] %vm764_vm0, %v736_v52  ;;  %vm546_vm11 = vcmp.ge.f32.partialorder %v450_v48, 0.0  ;;  %v642_v1 = vmul.f32 0.01, %v450_v48  ;;  %vm547_vm12 = vcmp.ge.f32.partialorder %v451_v49, 0.0  ;;  %v261_v47 = vld [vmem:[%s985_s20 + $0x2b8] sm:$0xff] }
  0x6c   : > { %834 = vst.msk [vmem:[%s1018_s25 + $0x228] sm:$0xff] %vm764_vm0, %v737_v53  ;;  %v643_v58 = vmul.f32 0.01, %v451_v49  ;;  %v452_v0 = vadd.f32 %v1366_v59, %v349_v50  ;;  %v453_v60 = vadd.f32 %v1366_v59, %v350_v51  ;;  %v454_v61 = vadd.f32 %v1366_v59, %v351_v54 }
  0x6d   : > { %v455_v62 = vadd.f32 %v1366_v59, %v352_v55  ;;  %v738_v63 = vsel %vm546_vm11, %v450_v48, %v642_v1  ;;  %v353_v4 = vmul.f32 %v1375_v3, %v250_v56  ;;  %v354_v5 = vmul.f32 %v1375_v3, %v251_v57  ;;  %v262_v56 = vld [vmem:[%s985_s20 + $0x2c0] sm:$0xff]  ;;  %v263_v57 = vld [vmem:[%s985_s20 + $0x2c8] sm:$0xff] }
  0x6e   : > { %v739_v2 = vsel %vm547_vm12, %v451_v49, %v643_v58  ;;  %835 = vst.msk [vmem:[%s1018_s25 + $0x230] sm:$0xff] %vm764_vm0, %v738_v63  ;;  %vm548_vm13 = vcmp.ge.f32.partialorder %v452_v0, 0.0  ;;  %v644_v8 = vmul.f32 0.01, %v452_v0  ;;  %vm549_vm14 = vcmp.ge.f32.partialorder %v453_v60, 0.0 }
  0x6f   : > { %836 = vst.msk [vmem:[%s1018_s25 + $0x238] sm:$0xff] %vm764_vm0, %v739_v2  ;;  %v645_v9 = vmul.f32 0.01, %v453_v60  ;;  %vm550_vm15 = vcmp.ge.f32.partialorder %v454_v61, 0.0  ;;  %v646_v10 = vmul.f32 0.01, %v454_v61  ;;  %v456_v14 = vadd.f32 %v1366_v59, %v353_v4 }
  0x70   : > { %vm551_vm1 = vcmp.ge.f32.partialorder %v455_v62, 0.0  ;;  %v647_v11 = vmul.f32 0.01, %v455_v62  ;;  %v740_v12 = vsel %vm548_vm13, %v452_v0, %v644_v8  ;;  %v457_v15 = vadd.f32 %v1366_v59, %v354_v5 }
  0x71   : > { %v741_v13 = vsel %vm549_vm14, %v453_v60, %v645_v9  ;;  %837 = vst.msk [vmem:[%s1018_s25 + $0x240] sm:$0xff] %vm764_vm0, %v740_v12  ;;  %v742_v18 = vsel %vm550_vm15, %v454_v61, %v646_v10  ;;  %v355_v20 = vmul.f32 %v1375_v3, %v252_v6  ;;  %v356_v21 = vmul.f32 %v1375_v3, %v253_v7  ;;  %v264_v61 = vld [vmem:[%s985_s20 + $0x2d0] sm:$0xff]  ;;  %v266_v12 = vld [vmem:[%s985_s20 + $0x2e0] sm:$0xff] }
  0x72   : > { %838 = vst.msk [vmem:[%s1018_s25 + $0x248] sm:$0xff] %vm764_vm0, %v741_v13  ;;  %v743_v19 = vsel %vm551_vm1, %v455_v62, %v647_v11  ;;  %839 = vst.msk [vmem:[%s1018_s25 + $0x250] sm:$0xff] %vm764_vm0, %v742_v18  ;;  %vm552_vm2 = vcmp.ge.f32.partialorder %v456_v14, 0.0  ;;  %v648_v24 = vmul.f32 0.01, %v456_v14  ;;  %vm553_vm3 = vcmp.ge.f32.partialorder %v457_v15, 0.0 }
  0x73   : > { %840 = vst.msk [vmem:[%s1018_s25 + $0x258] sm:$0xff] %vm764_vm0, %v743_v19  ;;  %v649_v25 = vmul.f32 0.01, %v457_v15  ;;  %v458_v26 = vadd.f32 %v1366_v59, %v355_v20  ;;  %v459_v27 = vadd.f32 %v1366_v59, %v356_v21  ;;  %v357_v28 = vmul.f32 %v1375_v3, %v254_v16  ;;  %v265_v62 = vld [vmem:[%s985_s20 + $0x2d8] sm:$0xff]  ;;  %v267_v13 = vld [vmem:[%s985_s20 + $0x2e8] sm:$0xff] }
  0x74   : > { %v358_v29 = vmul.f32 %v1375_v3, %v255_v17  ;;  %v744_v30 = vsel %vm552_vm2, %v456_v14, %v648_v24  ;;  %v359_v32 = vmul.f32 %v1375_v3, %v256_v22  ;;  %v360_v33 = vmul.f32 %v1375_v3, %v257_v23  ;;  %v268_v24 = vld [vmem:[%s985_s20 + $0x2f0] sm:$0xff] }
  0x75   : > { %v745_v31 = vsel %vm553_vm3, %v457_v15, %v649_v25  ;;  %841 = vst.msk [vmem:[%s1018_s25 + $0x260] sm:$0xff] %vm764_vm0, %v744_v30  ;;  %vm554_vm4 = vcmp.ge.f32.partialorder %v458_v26, 0.0  ;;  %v650_v36 = vmul.f32 0.01, %v458_v26  ;;  %vm555_vm5 = vcmp.ge.f32.partialorder %v459_v27, 0.0  ;;  %v269_v25 = vld [vmem:[%s985_s20 + $0x2f8] sm:$0xff] }
  0x76   : > { %842 = vst.msk [vmem:[%s1018_s25 + $0x268] sm:$0xff] %vm764_vm0, %v745_v31  ;;  %v651_v37 = vmul.f32 0.01, %v459_v27  ;;  %v460_v38 = vadd.f32 %v1366_v59, %v357_v28  ;;  %v461_v39 = vadd.f32 %v1366_v59, %v358_v29  ;;  %v462_v40 = vadd.f32 %v1366_v59, %v359_v32 }
  0x77   : > { %v463_v41 = vadd.f32 %v1366_v59, %v360_v33  ;;  %v746_v42 = vsel %vm554_vm4, %v458_v26, %v650_v36  ;;  %v361_v44 = vmul.f32 %v1375_v3, %v258_v34  ;;  %v362_v45 = vmul.f32 %v1375_v3, %v259_v35 }
  0x78   : > { %v747_v43 = vsel %vm555_vm5, %v459_v27, %v651_v37  ;;  %843 = vst.msk [vmem:[%s1018_s25 + $0x270] sm:$0xff] %vm764_vm0, %v746_v42  ;;  %vm556_vm6 = vcmp.ge.f32.partialorder %v460_v38, 0.0  ;;  %v652_v48 = vmul.f32 0.01, %v460_v38  ;;  %vm557_vm7 = vcmp.ge.f32.partialorder %v461_v39, 0.0 }
  0x79   : > { %844 = vst.msk [vmem:[%s1018_s25 + $0x278] sm:$0xff] %vm764_vm0, %v747_v43  ;;  %v653_v49 = vmul.f32 0.01, %v461_v39  ;;  %vm558_vm8 = vcmp.ge.f32.partialorder %v462_v40, 0.0  ;;  %v654_v50 = vmul.f32 0.01, %v462_v40  ;;  %v464_v54 = vadd.f32 %v1366_v59, %v361_v44 }
  0x7a   : > { %vm559_vm9 = vcmp.ge.f32.partialorder %v463_v41, 0.0  ;;  %v655_v51 = vmul.f32 0.01, %v463_v41  ;;  %v748_v52 = vsel %vm556_vm6, %v460_v38, %v652_v48  ;;  %v465_v55 = vadd.f32 %v1366_v59, %v362_v45 }
  0x7b   : > { %v749_v53 = vsel %vm557_vm7, %v461_v39, %v653_v49  ;;  %845 = vst.msk [vmem:[%s1018_s25 + $0x280] sm:$0xff] %vm764_vm0, %v748_v52  ;;  %v750_v1 = vsel %vm558_vm8, %v462_v40, %v654_v50  ;;  %v363_v0 = vmul.f32 %v1375_v3, %v260_v46  ;;  %v364_v60 = vmul.f32 %v1375_v3, %v261_v47 }
  0x7c   : > { %846 = vst.msk [vmem:[%s1018_s25 + $0x288] sm:$0xff] %vm764_vm0, %v749_v53  ;;  %v751_v58 = vsel %vm559_vm9, %v463_v41, %v655_v51  ;;  %847 = vst.msk [vmem:[%s1018_s25 + $0x290] sm:$0xff] %vm764_vm0, %v750_v1  ;;  %vm560_vm10 = vcmp.ge.f32.partialorder %v464_v54, 0.0  ;;  %v656_v63 = vmul.f32 0.01, %v464_v54  ;;  %vm561_vm11 = vcmp.ge.f32.partialorder %v465_v55, 0.0 }
  0x7d   : > { %848 = vst.msk [vmem:[%s1018_s25 + $0x298] sm:$0xff] %vm764_vm0, %v751_v58  ;;  %v657_v2 = vmul.f32 0.01, %v465_v55  ;;  %v466_v4 = vadd.f32 %v1366_v59, %v363_v0  ;;  %v467_v5 = vadd.f32 %v1366_v59, %v364_v60  ;;  %v365_v6 = vmul.f32 %v1375_v3, %v262_v56 }
  0x7e   : > { %v366_v7 = vmul.f32 %v1375_v3, %v263_v57  ;;  %v752_v8 = vsel %vm560_vm10, %v464_v54, %v656_v63  ;;  %v367_v10 = vmul.f32 %v1375_v3, %v264_v61  ;;  %v368_v11 = vmul.f32 %v1375_v3, %v265_v62 }
  0x7f   : > { %v753_v9 = vsel %vm561_vm11, %v465_v55, %v657_v2  ;;  %849 = vst.msk [vmem:[%s1018_s25 + $0x2a0] sm:$0xff] %vm764_vm0, %v752_v8  ;;  %vm562_vm12 = vcmp.ge.f32.partialorder %v466_v4, 0.0  ;;  %v658_v14 = vmul.f32 0.01, %v466_v4  ;;  %vm563_vm13 = vcmp.ge.f32.partialorder %v467_v5, 0.0 }
  0x80   : > { %850 = vst.msk [vmem:[%s1018_s25 + $0x2a8] sm:$0xff] %vm764_vm0, %v753_v9  ;;  %v659_v15 = vmul.f32 0.01, %v467_v5  ;;  %v468_v16 = vadd.f32 %v1366_v59, %v365_v6  ;;  %v469_v17 = vadd.f32 %v1366_v59, %v366_v7  ;;  %v470_v18 = vadd.f32 %v1366_v59, %v367_v10 }
  0x81   : > { %v471_v19 = vadd.f32 %v1366_v59, %v368_v11  ;;  %v754_v20 = vsel %vm562_vm12, %v466_v4, %v658_v14  ;;  %v369_v22 = vmul.f32 %v1375_v3, %v266_v12  ;;  %v370_v23 = vmul.f32 %v1375_v3, %v267_v13 }
  0x82   : > { %v755_v21 = vsel %vm563_vm13, %v467_v5, %v659_v15  ;;  %851 = vst.msk [vmem:[%s1018_s25 + $0x2b0] sm:$0xff] %vm764_vm0, %v754_v20  ;;  %vm564_vm14 = vcmp.ge.f32.partialorder %v468_v16, 0.0  ;;  %v660_v26 = vmul.f32 0.01, %v468_v16  ;;  %vm565_vm15 = vcmp.ge.f32.partialorder %v469_v17, 0.0 }
  0x83   : > { %852 = vst.msk [vmem:[%s1018_s25 + $0x2b8] sm:$0xff] %vm764_vm0, %v755_v21  ;;  %v661_v27 = vmul.f32 0.01, %v469_v17  ;;  %vm566_vm1 = vcmp.ge.f32.partialorder %v470_v18, 0.0  ;;  %v662_v28 = vmul.f32 0.01, %v470_v18  ;;  %v472_v32 = vadd.f32 %v1366_v59, %v369_v22 }
  0x84   : > { %vm567_vm2 = vcmp.ge.f32.partialorder %v471_v19, 0.0  ;;  %v663_v29 = vmul.f32 0.01, %v471_v19  ;;  %v756_v30 = vsel %vm564_vm14, %v468_v16, %v660_v26  ;;  %v473_v33 = vadd.f32 %v1366_v59, %v370_v23 }
  0x85   : > { %v757_v31 = vsel %vm565_vm15, %v469_v17, %v661_v27  ;;  %853 = vst.msk [vmem:[%s1018_s25 + $0x2c0] sm:$0xff] %vm764_vm0, %v756_v30  ;;  %v758_v34 = vsel %vm566_vm1, %v470_v18, %v662_v28  ;;  %v371_v36 = vmul.f32 %v1375_v3, %v268_v24  ;;  %v372_v37 = vmul.f32 %v1375_v3, %v269_v25 }
  0x86   : > { %854 = vst.msk [vmem:[%s1018_s25 + $0x2c8] sm:$0xff] %vm764_vm0, %v757_v31  ;;  %v759_v35 = vsel %vm567_vm2, %v471_v19, %v663_v29  ;;  %855 = vst.msk [vmem:[%s1018_s25 + $0x2d0] sm:$0xff] %vm764_vm0, %v758_v34  ;;  %vm568_vm3 = vcmp.ge.f32.partialorder %v472_v32, 0.0  ;;  %v664_v38 = vmul.f32 0.01, %v472_v32  ;;  %vm569_vm4 = vcmp.ge.f32.partialorder %v473_v33, 0.0 }
  0x87   : > { %856 = vst.msk [vmem:[%s1018_s25 + $0x2d8] sm:$0xff] %vm764_vm0, %v759_v35  ;;  %v665_v39 = vmul.f32 0.01, %v473_v33  ;;  %v474_v40 = vadd.f32 %v1366_v59, %v371_v36  ;;  %v475_v41 = vadd.f32 %v1366_v59, %v372_v37 }
  0x88   : > { %v760_v42 = vsel %vm568_vm3, %v472_v32, %v664_v38 }
  0x89   : > { %v761_v43 = vsel %vm569_vm4, %v473_v33, %v665_v39  ;;  %857 = vst.msk [vmem:[%s1018_s25 + $0x2e0] sm:$0xff] %vm764_vm0, %v760_v42  ;;  %vm570_vm5 = vcmp.ge.f32.partialorder %v474_v40, 0.0  ;;  %v666_v3 = vmul.f32 0.01, %v474_v40  ;;  %vm571_vm6 = vcmp.ge.f32.partialorder %v475_v41, 0.0 }
  0x8a   : > { %858 = vst.msk [vmem:[%s1018_s25 + $0x2e8] sm:$0xff] %vm764_vm0, %v761_v43  ;;  %v667_v44 = vmul.f32 0.01, %v475_v41 }
  0x8b   : > { %v762_v45 = vsel %vm570_vm5, %v474_v40, %v666_v3 }
  0x8c   : > { %v763_v46 = vsel %vm571_vm6, %v475_v41, %v667_v44  ;;  %859 = vst.msk [vmem:[%s1018_s25 + $0x2f0] sm:$0xff] %vm764_vm0, %v762_v45 }
  0x8d   : > { %860 = vst.msk [vmem:[%s1018_s25 + $0x2f8] sm:$0xff] %vm764_vm0, %v763_v46 }
  0x8e PF: > { %s13_s12 = sadd.s32 1, %s944_s12  }
  0x8f   : > { %p10_p4 = scmp.ge.s32.totalorder %s13_s12, 5  }
  0x91   :  { %12 = sbr.rel (!%p10_p4) target bundleno = 1 (0x1), region = 62 }

// kernel: down_forward.4
= control target key start
LH: loop header
LB: loop body
LE: loop exit
PB: predicated region body
PF: predicated region fallthrough
CT: control target
= control target key end

     0   :  { %s6785_s18 = smov 0   ;;  %s6787_s19 = smov 0   ;;  %s7848_s0 = inlined_call_operand.vmem [shape: bf16[2,18,2,2,83,4], index: 0, kind: input, shape index: {}, may-alias: {0,1,2}]   ;;  %s7849_s1 = inlined_call_operand.vmem [shape: bf16[2,18,2,2,83,4], index: 1, kind: input, shape index: {}, may-alias: {0,1,2}]   ;;  %s7850_s2 = inlined_call_operand.vmem [shape: bf16[2,18,2,2,83,4], index: 2, kind: input, shape index: {}, may-alias: {0,1,2}]   ;;  %s7851_s3 = inlined_call_operand.vmem [shape: bf16[27,4,128], index: 3, kind: input, shape index: {}]   ;;  %s7852_s4 = inlined_call_operand.vmem [shape: f32[2,16,72,128], index: 4, kind: output, shape index: {0}]   ;;  %s7853_s5 = inlined_call_operand.vmem [shape: f32[2,16,2,128], index: 5, kind: output, shape index: {1}]  }
   0x1   :  { %s6789_s20 = smov 0   ;;  %s6791_s21 = smov 0  }
   0x2   :  { %s6793_s22 = smov 0  }
   0x3 LB: > { %s25_s23 = sadd.s32 1, %s6743_s20  ;;  %s28_s24 = sadd.s32 1, %s6747_s21  ;;  %s6751_s22 = sphi %s6793_s22, %s16_s22   ;;  %s6747_s21 = sphi %s6791_s21, %s7873_s21   ;;  %s6743_s20 = sphi %s6789_s20, %s7872_s20   ;;  %s6739_s19 = sphi %s6787_s19, %s7871_s19   ;;  %s6735_s18 = sphi %s6785_s18, %s7870_s18  }
   0x4   : > { %p26_p0 = scmp.ge.s32.totalorder %s25_s23, 16  ;;  %p4823_p1 = scmp.ge.s32.totalorder %s6751_s22, 1 }
   0x5   : > { %p252_p2 = scmp.lt.s32.totalorder %s6751_s22, 33 }
   0x6   : > { %s7875_s23 = smov (%p26_p0, %s25_s23), 0  ;;  %s7877_s24 = smov (!%p26_p0, %s28_s24), %s6747_s21 }
   0x7   : > { %p253_p3 = pnand %p4823_p1, %p252_p2  ;;  %p30_p4 = scmp.ge.s32.totalorder %s7877_s24, 2 }
   0x8   : > { %v4839_v0 = vld [vmem:[%s7851_s3 + $0x2] sm:$0x3] (!%p253_p3)  ;;  %vm426_vm0 = vcmask (!%p253_p3), 1041408   ;;  %v5042_v1 = vld [vmem:[%s7851_s3 + $0x1a] sm:$0x3] (!%p253_p3)  ;;  %v6753_v2 = vmov (!%p253_p3), 0.0  }
   0x9   : > { %s7879_s24 = smov (%p30_p4, %s7877_s24), 0  ;;  %256 = sbr.rel (%p253_p3) target bundleno = 795 (0x31b), region = 36 }
   0xa   : > { %5419 = vmatprep.subr.bf16.mxu1 (!%p253_p3), %v6753_v2  ;;  %5705 = vmatprep.subr.bf16.mxu0 (!%p253_p3), %v6753_v2  ;;  %v428_v3 = vsel (!%p253_p3), %vm426_vm0, %v4839_v0, 0  ;;  %v6827_v4 = vsel (!%p253_p3), %vm426_vm0, %v5042_v1, 0  ;;  %p316_p5 = scmp.lt.s32.totalorder (!%p253_p3), %s6739_s19, 1  ;;  %p318_p6 = scmp.lt.s32.totalorder (!%p253_p3), %s6735_s18, 17  ;;  %vm6754_vm1 = vmmov (!%p253_p3), 0   ;;  %vm410_vm2 = vcmask (!%p253_p3), 31744  }
   0xb   : > { %5420 = vmatpush3.bf16.msra.mxu1 (!%p253_p3), %v428_v3  ;;  %5706 = vmatpush3.bf16.msra.mxu0 (!%p253_p3), %v6827_v4  ;;  %s325_s7 = sadd.s32 (!%p253_p3), 1, %s6735_s18  ;;  %v374_v5 = vld [vmem:[%s7851_s3] sm:$0x3] (!%p253_p3)  ;;  %v5063_v8 = vld [vmem:[%s7851_s3 + $0x1c] sm:$0x3] (!%p253_p3)  ;;  %vm1590_vm4 = vcmask (!%p253_p3), 1046528  }
   0xc   : > { %5421 = vmatprep.mubr.msk.bf16.mxu1 (!%p253_p3), %vm6754_vm1, %v6753_v2  ;;  %5707 = vmatprep.mubr.msk.bf16.mxu0 (!%p253_p3), %vm6754_vm1, %v6753_v2  ;;  %p328_p7 = scmp.lt.s32.totalorder (!%p253_p3), %s325_s7, 17  ;;  %v541_v7 = vsel (!%p253_p3), %vm426_vm0, %v374_v5, 0  ;;  %v2501_v11 = vsel (!%p253_p3), %vm426_vm0, %v5063_v8, 0  ;;  %vm652_vm3 = vsmask.f32 (!%p253_p3), 7424  ;;  %p349_p9 = scmp.lt.s32.totalorder (!%p253_p3), %s6735_s18, 15 }
   0xd   : > { %5727 = vmatprep.subr.bf16.mxu0 (!%p253_p3), %v6753_v2  ;;  %5441 = vmatprep.subr.bf16.mxu1 (!%p253_p3), %v6753_v2  ;;  %v5074_v25 = vld [vmem:[%s7851_s3 + $0x1e] sm:$0x3] (!%p253_p3)  ;;  %v4860_v34 = vld [vmem:[%s7851_s3 + $0x4] sm:$0x3] (!%p253_p3)  ;;  %v5095_v37 = vld [vmem:[%s7851_s3 + $0x20] sm:$0x3] (!%p253_p3) }
   0xe   : > { %v2676_v30 = vsel (!%p253_p3), %vm426_vm0, %v5074_v25, 0  ;;  %v708_v36 = vsel (!%p253_p3), %vm426_vm0, %v4860_v34, 0  ;;  %v6927_v43 = vsel (!%p253_p3), %vm426_vm0, %v5095_v37, 0 }
  0x10   : > { %s7881_s19 = smov (!%p316_p5, %s6739_s19), 1  ;;  %s7883_s7 = smov (!%p328_p7, %s325_s7), 17 }
  0x11   : > { %s319_s29 = scalar_select %p318_p6, %s6735_s18, 17 }
  0x12   : > { %s6841_s30 = smul.u32 792, %s7881_s19  ;;  %s4828_s16 = sshll.u32 %s7881_s19, 4 }
  0x13   : > { %s6524_s6 = smul.u32 44, %s319_s29 }
  0x14   : > { %s6526_s15 = smul.u32 44, %s7883_s7 }
  0x15   : > { %s322_s8 = sadd.s32 %s6841_s30, %s6524_s6  ;;  %s336_s6 = sadd.s32 2, %s6735_s18 }
  0x16   : > { %s4824_s11 = sshll.u32 %s322_s8, 2  ;;  %s332_s25 = sadd.s32 %s6526_s15, %s6841_s30 }
  0x17   : > { %s6851_s14 = scalar_lea.vmem %s7848_s0, %s4824_s11  ;;  %s4825_s26 = sshll.u32 %s332_s25, 2 }
  0x18   : > { %v6590_v6 = vld [vmem:[%s6851_s14 + $0x2c] sm:$0xff]   ;;  %v6592_v9 = vld [vmem:[%s6851_s14 + $0x34] sm:$0xff]   ;;  %s6867_s29 = scalar_lea.vmem %s7849_s1, %s4825_s26  ;;  %v6594_v12 = vld [vmem:[%s6851_s14 + $0x3c] sm:$0xff]   ;;  %p339_p8 = scmp.lt.s32.totalorder %s336_s6, 17 }
  0x19   : > { %5422 = vmatmul.mubr.msk.bf16.vlgmr.msra.gmra.mrb[0].mxu1 %vm410_vm2, %v6590_v6  ;;  %v6591_v10 = vld [vmem:[%s6867_s29 + $0x84] sm:$0xff]   ;;  %v6593_v13 = vld [vmem:[%s6867_s29 + $0x8c] sm:$0xff]   ;;  %v6597_v14 = vld [vmem:[%s6867_s29 + $0x58] sm:$0xff]   ;;  %s7887_s18 = smov (!%p349_p9, %s6735_s18), 15 }
  0x1a   : > { %5425 = vmatprep.mubr.msk.bf16.mxu1 %vm6754_vm1, %v6753_v2  ;;  %5442 = vmatpush3.bf16.msra.mxu1 %v541_v7  ;;  %v6598_v15 = vld [vmem:[%s6867_s29 + $0x60] sm:$0xff]   ;;  %v2449_v16 = vshll.u32 %v6597_v14, 16  ;;  %v6595_v18 = vld [vmem:[%s6867_s29 + $0x94] sm:$0xff]   ;;  %v2447_v19 = vshrl.u32 %v6597_v14, 16  ;;  %v6600_v24 = vld [vmem:[%s6867_s29 + $0x68] sm:$0xff]   ;;  %s7885_s6 = smov (!%p339_p8, %s336_s6), 17  ;;  %s361_s17 = sadd.s32 %s4828_s16, %s7887_s18 }
  0x1b   : > { %5463 = vmatprep.subr.bf16.mxu1 %v6753_v2  ;;  %5708 = vmatmul.mubr.msk.bf16.vlgmr.msra.gmra.mrb[0].mxu0 %vm410_vm2, %v6591_v10  ;;  %v6596_v17 = vld [vmem:[%s6851_s14 + $0x44] sm:$0xff]   ;;  %v2454_v21 = vshll.u32 %v6598_v15, 16  ;;  %v6599_v26 = vld [vmem:[%s6851_s14 + $0x4c] ss:$0 sps:$4 sm:$0xff]   ;;  %v2458_v28 = vshrl.u32 %v6598_v15, 16  ;;  %v2462_v29 = vshll.u32 %v6600_v24, 16 }
  0x1c   : > { %5728 = vmatpush3.bf16.msra.mxu0 %v2501_v11  ;;  %5711 = vmatprep.mubr.msk.bf16.mxu0 %vm6754_vm1, %v6753_v2  ;;  %v2451_v20 = vrot.slane %v2449_v16, 1  ;;  %v6602_v33 = vld [vmem:[%s6867_s29 + $0x70] sm:$0xff]   ;;  %v6601_v35 = vld [vmem:[%s6851_s14] sm:$0xff]   ;;  %v2466_v39 = vshrl.u32 %v6600_v24, 16  ;;  %s6527_s13 = smul.u32 44, %s7885_s6  ;;  %v6603_v53 = vld [vmem:[%s6851_s14 + $0x8] sm:$0xff]  }
  0x1d   : > { %5749 = vmatprep.subr.bf16.mxu0 %v6753_v2  ;;  %v2456_v23 = vrot.slane %v2454_v21, 1  ;;  %v2464_v32 = vrot.slane %v2462_v29, 1  ;;  %v2470_v40 = vshll.u32 %v6602_v33, 16  ;;  %v6604_v41 = vld [vmem:[%s6867_s29 + $0x78] sm:$0x1f]   ;;  %v6923_v42 = vld [vmem:[%s6867_s29 + $0xc] sm:$0xff]  }
  0x1e   : > { %v2452_v22 = vor.u32 %v2451_v20, %v2447_v19  ;;  %v6930_v44 = vld [vmem:[%s6867_s29 + $0x14] sm:$0xff]   ;;  %v2584_v45 = vld [vmem:[%s6867_s29 + $0x4] sm:$0xf]  ;;  %v2585_v46 = vld [vmem:[%s6867_s29 + $0x8] sm:$0xf]  ;;  %v2941_v51 = vrot.slane %v6923_v42, 1  ;;  %s6946_s15 = sadd.s32 %s6527_s13, %s6841_s30 }
  0x1f   : > { %v2460_v31 = vor.u32 %v2458_v28, %v2456_v23  ;;  %v2468_v47 = vor.u32 %v2466_v39, %v2464_v32  ;;  %v2472_v48 = vrot.slane %v2470_v40, 1  ;;  %v6940_v49 = vld [vmem:[%s6867_s29 + $0x1c] sm:$0xff]   ;;  %v2934_v50 = vld [vmem:[%s6867_s29 + $0x4] sm:$0xe]  ;;  %v2943_v52 = vrot.slane %v6930_v44, 1  ;;  %s4826_s30 = sshll.u32 %s6946_s15, 2 }
  0x20   : > { %v2457_v27 = vsel %vm652_vm3, %v2452_v22, %v2456_v23  ;;  %v6951_v54 = vld [vmem:[%s6867_s29 + $0x24] sm:$0x1f]   ;;  %v5107_v55 = vcombine.low %v2934_v50, %v2585_v46  ;;  %v2478_v56 = vshll.u32 %v6604_v41, 16  ;;  %v2945_v58 = vrot.slane %v6940_v49, 1  ;;  %v6605_v10 = vld [vmem:[%s6851_s14 + $0x10] sm:$0xff]   ;;  %v6606_v15 = vld [vmem:[%s6851_s14 + $0x18] sm:$0xff]   ;;  %s6991_s25 = scalar_lea.vmem %s7850_s2, %s4826_s30 }
  0x21   : > { %5426 = vmatmul.mubr.msk.bf16.gmra.mrb[4].mxu1 %vm410_vm2, %v6592_v9  ;;  %v2465_v38 = vsel %vm652_vm3, %v2460_v31, %v2464_v32  ;;  %v6954_v57 = vsel %vm1590_vm4, %v2941_v51, %v2943_v52  ;;  %v5075_v59 = vcombine.low %v2584_v45, %v2585_v46  ;;  %v2947_v61 = vrot.slane %v6951_v54, 1  ;;  %v6611_v11 = vld [vmem:[%s6851_s14] sm:$0xff]   ;;  %v6614_v31 = vld [vmem:[%s6851_s14 + $0x10] sm:$0xff]   ;;  %s4829_s26 = sshll.u32 %s361_s17, 1 }
  0x22   : > { %5429 = vmatprep.mubr.msk.bf16.mxu1 %vm6754_vm1, %v6753_v2  ;;  %v2940_v60 = vrot.slane %v5107_v55, 1  ;;  %v2473_v62 = vsel %vm652_vm3, %v2468_v47, %v2472_v48  ;;  %v2474_v63 = vshrl.u32 %v6602_v33, 16  ;;  %v6961_v0 = vsel %vm1590_vm4, %v2943_v52, %v2945_v58  ;;  %v6609_v23 = vld [vmem:[%s6851_s14 + $0x20] ss:$0 sps:$4 sm:$0xff]   ;;  %v4880_v28 = vld [vmem:[%s7851_s3 + $0x6] sm:$0x3]  ;;  %s363_s6 = scalar_lea.vmem %s7853_s5, %s4829_s26 }
  0x23   : > { %5712 = vmatmul.mubr.msk.bf16.gmra.mrb[4].mxu0 %vm410_vm2, %v6593_v13  ;;  %v2482_v1 = vshrl.u32 %v6604_v41, 16  ;;  %v2629_v3 = vshll.u32 %v6923_v42, 16  ;;  %v6970_v6 = vsel %vm1590_vm4, %v2945_v58, %v2947_v61  ;;  %v2480_v7 = vrot.slane %v2478_v56, 1 }
  0x24   : > { %5715 = vmatprep.mubr.msk.bf16.mxu0 %vm6754_vm1, %v6753_v2  ;;  %v6965_v5 = vsel %vm1590_vm4, %v2940_v60, %v2941_v51  ;;  %v2624_v8 = vshll.u32 %v5075_v59, 16  ;;  %v2476_v9 = vor.u32 %v2474_v63, %v2472_v48  ;;  %v2622_v13 = vshrl.u32 %v5075_v59, 16  ;;  %v6618_v63 = vld [vmem:[%s6867_s29 + $0x30] sm:$0xff]  }
  0x25   : > { %v2631_v14 = vrot.slane %v2629_v3, 1  ;;  %v2484_v19 = vor.u32 %v2482_v1, %v2480_v7  ;;  %v2633_v20 = vshrl.u32 %v6923_v42, 16  ;;  %v2637_v21 = vshll.u32 %v6930_v44, 16 }
  0x26   : > { %v2626_v16 = vrot.slane %v2624_v8, 1  ;;  %v654_v24 = vshrl.u32 %v6611_v11, 16  ;;  %v842_v34 = vsel %vm426_vm0, %v4880_v28, 0  ;;  %v669_v39 = vshll.u32 %v6614_v31, 16  ;;  %v6622_v28 = vld [vmem:[%s6867_s29 + $0x48] sm:$0xff]  }
  0x27   : > { %v2635_v32 = vor.u32 %v2633_v20, %v2631_v14  ;;  %v2639_v33 = vrot.slane %v2637_v21, 1  ;;  %v2649_v46 = vshrl.u32 %v6940_v49, 16  ;;  %v673_v47 = vshrl.u32 %v6614_v31, 16  ;;  %v5106_v20 = vld [vmem:[%s7851_s3 + $0x22] sm:$0x3] }
  0x28   : > { %v2627_v22 = vor.u32 %v2626_v16, %v2622_v13  ;;  %v671_v42 = vrot.slane %v669_v39, 1  ;;  %v2653_v50 = vshll.u32 %v6951_v54, 16  ;;  %v2657_v3 = vshrl.u32 %v6951_v54, 16 }
  0x29   : > { %5430 = vmatmul.mubr.msk.bf16.gmra.mrb[8].mxu1 %vm410_vm2, %v6594_v12  ;;  %v2481_v12 = vsel %vm652_vm3, %v2476_v9, %v2480_v7  ;;  %v2640_v40 = vsel %vm652_vm3, %v2635_v32, %v2639_v33  ;;  %v6619_v9 = vld [vmem:[%s6867_s29 + $0x38] sm:$0xff]  }
  0x2a   : > { %5433 = vmatprep.mubr.msk.bf16.mxu1 %vm6754_vm1, %v6753_v2  ;;  %v2655_v58 = vrot.slane %v2653_v50, 1  ;;  %v5113_v50 = vld [vmem:[%s7851_s3 + $0x24] sm:$0x3] }
  0x2b   : > { %5716 = vmatmul.mubr.msk.bf16.gmra.mrb[8].mxu0 %vm410_vm2, %v6595_v18  ;;  %v6612_v18 = vld [vmem:[%s6851_s14 + $0x8] sm:$0xff]  }
  0x2c   : > { %5729 = vmatprep.mubr.msk.bf16.mxu0 %vm6754_vm1, %v6753_v2 }
  0x31   : > { %5434 = vmatmul.mubr.msk.bf16.gmra.mrb[12].mxu1 %vm410_vm2, %v6596_v17  ;;  %v656_v17 = vshll.u32 %v6611_v11, 16  ;;  %v2797_v11 = vshrl.u32 %v6618_v63, 16 }
  0x32   : > { %5437 = vmatprep.mubr.msk.bf16.mxu1 %vm6754_vm1, %v6753_v2 }
  0x33   : > { %5730 = vmatmul.mubr.msk.bf16.vlgmr.msra.gmra.mrb[0].mxu0 %vm410_vm2, %v2457_v27  ;;  %v658_v25 = vrot.slane %v656_v17, 1  ;;  %v2632_v27 = vsel %vm652_vm3, %v2627_v22, %v2631_v14 }
  0x34   : > { %5750 = vmatpush3.bf16.msra.mxu0 %v2676_v30  ;;  %5733 = vmatprep.mubr.msk.bf16.mxu0 %vm6754_vm1, %v6753_v2 }
  0x35   : > { %5771 = vmatprep.subr.bf16.mxu0 %v6753_v2  ;;  %v659_v29 = vor.u32 %v658_v25, %v654_v24  ;;  %v2965_v25 = vsel %vm426_vm0, %v5106_v20, 0 }
  0x39   : > { %5438 = vmatmul.mubr.msk.bf16.gmra.mrb[16].mxu1 %vm410_vm2, %v6599_v26  ;;  %v661_v26 = vshll.u32 %v6612_v18, 16 }
  0x3a   : > { %5443 = vmatprep.mubr.msk.bf16.mxu1 %vm6754_vm1, %v6753_v2 }
  0x3b   : > { %5734 = vmatmul.mubr.msk.bf16.gmra.mrb[4].mxu0 %vm410_vm2, %v2465_v38  ;;  %v663_v30 = vrot.slane %v661_v26, 1  ;;  %v665_v38 = vshrl.u32 %v6612_v18, 16 }
  0x3c   : > { %5737 = vmatprep.mubr.msk.bf16.mxu0 %vm6754_vm1, %v6753_v2 }
  0x3d   : > { %v664_v37 = vsel %vm652_vm3, %v659_v29, %v663_v30  ;;  %v667_v41 = vor.u32 %v665_v38, %v663_v30  ;;  %v6621_v29 = vld [vmem:[%s6851_s14 + $0x58] sm:$0xff]   ;;  %v4900_v30 = vld [vmem:[%s7851_s3 + $0x8] sm:$0x3]  ;;  %v6623_v38 = vld [vmem:[%s6851_s14 + $0x60] sm:$0xff]  }
  0x3f   : > { %v672_v48 = vsel %vm652_vm3, %v667_v41, %v671_v42 }
  0x41   : > { %5444 = vmatmul.mubr.msk.bf16.vlgmr.msra.gmra.mrb[0].mxu1 %vm410_vm2, %v6601_v35  ;;  %v2641_v35 = vshrl.u32 %v6930_v44, 16 }
  0x42   : > { %5447 = vmatprep.mubr.msk.bf16.mxu1 %vm6754_vm1, %v6753_v2  ;;  %5464 = vmatpush3.bf16.msra.mxu1 %v708_v36  ;;  %v2645_v36 = vshll.u32 %v6940_v49, 16  ;;  %v675_v49 = vor.u32 %v673_v47, %v671_v42  ;;  %v6626_v47 = vld [vmem:[%s6851_s14 + $0x70] sm:$0xff]  }
  0x43   : > { %5485 = vmatprep.subr.bf16.mxu1 %v6753_v2  ;;  %5738 = vmatmul.mubr.msk.bf16.gmra.mrb[8].mxu0 %vm410_vm2, %v2473_v62  ;;  %v2643_v44 = vor.u32 %v2641_v35, %v2639_v33  ;;  %v2820_v33 = vshll.u32 %v6622_v28, 16 }
  0x44   : > { %5741 = vmatprep.mubr.msk.bf16.mxu0 %vm6754_vm1, %v6753_v2  ;;  %v2647_v45 = vrot.slane %v2645_v36, 1 }
  0x45   : > { %v2822_v36 = vrot.slane %v2820_v33, 1  ;;  %v6642_v33 = vld [vmem:[%s6991_s25 + $0x20] ss:$0 sps:$4 sm:$0xff]  }
  0x46   : > { %v2648_v52 = vsel %vm652_vm3, %v2643_v44, %v2647_v45  ;;  %v2651_v56 = vor.u32 %v2649_v46, %v2647_v45  ;;  %v6625_v44 = vld [vmem:[%s6851_s14 + $0x68] sm:$0xff]  }
  0x48   : > { %v2656_v1 = vsel %vm652_vm3, %v2651_v56, %v2655_v58  ;;  %v6636_v56 = vld [vmem:[%s6851_s14 + $0x58] sm:$0xff]  }
  0x49   : > { %5448 = vmatmul.mubr.msk.bf16.gmra.mrb[4].mxu1 %vm410_vm2, %v6603_v53  ;;  %v6617_v53 = vld [vmem:[%s6851_s14 + $0x20] sm:$0x1f]  }
  0x4a   : > { %5451 = vmatprep.mubr.msk.bf16.mxu1 %vm6754_vm1, %v6753_v2  ;;  %v685_v62 = vshll.u32 %v6617_v53, 16  ;;  %v689_v16 = vshrl.u32 %v6617_v53, 16  ;;  %v6629_v53 = vld [vmem:[%s6851_s14 + $0x84] sm:$0xff]  }
  0x4b   : > { %5742 = vmatmul.mubr.msk.bf16.gmra.mrb[12].mxu0 %vm410_vm2, %v2481_v12  ;;  %v2659_v12 = vor.u32 %v2657_v3, %v2655_v58  ;;  %v6637_v58 = vld [vmem:[%s6851_s14 + $0x60] sm:$0xff]  }
  0x4c   : > { %5745 = vmatprep.mubr.msk.bf16.mxu0 %vm6754_vm1, %v6753_v2  ;;  %v687_v8 = vrot.slane %v685_v62, 1  ;;  %v6633_v62 = vld [vmem:[%s6991_s25] sm:$0xff]  }
  0x4e   : > { %v691_v21 = vor.u32 %v689_v16, %v687_v8 }
  0x51   : > { %5452 = vmatmul.mubr.msk.bf16.gmra.mrb[8].mxu1 %vm410_vm2, %v6605_v10  ;;  %v2799_v10 = vshll.u32 %v6618_v63, 16  ;;  %v1097_v63 = vshrl.u32 %v6636_v56, 16 }
  0x52   : > { %5455 = vmatprep.mubr.msk.bf16.mxu1 %vm6754_vm1, %v6753_v2 }
  0x53   : > { %5746 = vmatmul.mubr.msk.bf16.gmra.mrb[16].mxu0 %vm410_vm2, %v2484_v19  ;;  %v2801_v14 = vrot.slane %v2799_v10, 1  ;;  %v6620_v19 = vld [vmem:[%s6867_s29 + $0x40] sm:$0xff]   ;;  %v6635_v10 = vld [vmem:[%s6991_s25 + $0x8] sm:$0xff]  }
  0x54   : > { %5751 = vmatprep.mubr.msk.bf16.mxu0 %vm6754_vm1, %v6753_v2  ;;  %v2812_v24 = vshll.u32 %v6620_v19, 16  ;;  %v2816_v32 = vshrl.u32 %v6620_v19, 16 }
  0x55   : > { %v2802_v17 = vor.u32 %v2801_v14, %v2797_v11 }
  0x59   : > { %5456 = vmatmul.mubr.msk.bf16.gmra.mrb[12].mxu1 %vm410_vm2, %v6606_v15  ;;  %v2804_v15 = vshll.u32 %v6619_v9, 16 }
  0x5a   : > { %5459 = vmatprep.mubr.msk.bf16.mxu1 %vm6754_vm1, %v6753_v2 }
  0x5b   : > { %5752 = vmatmul.mubr.msk.bf16.vlgmr.msra.gmra.mrb[0].mxu0 %vm410_vm2, %v2632_v27  ;;  %v2806_v18 = vrot.slane %v2804_v15, 1  ;;  %v2814_v27 = vrot.slane %v2812_v24, 1  ;;  %v6643_v24 = vld [vmem:[%s6851_s14 + $0x78] sm:$0x1f]  }
  0x5c   : > { %5772 = vmatpush3.bf16.msra.mxu0 %v6927_v43  ;;  %5755 = vmatprep.mubr.msk.bf16.mxu0 %vm6754_vm1, %v6753_v2  ;;  %v6616_v43 = vld [vmem:[%s6851_s14 + $0x18] sm:$0xff]  }
  0x5d   : > { %5793 = vmatprep.subr.bf16.mxu0 %v6753_v2  ;;  %v677_v51 = vshll.u32 %v6616_v43, 16  ;;  %v681_v59 = vshrl.u32 %v6616_v43, 16  ;;  %v2807_v22 = vsel %vm652_vm3, %v2802_v17, %v2806_v18  ;;  %v2818_v35 = vor.u32 %v2816_v32, %v2814_v27  ;;  %v6641_v17 = vld [vmem:[%s6851_s14 + $0x70] sm:$0xff]   ;;  %v7209_v32 = vld [vmem:[%s6851_s14 + $0x8] sm:$0xf] }
  0x5f   : > { %v679_v55 = vrot.slane %v677_v51, 1  ;;  %v2823_v39 = vsel %vm652_vm3, %v2818_v35, %v2822_v36  ;;  %v6628_v51 = vld [vmem:[%s6851_s14 + $0x78] ss:$0 sps:$4 sm:$0xff]  }
  0x61   : > { %5460 = vmatmul.mubr.msk.bf16.gmra.mrb[16].mxu1 %vm410_vm2, %v6609_v23  ;;  %v680_v60 = vsel %vm652_vm3, %v675_v49, %v679_v55  ;;  %v683_v7 = vor.u32 %v681_v59, %v679_v55  ;;  %v2808_v23 = vshrl.u32 %v6619_v9, 16  ;;  %v4921_v49 = vld [vmem:[%s7851_s3 + $0xa] sm:$0x3]  ;;  %v5133_v59 = vld [vmem:[%s7851_s3 + $0x26] sm:$0x3] }
  0x62   : > { %5465 = vmatprep.mubr.msk.bf16.mxu1 %vm6754_vm1, %v6753_v2  ;;  %v1151_v55 = vsel %vm426_vm0, %v4921_v49, 0  ;;  %v4932_v9 = vld [vmem:[%s7851_s3 + $0xc] sm:$0x3] }
  0x63   : > { %5756 = vmatmul.mubr.msk.bf16.gmra.mrb[4].mxu0 %vm410_vm2, %v2640_v40  ;;  %v688_v13 = vsel %vm652_vm3, %v683_v7, %v687_v8  ;;  %v2810_v26 = vor.u32 %v2808_v23, %v2806_v18  ;;  %v2824_v40 = vshrl.u32 %v6622_v28, 16  ;;  %v6639_v8 = vld [vmem:[%s6851_s14 + $0x68] sm:$0xff]   ;;  %v1326_v14 = vsel %vm426_vm0, %v4932_v9, 0  ;;  %v6638_v18 = vld [vmem:[%s6991_s25 + $0x10] sm:$0xff]  }
  0x64   : > { %5759 = vmatprep.mubr.msk.bf16.mxu0 %vm6754_vm1, %v6753_v2  ;;  %v1116_v20 = vshrl.u32 %v6639_v8, 16  ;;  %v1128_v28 = vshll.u32 %v6643_v24, 16 }
  0x65   : > { %v2815_v31 = vsel %vm652_vm3, %v2810_v26, %v2814_v27  ;;  %v2826_v42 = vor.u32 %v2824_v40, %v2822_v36  ;;  %v1124_v27 = vshrl.u32 %v6641_v17, 16  ;;  %v1132_v36 = vshrl.u32 %v6643_v24, 16  ;;  %v5164_v24 = vld [vmem:[%s7851_s3 + $0x2a] sm:$0x3] }
  0x69   : > { %5466 = vmatmul.mubr.msk.bf16.vlgmr.msra.gmra.mrb[0].mxu1 %vm410_vm2, %v664_v37  ;;  %v6624_v37 = vld [vmem:[%s6867_s29 + $0x50] sm:$0x1f]  }
  0x6a   : > { %5469 = vmatprep.mubr.msk.bf16.mxu1 %vm6754_vm1, %v6753_v2  ;;  %5486 = vmatpush3.bf16.msra.mxu1 %v842_v34  ;;  %v976_v34 = vsel %vm426_vm0, %v4900_v30, 0  ;;  %v2828_v41 = vshll.u32 %v6624_v37, 16  ;;  %v2832_v46 = vshrl.u32 %v6624_v37, 16  ;;  %v1130_v30 = vrot.slane %v1128_v28, 1  ;;  %v7219_v37 = vld [vmem:[%s6851_s14 + $0xc] sm:$0xff]  }
  0x6b   : > { %5507 = vmatprep.subr.bf16.mxu1 %v6753_v2  ;;  %5760 = vmatmul.mubr.msk.bf16.gmra.mrb[8].mxu0 %vm410_vm2, %v2648_v52  ;;  %v3098_v52 = vsel %vm426_vm0, %v5113_v50, 0  ;;  %v4953_v50 = vld [vmem:[%s7851_s3 + $0xe] sm:$0x3] }
  0x6c   : > { %5763 = vmatprep.mubr.msk.bf16.mxu0 %vm6754_vm1, %v6753_v2  ;;  %v2830_v43 = vrot.slane %v2828_v41, 1  ;;  %v1134_v40 = vor.u32 %v1132_v36, %v1130_v30  ;;  %v6644_v41 = vld [vmem:[%s6991_s25 + $0x2c] sm:$0xff]   ;;  %v6660_v36 = vld [vmem:[%s6851_s14 + $0x40] sm:$0xff]  }
  0x6e   : > { %v2831_v45 = vsel %vm652_vm3, %v2826_v42, %v2830_v43 }
  0x71   : > { %5470 = vmatmul.mubr.msk.bf16.gmra.mrb[4].mxu1 %vm410_vm2, %v672_v48  ;;  %v2834_v48 = vor.u32 %v2832_v46, %v2830_v43 }
  0x72   : > { %5473 = vmatprep.mubr.msk.bf16.mxu1 %vm6754_vm1, %v6753_v2 }
  0x73   : > { %5764 = vmatmul.mubr.msk.bf16.gmra.mrb[12].mxu0 %vm410_vm2, %v2656_v1  ;;  %v1104_v1 = vshll.u32 %v6637_v58, 16 }
  0x74   : > { %5767 = vmatprep.mubr.msk.bf16.mxu0 %vm6754_vm1, %v6753_v2 }
  0x75   : > { %v1106_v7 = vrot.slane %v1104_v1, 1 }
  0x79   : > { %5474 = vmatmul.mubr.msk.bf16.gmra.mrb[8].mxu1 %vm410_vm2, %v680_v60  ;;  %v6634_v60 = vld [vmem:[%s6851_s14 + $0xa4] ss:$0 sps:$4 sm:$0xff]  }
  0x7a   : > { %5477 = vmatprep.mubr.msk.bf16.mxu1 %vm6754_vm1, %v6753_v2 }
  0x7b   : > { %5768 = vmatmul.mubr.msk.bf16.gmra.mrb[16].mxu0 %vm410_vm2, %v2659_v12  ;;  %v1108_v12 = vshrl.u32 %v6637_v58, 16 }
  0x7c   : > { %5773 = vmatprep.mubr.msk.bf16.mxu0 %vm6754_vm1, %v6753_v2 }
  0x7d   : > { %v1110_v15 = vor.u32 %v1108_v12, %v1106_v7  ;;  %v6652_v12 = vld [vmem:[%s6991_s25 + $0x4c] ss:$0 sps:$4 sm:$0xff]  }
  0x81   : > { %5478 = vmatmul.mubr.msk.bf16.gmra.mrb[12].mxu1 %vm410_vm2, %v688_v13  ;;  %v1112_v13 = vshll.u32 %v6639_v8, 16 }
  0x82   : > { %5481 = vmatprep.mubr.msk.bf16.mxu1 %vm6754_vm1, %v6753_v2 }
  0x83   : > { %5774 = vmatmul.mubr.msk.bf16.vlgmr.msra.gmra.mrb[0].mxu0 %vm410_vm2, %v2807_v22  ;;  %v1114_v16 = vrot.slane %v1112_v13, 1 }
  0x84   : > { %5794 = vmatpush3.bf16.msra.mxu0 %v2965_v25  ;;  %5777 = vmatprep.mubr.msk.bf16.mxu0 %vm6754_vm1, %v6753_v2  ;;  %v6640_v25 = vld [vmem:[%s6991_s25 + $0x18] sm:$0xff]  }
  0x85   : > { %5815 = vmatprep.subr.bf16.mxu0 %v6753_v2  ;;  %v1115_v19 = vsel %vm652_vm3, %v1110_v15, %v1114_v16  ;;  %v1118_v22 = vor.u32 %v1116_v20, %v1114_v16 }
  0x89   : > { %5482 = vmatmul.mubr.msk.bf16.gmra.mrb[16].mxu1 %vm410_vm2, %v691_v21  ;;  %v1120_v21 = vshll.u32 %v6641_v17, 16 }
  0x8a   : > { %5487 = vmatprep.mubr.msk.bf16.mxu1 %vm6754_vm1, %v6753_v2 }
  0x8b   : > { %5778 = vmatmul.mubr.msk.bf16.gmra.mrb[4].mxu0 %vm410_vm2, %v2815_v31  ;;  %v1122_v23 = vrot.slane %v1120_v21, 1  ;;  %v1234_v31 = vld [vmem:[%s6851_s14 + $0x4] sm:$0xf] }
  0x8c   : > { %5781 = vmatprep.mubr.msk.bf16.mxu0 %vm6754_vm1, %v6753_v2  ;;  %v4933_v35 = vcombine.low %v1234_v31, %v7209_v32 }
  0x8d   : > { %v1123_v26 = vsel %vm652_vm3, %v1118_v22, %v1122_v23 }
  0x8e   : > { %v1272_v42 = vshrl.u32 %v4933_v35, 16 }
  0x91   : > { %5488 = vmatmul.mubr.msk.bf16.vlgmr.msra.gmra.mrb[0].mxu1 %vm410_vm2, %v6621_v29  ;;  %v1126_v29 = vor.u32 %v1124_v27, %v1122_v23  ;;  %v6656_v23 = vld [vmem:[%s6991_s25 + $0x10] sm:$0xff]  }
  0x92   : > { %5491 = vmatprep.mubr.msk.bf16.mxu1 %vm6754_vm1, %v6753_v2  ;;  %5508 = vmatpush3.bf16.msra.mxu1 %v976_v34  ;;  %v3368_v31 = vshll.u32 %v6656_v23, 16 }
  0x93   : > { %5529 = vmatprep.subr.bf16.mxu1 %v6753_v2  ;;  %5782 = vmatmul.mubr.msk.bf16.gmra.mrb[8].mxu0 %vm410_vm2, %v2823_v39  ;;  %v1131_v34 = vsel %vm652_vm3, %v1126_v29, %v1130_v30  ;;  %v5144_v39 = vld [vmem:[%s7851_s3 + $0x28] sm:$0x3] }
  0x94   : > { %5785 = vmatprep.mubr.msk.bf16.mxu0 %vm6754_vm1, %v6753_v2 }
  0x99   : > { %5492 = vmatmul.mubr.msk.bf16.gmra.mrb[4].mxu1 %vm410_vm2, %v6623_v38  ;;  %v1274_v38 = vshll.u32 %v4933_v35, 16 }
  0x9a   : > { %5495 = vmatprep.mubr.msk.bf16.mxu1 %vm6754_vm1, %v6753_v2 }
  0x9b   : > { %5786 = vmatmul.mubr.msk.bf16.gmra.mrb[12].mxu0 %vm410_vm2, %v2831_v45  ;;  %v1276_v43 = vrot.slane %v1274_v38, 1  ;;  %v3407_v45 = vsel %vm426_vm0, %v5144_v39, 0  ;;  %v3370_v39 = vrot.slane %v3368_v31, 1 }
  0x9c   : > { %5789 = vmatprep.mubr.msk.bf16.mxu0 %vm6754_vm1, %v6753_v2 }
  0x9d   : > { %v1277_v46 = vor.u32 %v1276_v43, %v1272_v42 }
  0xa1   : > { %5496 = vmatmul.mubr.msk.bf16.gmra.mrb[8].mxu1 %vm410_vm2, %v6625_v44  ;;  %v1279_v44 = vshll.u32 %v7219_v37, 16 }
  0xa2   : > { %5499 = vmatprep.mubr.msk.bf16.mxu1 %vm6754_vm1, %v6753_v2 }
  0xa3   : > { %5790 = vmatmul.mubr.msk.bf16.gmra.mrb[16].mxu0 %vm410_vm2, %v2834_v48  ;;  %v7234_v48 = vld [vmem:[%s6851_s14 + $0x14] sm:$0xff]  }
  0xa4   : > { %5795 = vmatprep.mubr.msk.bf16.mxu0 %vm6754_vm1, %v6753_v2  ;;  %v1287_v49 = vshll.u32 %v7234_v48, 16 }
  0xa9   : > { %5500 = vmatmul.mubr.msk.bf16.gmra.mrb[12].mxu1 %vm410_vm2, %v6626_v47  ;;  %v1281_v47 = vrot.slane %v1279_v44, 1  ;;  %v1462_v44 = vshll.u32 %v6660_v36, 16 }
  0xaa   : > { %5503 = vmatprep.mubr.msk.bf16.mxu1 %vm6754_vm1, %v6753_v2 }
  0xab   : > { %5796 = vmatmul.mubr.msk.bf16.vlgmr.msra.gmra.mrb[0].mxu0 %vm410_vm2, %v6965_v5  ;;  %v6630_v5 = vld [vmem:[%s6851_s14 + $0x8c] sm:$0xff]  }
  0xac   : > { %5816 = vmatpush3.bf16.msra.mxu0 %v3098_v52  ;;  %5799 = vmatprep.mubr.msk.bf16.mxu0 %vm6754_vm1, %v6753_v2  ;;  %v1282_v52 = vsel %vm652_vm3, %v1277_v46, %v1281_v47  ;;  %v3372_v46 = vshrl.u32 %v6656_v23, 16 }
  0xad   : > { %5837 = vmatprep.subr.bf16.mxu0 %v6753_v2 }
  0xb1   : > { %5504 = vmatmul.mubr.msk.bf16.gmra.mrb[16].mxu1 %vm410_vm2, %v6628_v51  ;;  %v6645_v51 = vld [vmem:[%s6991_s25 + $0x34] sm:$0xff]  }
  0xb2   : > { %5509 = vmatprep.mubr.msk.bf16.mxu1 %vm6754_vm1, %v6753_v2 }
  0xb3   : > { %5800 = vmatmul.mubr.msk.bf16.gmra.mrb[4].mxu0 %vm410_vm2, %v6954_v57  ;;  %v6631_v57 = vld [vmem:[%s6851_s14 + $0x94] sm:$0xff]  }
  0xb4   : > { %5803 = vmatprep.mubr.msk.bf16.mxu0 %vm6754_vm1, %v6753_v2 }
  0xb9   : > { %5510 = vmatmul.mubr.msk.bf16.vlgmr.msra.gmra.mrb[0].mxu1 %vm410_vm2, %v6629_v53  ;;  %v1283_v53 = vshrl.u32 %v7219_v37, 16 }
  0xba   : > { %5513 = vmatprep.mubr.msk.bf16.mxu1 %vm6754_vm1, %v6753_v2  ;;  %5530 = vmatpush3.bf16.msra.mxu1 %v1151_v55  ;;  %v1501_v55 = vsel %vm426_vm0, %v4953_v50, 0 }
  0xbb   : > { %5551 = vmatprep.subr.bf16.mxu1 %v6753_v2  ;;  %5804 = vmatmul.mubr.msk.bf16.gmra.mrb[8].mxu0 %vm410_vm2, %v6961_v0  ;;  %v6632_v0 = vld [vmem:[%s6851_s14 + $0x9c] sm:$0xff]  }
  0xbc   : > { %5807 = vmatprep.mubr.msk.bf16.mxu0 %vm6754_vm1, %v6753_v2 }
  0xc1   : > { %5514 = vmatmul.mubr.msk.bf16.gmra.mrb[4].mxu1 %vm410_vm2, %v6630_v5  ;;  %v1285_v5 = vor.u32 %v1283_v53, %v1281_v47  ;;  %v6662_v53 = vld [vmem:[%s6851_s14 + $0x48] sm:$0xff]  }
  0xc2   : > { %5517 = vmatprep.mubr.msk.bf16.mxu1 %vm6754_vm1, %v6753_v2 }
  0xc3   : > { %5808 = vmatmul.mubr.msk.bf16.gmra.mrb[12].mxu0 %vm410_vm2, %v6970_v6  ;;  %v1099_v6 = vshll.u32 %v6636_v56, 16  ;;  %v6648_v56 = vld [vmem:[%s6991_s25 + $0x3c] sm:$0xff]  }
  0xc4   : > { %5811 = vmatprep.mubr.msk.bf16.mxu0 %vm6754_vm1, %v6753_v2 }
  0xc5   : > { %v1101_v54 = vrot.slane %v1099_v6, 1  ;;  %v1291_v6 = vshrl.u32 %v7234_v48, 16 }
  0xc7   : > { %v1102_v3 = vor.u32 %v1101_v54, %v1097_v63  ;;  %v7266_v63 = vld [vmem:[%s6851_s14 + $0x24] sm:$0x1f]  }
  0xc8   : > { %v6650_v54 = vld [vmem:[%s6991_s25 + $0x44] sm:$0xff]  }
  0xc9   : > { %5518 = vmatmul.mubr.msk.bf16.gmra.mrb[8].mxu1 %vm410_vm2, %v6631_v57  ;;  %v1107_v11 = vsel %vm652_vm3, %v1102_v3, %v1106_v7  ;;  %v1289_v57 = vrot.slane %v1287_v49, 1  ;;  %v1303_v3 = vshll.u32 %v7266_v63, 16  ;;  %v6654_v7 = vld [vmem:[%s6991_s25] sm:$0xff]   ;;  %v3374_v49 = vor.u32 %v3372_v46, %v3370_v39  ;;  %v6679_v46 = vld [vmem:[%s6991_s25 + $0x58] sm:$0xff]  }
  0xca   : > { %5521 = vmatprep.mubr.msk.bf16.mxu1 %vm6754_vm1, %v6753_v2  ;;  %v3353_v15 = vshrl.u32 %v6654_v7, 16 }
  0xcb   : > { %5812 = vmatmul.mubr.msk.bf16.gmra.mrb[16].mxu0 %vm410_vm2, %v2947_v61  ;;  %v3232_v61 = vsel %vm426_vm0, %v5133_v59, 0  ;;  %v1290_v58 = vsel %vm652_vm3, %v1285_v5, %v1289_v57  ;;  %v1305_v9 = vrot.slane %v1303_v3, 1  ;;  %v6661_v5 = vld [vmem:[%s6991_s25 + $0x20] sm:$0x1f]  }
  0xcc   : > { %5817 = vmatprep.mubr.msk.bf16.mxu0 %vm6754_vm1, %v6753_v2 }
  0xd1   : > { %5522 = vmatmul.mubr.msk.bf16.gmra.mrb[12].mxu1 %vm410_vm2, %v6632_v0  ;;  %v7252_v0 = vld [vmem:[%s6851_s14 + $0x1c] sm:$0xff]  }
  0xd2   : > { %5525 = vmatprep.mubr.msk.bf16.mxu1 %vm6754_vm1, %v6753_v2  ;;  %v1295_v59 = vshll.u32 %v7252_v0, 16 }
  0xd3   : > { %5818 = vmatmul.mubr.msk.bf16.vlgmr.msra.gmra.mrb[0].mxu0 %vm410_vm2, %v6633_v62 }
  0xd4   : > { %5838 = vmatpush3.bf16.msra.mxu0 %v3232_v61  ;;  %5821 = vmatprep.mubr.msk.bf16.mxu0 %vm6754_vm1, %v6753_v2  ;;  %v1297_v62 = vrot.slane %v1295_v59, 1  ;;  %v1299_v61 = vshrl.u32 %v7252_v0, 16 }
  0xd5   : > { %5859 = vmatprep.subr.bf16.mxu0 %v6753_v2 }
  0xd6   : > { %v1301_v8 = vor.u32 %v1299_v61, %v1297_v62 }
  0xd8   : > { %v1306_v13 = vsel %vm652_vm3, %v1301_v8, %v1305_v9  ;;  %v1474_v8 = vshrl.u32 %v6662_v53, 16 }
  0xd9   : > { %5526 = vmatmul.mubr.msk.bf16.gmra.mrb[16].mxu1 %vm410_vm2, %v6634_v60  ;;  %v1293_v60 = vor.u32 %v1291_v6, %v1289_v57 }
  0xda   : > { %5531 = vmatprep.mubr.msk.bf16.mxu1 %vm6754_vm1, %v6753_v2 }
  0xdb   : > { %5822 = vmatmul.mubr.msk.bf16.gmra.mrb[4].mxu0 %vm410_vm2, %v6635_v10  ;;  %v1298_v1 = vsel %vm652_vm3, %v1293_v60, %v1297_v62  ;;  %v6655_v10 = vld [vmem:[%s6991_s25 + $0x8] sm:$0xff]   ;;  %v3384_v60 = vshll.u32 %v6661_v5, 16 }
  0xdc   : > { %5825 = vmatprep.mubr.msk.bf16.mxu0 %vm6754_vm1, %v6753_v2  ;;  %v3360_v17 = vshll.u32 %v6655_v10, 16  ;;  %v3364_v30 = vshrl.u32 %v6655_v10, 16 }
  0xdd   : > { %v3386_v3 = vrot.slane %v3384_v60, 1 }
  0xde   : > { %v3362_v22 = vrot.slane %v3360_v17, 1  ;;  %v1584_v17 = vld [vmem:[%s6851_s14 + $0x4] sm:$0xe] }
  0xe0   : > { %v3366_v38 = vor.u32 %v3364_v30, %v3362_v22  ;;  %v1596_v30 = vrot.slane %v7252_v0, 1  ;;  %v6669_v0 = vld [vmem:[%s6991_s25 + $0x78] ss:$0 sps:$4 sm:$0xff]  }
  0xe1   : > { %5532 = vmatmul.mubr.msk.bf16.vlgmr.msra.gmra.mrb[0].mxu1 %vm410_vm2, %v1107_v11  ;;  %v3355_v11 = vshll.u32 %v6654_v7, 16 }
  0xe2   : > { %5535 = vmatprep.mubr.msk.bf16.mxu1 %vm6754_vm1, %v6753_v2  ;;  %5552 = vmatpush3.bf16.msra.mxu1 %v1326_v14  ;;  %v6657_v14 = vld [vmem:[%s6851_s14 + $0x30] sm:$0xff]  }
  0xe3   : > { %5573 = vmatprep.subr.bf16.mxu1 %v6753_v2  ;;  %5826 = vmatmul.mubr.msk.bf16.gmra.mrb[8].mxu0 %vm410_vm2, %v6638_v18  ;;  %v3357_v16 = vrot.slane %v3355_v11, 1  ;;  %v1307_v18 = vshrl.u32 %v7266_v63, 16  ;;  %v1449_v20 = vshll.u32 %v6657_v14, 16  ;;  %v3388_v11 = vshrl.u32 %v6661_v5, 16 }
  0xe4   : > { %5829 = vmatprep.mubr.msk.bf16.mxu0 %vm6754_vm1, %v6753_v2 }
  0xe5   : > { %v3358_v21 = vor.u32 %v3357_v16, %v3353_v15  ;;  %v1451_v27 = vrot.slane %v1449_v20, 1  ;;  %v6664_v20 = vld [vmem:[%s6991_s25 + $0x58] sm:$0xff]  }
  0xe7   : > { %v3363_v29 = vsel %vm652_vm3, %v3358_v21, %v3362_v22  ;;  %v4965_v21 = vcombine.low %v1584_v17, %v7209_v32  ;;  %v4971_v32 = vld [vmem:[%s7851_s3 + $0x12] sm:$0x3] }
  0xe9   : > { %5536 = vmatmul.mubr.msk.bf16.gmra.mrb[4].mxu1 %vm410_vm2, %v1115_v19  ;;  %v6658_v19 = vld [vmem:[%s6851_s14 + $0x38] sm:$0xff]   ;;  %v1591_v23 = vrot.slane %v4965_v21, 1 }
  0xea   : > { %5539 = vmatprep.mubr.msk.bf16.mxu1 %vm6754_vm1, %v6753_v2  ;;  %v1454_v28 = vshll.u32 %v6658_v19, 16  ;;  %v1458_v43 = vshrl.u32 %v6658_v19, 16 }
  0xeb   : > { %5830 = vmatmul.mubr.msk.bf16.gmra.mrb[12].mxu0 %vm410_vm2, %v6640_v25  ;;  %v1309_v25 = vor.u32 %v1307_v18, %v1305_v9  ;;  %v5184_v18 = vld [vmem:[%s7851_s3 + $0x2c] sm:$0x3] }
  0xec   : > { %5833 = vmatprep.mubr.msk.bf16.mxu0 %vm6754_vm1, %v6753_v2  ;;  %v1456_v35 = vrot.slane %v1454_v28, 1  ;;  %v3675_v22 = vsel %vm426_vm0, %v5184_v18, 0  ;;  %v6667_v28 = vld [vmem:[%s6991_s25 + $0x68] sm:$0xff]  }
  0xf1   : > { %5540 = vmatmul.mubr.msk.bf16.gmra.mrb[8].mxu1 %vm410_vm2, %v1123_v26  ;;  %v1447_v26 = vshrl.u32 %v6657_v14, 16  ;;  %v3390_v14 = vor.u32 %v3388_v11, %v3386_v3 }
  0xf2   : > { %5543 = vmatprep.mubr.msk.bf16.mxu1 %vm6754_vm1, %v6753_v2 }
  0xf3   : > { %5834 = vmatmul.mubr.msk.bf16.gmra.mrb[16].mxu0 %vm410_vm2, %v6642_v33  ;;  %v3541_v33 = vsel %vm426_vm0, %v5164_v24, 0  ;;  %v1592_v24 = vrot.slane %v7219_v37, 1  ;;  %v1594_v37 = vrot.slane %v7234_v48, 1  ;;  %v6668_v48 = vld [vmem:[%s6991_s25 + $0x70] sm:$0xff]  }
  0xf4   : > { %5839 = vmatprep.mubr.msk.bf16.mxu0 %vm6754_vm1, %v6753_v2 }
  0xf5   : > { %v1597_v31 = vsel %vm1590_vm4, %v1594_v37, %v1596_v30 }
  0xf9   : > { %5544 = vmatmul.mubr.msk.bf16.gmra.mrb[12].mxu1 %vm410_vm2, %v1131_v34  ;;  %v1452_v34 = vor.u32 %v1451_v27, %v1447_v26  ;;  %v1593_v26 = vsel %vm1590_vm4, %v1591_v23, %v1592_v24  ;;  %v1749_v27 = vsel %vm426_vm0, %v4971_v32, 0  ;;  %v7492_v23 = vld [vmem:[%s6991_s25 + $0x8] sm:$0xf] }
  0xfa   : > { %5547 = vmatprep.mubr.msk.bf16.mxu1 %vm6754_vm1, %v6753_v2 }
  0xfb   : > { %5840 = vmatmul.mubr.msk.bf16.vlgmr.msra.gmra.mrb[0].mxu0 %vm410_vm2, %v6644_v41  ;;  %v4964_v41 = vld [vmem:[%s7851_s3 + $0x10] sm:$0x3]  ;;  %v1457_v42 = vsel %vm652_vm3, %v1452_v34, %v1456_v35 }
  0xfc   : > { %5860 = vmatpush3.bf16.msra.mxu0 %v3407_v45  ;;  %5843 = vmatprep.mubr.msk.bf16.mxu0 %vm6754_vm1, %v6753_v2  ;;  %v3371_v45 = vsel %vm652_vm3, %v3366_v38, %v3370_v39  ;;  %v1616_v50 = vsel %vm426_vm0, %v4964_v41, 0  ;;  %v6672_v38 = vld [vmem:[%s6867_s29] sm:$0xff]   ;;  %v4991_v39 = vld [vmem:[%s7851_s3 + $0x14] sm:$0x3] }
  0xfd   : > { %5881 = vmatprep.subr.bf16.mxu0 %v6753_v2  ;;  %v1883_v41 = vsel %vm426_vm0, %v4991_v39, 0  ;;  %v6691_v39 = vld [vmem:[%s6867_s29 + $0x4c] ss:$0 sps:$4 sm:$0xff]  }
 0x101   : > { %5548 = vmatmul.mubr.msk.bf16.gmra.mrb[16].mxu1 %vm410_vm2, %v1134_v40  ;;  %v6659_v40 = vld [vmem:[%s6991_s25 + $0x18] sm:$0xff]  }
 0x102   : > { %5553 = vmatprep.mubr.msk.bf16.mxu1 %vm6754_vm1, %v6753_v2  ;;  %v3376_v47 = vshll.u32 %v6659_v40, 16  ;;  %v3380_v59 = vshrl.u32 %v6659_v40, 16  ;;  %v6671_v40 = vld [vmem:[%s6991_s25 + $0x8c] sm:$0xff]  }
 0x103   : > { %5844 = vmatmul.mubr.msk.bf16.gmra.mrb[4].mxu0 %vm410_vm2, %v6645_v51  ;;  %v1460_v51 = vor.u32 %v1458_v43, %v1456_v35  ;;  %v6670_v35 = vld [vmem:[%s6991_s25 + $0x84] sm:$0xff]   ;;  %v6673_v43 = vld [vmem:[%s6991_s25 + $0x94] sm:$0xff]  }
 0x104   : > { %5847 = vmatprep.mubr.msk.bf16.mxu0 %vm6754_vm1, %v6753_v2 }
 0x109   : > { %5554 = vmatmul.mubr.msk.bf16.vlgmr.msra.gmra.mrb[0].mxu1 %vm410_vm2, %v1282_v52  ;;  %v1464_v52 = vrot.slane %v1462_v44, 1  ;;  %v6676_v44 = vld [vmem:[%s6867_s29 + $0x10] sm:$0xff]  }
 0x10a   : > { %5557 = vmatprep.mubr.msk.bf16.mxu1 %vm6754_vm1, %v6753_v2  ;;  %5574 = vmatpush3.bf16.msra.mxu1 %v1501_v55  ;;  %v3378_v55 = vrot.slane %v3376_v47, 1  ;;  %v6680_v47 = vld [vmem:[%s6991_s25 + $0x60] sm:$0xff]  }
 0x10b   : > { %5595 = vmatprep.subr.bf16.mxu1 %v6753_v2  ;;  %5848 = vmatmul.mubr.msk.bf16.gmra.mrb[8].mxu0 %vm410_vm2, %v6648_v56  ;;  %v1465_v57 = vsel %vm652_vm3, %v1460_v51, %v1464_v52  ;;  %v1466_v56 = vshrl.u32 %v6660_v36, 16  ;;  %v6678_v51 = vld [vmem:[%s6867_s29 + $0x18] sm:$0xff]   ;;  %v3807_v60 = vshrl.u32 %v6680_v47, 16 }
 0x10c   : > { %5851 = vmatprep.mubr.msk.bf16.mxu0 %vm6754_vm1, %v6753_v2  ;;  %v3379_v6 = vsel %vm652_vm3, %v3374_v49, %v3378_v55  ;;  %v3382_v61 = vor.u32 %v3380_v59, %v3378_v55  ;;  %v3803_v55 = vshll.u32 %v6680_v47, 16 }
 0x10d   : > { %v1468_v62 = vor.u32 %v1466_v56, %v1464_v52  ;;  %v6677_v52 = vld [vmem:[%s6991_s25 + $0xa4] ss:$0 sps:$4 sm:$0xff]   ;;  %v6682_v56 = vld [vmem:[%s6991_s25 + $0x68] sm:$0xff]  }
 0x10e   : > { %v3387_v10 = vsel %vm652_vm3, %v3382_v61, %v3386_v3  ;;  %v6684_v3 = vld [vmem:[%s6991_s25 + $0x70] sm:$0xff]  }
 0x10f   : > { %v3819_v11 = vshll.u32 %v6684_v3, 16  ;;  %v3823_v18 = vshrl.u32 %v6684_v3, 16 }
 0x111   : > { %5558 = vmatmul.mubr.msk.bf16.gmra.mrb[4].mxu1 %vm410_vm2, %v1290_v58  ;;  %v1470_v58 = vshll.u32 %v6662_v53, 16  ;;  %v3796_v53 = vshrl.u32 %v6679_v46, 16 }
 0x112   : > { %5561 = vmatprep.mubr.msk.bf16.mxu1 %vm6754_vm1, %v6753_v2 }
 0x113   : > { %5852 = vmatmul.mubr.msk.bf16.gmra.mrb[12].mxu0 %vm410_vm2, %v6650_v54  ;;  %v1472_v54 = vrot.slane %v1470_v58, 1  ;;  %v5216_v58 = vld [vmem:[%s7851_s3 + $0x30] sm:$0x3] }
 0x114   : > { %5855 = vmatprep.mubr.msk.bf16.mxu0 %vm6754_vm1, %v6753_v2 }
 0x115   : > { %v1473_v7 = vsel %vm652_vm3, %v1468_v62, %v1472_v54  ;;  %v3811_v62 = vshll.u32 %v6682_v56, 16 }
 0x117   : > { %v3813_v61 = vrot.slane %v3811_v62, 1 }
 0x119   : > { %5562 = vmatmul.mubr.msk.bf16.gmra.mrb[8].mxu1 %vm410_vm2, %v1298_v1  ;;  %v6663_v1 = vld [vmem:[%s6851_s14 + $0x50] sm:$0x1f]  }
 0x11a   : > { %5565 = vmatprep.mubr.msk.bf16.mxu1 %vm6754_vm1, %v6753_v2  ;;  %v1478_v9 = vshll.u32 %v6663_v1, 16  ;;  %v1482_v16 = vshrl.u32 %v6663_v1, 16 }
 0x11b   : > { %5856 = vmatmul.mubr.msk.bf16.gmra.mrb[16].mxu0 %vm410_vm2, %v6652_v12  ;;  %v1476_v12 = vor.u32 %v1474_v8, %v1472_v54  ;;  %v4025_v54 = vsel %vm426_vm0, %v5216_v58, 0  ;;  %v5002_v8 = vld [vmem:[%s7851_s3 + $0x16] sm:$0x3] }
 0x11c   : > { %5861 = vmatprep.mubr.msk.bf16.mxu0 %vm6754_vm1, %v6753_v2 }
 0x121   : > { %5566 = vmatmul.mubr.msk.bf16.gmra.mrb[12].mxu1 %vm410_vm2, %v1306_v13  ;;  %v1480_v13 = vrot.slane %v1478_v9, 1 }
 0x122   : > { %5569 = vmatprep.mubr.msk.bf16.mxu1 %vm6754_vm1, %v6753_v2 }
 0x123   : > { %5862 = vmatmul.mubr.msk.bf16.vlgmr.msra.gmra.mrb[0].mxu0 %vm410_vm2, %v3363_v29  ;;  %v1481_v15 = vsel %vm652_vm3, %v1476_v12, %v1480_v13  ;;  %v1484_v19 = vor.u32 %v1482_v16, %v1480_v13  ;;  %v1595_v29 = vsel %vm1590_vm4, %v1592_v24, %v1594_v37  ;;  %v2058_v12 = vsel %vm426_vm0, %v5002_v8, 0  ;;  %v6685_v16 = vld [vmem:[%s6867_s29 + $0x34] sm:$0xff]   ;;  %v6687_v24 = vld [vmem:[%s6867_s29 + $0x3c] sm:$0xff]  }
 0x124   : > { %5882 = vmatpush3.bf16.msra.mxu0 %v3541_v33  ;;  %5865 = vmatprep.mubr.msk.bf16.mxu0 %vm6754_vm1, %v6753_v2  ;;  %v1598_v33 = vrot.slane %v7266_v63, 1  ;;  %v5205_v63 = vld [vmem:[%s7851_s3 + $0x2e] sm:$0x3] }
 0x125   : > { %5903 = vmatprep.subr.bf16.mxu0 %v6753_v2  ;;  %v3850_v36 = vsel %vm426_vm0, %v5205_v63, 0 }
 0x126   : > { %v1599_v34 = vsel %vm1590_vm4, %v1596_v30, %v1598_v33  ;;  %v6693_v30 = vld [vmem:[%s6867_s29] sm:$0xff]  }
 0x129   : > { %5570 = vmatmul.mubr.msk.bf16.gmra.mrb[16].mxu1 %vm410_vm2, %v1309_v25  ;;  %v6665_v25 = vld [vmem:[%s6991_s25 + $0x60] sm:$0xff]  }
 0x12a   : > { %5575 = vmatprep.mubr.msk.bf16.mxu1 %vm6754_vm1, %v6753_v2 }
 0x12b   : > { %5866 = vmatmul.mubr.msk.bf16.gmra.mrb[4].mxu0 %vm410_vm2, %v3371_v45  ;;  %v6675_v45 = vld [vmem:[%s6991_s25 + $0x9c] sm:$0xff]  }
 0x12c   : > { %5869 = vmatprep.mubr.msk.bf16.mxu0 %vm6754_vm1, %v6753_v2 }
 0x131   : > { %5576 = vmatmul.mubr.msk.bf16.vlgmr.msra.gmra.mrb[0].mxu1 %vm410_vm2, %v1457_v42  ;;  %v6674_v42 = vld [vmem:[%s6867_s29 + $0x8] sm:$0xff]  }
 0x132   : > { %5579 = vmatprep.mubr.msk.bf16.mxu1 %vm6754_vm1, %v6753_v2  ;;  %5596 = vmatpush3.bf16.msra.mxu1 %v1616_v50  ;;  %v3798_v50 = vshll.u32 %v6679_v46, 16 }
 0x133   : > { %5617 = vmatprep.subr.bf16.mxu1 %v6753_v2  ;;  %5870 = vmatmul.mubr.msk.bf16.gmra.mrb[8].mxu0 %vm410_vm2, %v3379_v6  ;;  %v6681_v6 = vld [vmem:[%s6867_s29 + $0x20] ss:$0 sps:$4 sm:$0xff]  }
 0x134   : > { %5873 = vmatprep.mubr.msk.bf16.mxu0 %vm6754_vm1, %v6753_v2  ;;  %v3800_v49 = vrot.slane %v3798_v50, 1 }
 0x136   : > { %v3801_v5 = vor.u32 %v3800_v49, %v3796_v53  ;;  %v7535_v49 = vld [vmem:[%s6991_s25 + $0x1c] sm:$0xff]  }
 0x139   : > { %5580 = vmatmul.mubr.msk.bf16.gmra.mrb[4].mxu1 %vm410_vm2, %v1465_v57  ;;  %v3805_v57 = vrot.slane %v3803_v55, 1  ;;  %v5022_v55 = vld [vmem:[%s7851_s3 + $0x18] sm:$0x3] }
 0x13a   : > { %5583 = vmatprep.mubr.msk.bf16.mxu1 %vm6754_vm1, %v6753_v2 }
 0x13b   : > { %5874 = vmatmul.mubr.msk.bf16.gmra.mrb[12].mxu0 %vm410_vm2, %v3387_v10  ;;  %v3806_v59 = vsel %vm652_vm3, %v3801_v5, %v3805_v57  ;;  %v3809_v1 = vor.u32 %v3807_v60, %v3805_v57  ;;  %v3815_v10 = vshrl.u32 %v6682_v56, 16  ;;  %v2192_v60 = vsel %vm426_vm0, %v5022_v55, 0 }
 0x13c   : > { %5877 = vmatprep.mubr.msk.bf16.mxu0 %vm6754_vm1, %v6753_v2 }
 0x13d   : > { %v3814_v9 = vsel %vm652_vm3, %v3809_v1, %v3813_v61  ;;  %v3817_v13 = vor.u32 %v3815_v10, %v3813_v61  ;;  %v6698_v1 = vld [vmem:[%s6867_s29 + $0x18] sm:$0xff]  }
 0x13e   : > { %v2027_v10 = vshll.u32 %v6698_v1, 16 }
 0x141   : > { %5584 = vmatmul.mubr.msk.bf16.gmra.mrb[8].mxu1 %vm410_vm2, %v1473_v7  ;;  %v6683_v7 = vld [vmem:[%s6867_s29 + $0x2c] sm:$0xff]  }
 0x142   : > { %5587 = vmatprep.mubr.msk.bf16.mxu1 %vm6754_vm1, %v6753_v2 }
 0x143   : > { %5878 = vmatmul.mubr.msk.bf16.gmra.mrb[16].mxu0 %vm410_vm2, %v3390_v14  ;;  %v3821_v14 = vrot.slane %v3819_v11, 1 }
 0x144   : > { %5883 = vmatprep.mubr.msk.bf16.mxu0 %vm6754_vm1, %v6753_v2 }
 0x145   : > { %v3822_v17 = vsel %vm652_vm3, %v3817_v13, %v3821_v14 }
 0x149   : > { %5588 = vmatmul.mubr.msk.bf16.gmra.mrb[12].mxu1 %vm410_vm2, %v1481_v15  ;;  %v6686_v15 = vld [vmem:[%s6991_s25 + $0x78] sm:$0x1f]  }
 0x14a   : > { %5591 = vmatprep.mubr.msk.bf16.mxu1 %vm6754_vm1, %v6753_v2 }
 0x14b   : > { %5884 = vmatmul.mubr.msk.bf16.vlgmr.msra.gmra.mrb[0].mxu0 %vm410_vm2, %v6664_v20  ;;  %v3825_v20 = vor.u32 %v3823_v18, %v3821_v14 }
 0x14c   : > { %5904 = vmatpush3.bf16.msra.mxu0 %v3675_v22  ;;  %5887 = vmatprep.mubr.msk.bf16.mxu0 %vm6754_vm1, %v6753_v2  ;;  %v3933_v22 = vld [vmem:[%s6991_s25 + $0x4] sm:$0xf] }
 0x14d   : > { %5925 = vmatprep.subr.bf16.mxu0 %v6753_v2 }
 0x151   : > { %5592 = vmatmul.mubr.msk.bf16.gmra.mrb[16].mxu1 %vm410_vm2, %v1484_v19  ;;  %v3827_v19 = vshll.u32 %v6686_v15, 16 }
 0x152   : > { %5597 = vmatprep.mubr.msk.bf16.mxu1 %vm6754_vm1, %v6753_v2 }
 0x153   : > { %5888 = vmatmul.mubr.msk.bf16.gmra.mrb[4].mxu0 %vm410_vm2, %v6665_v25  ;;  %v3829_v21 = vrot.slane %v3827_v19, 1  ;;  %v5217_v25 = vcombine.low %v3933_v22, %v7492_v23 }
 0x154   : > { %5891 = vmatprep.mubr.msk.bf16.mxu0 %vm6754_vm1, %v6753_v2 }
 0x155   : > { %v3830_v32 = vsel %vm652_vm3, %v3825_v20, %v3829_v21  ;;  %v3973_v37 = vshll.u32 %v5217_v25, 16  ;;  %v2031_v20 = vshrl.u32 %v6698_v1, 16  ;;  %v4283_v1 = vld [vmem:[%s6991_s25 + $0x4] sm:$0xe] }
 0x159   : > { %5598 = vmatmul.mubr.msk.bf16.vlgmr.msra.gmra.mrb[0].mxu1 %vm410_vm2, %v1593_v26  ;;  %v3831_v26 = vshrl.u32 %v6686_v15, 16  ;;  %v2029_v15 = vrot.slane %v2027_v10, 1 }
 0x15a   : > { %5601 = vmatprep.mubr.msk.bf16.mxu1 %vm6754_vm1, %v6753_v2  ;;  %5618 = vmatpush3.bf16.msra.mxu1 %v1749_v27  ;;  %v7504_v27 = vld [vmem:[%s6991_s25 + $0xc] sm:$0xff]  }
 0x15b   : > { %5639 = vmatprep.subr.bf16.mxu1 %v6753_v2  ;;  %5892 = vmatmul.mubr.msk.bf16.gmra.mrb[8].mxu0 %vm410_vm2, %v6667_v28  ;;  %v6688_v28 = vld [vmem:[%s6867_s29 + $0x44] sm:$0xff]   ;;  %v4290_v10 = vrot.slane %v7504_v27, 1 }
 0x15c   : > { %5895 = vmatprep.mubr.msk.bf16.mxu0 %vm6754_vm1, %v6753_v2 }
 0x161   : > { %5602 = vmatmul.mubr.msk.bf16.gmra.mrb[4].mxu1 %vm410_vm2, %v1595_v29  ;;  %v3833_v29 = vor.u32 %v3831_v26, %v3829_v21 }
 0x162   : > { %5605 = vmatprep.mubr.msk.bf16.mxu1 %vm6754_vm1, %v6753_v2 }
 0x163   : > { %5896 = vmatmul.mubr.msk.bf16.gmra.mrb[12].mxu0 %vm410_vm2, %v6668_v48  ;;  %v3971_v48 = vshrl.u32 %v5217_v25, 16  ;;  %v2033_v25 = vor.u32 %v2031_v20, %v2029_v15 }
 0x164   : > { %5899 = vmatprep.mubr.msk.bf16.mxu0 %vm6754_vm1, %v6753_v2 }
 0x169   : > { %5606 = vmatmul.mubr.msk.bf16.gmra.mrb[8].mxu1 %vm410_vm2, %v1597_v31  ;;  %v3975_v31 = vrot.slane %v3973_v37, 1  ;;  %v6701_v37 = vld [vmem:[%s6991_s25 + $0x38] sm:$0xff]  }
 0x16a   : > { %5609 = vmatprep.mubr.msk.bf16.mxu1 %vm6754_vm1, %v6753_v2 }
 0x16b   : > { %5900 = vmatmul.mubr.msk.bf16.gmra.mrb[16].mxu0 %vm410_vm2, %v6669_v0  ;;  %v6694_v0 = vld [vmem:[%s6867_s29 + $0x8] sm:$0xff]   ;;  %v3976_v63 = vor.u32 %v3975_v31, %v3971_v48 }
 0x16c   : > { %5905 = vmatprep.mubr.msk.bf16.mxu0 %vm6754_vm1, %v6753_v2  ;;  %v2015_v57 = vshrl.u32 %v6694_v0, 16 }
 0x171   : > { %5610 = vmatmul.mubr.msk.bf16.gmra.mrb[12].mxu1 %vm410_vm2, %v1599_v34  ;;  %v2006_v34 = vshll.u32 %v6693_v30, 16 }
 0x172   : > { %5613 = vmatprep.mubr.msk.bf16.mxu1 %vm6754_vm1, %v6753_v2 }
 0x173   : > { %5906 = vmatmul.mubr.msk.bf16.vlgmr.msra.gmra.mrb[0].mxu0 %vm410_vm2, %v6670_v35 }
 0x174   : > { %5926 = vmatpush3.bf16.msra.mxu0 %v3850_v36  ;;  %5909 = vmatprep.mubr.msk.bf16.mxu0 %vm6754_vm1, %v6753_v2  ;;  %v7517_v36 = vld [vmem:[%s6991_s25 + $0x14] sm:$0xff]  }
 0x175   : > { %5947 = vmatprep.subr.bf16.mxu0 %v6753_v2 }
 0x179   : > { %5614 = vmatmul.mubr.msk.bf16.gmra.mrb[16].mxu1 %vm410_vm2, %v1598_v33  ;;  %v3978_v33 = vshll.u32 %v7504_v27, 16 }
 0x17a   : > { %5619 = vmatprep.mubr.msk.bf16.mxu1 %vm6754_vm1, %v6753_v2 }
 0x17b   : > { %5910 = vmatmul.mubr.msk.bf16.gmra.mrb[4].mxu0 %vm410_vm2, %v6671_v40  ;;  %v3980_v35 = vrot.slane %v3978_v33, 1  ;;  %v2004_v40 = vshrl.u32 %v6693_v30, 16  ;;  %v4153_v33 = vshll.u32 %v6701_v37, 16 }
 0x17c   : > { %5913 = vmatprep.mubr.msk.bf16.mxu0 %vm6754_vm1, %v6753_v2 }
 0x181   : > { %5620 = vmatmul.mubr.msk.bf16.vlgmr.msra.gmra.mrb[0].mxu1 %vm410_vm2, %v6672_v38  ;;  %v5237_v38 = vld [vmem:[%s7851_s3 + $0x32] sm:$0x3] }
 0x182   : > { %5623 = vmatprep.mubr.msk.bf16.mxu1 %vm6754_vm1, %v6753_v2  ;;  %5640 = vmatpush3.bf16.msra.mxu1 %v1883_v41  ;;  %v2008_v41 = vrot.slane %v2006_v34, 1  ;;  %v4200_v46 = vsel %vm426_vm0, %v5237_v38, 0  ;;  %v5248_v38 = vld [vmem:[%s7851_s3 + $0x34] sm:$0x3] }
 0x183   : > { %5661 = vmatprep.subr.bf16.mxu1 %v6753_v2  ;;  %5914 = vmatmul.mubr.msk.bf16.gmra.mrb[8].mxu0 %vm410_vm2, %v6673_v43  ;;  %v3981_v43 = vsel %vm652_vm3, %v3976_v63, %v3980_v35  ;;  %v4155_v63 = vrot.slane %v4153_v33, 1 }
 0x184   : > { %5917 = vmatprep.mubr.msk.bf16.mxu0 %vm6754_vm1, %v6753_v2  ;;  %v2009_v47 = vor.u32 %v2008_v41, %v2004_v40  ;;  %v4157_v41 = vshrl.u32 %v6701_v37, 16 }
 0x189   : > { %5624 = vmatmul.mubr.msk.bf16.gmra.mrb[4].mxu1 %vm410_vm2, %v6674_v42  ;;  %v2011_v42 = vshll.u32 %v6694_v0, 16 }
 0x18a   : > { %5627 = vmatprep.mubr.msk.bf16.mxu1 %vm6754_vm1, %v6753_v2 }
 0x18b   : > { %5918 = vmatmul.mubr.msk.bf16.gmra.mrb[12].mxu0 %vm410_vm2, %v6675_v45  ;;  %v3986_v45 = vshll.u32 %v7517_v36, 16  ;;  %v2013_v50 = vrot.slane %v2011_v42, 1 }
 0x18c   : > { %5921 = vmatprep.mubr.msk.bf16.mxu0 %vm6754_vm1, %v6753_v2 }
 0x18d   : > { %v3988_v53 = vrot.slane %v3986_v45, 1  ;;  %v2014_v5 = vsel %vm652_vm3, %v2009_v47, %v2013_v50  ;;  %v2017_v62 = vor.u32 %v2015_v57, %v2013_v50  ;;  %v6703_v47 = vld [vmem:[%s6867_s29 + $0x58] sm:$0xff]   ;;  %v6705_v57 = vld [vmem:[%s6867_s29 + $0x60] sm:$0xff]  }
 0x191   : > { %5628 = vmatmul.mubr.msk.bf16.gmra.mrb[8].mxu1 %vm410_vm2, %v6676_v44  ;;  %v3982_v44 = vshrl.u32 %v7504_v27, 16  ;;  %v4294_v27 = vrot.slane %v7535_v49, 1 }
 0x192   : > { %5631 = vmatprep.mubr.msk.bf16.mxu1 %vm6754_vm1, %v6753_v2 }
 0x193   : > { %5922 = vmatmul.mubr.msk.bf16.gmra.mrb[16].mxu0 %vm410_vm2, %v6677_v52  ;;  %v3984_v52 = vor.u32 %v3982_v44, %v3980_v35  ;;  %v6702_v35 = vld [vmem:[%s6991_s25 + $0x40] sm:$0xff]   ;;  %v4159_v44 = vor.u32 %v4157_v41, %v4155_v63 }
 0x194   : > { %5927 = vmatprep.mubr.msk.bf16.mxu0 %vm6754_vm1, %v6753_v2  ;;  %v4161_v42 = vshll.u32 %v6702_v35, 16 }
 0x195   : > { %v3989_v58 = vsel %vm652_vm3, %v3984_v52, %v3988_v53 }
 0x196   : > { %v4163_v45 = vrot.slane %v4161_v42, 1 }
 0x198   : > { %v4164_v50 = vsel %vm652_vm3, %v4159_v44, %v4163_v45 }
 0x199   : > { %5632 = vmatmul.mubr.msk.bf16.gmra.mrb[12].mxu1 %vm410_vm2, %v6678_v51  ;;  %v6696_v51 = vld [vmem:[%s6867_s29 + $0x10] sm:$0xff]  }
 0x19a   : > { %5635 = vmatprep.mubr.msk.bf16.mxu1 %vm6754_vm1, %v6753_v2  ;;  %v2019_v56 = vshll.u32 %v6696_v51, 16 }
 0x19b   : > { %5928 = vmatmul.mubr.msk.bf16.vlgmr.msra.gmra.mrb[0].mxu0 %vm410_vm2, %v3806_v59  ;;  %v3994_v59 = vshll.u32 %v7535_v49, 16 }
 0x19c   : > { %5948 = vmatpush3.bf16.msra.mxu0 %v4025_v54  ;;  %5931 = vmatprep.mubr.msk.bf16.mxu0 %vm6754_vm1, %v6753_v2  ;;  %v2021_v54 = vrot.slane %v2019_v56, 1 }
 0x19d   : > { %5969 = vmatprep.subr.bf16.mxu0 %v6753_v2  ;;  %v3996_v3 = vrot.slane %v3994_v59, 1 }
 0x19e   : > { %v2022_v8 = vsel %vm652_vm3, %v2017_v62, %v2021_v54 }
 0x1a1   : > { %5636 = vmatmul.mubr.msk.bf16.gmra.mrb[16].mxu1 %vm410_vm2, %v6681_v6  ;;  %v3990_v6 = vshrl.u32 %v7517_v36, 16 }
 0x1a2   : > { %5641 = vmatprep.mubr.msk.bf16.mxu1 %vm6754_vm1, %v6753_v2 }
 0x1a3   : > { %5932 = vmatmul.mubr.msk.bf16.gmra.mrb[4].mxu0 %vm410_vm2, %v3814_v9  ;;  %v3992_v61 = vor.u32 %v3990_v6, %v3988_v53  ;;  %v2023_v9 = vshrl.u32 %v6696_v51, 16  ;;  %v4165_v51 = vshrl.u32 %v6702_v35, 16 }
 0x1a4   : > { %5935 = vmatprep.mubr.msk.bf16.mxu0 %vm6754_vm1, %v6753_v2 }
 0x1a5   : > { %v3997_v11 = vsel %vm652_vm3, %v3992_v61, %v3996_v3  ;;  %v2025_v14 = vor.u32 %v2023_v9, %v2021_v54  ;;  %v4167_v53 = vor.u32 %v4165_v51, %v4163_v45  ;;  %v6708_v61 = vld [vmem:[%s6867_s29 + $0x70] sm:$0xff]  }
 0x1a7   : > { %v2030_v19 = vsel %vm652_vm3, %v2025_v14, %v2029_v15  ;;  %v6712_v15 = vld [vmem:[%s6867_s29 + $0xa4] ss:$0 sps:$4 sm:$0xff]  }
 0x1a9   : > { %5642 = vmatmul.mubr.msk.bf16.vlgmr.msra.gmra.mrb[0].mxu1 %vm410_vm2, %v6683_v7  ;;  %v7554_v7 = vld [vmem:[%s6991_s25 + $0x24] sm:$0x1f]  }
 0x1aa   : > { %5645 = vmatprep.mubr.msk.bf16.mxu1 %vm6754_vm1, %v6753_v2  ;;  %5662 = vmatpush3.bf16.msra.mxu1 %v2058_v12  ;;  %v3998_v12 = vshrl.u32 %v7535_v49, 16  ;;  %v4002_v13 = vshll.u32 %v7554_v7, 16  ;;  %v4406_v49 = vlaneseq }
 0x1ab   : > { %5683 = vmatprep.subr.bf16.mxu1 %v6753_v2  ;;  %5936 = vmatmul.mubr.msk.bf16.gmra.mrb[8].mxu0 %vm410_vm2, %v3822_v17 }
 0x1ac   : > { %5939 = vmatprep.mubr.msk.bf16.mxu0 %vm6754_vm1, %v6753_v2  ;;  %v4000_v17 = vor.u32 %v3998_v12, %v3996_v3  ;;  %v4004_v18 = vrot.slane %v4002_v13, 1  ;;  %v6711_v13 = vld [vmem:[%s6867_s29 + $0x9c] sm:$0xff]  }
 0x1ae   : > { %v4005_v22 = vsel %vm652_vm3, %v4000_v17, %v4004_v18 }
 0x1b1   : > { %5646 = vmatmul.mubr.msk.bf16.gmra.mrb[4].mxu1 %vm410_vm2, %v6685_v16  ;;  %v6699_v16 = vld [vmem:[%s6867_s29 + $0x20] sm:$0x1f]  }
 0x1b2   : > { %5649 = vmatprep.mubr.msk.bf16.mxu1 %vm6754_vm1, %v6753_v2  ;;  %v2035_v21 = vshll.u32 %v6699_v16, 16  ;;  %v2039_v0 = vshrl.u32 %v6699_v16, 16 }
 0x1b3   : > { %5940 = vmatmul.mubr.msk.bf16.gmra.mrb[12].mxu0 %vm410_vm2, %v3830_v32  ;;  %v4006_v32 = vshrl.u32 %v7554_v7, 16 }
 0x1b4   : > { %5943 = vmatprep.mubr.msk.bf16.mxu0 %vm6754_vm1, %v6753_v2  ;;  %v2037_v26 = vrot.slane %v2035_v21, 1 }
 0x1b6   : > { %v2038_v30 = vsel %vm652_vm3, %v2033_v25, %v2037_v26 }
 0x1b9   : > { %5650 = vmatmul.mubr.msk.bf16.gmra.mrb[8].mxu1 %vm410_vm2, %v6687_v24  ;;  %v6700_v24 = vld [vmem:[%s6991_s25 + $0x30] sm:$0xff]  }
 0x1ba   : > { %5653 = vmatprep.mubr.msk.bf16.mxu1 %vm6754_vm1, %v6753_v2  ;;  %v4146_v48 = vshrl.u32 %v6700_v24, 16 }
 0x1bb   : > { %5944 = vmatmul.mubr.msk.bf16.gmra.mrb[16].mxu0 %vm410_vm2, %v3833_v29  ;;  %v4008_v29 = vor.u32 %v4006_v32, %v4004_v18  ;;  %v7665_v18 = vshrl.u32 %v4406_v49, 7 }
 0x1bc   : > { %5949 = vmatprep.mubr.msk.bf16.mxu0 %vm6754_vm1, %v6753_v2 }
 0x1bd   : > { %v4409_v37 = vadd.s32 16, %v7665_v18  ;;  %v7700_v44 = vadd.s32 40, %v7665_v18 }
 0x1c1   : > { %5654 = vmatmul.mubr.msk.bf16.gmra.mrb[12].mxu1 %vm410_vm2, %v6688_v28  ;;  %v4148_v28 = vshll.u32 %v6700_v24, 16  ;;  %v7673_v24 = vmul.u32.u64.low 3817748708, %v7665_v18  ;;  %v7674_v32 = vmul.u32.u64.high 3817748708, %v7665_v18, %v7673_v24 }
 0x1c2   : > { %5657 = vmatprep.mubr.msk.bf16.mxu1 %vm6754_vm1, %v6753_v2 }
 0x1c3   : > { %5950 = vmatmul.mubr.msk.bf16.vlgmr.msra.gmra.mrb[0].mxu0 %vm410_vm2, %v3981_v43  ;;  %v4150_v31 = vrot.slane %v4148_v28, 1  ;;  %v4314_v43 = vsel %vm426_vm0, %v5248_v38, 0 }
 0x1c4   : > { %5970 = vmatpush3.bf16.msra.mxu0 %v4200_v46  ;;  %5953 = vmatprep.mubr.msk.bf16.mxu0 %vm6754_vm1, %v6753_v2  ;;  %v6704_v46 = vld [vmem:[%s6991_s25 + $0x48] sm:$0xff]  }
 0x1c5   : > { %5991 = vmatprep.subr.bf16.mxu0 %v6753_v2  ;;  %v4151_v34 = vor.u32 %v4150_v31, %v4146_v48  ;;  %v4169_v52 = vshll.u32 %v6704_v46, 16  ;;  %v4422_v31 = vshrl.u32 %v7674_v32, 3 }
 0x1c7   : > { %v4156_v40 = vsel %vm652_vm3, %v4151_v34, %v4155_v63  ;;  %v4171_v55 = vrot.slane %v4169_v52, 1  ;;  %v4423_v38 = vmul.u32 9, %v4422_v31 }
 0x1c9   : > { %5658 = vmatmul.mubr.msk.bf16.gmra.mrb[16].mxu1 %vm410_vm2, %v6691_v39  ;;  %v2041_v39 = vor.u32 %v2039_v0, %v2037_v26  ;;  %v4172_v56 = vsel %vm652_vm3, %v4167_v53, %v4171_v55  ;;  %v7686_v33 = vmul.u32.u64.low 3817748708, %v4409_v37  ;;  %v7687_v0 = vmul.u32.u64.high 3817748708, %v4409_v37, %v7686_v33 }
 0x1ca   : > { %5663 = vmatprep.mubr.msk.bf16.mxu1 %vm6754_vm1, %v6753_v2 }
 0x1cb   : > { %5954 = vmatmul.mubr.msk.bf16.gmra.mrb[4].mxu0 %vm410_vm2, %v3989_v58  ;;  %v4173_v58 = vshrl.u32 %v6704_v46, 16  ;;  %v4424_v46 = vsub.s32 %v7665_v18, %v4423_v38  ;;  %v4444_v51 = vshrl.u32 %v7687_v0, 3 }
 0x1cc   : > { %5957 = vmatprep.mubr.msk.bf16.mxu0 %vm6754_vm1, %v6753_v2 }
 0x1cd   : > { %v4175_v59 = vor.u32 %v4173_v58, %v4171_v55  ;;  %vm4515_vm5 = vcmp.ne.s32.totalorder %v4424_v46, 0  ;;  %vm4524_vm6 = vcmp.lt.s32.totalorder %v4424_v46, 0  ;;  %v4542_v58 = vadd.s32 9, %v4424_v46 }
 0x1ce   : > { %vm7720_vm7 = vmand %vm4524_vm6, %vm4515_vm5 }
 0x1d1   : > { %5664 = vmatmul.mubr.msk.bf16.vlgmr.msra.gmra.mrb[0].mxu1 %vm410_vm2, %v2014_v5  ;;  %v6706_v5 = vld [vmem:[%s6991_s25 + $0x50] sm:$0x1f]   ;;  %s6528_s25 = smul.u32 9, %s7887_s18 }
 0x1d2   : > { %5667 = vmatprep.mubr.msk.bf16.mxu1 %vm6754_vm1, %v6753_v2  ;;  %5684 = vmatpush3.bf16.msra.mxu1 %v2192_v60  ;;  %v4177_v6 = vshll.u32 %v6706_v5, 16  ;;  %v6707_v60 = vld [vmem:[%s6867_s29 + $0x68] sm:$0xff]   ;;  %v4181_v54 = vshrl.u32 %v6706_v5, 16  ;;  %v7713_v55 = vmul.u32.u64.low 3817748708, %v7700_v44  ;;  %v7714_v5 = vmul.u32.u64.high 3817748708, %v7700_v44, %v7713_v55 }
 0x1d3   : > { %6013 = vmatprep.subr.bf16.mxu1 %v6753_v2  ;;  %5958 = vmatmul.mubr.msk.bf16.gmra.mrb[8].mxu0 %vm410_vm2, %v3997_v11  ;;  %v6710_v11 = vld [vmem:[%s6867_s29 + $0x78] ss:$0 sps:$4 sm:$0xff]   ;;  %s6529_s29 = smul.u32 144, %s7881_s19 }
 0x1d4   : > { %5961 = vmatprep.mubr.msk.bf16.mxu0 %vm6754_vm1, %v6753_v2 }
 0x1d5   : > { %s353_s14 = sadd.s32 %s6529_s29, %s6528_s25 }
 0x1d6   : > { %s4827_s12 = sshll.u32 %s353_s14, 3 }
 0x1d7   : > { %s7751_s30 = scalar_lea.vmem %s7852_s4, %s4827_s12 }
 0x1d9   : > { %5668 = vmatmul.mubr.msk.bf16.gmra.mrb[4].mxu1 %vm410_vm2, %v2022_v8  ;;  %v5249_v8 = vcombine.low %v4283_v1, %v7492_v23  ;;  %v4292_v23 = vrot.slane %v7517_v36, 1  ;;  %v4296_v36 = vrot.slane %v7554_v7, 1  ;;  %v4408_v7 = vadd.s32 8, %v7665_v18 }
 0x1da   : > { %5671 = vmatprep.mubr.msk.bf16.mxu1 %vm6754_vm1, %v6753_v2 }
 0x1db   : > { %5962 = vmatmul.mubr.msk.bf16.gmra.mrb[12].mxu0 %vm410_vm2, %v4005_v22  ;;  %v4289_v9 = vrot.slane %v5249_v8, 1  ;;  %v4293_v14 = vsel %vm1590_vm4, %v4290_v10, %v4292_v23  ;;  %v4295_v16 = vsel %vm1590_vm4, %v4292_v23, %v4294_v27  ;;  %v4297_v17 = vsel %vm1590_vm4, %v4294_v27, %v4296_v36 }
 0x1dc   : > { %5965 = vmatprep.mubr.msk.bf16.mxu0 %vm6754_vm1, %v6753_v2 }
 0x1dd   : > { %v4291_v12 = vsel %vm1590_vm4, %v4289_v9, %v4290_v10  ;;  %v4477_v10 = vshrl.u32 %v7714_v5, 3 }
 0x1e1   : > { %5672 = vmatmul.mubr.msk.bf16.gmra.mrb[8].mxu1 %vm410_vm2, %v2030_v19 }
 0x1e2   : > { %5675 = vmatprep.mubr.msk.bf16.mxu1 %vm6754_vm1, %v6753_v2 }
 0x1e3   : > { %5966 = vmatmul.mubr.msk.bf16.gmra.mrb[16].mxu0 %vm410_vm2, %v4008_v29 }
 0x1e4   : > { %5971 = vmatprep.mubr.msk.bf16.mxu0 %vm6754_vm1, %v6753_v2 }
 0x1e9   : > { %5676 = vmatmul.mubr.msk.bf16.gmra.mrb[12].mxu1 %vm410_vm2, %v2038_v30  ;;  %v4410_v30 = vadd.s32 24, %v7665_v18 }
 0x1ea   : > { %5679 = vmatprep.mubr.msk.bf16.mxu1 %vm6754_vm1, %v6753_v2 }
 0x1eb   : > { %5972 = vmatmul.mubr.msk.bf16.vlgmr.msra.gmra.mrb[0].mxu0 %vm410_vm2, %v4156_v40  ;;  %v7690_v63 = vmul.u32.u64.low 3817748708, %v4410_v30  ;;  %v7691_v35 = vmul.u32.u64.high 3817748708, %v4410_v30, %v7690_v63 }
 0x1ec   : > { %5992 = vmatpush3.bf16.msra.mxu0 %v4314_v43  ;;  %5975 = vmatprep.mubr.msk.bf16.mxu0 %vm6754_vm1, %v6753_v2 }
 0x1ed   : > { %v4455_v53 = vshrl.u32 %v7691_v35, 3 }
 0x1f1   : > { %5680 = vmatmul.mubr.msk.bf16.gmra.mrb[16].mxu1 %vm410_vm2, %v2041_v39  ;;  %v4411_v39 = vadd.s32 32, %v7665_v18 }
 0x1f2   : > { %5685 = vmatprep.mubr.msk.bf16.mxu1 %vm6754_vm1, %v6753_v2 }
 0x1f3   : > { %5976 = vmatmul.mubr.msk.bf16.gmra.mrb[4].mxu0 %vm410_vm2, %v4164_v50 }
 0x1f4   : > { %5979 = vmatprep.mubr.msk.bf16.mxu0 %vm6754_vm1, %v6753_v2 }
 0x1f9   : > { %5686 = vmatmul.mubr.msk.bf16.vlgmr.msra.gmra.mrb[0].mxu1 %vm410_vm2, %v6703_v47  ;;  %v7706_v47 = vmul.u32.u64.low 3817748708, %v4411_v39  ;;  %v7707_v50 = vmul.u32.u64.high 3817748708, %v4411_v39, %v7706_v47 }
 0x1fa   : > { %5689 = vmatprep.mubr.msk.bf16.mxu1 %vm6754_vm1, %v6753_v2  ;;  %6014 = vmatpush3.bf16.msra.mxu1 %v6827_v4  ;;  %v4179_v4 = vrot.slane %v4177_v6, 1 }
 0x1fb   : > { %5980 = vmatmul.mubr.msk.bf16.gmra.mrb[8].mxu0 %vm410_vm2, %v4172_v56  ;;  %v4445_v56 = vmul.u32 9, %v4444_v51 }
 0x1fc   : > { %5983 = vmatprep.mubr.msk.bf16.mxu0 %vm6754_vm1, %v6753_v2  ;;  %v4180_v62 = vsel %vm652_vm3, %v4175_v59, %v4179_v4  ;;  %v4183_v3 = vor.u32 %v4181_v54, %v4179_v4  ;;  %v4456_v59 = vmul.u32 9, %v4455_v53  ;;  %v7725_v4 = vadd.s32 56, %v7665_v18 }
 0x1fe   : > { %v4457_v9 = vsub.s32 %v4410_v30, %v4456_v59 }
 0x200   : > { %vm4518_vm14 = vcmp.ne.s32.totalorder %v4457_v9, 0  ;;  %vm4527_vm15 = vcmp.lt.s32.totalorder %v4457_v9, 0 }
 0x201   : > { %5690 = vmatmul.mubr.msk.bf16.gmra.mrb[4].mxu1 %vm410_vm2, %v6705_v57  ;;  %v7718_v57 = vadd.s32 48, %v7665_v18 }
 0x202   : > { %5693 = vmatprep.mubr.msk.bf16.mxu1 %vm6754_vm1, %v6753_v2 }
 0x203   : > { %5984 = vmatmul.mubr.msk.bf16.gmra.mrb[12].mxu0 %vm410_vm2, %v4180_v62  ;;  %v7729_v62 = vmul.u32.u64.low 3817748708, %v7718_v57  ;;  %v7730_v54 = vmul.u32.u64.high 3817748708, %v7718_v57, %v7729_v62 }
 0x204   : > { %5987 = vmatprep.mubr.msk.bf16.mxu0 %vm6754_vm1, %v6753_v2 }
 0x209   : > { %5694 = vmatmul.mubr.msk.bf16.gmra.mrb[8].mxu1 %vm410_vm2, %v6707_v60  ;;  %v4466_v60 = vshrl.u32 %v7707_v50, 3 }
 0x20a   : > { %5697 = vmatprep.mubr.msk.bf16.mxu1 %vm6754_vm1, %v6753_v2 }
 0x20b   : > { %5988 = vmatmul.mubr.msk.bf16.gmra.mrb[16].mxu0 %vm410_vm2, %v4183_v3  ;;  %v4551_v3 = vsel %vm7720_vm7, %v4542_v58, %v4424_v46  ;;  %v4467_v23 = vmul.u32 9, %v4466_v60 }
 0x20c   : > { %5993 = vmatprep.mubr.msk.bf16.mxu0 %vm6754_vm1, %v6753_v2  ;;  %vm4560_vm13 = vcmp.lt.s32.totalorder %v4551_v3, 8 }
 0x211   : > { %5698 = vmatmul.mubr.msk.bf16.gmra.mrb[12].mxu1 %vm410_vm2, %v6708_v61  ;;  %v4446_v61 = vsub.s32 %v4409_v37, %v4445_v56 }
 0x212   : > { %5701 = vmatprep.mubr.msk.bf16.mxu1 %vm6754_vm1, %v6753_v2 }
 0x213   : > { %5994 = vmatmul.mubr.msk.bf16.vlgmr.msra.gmra.mrb[0].mxu0 %vm410_vm2, %v4291_v12  ;;  %vm4517_vm11 = vcmp.ne.s32.totalorder %v4446_v61, 0  ;;  %vm4526_vm12 = vcmp.lt.s32.totalorder %v4446_v61, 0 }
 0x214   : > { %5997 = vmatprep.mubr.msk.bf16.mxu0 %vm6754_vm1, %v6753_v2 }
 0x219   : > { %5702 = vmatmul.mubr.msk.bf16.gmra.mrb[16].mxu1 %vm410_vm2, %v6710_v11  ;;  %v7740_v11 = vmul.u32.u64.low 3817748708, %v7725_v4  ;;  %v7741_v12 = vmul.u32.u64.high 3817748708, %v7725_v4, %v7740_v11 }
 0x21a   : > { %5719 = vmatprep.mubr.msk.bf16.mxu1 %vm6754_vm1, %v6753_v2 }
 0x21b   : > { %5998 = vmatmul.mubr.msk.bf16.gmra.mrb[4].mxu0 %vm410_vm2, %v4293_v14  ;;  %v7746_v14 = vadd.s32 64, %v7665_v18  ;;  %v4499_v31 = vshrl.u32 %v7741_v12, 3 }
 0x21c   : > { %6001 = vmatprep.mubr.msk.bf16.mxu0 %vm6754_vm1, %v6753_v2 }
 0x21d   : > { %v4500_v47 = vmul.u32 9, %v4499_v31 }
 0x221   : > { %5720 = vmatmul.mubr.msk.bf16.vlgmr.msra.gmra.mrb[12].mxu1 %vm410_vm2, %v6711_v13 }
 0x222   : > { %5723 = vmatprep.mubr.msk.bf16.mxu1 %vm6754_vm1, %v6753_v2 }
 0x223   : > { %6002 = vmatmul.mubr.msk.bf16.gmra.mrb[8].mxu0 %vm410_vm2, %v4295_v16 }
 0x224   : > { %6005 = vmatprep.mubr.msk.bf16.mxu0 %vm6754_vm1, %v6753_v2 }
 0x229   : > { %5724 = vmatmul.mubr.msk.bf16.gmra.mrb[16].mxu1 %vm410_vm2, %v6712_v15  ;;  %v4544_v15 = vadd.s32 9, %v4446_v61 }
 0x22b   : > { %6006 = vmatmul.mubr.msk.bf16.gmra.mrb[12].mxu0 %vm410_vm2, %v4297_v17  ;;  %v4478_v17 = vmul.u32 9, %v4477_v10 }
 0x22c   : > { %6009 = vmatprep.mubr.msk.bf16.mxu0 %vm6754_vm1, %v6753_v2  ;;  %v7676_v25 = vmul.u32.u64.low 3817748708, %v4408_v7  ;;  %v7677_v2 = vmul.u32.u64.high 3817748708, %v4408_v7, %v7676_v25  ;;  %vm7755_vm1 = vmand %vm4526_vm12, %vm4517_vm11 }
 0x22d   : > { %v4553_v30 = vsel %vm7755_vm1, %v4544_v15, %v4446_v61 }
 0x22e   : > { %v4433_v34 = vshrl.u32 %v7677_v2, 3  ;;  %v7763_v25 = vmul.u32.u64.low 3817748708, %v7746_v14  ;;  %v7764_v2 = vmul.u32.u64.high 3817748708, %v7746_v14, %v7763_v25  ;;  %vm4562_vm5 = vcmp.lt.s32.totalorder %v4553_v30, 8 }
 0x230   : > { %v4434_v43 = vmul.u32 9, %v4433_v34  ;;  %v4510_v58 = vshrl.u32 %v7764_v2, 3 }
 0x232   : > { %v4435_v52 = vsub.s32 %v4408_v7, %v4434_v43  ;;  %v4468_v7 = vsub.s32 %v4411_v39, %v4467_v23 }
 0x233   : > { %6010 = vmatmul.mubr.msk.bf16.gmra.mrb[16].mxu0 %vm410_vm2, %v4296_v36  ;;  %vm7767_vm2 = vmand %vm4527_vm15, %vm4518_vm14 }
 0x234   : > { %vm4516_vm8 = vcmp.ne.s32.totalorder %v4435_v52, 0  ;;  %vm4525_vm9 = vcmp.lt.s32.totalorder %v4435_v52, 0  ;;  %v4543_v1 = vadd.s32 9, %v4435_v52  ;;  %vm4519_vm3 = vcmp.ne.s32.totalorder %v4468_v7, 0 }
 0x235   : > { %vm7734_vm10 = vmand %vm4525_vm9, %vm4516_vm8  ;;  %vm4528_vm4 = vcmp.lt.s32.totalorder %v4468_v7, 0  ;;  %v4546_v43 = vadd.s32 9, %v4468_v7 }
 0x236   : > { %v4552_v13 = vsel %vm7734_vm10, %v4543_v1, %v4435_v52  ;;  %vm7785_vm9 = vmand %vm4528_vm4, %vm4519_vm3 }
 0x237   : > { %vm4561_vm0 = vcmp.lt.s32.totalorder %v4552_v13, 8 }
 0x2cc   : > { %v7667_v19 = vpop.f32.mrb[0].mxu1 }
 0x2cd   : > { %v5687_v20 = vpop.f32.mrb[1].mxu1 }
 0x2ce   : > { %v7669_v21 = vpop.f32.mrb[2].mxu1  ;;  %v4545_v20 = vadd.s32 9, %v4457_v9 }
 0x2cf   : > { %v5688_v22 = vpop.f32.mrb[3].mxu1 }
 0x2d0   : > { %v4488_v22 = vshrl.u32 %v7730_v54, 3  ;;  %v4554_v34 = vsel %vm7767_vm2, %v4545_v20, %v4457_v9  ;;  %v4555_v54 = vsel %vm7785_vm9, %v4546_v43, %v4468_v7  ;;  %v4511_v9 = vmul.u32 9, %v4510_v58 }
 0x2d1   : > { %vm4563_vm8 = vcmp.lt.s32.totalorder %v4554_v34, 8 }
 0x2d2   : > { %v4489_v35 = vmul.u32 9, %v4488_v22  ;;  %v4512_v20 = vsub.s32 %v7746_v14, %v4511_v9 }
 0x2d4   : > { %v7679_v26 = vpop.f32.mrb[4].mxu1  ;;  %v4490_v56 = vsub.s32 %v7718_v57, %v4489_v35  ;;  %vm4523_vm3 = vcmp.ne.s32.totalorder %v4512_v20, 0  ;;  %vm4532_vm4 = vcmp.lt.s32.totalorder %v4512_v20, 0  ;;  %v4550_v31 = vadd.s32 9, %v4512_v20 }
 0x2d5   : > { %v5691_v28 = vpop.f32.mrb[5].mxu1 }
 0x2d6   : > { %v7682_v29 = vpop.f32.mrb[6].mxu1  ;;  %vm4521_vm11 = vcmp.ne.s32.totalorder %v4490_v56, 0  ;;  %vm4530_vm12 = vcmp.lt.s32.totalorder %v4490_v56, 0 }
 0x2d7   : > { %v5692_v48 = vpop.f32.mrb[7].mxu1  ;;  %vm7807_vm1 = vmand %vm4530_vm12, %vm4521_vm11 }
 0x2d8   : > { %v4479_v48 = vsub.s32 %v7700_v44, %v4478_v17 }
 0x2da   : > { %vm4520_vm6 = vcmp.ne.s32.totalorder %v4479_v48, 0  ;;  %vm4529_vm7 = vcmp.lt.s32.totalorder %v4479_v48, 0  ;;  %v4547_v53 = vadd.s32 9, %v4479_v48 }
 0x2db   : > { %vm7795_vm10 = vmand %vm4529_vm7, %vm4520_vm6 }
 0x2dc   : > { %v7695_v40 = vpop.f32.mrb[8].mxu1  ;;  %v4556_v3 = vsel %vm7795_vm10, %v4547_v53, %v4479_v48  ;;  %vm4541_vm7 = vmand %vm4532_vm4, %vm4523_vm3 }
 0x2dd   : > { %v5695_v41 = vpop.f32.mrb[9].mxu1 }
 0x2de   : > { %v7697_v42 = vpop.f32.mrb[10].mxu1 }
 0x2df   : > { %v5696_v45 = vpop.f32.mrb[11].mxu1 }
 0x2e6   : > { %v4350_v27 = vpop.f32.mrb[0].mxu0 }
 0x2e7   : > { %v6015_v16 = vadd.f32 %v4350_v27, %v7667_v19  ;;  %v5995_v36 = vpop.f32.mrb[1].mxu0  ;;  %v4548_v27 = vadd.s32 9, %v4490_v56 }
 0x2e8   : > { %v4353_v49 = vpop.f32.mrb[2].mxu0 }
 0x2e9   : > { %4397 = vst [vmem:[%s7751_s30] sm:$0xff] %v6015_v16  ;;  %v4587_v24 = vsel %vm4560_vm13, %v6015_v16, 0.0  ;;  %v6016_v19 = vadd.f32 %v4353_v49, %v7669_v21  ;;  %v5996_v32 = vpop.f32.mrb[3].mxu0  ;;  %vm4564_vm13 = vcmp.lt.s32.totalorder %v4555_v54, 8 }
 0x2ea   : > { %v4611_v21 = vmul.f32 %v4587_v24, %v4587_v24  ;;  %v4557_v32 = vsel %vm7807_vm1, %v4548_v27, %v4490_v56 }
 0x2eb   : > { %4398 = vst [vmem:[%s7751_s30 + $0x8] sm:$0xff] %v6016_v19  ;;  %v4588_v28 = vsel %vm4561_vm0, %v6016_v19, 0.0  ;;  %vm4565_vm0 = vcmp.lt.s32.totalorder %v4556_v3, 8 }
 0x2ec   : > { %v4596_v33 = vadd.f32 %v4588_v28, %v4587_v24  ;;  %v4612_v0 = vmul.f32 %v4588_v28, %v4588_v28 }
 0x2ee   : > { %v4620_v38 = vadd.f32 %v4612_v0, %v4611_v21  ;;  %v4358_v39 = vpop.f32.mrb[4].mxu0 }
 0x2ef   : > { %v6017_v44 = vadd.f32 %v4358_v39, %v7679_v26  ;;  %v5999_v45 = vpop.f32.mrb[5].mxu0 }
 0x2f0   : > { %v4361_v50 = vpop.f32.mrb[6].mxu0 }
 0x2f1   : > { %4399 = vst [vmem:[%s7751_s30 + $0x10] sm:$0xff] %v6017_v44  ;;  %v4589_v55 = vsel %vm4562_vm5, %v6017_v44, 0.0  ;;  %v6018_v26 = vadd.f32 %v4361_v50, %v7682_v29  ;;  %v6000_v5 = vpop.f32.mrb[7].mxu0  ;;  %v4501_v29 = vsub.s32 %v7725_v4, %v4500_v47  ;;  %vm4566_vm5 = vcmp.lt.s32.totalorder %v4557_v32, 8 }
 0x2f2   : > { %v4597_v6 = vadd.f32 %v4596_v33, %v4589_v55  ;;  %v4613_v59 = vmul.f32 %v4589_v55, %v4589_v55 }
 0x2f3   : > { %4400 = vst [vmem:[%s7751_s30 + $0x18] sm:$0xff] %v6018_v26  ;;  %v4590_v62 = vsel %vm4563_vm8, %v6018_v26, 0.0  ;;  %vm4522_vm14 = vcmp.ne.s32.totalorder %v4501_v29, 0  ;;  %vm4531_vm15 = vcmp.lt.s32.totalorder %v4501_v29, 0 }
 0x2f4   : > { %v7778_v63 = vpop.f32.mrb[12].mxu1  ;;  %v4621_v1 = vadd.f32 %v4620_v38, %v4613_v59  ;;  %v4598_v61 = vadd.f32 %v4597_v6, %v4590_v62  ;;  %v4614_v57 = vmul.f32 %v4590_v62, %v4590_v62  ;;  %vm7814_vm2 = vmand %vm4531_vm15, %vm4522_vm14 }
 0x2f5   : > { %v5721_v41 = vpop.f32.mrb[13].mxu1 }
 0x2f6   : > { %v7781_v46 = vpop.f32.mrb[14].mxu1  ;;  %v4622_v10 = vadd.f32 %v4621_v1, %v4614_v57  ;;  %v4366_v11 = vpop.f32.mrb[8].mxu0  ;;  %v4559_v41 = vsel %vm4541_vm7, %v4550_v31, %v4512_v20 }
 0x2f7   : > { %v5722_v52 = vpop.f32.mrb[15].mxu1  ;;  %v6019_v23 = vadd.f32 %v4366_v11, %v7695_v40  ;;  %v6003_v13 = vpop.f32.mrb[9].mxu0  ;;  %v4549_v40 = vadd.s32 9, %v4501_v29  ;;  %vm4568_vm8 = vcmp.lt.s32.totalorder %v4559_v41, 8 }
 0x2f8   : > { %v4369_v15 = vpop.f32.mrb[10].mxu0 }
 0x2f9   : > { %4401 = vst [vmem:[%s7751_s30 + $0x20] sm:$0xff] %v6019_v23  ;;  %v4591_v17 = vsel %vm4564_vm13, %v6019_v23, 0.0  ;;  %v6020_v49 = vadd.f32 %v4369_v15, %v7697_v42  ;;  %v6004_v18 = vpop.f32.mrb[11].mxu0  ;;  %v4558_v42 = vsel %vm7814_vm2, %v4549_v40, %v4501_v29 }
 0x2fa   : > { %v4599_v7 = vadd.f32 %v4598_v61, %v4591_v17  ;;  %v4615_v22 = vmul.f32 %v4591_v17, %v4591_v17  ;;  %vm4567_vm6 = vcmp.lt.s32.totalorder %v4558_v42, 8 }
 0x2fb   : > { %4402 = vst [vmem:[%s7751_s30 + $0x28] sm:$0xff] %v6020_v49  ;;  %v4592_v19 = vsel %vm4565_vm0, %v6020_v49, 0.0 }
 0x2fc   : > { %v2394_v8 = vpop.f32.mrb[16].mxu1  ;;  %v4623_v25 = vadd.f32 %v4622_v10, %v4615_v22  ;;  %v4600_v2 = vadd.f32 %v4599_v7, %v4592_v19  ;;  %v4616_v37 = vmul.f32 %v4592_v19, %v4592_v19 }
 0x2fd   : > { %v5725_v12 = vpop.f32.mrb[17].mxu1 }
 0x2fe   : > { %v2397_v4 = vpop.f32.mrb[18].mxu1  ;;  %v4624_v14 = vadd.f32 %v4623_v25, %v4616_v37  ;;  %v4374_v28 = vpop.f32.mrb[12].mxu0 }
 0x2ff   : > { %v5726_v36 = vpop.f32.mrb[19].mxu1  ;;  %v6021_v30 = vadd.f32 %v4374_v28, %v7778_v63  ;;  %v6007_v48 = vpop.f32.mrb[13].mxu0 }
 0x300   : > { %v4377_v21 = vpop.f32.mrb[14].mxu0 }
 0x301   : > { %4403 = vst [vmem:[%s7751_s30 + $0x30] sm:$0xff] %v6021_v30  ;;  %v4593_v33 = vsel %vm4566_vm5, %v6021_v30, 0.0  ;;  %v6022_v0 = vadd.f32 %v4377_v21, %v7781_v46  ;;  %v6008_v34 = vpop.f32.mrb[15].mxu0 }
 0x302   : > { %v4601_v35 = vadd.f32 %v4600_v2, %v4593_v33  ;;  %v4617_v38 = vmul.f32 %v4593_v33, %v4593_v33 }
 0x303   : > { %4404 = vst [vmem:[%s7751_s30 + $0x38] sm:$0xff] %v6022_v0  ;;  %v4594_v39 = vsel %vm4567_vm6, %v6022_v0, 0.0 }
 0x304   : > { %v4625_v43 = vadd.f32 %v4624_v14, %v4617_v38  ;;  %v4602_v44 = vadd.f32 %v4601_v35, %v4594_v39  ;;  %v4618_v63 = vmul.f32 %v4594_v39, %v4594_v39 }
 0x306   : > { %v4626_v45 = vadd.f32 %v4625_v43, %v4618_v63  ;;  %v4382_v47 = vpop.f32.mrb[16].mxu0 }
 0x307   : > { %v6023_v50 = vadd.f32 %v4382_v47, %v2394_v8  ;;  %v6011_v51 = vpop.f32.mrb[17].mxu0 }
 0x308   : > { %v4385_v52 = vpop.f32.mrb[18].mxu0 }
 0x309   : > { %4405 = vst [vmem:[%s7751_s30 + $0x40] sm:$0xff] %v6023_v50  ;;  %v4595_v46 = vsel %vm4568_vm8, %v6023_v50, 0.0  ;;  %v6012_v53 = vpop.f32.mrb[19].mxu0 }
 0x30a   : > { %v4603_v55 = vadd.f32 %v4602_v44, %v4595_v46  ;;  %v4619_v26 = vmul.f32 %v4595_v46, %v4595_v46 }
 0x30c   : > { %v4604_v5 = vrot.slane %v4603_v55, 4  ;;  %v4627_v56 = vadd.f32 %v4626_v45, %v4619_v26 }
 0x30e   : > { %v4605_v58 = vadd.f32 %v4604_v5, %v4603_v55  ;;  %v4628_v6 = vrot.slane %v4627_v56, 4 }
 0x310   : > { %v4606_v59 = vrot.slane %v4605_v58, 2  ;;  %v4629_v60 = vadd.f32 %v4628_v6, %v4627_v56 }
 0x312   : > { %v4607_v62 = vadd.f32 %v4606_v59, %v4605_v58  ;;  %v4630_v54 = vrot.slane %v4629_v60, 2 }
 0x314   : > { %v4608_v29 = vrot.slane %v4607_v62, 1  ;;  %v4631_v1 = vadd.f32 %v4630_v54, %v4629_v60 }
 0x316   : > { %v4609_v61 = vadd.f32 %v4608_v29, %v4607_v62  ;;  %v4632_v57 = vrot.slane %v4631_v1, 1 }
 0x318   : > { %4610 = vst [vmem:[%s363_s6] sm:$0x1] %v4609_v61  ;;  %v4633_v3 = vadd.f32 %v4632_v57, %v4631_v1 }
 0x31a   : > { %4634 = vst [vmem:[%s363_s6 + $0x1] sm:$0x1] %v4633_v3 }
 0x31b PF: > { %s16_s22 = sadd.s32 1, %s6751_s22   ;;  %s7870_s18 = smov %s6743_s20 }
 0x31c   : > { %p13_p10 = scmp.ge.s32.totalorder %s16_s22, 34   ;;  %s7871_s19 = smov %s6747_s21 }
 0x31d   : > { %s7872_s20 = smov %s7875_s23  ;;  %s7873_s21 = smov %s7879_s24 }
 0x31e   :  { %15 = sbr.rel (!%p13_p10) target bundleno = 3 (0x3), region = 119 }

// kernel: down_forward.7
= control target key start
LH: loop header
LB: loop body
LE: loop exit
PB: predicated region body
PF: predicated region fallthrough
CT: control target
= control target key end

     0   :  { %s854_s12 = smov 0   ;;  %s1282_s0 = inlined_call_operand.vmem [shape: f32[2560,128], index: 0, kind: input, shape index: {}]   ;;  %s1283_s1 = inlined_call_operand.vmem [shape: f32[1,128], index: 1, kind: input, shape index: {}]   ;;  %s1284_s2 = inlined_call_operand.vmem [shape: f32[1,128], index: 2, kind: input, shape index: {}]   ;;  %s1285_s3 = inlined_call_operand.vmem [shape: f32[2560,8], index: 3, kind: output, shape index: {}]  }
   0x1 LB: > { %s805_s13 = sadd.s32 4294967295, %s832_s12   ;;  %p809_p0 = scmp.ge.s32.totalorder %s832_s12, 1  ;;  %s832_s12 = sphi %s854_s12, %s13_s12  }
   0x2   : > { %p138_p1 = scmp.lt.s32.totalorder %s832_s12, 5 }
   0x4   : > { %p139_p2 = pnand %p809_p0, %p138_p1 }
   0x5   : > { %s162_s14 = smul.u32 (!%p139_p2), 80, %s805_s13  ;;  %v868_v0 = vld [vmem:[%s1283_s1] ss:$0 sm:$0xff] (!%p139_p2)  ;;  %vm668_vm0 = vcmask (!%p139_p2), 64512  }
   0x6   : > { %142 = sbr.rel (%p139_p2) target bundleno = 122 (0x7a), region = 32  ;;  %v878_v1 = vld [vmem:[%s1284_s2] ss:$0 sm:$0xff] (!%p139_p2) }
   0x7   : > { %p163_p3 = scmp.lt.s32.totalorder (!%p139_p2), %s162_s14, 319 }
   0xd   : > { %s1287_s14 = smov (!%p163_p3, %s162_s14), 319 }
   0xe   : > { %s810_s15 = sshll.u32 %s1287_s14, 3 }
   0xf   : > { %s873_s20 = scalar_lea.vmem %s1282_s0, %s810_s15  ;;  %s906_s25 = scalar_lea.vmem %s1285_s3, %s810_s15 }
  0x10   : > { %v174_v2 = vld [vmem:[%s873_s20] sm:$0xff]  ;;  %v175_v3 = vld [vmem:[%s873_s20 + $0x8] sm:$0xff]  ;;  %v176_v4 = vld [vmem:[%s873_s20 + $0x10] sm:$0xff] }
  0x11   : > { %v261_v5 = vmul.f32 %v868_v0, %v174_v2  ;;  %v262_v6 = vmul.f32 %v868_v0, %v175_v3  ;;  %v263_v7 = vmul.f32 %v868_v0, %v176_v4  ;;  %v177_v8 = vld [vmem:[%s873_s20 + $0x18] sm:$0xff]  ;;  %v178_v9 = vld [vmem:[%s873_s20 + $0x20] sm:$0xff]  ;;  %v179_v10 = vld [vmem:[%s873_s20 + $0x28] sm:$0xff] }
  0x12   : > { %v264_v11 = vmul.f32 %v868_v0, %v177_v8  ;;  %v265_v12 = vmul.f32 %v868_v0, %v178_v9  ;;  %v266_v13 = vmul.f32 %v868_v0, %v179_v10  ;;  %v180_v14 = vld [vmem:[%s873_s20 + $0x30] sm:$0xff]  ;;  %v181_v15 = vld [vmem:[%s873_s20 + $0x38] sm:$0xff]  ;;  %v182_v24 = vld [vmem:[%s873_s20 + $0x40] sm:$0xff] }
  0x13   : > { %v348_v16 = vadd.f32 %v878_v1, %v261_v5  ;;  %v349_v17 = vadd.f32 %v878_v1, %v262_v6  ;;  %v350_v18 = vadd.f32 %v878_v1, %v263_v7  ;;  %v267_v19 = vmul.f32 %v868_v0, %v180_v14  ;;  %v183_v32 = vld [vmem:[%s873_s20 + $0x48] sm:$0xff]  ;;  %v184_v33 = vld [vmem:[%s873_s20 + $0x50] sm:$0xff]  ;;  %v185_v34 = vld [vmem:[%s873_s20 + $0x58] sm:$0xff] }
  0x14   : > { %v351_v20 = vadd.f32 %v878_v1, %v264_v11  ;;  %v352_v21 = vadd.f32 %v878_v1, %v265_v12  ;;  %v353_v22 = vadd.f32 %v878_v1, %v266_v13  ;;  %v268_v23 = vmul.f32 %v868_v0, %v181_v15  ;;  %v186_v46 = vld [vmem:[%s873_s20 + $0x60] sm:$0xff]  ;;  %v187_v47 = vld [vmem:[%s873_s20 + $0x68] sm:$0xff]  ;;  %v188_v58 = vld [vmem:[%s873_s20 + $0x70] sm:$0xff] }
  0x15   : > { %vm428_vm1 = vcmp.ge.f32.partialorder %v348_v16, 0.0  ;;  %v508_v25 = vmul.f32 0.01, %v348_v16  ;;  %vm429_vm2 = vcmp.ge.f32.partialorder %v349_v17, 0.0  ;;  %v509_v26 = vmul.f32 0.01, %v349_v17 }
  0x16   : > { %vm430_vm3 = vcmp.ge.f32.partialorder %v350_v18, 0.0  ;;  %v510_v27 = vmul.f32 0.01, %v350_v18  ;;  %vm431_vm4 = vcmp.ge.f32.partialorder %v351_v20, 0.0  ;;  %v511_v28 = vmul.f32 0.01, %v351_v20 }
  0x17   : > { %v588_v29 = vsel %vm428_vm1, %v348_v16, %v508_v25  ;;  %v589_v30 = vsel %vm429_vm2, %v349_v17, %v509_v26  ;;  %vm432_vm5 = vcmp.ge.f32.partialorder %v352_v21, 0.0  ;;  %v512_v31 = vmul.f32 0.01, %v352_v21  ;;  %v189_v59 = vld [vmem:[%s873_s20 + $0x78] sm:$0xff]  ;;  %v190_v6 = vld [vmem:[%s873_s20 + $0x80] sm:$0xff]  ;;  %v191_v7 = vld [vmem:[%s873_s20 + $0x88] sm:$0xff] }
  0x18   : > { %669 = vst.msk [vmem:[%s906_s25] sm:$0xff] %vm668_vm0, %v588_v29  ;;  %670 = vst.msk [vmem:[%s906_s25 + $0x8] sm:$0xff] %vm668_vm0, %v589_v30  ;;  %v590_v35 = vsel %vm430_vm3, %v350_v18, %v510_v27  ;;  %v591_v36 = vsel %vm431_vm4, %v351_v20, %v511_v28  ;;  %vm433_vm6 = vcmp.ge.f32.partialorder %v353_v22, 0.0  ;;  %v513_v37 = vmul.f32 0.01, %v353_v22  ;;  %v192_v12 = vld [vmem:[%s873_s20 + $0x90] sm:$0xff] }
  0x19   : > { %671 = vst.msk [vmem:[%s906_s25 + $0x10] sm:$0xff] %vm668_vm0, %v590_v35  ;;  %672 = vst.msk [vmem:[%s906_s25 + $0x18] sm:$0xff] %vm668_vm0, %v591_v36  ;;  %v592_v38 = vsel %vm432_vm5, %v352_v21, %v512_v31  ;;  %v354_v39 = vadd.f32 %v878_v1, %v267_v19  ;;  %v355_v40 = vadd.f32 %v878_v1, %v268_v23  ;;  %v193_v13 = vld [vmem:[%s873_s20 + $0x98] sm:$0xff]  ;;  %v195_v25 = vld [vmem:[%s873_s20 + $0xa8] sm:$0xff] }
  0x1a   : > { %v269_v41 = vmul.f32 %v868_v0, %v182_v24  ;;  %673 = vst.msk [vmem:[%s906_s25 + $0x20] sm:$0xff] %vm668_vm0, %v592_v38  ;;  %v593_v42 = vsel %vm433_vm6, %v353_v22, %v513_v37  ;;  %v270_v43 = vmul.f32 %v868_v0, %v183_v32  ;;  %v271_v44 = vmul.f32 %v868_v0, %v184_v33  ;;  %v194_v24 = vld [vmem:[%s873_s20 + $0xa0] sm:$0xff]  ;;  %v196_v36 = vld [vmem:[%s873_s20 + $0xb0] sm:$0xff]  ;;  %v197_v37 = vld [vmem:[%s873_s20 + $0xb8] sm:$0xff] }
  0x1b   : > { %v272_v45 = vmul.f32 %v868_v0, %v185_v34  ;;  %674 = vst.msk [vmem:[%s906_s25 + $0x28] sm:$0xff] %vm668_vm0, %v593_v42  ;;  %vm434_vm7 = vcmp.ge.f32.partialorder %v354_v39, 0.0  ;;  %v514_v48 = vmul.f32 0.01, %v354_v39  ;;  %vm435_vm8 = vcmp.ge.f32.partialorder %v355_v40, 0.0 }
  0x1c   : > { %v515_v49 = vmul.f32 0.01, %v355_v40  ;;  %v356_v50 = vadd.f32 %v878_v1, %v269_v41  ;;  %v357_v51 = vadd.f32 %v878_v1, %v270_v43  ;;  %v358_v52 = vadd.f32 %v878_v1, %v271_v44 }
  0x1d   : > { %v359_v53 = vadd.f32 %v878_v1, %v272_v45  ;;  %v594_v54 = vsel %vm434_vm7, %v354_v39, %v514_v48  ;;  %v273_v56 = vmul.f32 %v868_v0, %v186_v46  ;;  %v274_v57 = vmul.f32 %v868_v0, %v187_v47  ;;  %v198_v46 = vld [vmem:[%s873_s20 + $0xc0] sm:$0xff]  ;;  %v199_v47 = vld [vmem:[%s873_s20 + $0xc8] sm:$0xff] }
  0x1e   : > { %v595_v55 = vsel %vm435_vm8, %v355_v40, %v515_v49  ;;  %675 = vst.msk [vmem:[%s906_s25 + $0x30] sm:$0xff] %vm668_vm0, %v594_v54  ;;  %vm436_vm9 = vcmp.ge.f32.partialorder %v356_v50, 0.0  ;;  %v516_v60 = vmul.f32 0.01, %v356_v50  ;;  %vm437_vm10 = vcmp.ge.f32.partialorder %v357_v51, 0.0 }
  0x1f   : > { %676 = vst.msk [vmem:[%s906_s25 + $0x38] sm:$0xff] %vm668_vm0, %v595_v55  ;;  %v517_v61 = vmul.f32 0.01, %v357_v51  ;;  %vm438_vm11 = vcmp.ge.f32.partialorder %v358_v52, 0.0  ;;  %v518_v62 = vmul.f32 0.01, %v358_v52  ;;  %v360_v4 = vadd.f32 %v878_v1, %v273_v56 }
  0x20   : > { %vm439_vm12 = vcmp.ge.f32.partialorder %v359_v53, 0.0  ;;  %v519_v63 = vmul.f32 0.01, %v359_v53  ;;  %v596_v2 = vsel %vm436_vm9, %v356_v50, %v516_v60  ;;  %v361_v5 = vadd.f32 %v878_v1, %v274_v57 }
  0x21   : > { %v597_v3 = vsel %vm437_vm10, %v357_v51, %v517_v61  ;;  %677 = vst.msk [vmem:[%s906_s25 + $0x40] sm:$0xff] %vm668_vm0, %v596_v2  ;;  %v598_v8 = vsel %vm438_vm11, %v358_v52, %v518_v62  ;;  %v275_v10 = vmul.f32 %v868_v0, %v188_v58  ;;  %v276_v11 = vmul.f32 %v868_v0, %v189_v59  ;;  %v200_v52 = vld [vmem:[%s873_s20 + $0xd0] sm:$0xff]  ;;  %v202_v2 = vld [vmem:[%s873_s20 + $0xe0] sm:$0xff] }
  0x22   : > { %678 = vst.msk [vmem:[%s906_s25 + $0x48] sm:$0xff] %vm668_vm0, %v597_v3  ;;  %v599_v9 = vsel %vm439_vm12, %v359_v53, %v519_v63  ;;  %679 = vst.msk [vmem:[%s906_s25 + $0x50] sm:$0xff] %vm668_vm0, %v598_v8  ;;  %vm440_vm13 = vcmp.ge.f32.partialorder %v360_v4, 0.0  ;;  %v520_v14 = vmul.f32 0.01, %v360_v4  ;;  %vm441_vm14 = vcmp.ge.f32.partialorder %v361_v5, 0.0 }
  0x23   : > { %680 = vst.msk [vmem:[%s906_s25 + $0x58] sm:$0xff] %vm668_vm0, %v599_v9  ;;  %v521_v15 = vmul.f32 0.01, %v361_v5  ;;  %v362_v16 = vadd.f32 %v878_v1, %v275_v10  ;;  %v363_v17 = vadd.f32 %v878_v1, %v276_v11  ;;  %v277_v18 = vmul.f32 %v868_v0, %v190_v6  ;;  %v201_v53 = vld [vmem:[%s873_s20 + $0xd8] sm:$0xff]  ;;  %v203_v3 = vld [vmem:[%s873_s20 + $0xe8] sm:$0xff] }
  0x24   : > { %v278_v19 = vmul.f32 %v868_v0, %v191_v7  ;;  %v600_v20 = vsel %vm440_vm13, %v360_v4, %v520_v14  ;;  %v279_v22 = vmul.f32 %v868_v0, %v192_v12  ;;  %v280_v23 = vmul.f32 %v868_v0, %v193_v13  ;;  %v204_v14 = vld [vmem:[%s873_s20 + $0xf0] sm:$0xff] }
  0x25   : > { %v601_v21 = vsel %vm441_vm14, %v361_v5, %v521_v15  ;;  %681 = vst.msk [vmem:[%s906_s25 + $0x60] sm:$0xff] %vm668_vm0, %v600_v20  ;;  %vm442_vm15 = vcmp.ge.f32.partialorder %v362_v16, 0.0  ;;  %v522_v26 = vmul.f32 0.01, %v362_v16  ;;  %vm443_vm1 = vcmp.ge.f32.partialorder %v363_v17, 0.0  ;;  %v205_v15 = vld [vmem:[%s873_s20 + $0xf8] sm:$0xff] }
  0x26   : > { %682 = vst.msk [vmem:[%s906_s25 + $0x68] sm:$0xff] %vm668_vm0, %v601_v21  ;;  %v523_v27 = vmul.f32 0.01, %v363_v17  ;;  %v364_v28 = vadd.f32 %v878_v1, %v277_v18  ;;  %v365_v29 = vadd.f32 %v878_v1, %v278_v19  ;;  %v366_v30 = vadd.f32 %v878_v1, %v279_v22 }
  0x27   : > { %v367_v31 = vadd.f32 %v878_v1, %v280_v23  ;;  %v602_v32 = vsel %vm442_vm15, %v362_v16, %v522_v26  ;;  %v281_v34 = vmul.f32 %v868_v0, %v194_v24  ;;  %v282_v35 = vmul.f32 %v868_v0, %v195_v25  ;;  %v206_v24 = vld [vmem:[%s873_s20 + $0x100] sm:$0xff]  ;;  %v207_v25 = vld [vmem:[%s873_s20 + $0x108] sm:$0xff] }
  0x28   : > { %v603_v33 = vsel %vm443_vm1, %v363_v17, %v523_v27  ;;  %683 = vst.msk [vmem:[%s906_s25 + $0x70] sm:$0xff] %vm668_vm0, %v602_v32  ;;  %vm444_vm2 = vcmp.ge.f32.partialorder %v364_v28, 0.0  ;;  %v524_v38 = vmul.f32 0.01, %v364_v28  ;;  %vm445_vm3 = vcmp.ge.f32.partialorder %v365_v29, 0.0 }
  0x29   : > { %684 = vst.msk [vmem:[%s906_s25 + $0x78] sm:$0xff] %vm668_vm0, %v603_v33  ;;  %v525_v39 = vmul.f32 0.01, %v365_v29  ;;  %vm446_vm4 = vcmp.ge.f32.partialorder %v366_v30, 0.0  ;;  %v526_v40 = vmul.f32 0.01, %v366_v30  ;;  %v368_v44 = vadd.f32 %v878_v1, %v281_v34 }
  0x2a   : > { %vm447_vm5 = vcmp.ge.f32.partialorder %v367_v31, 0.0  ;;  %v527_v41 = vmul.f32 0.01, %v367_v31  ;;  %v604_v42 = vsel %vm444_vm2, %v364_v28, %v524_v38  ;;  %v369_v45 = vadd.f32 %v878_v1, %v282_v35 }
  0x2b   : > { %v605_v43 = vsel %vm445_vm3, %v365_v29, %v525_v39  ;;  %685 = vst.msk [vmem:[%s906_s25 + $0x80] sm:$0xff] %vm668_vm0, %v604_v42  ;;  %v606_v48 = vsel %vm446_vm4, %v366_v30, %v526_v40  ;;  %v283_v50 = vmul.f32 %v868_v0, %v196_v36  ;;  %v284_v51 = vmul.f32 %v868_v0, %v197_v37  ;;  %v208_v30 = vld [vmem:[%s873_s20 + $0x110] sm:$0xff]  ;;  %v210_v42 = vld [vmem:[%s873_s20 + $0x120] sm:$0xff] }
  0x2c   : > { %686 = vst.msk [vmem:[%s906_s25 + $0x88] sm:$0xff] %vm668_vm0, %v605_v43  ;;  %v607_v49 = vsel %vm447_vm5, %v367_v31, %v527_v41  ;;  %687 = vst.msk [vmem:[%s906_s25 + $0x90] sm:$0xff] %vm668_vm0, %v606_v48  ;;  %vm448_vm6 = vcmp.ge.f32.partialorder %v368_v44, 0.0  ;;  %v528_v54 = vmul.f32 0.01, %v368_v44  ;;  %vm449_vm7 = vcmp.ge.f32.partialorder %v369_v45, 0.0 }
  0x2d   : > { %688 = vst.msk [vmem:[%s906_s25 + $0x98] sm:$0xff] %vm668_vm0, %v607_v49  ;;  %v529_v55 = vmul.f32 0.01, %v369_v45  ;;  %v370_v56 = vadd.f32 %v878_v1, %v283_v50  ;;  %v371_v57 = vadd.f32 %v878_v1, %v284_v51  ;;  %v285_v58 = vmul.f32 %v868_v0, %v198_v46  ;;  %v209_v31 = vld [vmem:[%s873_s20 + $0x118] sm:$0xff]  ;;  %v211_v43 = vld [vmem:[%s873_s20 + $0x128] sm:$0xff] }
  0x2e   : > { %v286_v59 = vmul.f32 %v868_v0, %v199_v47  ;;  %v608_v60 = vsel %vm448_vm6, %v368_v44, %v528_v54  ;;  %v287_v62 = vmul.f32 %v868_v0, %v200_v52  ;;  %v288_v63 = vmul.f32 %v868_v0, %v201_v53  ;;  %v212_v54 = vld [vmem:[%s873_s20 + $0x130] sm:$0xff] }
  0x2f   : > { %v609_v61 = vsel %vm449_vm7, %v369_v45, %v529_v55  ;;  %689 = vst.msk [vmem:[%s906_s25 + $0xa0] sm:$0xff] %vm668_vm0, %v608_v60  ;;  %vm450_vm8 = vcmp.ge.f32.partialorder %v370_v56, 0.0  ;;  %v530_v4 = vmul.f32 0.01, %v370_v56  ;;  %vm451_vm9 = vcmp.ge.f32.partialorder %v371_v57, 0.0  ;;  %v213_v55 = vld [vmem:[%s873_s20 + $0x138] sm:$0xff] }
  0x30   : > { %690 = vst.msk [vmem:[%s906_s25 + $0xa8] sm:$0xff] %vm668_vm0, %v609_v61  ;;  %v531_v5 = vmul.f32 0.01, %v371_v57  ;;  %v372_v6 = vadd.f32 %v878_v1, %v285_v58  ;;  %v373_v7 = vadd.f32 %v878_v1, %v286_v59  ;;  %v374_v8 = vadd.f32 %v878_v1, %v287_v62 }
  0x31   : > { %v375_v9 = vadd.f32 %v878_v1, %v288_v63  ;;  %v610_v10 = vsel %vm450_vm8, %v370_v56, %v530_v4  ;;  %v289_v12 = vmul.f32 %v868_v0, %v202_v2  ;;  %v290_v13 = vmul.f32 %v868_v0, %v203_v3  ;;  %v214_v2 = vld [vmem:[%s873_s20 + $0x140] sm:$0xff]  ;;  %v215_v3 = vld [vmem:[%s873_s20 + $0x148] sm:$0xff] }
  0x32   : > { %v611_v11 = vsel %vm451_vm9, %v371_v57, %v531_v5  ;;  %691 = vst.msk [vmem:[%s906_s25 + $0xb0] sm:$0xff] %vm668_vm0, %v610_v10  ;;  %vm452_vm10 = vcmp.ge.f32.partialorder %v372_v6, 0.0  ;;  %v532_v16 = vmul.f32 0.01, %v372_v6  ;;  %vm453_vm11 = vcmp.ge.f32.partialorder %v373_v7, 0.0 }
  0x33   : > { %692 = vst.msk [vmem:[%s906_s25 + $0xb8] sm:$0xff] %vm668_vm0, %v611_v11  ;;  %v533_v17 = vmul.f32 0.01, %v373_v7  ;;  %vm454_vm12 = vcmp.ge.f32.partialorder %v374_v8, 0.0  ;;  %v534_v18 = vmul.f32 0.01, %v374_v8  ;;  %v376_v22 = vadd.f32 %v878_v1, %v289_v12 }
  0x34   : > { %vm455_vm13 = vcmp.ge.f32.partialorder %v375_v9, 0.0  ;;  %v535_v19 = vmul.f32 0.01, %v375_v9  ;;  %v612_v20 = vsel %vm452_vm10, %v372_v6, %v532_v16  ;;  %v377_v23 = vadd.f32 %v878_v1, %v290_v13 }
  0x35   : > { %v613_v21 = vsel %vm453_vm11, %v373_v7, %v533_v17  ;;  %693 = vst.msk [vmem:[%s906_s25 + $0xc0] sm:$0xff] %vm668_vm0, %v612_v20  ;;  %v614_v26 = vsel %vm454_vm12, %v374_v8, %v534_v18  ;;  %v291_v28 = vmul.f32 %v868_v0, %v204_v14  ;;  %v292_v29 = vmul.f32 %v868_v0, %v205_v15  ;;  %v216_v8 = vld [vmem:[%s873_s20 + $0x150] sm:$0xff]  ;;  %v218_v20 = vld [vmem:[%s873_s20 + $0x160] sm:$0xff] }
  0x36   : > { %694 = vst.msk [vmem:[%s906_s25 + $0xc8] sm:$0xff] %vm668_vm0, %v613_v21  ;;  %v615_v27 = vsel %vm455_vm13, %v375_v9, %v535_v19  ;;  %695 = vst.msk [vmem:[%s906_s25 + $0xd0] sm:$0xff] %vm668_vm0, %v614_v26  ;;  %vm456_vm14 = vcmp.ge.f32.partialorder %v376_v22, 0.0  ;;  %v536_v32 = vmul.f32 0.01, %v376_v22  ;;  %vm457_vm15 = vcmp.ge.f32.partialorder %v377_v23, 0.0 }
  0x37   : > { %696 = vst.msk [vmem:[%s906_s25 + $0xd8] sm:$0xff] %vm668_vm0, %v615_v27  ;;  %v537_v33 = vmul.f32 0.01, %v377_v23  ;;  %v378_v34 = vadd.f32 %v878_v1, %v291_v28  ;;  %v379_v35 = vadd.f32 %v878_v1, %v292_v29  ;;  %v293_v36 = vmul.f32 %v868_v0, %v206_v24  ;;  %v217_v9 = vld [vmem:[%s873_s20 + $0x158] sm:$0xff]  ;;  %v219_v21 = vld [vmem:[%s873_s20 + $0x168] sm:$0xff] }
  0x38   : > { %v294_v37 = vmul.f32 %v868_v0, %v207_v25  ;;  %v616_v38 = vsel %vm456_vm14, %v376_v22, %v536_v32  ;;  %v295_v40 = vmul.f32 %v868_v0, %v208_v30  ;;  %v296_v41 = vmul.f32 %v868_v0, %v209_v31  ;;  %v220_v32 = vld [vmem:[%s873_s20 + $0x170] sm:$0xff] }
  0x39   : > { %v617_v39 = vsel %vm457_vm15, %v377_v23, %v537_v33  ;;  %697 = vst.msk [vmem:[%s906_s25 + $0xe0] sm:$0xff] %vm668_vm0, %v616_v38  ;;  %vm458_vm1 = vcmp.ge.f32.partialorder %v378_v34, 0.0  ;;  %v538_v44 = vmul.f32 0.01, %v378_v34  ;;  %vm459_vm2 = vcmp.ge.f32.partialorder %v379_v35, 0.0  ;;  %v221_v33 = vld [vmem:[%s873_s20 + $0x178] sm:$0xff] }
  0x3a   : > { %698 = vst.msk [vmem:[%s906_s25 + $0xe8] sm:$0xff] %vm668_vm0, %v617_v39  ;;  %v539_v45 = vmul.f32 0.01, %v379_v35  ;;  %v380_v46 = vadd.f32 %v878_v1, %v293_v36  ;;  %v381_v47 = vadd.f32 %v878_v1, %v294_v37  ;;  %v382_v48 = vadd.f32 %v878_v1, %v295_v40 }
  0x3b   : > { %v383_v49 = vadd.f32 %v878_v1, %v296_v41  ;;  %v618_v50 = vsel %vm458_vm1, %v378_v34, %v538_v44  ;;  %v297_v52 = vmul.f32 %v868_v0, %v210_v42  ;;  %v298_v53 = vmul.f32 %v868_v0, %v211_v43  ;;  %v222_v42 = vld [vmem:[%s873_s20 + $0x180] sm:$0xff]  ;;  %v223_v43 = vld [vmem:[%s873_s20 + $0x188] sm:$0xff] }
  0x3c   : > { %v619_v51 = vsel %vm459_vm2, %v379_v35, %v539_v45  ;;  %699 = vst.msk [vmem:[%s906_s25 + $0xf0] sm:$0xff] %vm668_vm0, %v618_v50  ;;  %vm460_vm3 = vcmp.ge.f32.partialorder %v380_v46, 0.0  ;;  %v540_v56 = vmul.f32 0.01, %v380_v46  ;;  %vm461_vm4 = vcmp.ge.f32.partialorder %v381_v47, 0.0 }
  0x3d   : > { %700 = vst.msk [vmem:[%s906_s25 + $0xf8] sm:$0xff] %vm668_vm0, %v619_v51  ;;  %v541_v57 = vmul.f32 0.01, %v381_v47  ;;  %vm462_vm5 = vcmp.ge.f32.partialorder %v382_v48, 0.0  ;;  %v542_v58 = vmul.f32 0.01, %v382_v48  ;;  %v384_v62 = vadd.f32 %v878_v1, %v297_v52 }
  0x3e   : > { %vm463_vm6 = vcmp.ge.f32.partialorder %v383_v49, 0.0  ;;  %v543_v59 = vmul.f32 0.01, %v383_v49  ;;  %v620_v60 = vsel %vm460_vm3, %v380_v46, %v540_v56  ;;  %v385_v63 = vadd.f32 %v878_v1, %v298_v53 }
  0x3f   : > { %v621_v61 = vsel %vm461_vm4, %v381_v47, %v541_v57  ;;  %701 = vst.msk [vmem:[%s906_s25 + $0x100] sm:$0xff] %vm668_vm0, %v620_v60  ;;  %v622_v4 = vsel %vm462_vm5, %v382_v48, %v542_v58  ;;  %v299_v6 = vmul.f32 %v868_v0, %v212_v54  ;;  %v300_v7 = vmul.f32 %v868_v0, %v213_v55  ;;  %v224_v48 = vld [vmem:[%s873_s20 + $0x190] sm:$0xff]  ;;  %v226_v60 = vld [vmem:[%s873_s20 + $0x1a0] sm:$0xff] }
  0x40   : > { %702 = vst.msk [vmem:[%s906_s25 + $0x108] sm:$0xff] %vm668_vm0, %v621_v61  ;;  %v623_v5 = vsel %vm463_vm6, %v383_v49, %v543_v59  ;;  %703 = vst.msk [vmem:[%s906_s25 + $0x110] sm:$0xff] %vm668_vm0, %v622_v4  ;;  %vm464_vm7 = vcmp.ge.f32.partialorder %v384_v62, 0.0  ;;  %v544_v10 = vmul.f32 0.01, %v384_v62  ;;  %vm465_vm8 = vcmp.ge.f32.partialorder %v385_v63, 0.0 }
  0x41   : > { %704 = vst.msk [vmem:[%s906_s25 + $0x118] sm:$0xff] %vm668_vm0, %v623_v5  ;;  %v545_v11 = vmul.f32 0.01, %v385_v63  ;;  %v386_v12 = vadd.f32 %v878_v1, %v299_v6  ;;  %v387_v13 = vadd.f32 %v878_v1, %v300_v7  ;;  %v301_v14 = vmul.f32 %v868_v0, %v214_v2  ;;  %v225_v49 = vld [vmem:[%s873_s20 + $0x198] sm:$0xff]  ;;  %v227_v61 = vld [vmem:[%s873_s20 + $0x1a8] sm:$0xff] }
  0x42   : > { %v302_v15 = vmul.f32 %v868_v0, %v215_v3  ;;  %v624_v16 = vsel %vm464_vm7, %v384_v62, %v544_v10  ;;  %v303_v18 = vmul.f32 %v868_v0, %v216_v8  ;;  %v304_v19 = vmul.f32 %v868_v0, %v217_v9  ;;  %v228_v10 = vld [vmem:[%s873_s20 + $0x1b0] sm:$0xff] }
  0x43   : > { %v625_v17 = vsel %vm465_vm8, %v385_v63, %v545_v11  ;;  %705 = vst.msk [vmem:[%s906_s25 + $0x120] sm:$0xff] %vm668_vm0, %v624_v16  ;;  %vm466_vm9 = vcmp.ge.f32.partialorder %v386_v12, 0.0  ;;  %v546_v22 = vmul.f32 0.01, %v386_v12  ;;  %vm467_vm10 = vcmp.ge.f32.partialorder %v387_v13, 0.0  ;;  %v229_v11 = vld [vmem:[%s873_s20 + $0x1b8] sm:$0xff] }
  0x44   : > { %706 = vst.msk [vmem:[%s906_s25 + $0x128] sm:$0xff] %vm668_vm0, %v625_v17  ;;  %v547_v23 = vmul.f32 0.01, %v387_v13  ;;  %v388_v24 = vadd.f32 %v878_v1, %v301_v14  ;;  %v389_v25 = vadd.f32 %v878_v1, %v302_v15  ;;  %v390_v26 = vadd.f32 %v878_v1, %v303_v18 }
  0x45   : > { %v391_v27 = vadd.f32 %v878_v1, %v304_v19  ;;  %v626_v28 = vsel %vm466_vm9, %v386_v12, %v546_v22  ;;  %v305_v30 = vmul.f32 %v868_v0, %v218_v20  ;;  %v306_v31 = vmul.f32 %v868_v0, %v219_v21  ;;  %v230_v20 = vld [vmem:[%s873_s20 + $0x1c0] sm:$0xff]  ;;  %v231_v21 = vld [vmem:[%s873_s20 + $0x1c8] sm:$0xff] }
  0x46   : > { %v627_v29 = vsel %vm467_vm10, %v387_v13, %v547_v23  ;;  %707 = vst.msk [vmem:[%s906_s25 + $0x130] sm:$0xff] %vm668_vm0, %v626_v28  ;;  %vm468_vm11 = vcmp.ge.f32.partialorder %v388_v24, 0.0  ;;  %v548_v34 = vmul.f32 0.01, %v388_v24  ;;  %vm469_vm12 = vcmp.ge.f32.partialorder %v389_v25, 0.0 }
  0x47   : > { %708 = vst.msk [vmem:[%s906_s25 + $0x138] sm:$0xff] %vm668_vm0, %v627_v29  ;;  %v549_v35 = vmul.f32 0.01, %v389_v25  ;;  %vm470_vm13 = vcmp.ge.f32.partialorder %v390_v26, 0.0  ;;  %v550_v36 = vmul.f32 0.01, %v390_v26  ;;  %v392_v40 = vadd.f32 %v878_v1, %v305_v30 }
  0x48   : > { %vm471_vm14 = vcmp.ge.f32.partialorder %v391_v27, 0.0  ;;  %v551_v37 = vmul.f32 0.01, %v391_v27  ;;  %v628_v38 = vsel %vm468_vm11, %v388_v24, %v548_v34  ;;  %v393_v41 = vadd.f32 %v878_v1, %v306_v31 }
  0x49   : > { %v629_v39 = vsel %vm469_vm12, %v389_v25, %v549_v35  ;;  %709 = vst.msk [vmem:[%s906_s25 + $0x140] sm:$0xff] %vm668_vm0, %v628_v38  ;;  %v630_v44 = vsel %vm470_vm13, %v390_v26, %v550_v36  ;;  %v307_v46 = vmul.f32 %v868_v0, %v220_v32  ;;  %v308_v47 = vmul.f32 %v868_v0, %v221_v33  ;;  %v232_v26 = vld [vmem:[%s873_s20 + $0x1d0] sm:$0xff]  ;;  %v234_v38 = vld [vmem:[%s873_s20 + $0x1e0] sm:$0xff] }
  0x4a   : > { %710 = vst.msk [vmem:[%s906_s25 + $0x148] sm:$0xff] %vm668_vm0, %v629_v39  ;;  %v631_v45 = vsel %vm471_vm14, %v391_v27, %v551_v37  ;;  %711 = vst.msk [vmem:[%s906_s25 + $0x150] sm:$0xff] %vm668_vm0, %v630_v44  ;;  %vm472_vm15 = vcmp.ge.f32.partialorder %v392_v40, 0.0  ;;  %v552_v50 = vmul.f32 0.01, %v392_v40  ;;  %vm473_vm1 = vcmp.ge.f32.partialorder %v393_v41, 0.0 }
  0x4b   : > { %712 = vst.msk [vmem:[%s906_s25 + $0x158] sm:$0xff] %vm668_vm0, %v631_v45  ;;  %v553_v51 = vmul.f32 0.01, %v393_v41  ;;  %v394_v52 = vadd.f32 %v878_v1, %v307_v46  ;;  %v395_v53 = vadd.f32 %v878_v1, %v308_v47  ;;  %v309_v54 = vmul.f32 %v868_v0, %v222_v42  ;;  %v233_v27 = vld [vmem:[%s873_s20 + $0x1d8] sm:$0xff]  ;;  %v235_v39 = vld [vmem:[%s873_s20 + $0x1e8] sm:$0xff] }
  0x4c   : > { %v310_v55 = vmul.f32 %v868_v0, %v223_v43  ;;  %v632_v56 = vsel %vm472_vm15, %v392_v40, %v552_v50  ;;  %v311_v58 = vmul.f32 %v868_v0, %v224_v48  ;;  %v312_v59 = vmul.f32 %v868_v0, %v225_v49  ;;  %v236_v50 = vld [vmem:[%s873_s20 + $0x1f0] sm:$0xff] }
  0x4d   : > { %v633_v57 = vsel %vm473_vm1, %v393_v41, %v553_v51  ;;  %713 = vst.msk [vmem:[%s906_s25 + $0x160] sm:$0xff] %vm668_vm0, %v632_v56  ;;  %vm474_vm2 = vcmp.ge.f32.partialorder %v394_v52, 0.0  ;;  %v554_v62 = vmul.f32 0.01, %v394_v52  ;;  %vm475_vm3 = vcmp.ge.f32.partialorder %v395_v53, 0.0  ;;  %v237_v51 = vld [vmem:[%s873_s20 + $0x1f8] sm:$0xff] }
  0x4e   : > { %714 = vst.msk [vmem:[%s906_s25 + $0x168] sm:$0xff] %vm668_vm0, %v633_v57  ;;  %v555_v63 = vmul.f32 0.01, %v395_v53  ;;  %v396_v2 = vadd.f32 %v878_v1, %v309_v54  ;;  %v397_v3 = vadd.f32 %v878_v1, %v310_v55  ;;  %v398_v4 = vadd.f32 %v878_v1, %v311_v58 }
  0x4f   : > { %v399_v5 = vadd.f32 %v878_v1, %v312_v59  ;;  %v634_v6 = vsel %vm474_vm2, %v394_v52, %v554_v62  ;;  %v313_v8 = vmul.f32 %v868_v0, %v226_v60  ;;  %v314_v9 = vmul.f32 %v868_v0, %v227_v61  ;;  %v238_v60 = vld [vmem:[%s873_s20 + $0x200] sm:$0xff]  ;;  %v239_v61 = vld [vmem:[%s873_s20 + $0x208] sm:$0xff] }
  0x50   : > { %v635_v7 = vsel %vm475_vm3, %v395_v53, %v555_v63  ;;  %715 = vst.msk [vmem:[%s906_s25 + $0x170] sm:$0xff] %vm668_vm0, %v634_v6  ;;  %vm476_vm4 = vcmp.ge.f32.partialorder %v396_v2, 0.0  ;;  %v556_v12 = vmul.f32 0.01, %v396_v2  ;;  %vm477_vm5 = vcmp.ge.f32.partialorder %v397_v3, 0.0 }
  0x51   : > { %716 = vst.msk [vmem:[%s906_s25 + $0x178] sm:$0xff] %vm668_vm0, %v635_v7  ;;  %v557_v13 = vmul.f32 0.01, %v397_v3  ;;  %vm478_vm6 = vcmp.ge.f32.partialorder %v398_v4, 0.0  ;;  %v558_v14 = vmul.f32 0.01, %v398_v4  ;;  %v400_v18 = vadd.f32 %v878_v1, %v313_v8 }
  0x52   : > { %vm479_vm7 = vcmp.ge.f32.partialorder %v399_v5, 0.0  ;;  %v559_v15 = vmul.f32 0.01, %v399_v5  ;;  %v636_v16 = vsel %vm476_vm4, %v396_v2, %v556_v12  ;;  %v401_v19 = vadd.f32 %v878_v1, %v314_v9 }
  0x53   : > { %v637_v17 = vsel %vm477_vm5, %v397_v3, %v557_v13  ;;  %717 = vst.msk [vmem:[%s906_s25 + $0x180] sm:$0xff] %vm668_vm0, %v636_v16  ;;  %v638_v22 = vsel %vm478_vm6, %v398_v4, %v558_v14  ;;  %v315_v24 = vmul.f32 %v868_v0, %v228_v10  ;;  %v316_v25 = vmul.f32 %v868_v0, %v229_v11  ;;  %v240_v4 = vld [vmem:[%s873_s20 + $0x210] sm:$0xff]  ;;  %v242_v16 = vld [vmem:[%s873_s20 + $0x220] sm:$0xff] }
  0x54   : > { %718 = vst.msk [vmem:[%s906_s25 + $0x188] sm:$0xff] %vm668_vm0, %v637_v17  ;;  %v639_v23 = vsel %vm479_vm7, %v399_v5, %v559_v15  ;;  %719 = vst.msk [vmem:[%s906_s25 + $0x190] sm:$0xff] %vm668_vm0, %v638_v22  ;;  %vm480_vm8 = vcmp.ge.f32.partialorder %v400_v18, 0.0  ;;  %v560_v28 = vmul.f32 0.01, %v400_v18  ;;  %vm481_vm9 = vcmp.ge.f32.partialorder %v401_v19, 0.0 }
  0x55   : > { %720 = vst.msk [vmem:[%s906_s25 + $0x198] sm:$0xff] %vm668_vm0, %v639_v23  ;;  %v561_v29 = vmul.f32 0.01, %v401_v19  ;;  %v402_v30 = vadd.f32 %v878_v1, %v315_v24  ;;  %v403_v31 = vadd.f32 %v878_v1, %v316_v25  ;;  %v317_v32 = vmul.f32 %v868_v0, %v230_v20  ;;  %v241_v5 = vld [vmem:[%s873_s20 + $0x218] sm:$0xff]  ;;  %v243_v17 = vld [vmem:[%s873_s20 + $0x228] sm:$0xff] }
  0x56   : > { %v318_v33 = vmul.f32 %v868_v0, %v231_v21  ;;  %v640_v34 = vsel %vm480_vm8, %v400_v18, %v560_v28  ;;  %v319_v36 = vmul.f32 %v868_v0, %v232_v26  ;;  %v320_v37 = vmul.f32 %v868_v0, %v233_v27  ;;  %v244_v28 = vld [vmem:[%s873_s20 + $0x230] sm:$0xff] }
  0x57   : > { %v641_v35 = vsel %vm481_vm9, %v401_v19, %v561_v29  ;;  %721 = vst.msk [vmem:[%s906_s25 + $0x1a0] sm:$0xff] %vm668_vm0, %v640_v34  ;;  %vm482_vm10 = vcmp.ge.f32.partialorder %v402_v30, 0.0  ;;  %v562_v40 = vmul.f32 0.01, %v402_v30  ;;  %vm483_vm11 = vcmp.ge.f32.partialorder %v403_v31, 0.0  ;;  %v245_v29 = vld [vmem:[%s873_s20 + $0x238] sm:$0xff] }
  0x58   : > { %722 = vst.msk [vmem:[%s906_s25 + $0x1a8] sm:$0xff] %vm668_vm0, %v641_v35  ;;  %v563_v41 = vmul.f32 0.01, %v403_v31  ;;  %v404_v42 = vadd.f32 %v878_v1, %v317_v32  ;;  %v405_v43 = vadd.f32 %v878_v1, %v318_v33  ;;  %v406_v44 = vadd.f32 %v878_v1, %v319_v36 }
  0x59   : > { %v407_v45 = vadd.f32 %v878_v1, %v320_v37  ;;  %v642_v46 = vsel %vm482_vm10, %v402_v30, %v562_v40  ;;  %v321_v48 = vmul.f32 %v868_v0, %v234_v38  ;;  %v322_v49 = vmul.f32 %v868_v0, %v235_v39  ;;  %v246_v38 = vld [vmem:[%s873_s20 + $0x240] sm:$0xff]  ;;  %v247_v39 = vld [vmem:[%s873_s20 + $0x248] sm:$0xff] }
  0x5a   : > { %v643_v47 = vsel %vm483_vm11, %v403_v31, %v563_v41  ;;  %723 = vst.msk [vmem:[%s906_s25 + $0x1b0] sm:$0xff] %vm668_vm0, %v642_v46  ;;  %vm484_vm12 = vcmp.ge.f32.partialorder %v404_v42, 0.0  ;;  %v564_v52 = vmul.f32 0.01, %v404_v42  ;;  %vm485_vm13 = vcmp.ge.f32.partialorder %v405_v43, 0.0 }
  0x5b   : > { %724 = vst.msk [vmem:[%s906_s25 + $0x1b8] sm:$0xff] %vm668_vm0, %v643_v47  ;;  %v565_v53 = vmul.f32 0.01, %v405_v43  ;;  %vm486_vm14 = vcmp.ge.f32.partialorder %v406_v44, 0.0  ;;  %v566_v54 = vmul.f32 0.01, %v406_v44  ;;  %v408_v58 = vadd.f32 %v878_v1, %v321_v48 }
  0x5c   : > { %vm487_vm15 = vcmp.ge.f32.partialorder %v407_v45, 0.0  ;;  %v567_v55 = vmul.f32 0.01, %v407_v45  ;;  %v644_v56 = vsel %vm484_vm12, %v404_v42, %v564_v52  ;;  %v409_v59 = vadd.f32 %v878_v1, %v322_v49 }
  0x5d   : > { %v645_v57 = vsel %vm485_vm13, %v405_v43, %v565_v53  ;;  %725 = vst.msk [vmem:[%s906_s25 + $0x1c0] sm:$0xff] %vm668_vm0, %v644_v56  ;;  %v646_v62 = vsel %vm486_vm14, %v406_v44, %v566_v54  ;;  %v323_v2 = vmul.f32 %v868_v0, %v236_v50  ;;  %v324_v3 = vmul.f32 %v868_v0, %v237_v51  ;;  %v248_v44 = vld [vmem:[%s873_s20 + $0x250] sm:$0xff]  ;;  %v250_v56 = vld [vmem:[%s873_s20 + $0x260] sm:$0xff] }
  0x5e   : > { %726 = vst.msk [vmem:[%s906_s25 + $0x1c8] sm:$0xff] %vm668_vm0, %v645_v57  ;;  %v647_v63 = vsel %vm487_vm15, %v407_v45, %v567_v55  ;;  %727 = vst.msk [vmem:[%s906_s25 + $0x1d0] sm:$0xff] %vm668_vm0, %v646_v62  ;;  %vm488_vm1 = vcmp.ge.f32.partialorder %v408_v58, 0.0  ;;  %v568_v6 = vmul.f32 0.01, %v408_v58  ;;  %vm489_vm2 = vcmp.ge.f32.partialorder %v409_v59, 0.0 }
  0x5f   : > { %728 = vst.msk [vmem:[%s906_s25 + $0x1d8] sm:$0xff] %vm668_vm0, %v647_v63  ;;  %v569_v7 = vmul.f32 0.01, %v409_v59  ;;  %v410_v8 = vadd.f32 %v878_v1, %v323_v2  ;;  %v411_v9 = vadd.f32 %v878_v1, %v324_v3  ;;  %v325_v10 = vmul.f32 %v868_v0, %v238_v60  ;;  %v249_v45 = vld [vmem:[%s873_s20 + $0x258] sm:$0xff]  ;;  %v251_v57 = vld [vmem:[%s873_s20 + $0x268] sm:$0xff] }
  0x60   : > { %v326_v11 = vmul.f32 %v868_v0, %v239_v61  ;;  %v648_v12 = vsel %vm488_vm1, %v408_v58, %v568_v6  ;;  %v327_v14 = vmul.f32 %v868_v0, %v240_v4  ;;  %v328_v15 = vmul.f32 %v868_v0, %v241_v5  ;;  %v825_v3 = vld [vmem:[%s1283_s1] ss:$0 sm:$0xff]  ;;  %v252_v6 = vld [vmem:[%s873_s20 + $0x270] sm:$0xff] }
  0x61   : > { %v649_v13 = vsel %vm489_vm2, %v409_v59, %v569_v7  ;;  %729 = vst.msk [vmem:[%s906_s25 + $0x1e0] sm:$0xff] %vm668_vm0, %v648_v12  ;;  %vm490_vm3 = vcmp.ge.f32.partialorder %v410_v8, 0.0  ;;  %v570_v18 = vmul.f32 0.01, %v410_v8  ;;  %vm491_vm4 = vcmp.ge.f32.partialorder %v411_v9, 0.0  ;;  %v253_v7 = vld [vmem:[%s873_s20 + $0x278] sm:$0xff] }
  0x62   : > { %730 = vst.msk [vmem:[%s906_s25 + $0x1e8] sm:$0xff] %vm668_vm0, %v649_v13  ;;  %v571_v19 = vmul.f32 0.01, %v411_v9  ;;  %v412_v20 = vadd.f32 %v878_v1, %v325_v10  ;;  %v413_v21 = vadd.f32 %v878_v1, %v326_v11  ;;  %v414_v22 = vadd.f32 %v878_v1, %v327_v14  ;;  %v824_v59 = vld [vmem:[%s1284_s2] ss:$0 sm:$0xff] }
  0x63   : > { %v415_v23 = vadd.f32 %v878_v1, %v328_v15  ;;  %v650_v24 = vsel %vm490_vm3, %v410_v8, %v570_v18  ;;  %v329_v26 = vmul.f32 %v868_v0, %v242_v16  ;;  %v330_v27 = vmul.f32 %v868_v0, %v243_v17 }
  0x64   : > { %v651_v25 = vsel %vm491_vm4, %v411_v9, %v571_v19  ;;  %731 = vst.msk [vmem:[%s906_s25 + $0x1f0] sm:$0xff] %vm668_vm0, %v650_v24  ;;  %vm492_vm5 = vcmp.ge.f32.partialorder %v412_v20, 0.0  ;;  %v572_v30 = vmul.f32 0.01, %v412_v20  ;;  %vm493_vm6 = vcmp.ge.f32.partialorder %v413_v21, 0.0 }
  0x65   : > { %732 = vst.msk [vmem:[%s906_s25 + $0x1f8] sm:$0xff] %vm668_vm0, %v651_v25  ;;  %v573_v31 = vmul.f32 0.01, %v413_v21  ;;  %vm494_vm7 = vcmp.ge.f32.partialorder %v414_v22, 0.0  ;;  %v574_v32 = vmul.f32 0.01, %v414_v22  ;;  %v416_v36 = vadd.f32 %v878_v1, %v329_v26 }
  0x66   : > { %vm495_vm8 = vcmp.ge.f32.partialorder %v415_v23, 0.0  ;;  %v575_v33 = vmul.f32 0.01, %v415_v23  ;;  %v652_v34 = vsel %vm492_vm5, %v412_v20, %v572_v30  ;;  %v417_v37 = vadd.f32 %v878_v1, %v330_v27 }
  0x67   : > { %v653_v35 = vsel %vm493_vm6, %v413_v21, %v573_v31  ;;  %733 = vst.msk [vmem:[%s906_s25 + $0x200] sm:$0xff] %vm668_vm0, %v652_v34  ;;  %v654_v40 = vsel %vm494_vm7, %v414_v22, %v574_v32  ;;  %v331_v42 = vmul.f32 %v868_v0, %v244_v28  ;;  %v332_v43 = vmul.f32 %v868_v0, %v245_v29 }
  0x68   : > { %734 = vst.msk [vmem:[%s906_s25 + $0x208] sm:$0xff] %vm668_vm0, %v653_v35  ;;  %v655_v41 = vsel %vm495_vm8, %v415_v23, %v575_v33  ;;  %735 = vst.msk [vmem:[%s906_s25 + $0x210] sm:$0xff] %vm668_vm0, %v654_v40  ;;  %vm496_vm9 = vcmp.ge.f32.partialorder %v416_v36, 0.0  ;;  %v576_v46 = vmul.f32 0.01, %v416_v36  ;;  %vm497_vm10 = vcmp.ge.f32.partialorder %v417_v37, 0.0 }
  0x69   : > { %736 = vst.msk [vmem:[%s906_s25 + $0x218] sm:$0xff] %vm668_vm0, %v655_v41  ;;  %v577_v47 = vmul.f32 0.01, %v417_v37  ;;  %v418_v48 = vadd.f32 %v878_v1, %v331_v42  ;;  %v419_v49 = vadd.f32 %v878_v1, %v332_v43  ;;  %v333_v50 = vmul.f32 %v868_v0, %v246_v38 }
  0x6a   : > { %v334_v51 = vmul.f32 %v868_v0, %v247_v39  ;;  %v656_v52 = vsel %vm496_vm9, %v416_v36, %v576_v46  ;;  %v335_v54 = vmul.f32 %v868_v0, %v248_v44  ;;  %v336_v55 = vmul.f32 %v868_v0, %v249_v45 }
  0x6b   : > { %v657_v53 = vsel %vm497_vm10, %v417_v37, %v577_v47  ;;  %737 = vst.msk [vmem:[%s906_s25 + $0x220] sm:$0xff] %vm668_vm0, %v656_v52  ;;  %vm498_vm11 = vcmp.ge.f32.partialorder %v418_v48, 0.0  ;;  %v578_v1 = vmul.f32 0.01, %v418_v48  ;;  %vm499_vm12 = vcmp.ge.f32.partialorder %v419_v49, 0.0 }
  0x6c   : > { %738 = vst.msk [vmem:[%s906_s25 + $0x228] sm:$0xff] %vm668_vm0, %v657_v53  ;;  %v579_v58 = vmul.f32 0.01, %v419_v49  ;;  %v420_v60 = vadd.f32 %v824_v59, %v333_v50  ;;  %v421_v0 = vadd.f32 %v824_v59, %v334_v51  ;;  %v422_v61 = vadd.f32 %v824_v59, %v335_v54 }
  0x6d   : > { %v423_v62 = vadd.f32 %v824_v59, %v336_v55  ;;  %v658_v63 = vsel %vm498_vm11, %v418_v48, %v578_v1  ;;  %v337_v4 = vmul.f32 %v825_v3, %v250_v56  ;;  %v338_v5 = vmul.f32 %v825_v3, %v251_v57 }
  0x6e   : > { %v659_v2 = vsel %vm499_vm12, %v419_v49, %v579_v58  ;;  %739 = vst.msk [vmem:[%s906_s25 + $0x230] sm:$0xff] %vm668_vm0, %v658_v63  ;;  %vm500_vm13 = vcmp.ge.f32.partialorder %v420_v60, 0.0  ;;  %v580_v8 = vmul.f32 0.01, %v420_v60  ;;  %vm501_vm14 = vcmp.ge.f32.partialorder %v421_v0, 0.0 }
  0x6f   : > { %740 = vst.msk [vmem:[%s906_s25 + $0x238] sm:$0xff] %vm668_vm0, %v659_v2  ;;  %v581_v9 = vmul.f32 0.01, %v421_v0  ;;  %vm502_vm15 = vcmp.ge.f32.partialorder %v422_v61, 0.0  ;;  %v582_v10 = vmul.f32 0.01, %v422_v61  ;;  %v424_v14 = vadd.f32 %v824_v59, %v337_v4 }
  0x70   : > { %vm503_vm1 = vcmp.ge.f32.partialorder %v423_v62, 0.0  ;;  %v583_v11 = vmul.f32 0.01, %v423_v62  ;;  %v660_v12 = vsel %vm500_vm13, %v420_v60, %v580_v8  ;;  %v425_v15 = vadd.f32 %v824_v59, %v338_v5 }
  0x71   : > { %v661_v13 = vsel %vm501_vm14, %v421_v0, %v581_v9  ;;  %741 = vst.msk [vmem:[%s906_s25 + $0x240] sm:$0xff] %vm668_vm0, %v660_v12  ;;  %v662_v16 = vsel %vm502_vm15, %v422_v61, %v582_v10  ;;  %v339_v18 = vmul.f32 %v825_v3, %v252_v6  ;;  %v340_v19 = vmul.f32 %v825_v3, %v253_v7 }
  0x72   : > { %742 = vst.msk [vmem:[%s906_s25 + $0x248] sm:$0xff] %vm668_vm0, %v661_v13  ;;  %v663_v17 = vsel %vm503_vm1, %v423_v62, %v583_v11  ;;  %743 = vst.msk [vmem:[%s906_s25 + $0x250] sm:$0xff] %vm668_vm0, %v662_v16  ;;  %vm504_vm2 = vcmp.ge.f32.partialorder %v424_v14, 0.0  ;;  %v584_v20 = vmul.f32 0.01, %v424_v14  ;;  %vm505_vm3 = vcmp.ge.f32.partialorder %v425_v15, 0.0 }
  0x73   : > { %744 = vst.msk [vmem:[%s906_s25 + $0x258] sm:$0xff] %vm668_vm0, %v663_v17  ;;  %v585_v21 = vmul.f32 0.01, %v425_v15  ;;  %v426_v22 = vadd.f32 %v824_v59, %v339_v18  ;;  %v427_v23 = vadd.f32 %v824_v59, %v340_v19 }
  0x74   : > { %v664_v24 = vsel %vm504_vm2, %v424_v14, %v584_v20 }
  0x75   : > { %v665_v25 = vsel %vm505_vm3, %v425_v15, %v585_v21  ;;  %745 = vst.msk [vmem:[%s906_s25 + $0x260] sm:$0xff] %vm668_vm0, %v664_v24  ;;  %vm506_vm4 = vcmp.ge.f32.partialorder %v426_v22, 0.0  ;;  %v586_v26 = vmul.f32 0.01, %v426_v22  ;;  %vm507_vm5 = vcmp.ge.f32.partialorder %v427_v23, 0.0 }
  0x76   : > { %746 = vst.msk [vmem:[%s906_s25 + $0x268] sm:$0xff] %vm668_vm0, %v665_v25  ;;  %v587_v27 = vmul.f32 0.01, %v427_v23 }
  0x77   : > { %v666_v28 = vsel %vm506_vm4, %v426_v22, %v586_v26 }
  0x78   : > { %v667_v29 = vsel %vm507_vm5, %v427_v23, %v587_v27  ;;  %747 = vst.msk [vmem:[%s906_s25 + $0x270] sm:$0xff] %vm668_vm0, %v666_v28 }
  0x79   : > { %748 = vst.msk [vmem:[%s906_s25 + $0x278] sm:$0xff] %vm668_vm0, %v667_v29 }
  0x7a PF: > { %s13_s12 = sadd.s32 1, %s832_s12  }
  0x7b   : > { %p10_p4 = scmp.ge.s32.totalorder %s13_s12, 6  }
  0x7d   :  { %12 = sbr.rel (!%p10_p4) target bundleno = 1 (0x1), region = 62 }

// kernel: down_forward.6
= control target key start
LH: loop header
LB: loop body
LE: loop exit
PB: predicated region body
PF: predicated region fallthrough
CT: control target
= control target key end

     0   :  { %s6416_s18 = smov 0   ;;  %s6418_s19 = smov 0   ;;  %s7788_s0 = inlined_call_operand.vmem [shape: bf16[2,18,1,1,102,8], index: 0, kind: input, shape index: {}, may-alias: {0,1,2}]   ;;  %s7789_s1 = inlined_call_operand.vmem [shape: bf16[2,18,1,1,102,8], index: 1, kind: input, shape index: {}, may-alias: {0,1,2}]   ;;  %s7790_s2 = inlined_call_operand.vmem [shape: bf16[2,18,1,1,102,8], index: 2, kind: input, shape index: {}, may-alias: {0,1,2}]   ;;  %s7791_s3 = inlined_call_operand.vmem [shape: bf16[27,8,128], index: 3, kind: input, shape index: {}]   ;;  %s7792_s4 = inlined_call_operand.vmem [shape: f32[2,16,80,128], index: 4, kind: output, shape index: {0}]   ;;  %s7793_s5 = inlined_call_operand.vmem [shape: f32[2,16,2,128], index: 5, kind: output, shape index: {1}]  }
   0x1   :  { %s6420_s20 = smov 0   ;;  %s6422_s21 = smov 0  }
   0x2   :  { %s6424_s22 = smov 0  }
   0x3 LB: > { %s25_s23 = sadd.s32 1, %s6374_s20  ;;  %s28_s24 = sadd.s32 1, %s6378_s21  ;;  %s6382_s22 = sphi %s6424_s22, %s16_s22   ;;  %s6378_s21 = sphi %s6422_s21, %s7817_s21   ;;  %s6374_s20 = sphi %s6420_s20, %s7816_s20   ;;  %s6370_s19 = sphi %s6418_s19, %s7815_s19   ;;  %s6366_s18 = sphi %s6416_s18, %s7814_s18  }
   0x4   : > { %p26_p0 = scmp.ge.s32.totalorder %s25_s23, 16  ;;  %p4675_p1 = scmp.ge.s32.totalorder %s6382_s22, 1 }
   0x5   : > { %p252_p2 = scmp.lt.s32.totalorder %s6382_s22, 33 }
   0x6   : > { %s7819_s23 = smov (%p26_p0, %s25_s23), 0  ;;  %s7821_s24 = smov (!%p26_p0, %s28_s24), %s6378_s21 }
   0x7   : > { %p253_p3 = pnand %p4675_p1, %p252_p2  ;;  %p30_p4 = scmp.ge.s32.totalorder %s7821_s24, 2 }
   0x8   : > { %v4682_v0 = vld [vmem:[%s7791_s3 + $0x4] sm:$0xf] (!%p253_p3)  ;;  %vm468_vm0 = vcmask (!%p253_p3), 1043456   ;;  %v4800_v1 = vld [vmem:[%s7791_s3 + $0x34] sm:$0xf] (!%p253_p3)  ;;  %v6384_v2 = vmov (!%p253_p3), 0.0  }
   0x9   : > { %s7823_s24 = smov (%p30_p4, %s7821_s24), 0  ;;  %256 = sbr.rel (%p253_p3) target bundleno = 806 (0x326), region = 36 }
   0xa   : > { %5086 = vmatprep.subr.bf16.mxu1 (!%p253_p3), %v6384_v2  ;;  %5372 = vmatprep.subr.bf16.mxu0 (!%p253_p3), %v6384_v2  ;;  %v470_v3 = vsel (!%p253_p3), %vm468_vm0, %v4682_v0, 0  ;;  %v6460_v4 = vsel (!%p253_p3), %vm468_vm0, %v4800_v1, 0  ;;  %p316_p5 = scmp.lt.s32.totalorder (!%p253_p3), %s6370_s19, 1  ;;  %p318_p6 = scmp.lt.s32.totalorder (!%p253_p3), %s6366_s18, 17  ;;  %vm6385_vm1 = vmmov (!%p253_p3), 0   ;;  %vm452_vm3 = vcmask (!%p253_p3), 64512  }
   0xb   : > { %5087 = vmatpush3.bf16.msra.mxu1 (!%p253_p3), %v470_v3  ;;  %5373 = vmatpush3.bf16.msra.mxu0 (!%p253_p3), %v6460_v4  ;;  %s325_s29 = sadd.s32 (!%p253_p3), 1, %s6366_s18  ;;  %vm407_vm2 = vsmask.f32 (!%p253_p3), 7424  ;;  %v375_v19 = vld [vmem:[%s7791_s3] sm:$0xf] (!%p253_p3)  ;;  %vm637_vm5 = vcmask (!%p253_p3), 1046528  }
   0xc   : > { %5088 = vmatprep.mubr.msk.bf16.mxu1 (!%p253_p3), %vm6385_vm1, %v6384_v2  ;;  %5374 = vmatprep.mubr.msk.bf16.mxu0 (!%p253_p3), %vm6385_vm1, %v6384_v2  ;;  %p328_p7 = scmp.lt.s32.totalorder (!%p253_p3), %s325_s29, 17  ;;  %v556_v28 = vsel (!%p253_p3), %vm468_vm0, %v375_v19, 0  ;;  %v4807_v35 = vld [vmem:[%s7791_s3 + $0x38] sm:$0xf] (!%p253_p3)  ;;  %vm909_vm4 = vsmask.f32 (!%p253_p3), 6400 }
   0xd   : > { %5394 = vmatprep.subr.bf16.mxu0 (!%p253_p3), %v6384_v2  ;;  %5108 = vmatprep.subr.bf16.mxu1 (!%p253_p3), %v6384_v2  ;;  %v2404_v45 = vsel (!%p253_p3), %vm468_vm0, %v4807_v35, 0  ;;  %vm1070_vm6 = vcmask (!%p253_p3), 1045504   ;;  %vm1503_vm7 = vcmask (!%p253_p3), 1044480   ;;  %vm1342_vm8 = vsmask.f32 (!%p253_p3), 5376  ;;  %p349_p9 = scmp.lt.s32.totalorder (!%p253_p3), %s6366_s18, 15 }
  0x10   : > { %s7825_s19 = smov (!%p316_p5, %s6370_s19), 1  ;;  %s7827_s29 = smov (!%p328_p7, %s325_s29), 17 }
  0x11   : > { %s319_s30 = scalar_select %p318_p6, %s6366_s18, 17 }
  0x12   : > { %s6477_s6 = smul.u32 234, %s7825_s19  ;;  %s4680_s17 = sshll.u32 %s7825_s19, 4 }
  0x13   : > { %s6192_s7 = smul.u32 13, %s319_s30  ;;  %s336_s30 = sadd.s32 2, %s6366_s18 }
  0x14   : > { %s6194_s10 = smul.u32 13, %s7827_s29  ;;  %p339_p8 = scmp.lt.s32.totalorder %s336_s30, 17 }
  0x15   : > { %s322_s8 = sadd.s32 %s6477_s6, %s6192_s7  ;;  %s7831_s18 = smov (!%p349_p9, %s6366_s18), 15 }
  0x16   : > { %s4676_s9 = sshll.u32 %s322_s8, 2  ;;  %s332_s14 = sadd.s32 %s6194_s10, %s6477_s6 }
  0x17   : > { %s6483_s13 = scalar_lea.vmem %s7788_s0, %s4676_s9  ;;  %s4677_s15 = sshll.u32 %s332_s14, 2 }
  0x18   : > { %v365_v5 = vld [vmem:[%s6483_s13] sm:$0xf]  ;;  %v6488_v6 = vld [vmem:[%s6483_s13 + $0x4] sm:$0xf]  ;;  %v6494_v8 = vld [vmem:[%s6483_s13 + $0x8] sm:$0xff]   ;;  %s6499_s25 = scalar_lea.vmem %s7789_s1, %s4677_s15  ;;  %s7829_s30 = smov (!%p339_p8, %s336_s30), 17 }
  0x19   : > { %v6491_v7 = vcombine.low %v365_v5, %v6488_v6  ;;  %v6502_v9 = vld [vmem:[%s6483_s13 + $0x10] sm:$0xff]   ;;  %v416_v12 = vshll.u32 %v6494_v8, 16  ;;  %v2058_v13 = vld [vmem:[%s6499_s25 + $0x4] sm:$0xe]  ;;  %v6509_v14 = vld [vmem:[%s6499_s25 + $0x8] sm:$0xf]  ;;  %s361_s26 = sadd.s32 %s4680_s17, %s7831_s18 }
  0x1a   : > { %v6512_v17 = vcombine.low %v2058_v13, %v6509_v14  ;;  %v6515_v18 = vld [vmem:[%s6499_s25 + $0xc] sm:$0xff]   ;;  %v6521_v20 = vld [vmem:[%s6499_s25 + $0x14] sm:$0xff]   ;;  %v420_v21 = vshrl.u32 %v6494_v8, 16  ;;  %v424_v22 = vshll.u32 %v6502_v9, 16  ;;  %v6543_v44 = vld [vmem:[%s6499_s25 + $0x1c] sm:$0xff]   ;;  %v428_v48 = vshrl.u32 %v6502_v9, 16 }
  0x1b   : > { %v409_v10 = vshrl.u32 %v6491_v7, 16  ;;  %v411_v11 = vshll.u32 %v6491_v7, 16  ;;  %v418_v16 = vrot.slane %v416_v12, 1  ;;  %v2226_v26 = vshrl.u32 %v6515_v18, 16  ;;  %v6540_v40 = vld [vmem:[%s6483_s13 + $0x18] sm:$0xff]   ;;  %v6562_v55 = vld [vmem:[%s6483_s13 + $0x20] sm:$0xff]  }
  0x1c   : > { %v2218_v24 = vshrl.u32 %v6512_v17, 16  ;;  %v2221_v25 = vshll.u32 %v6512_v17, 16  ;;  %v2229_v27 = vshll.u32 %v6515_v18, 16  ;;  %v2235_v29 = vshrl.u32 %v6521_v20, 16  ;;  %v631_v59 = vld [vmem:[%s6483_s13] sm:$0xe] }
  0x1d   : > { %v413_v15 = vrot.slane %v411_v11, 1  ;;  %v2228_v33 = vrot.slane %v2226_v26, 1  ;;  %v2238_v36 = vshll.u32 %v6521_v20, 16  ;;  %v422_v38 = vor.u32 %v420_v21, %v418_v16  ;;  %v2371_v11 = vld [vmem:[%s6499_s25 + $0x4] sm:$0xc]  ;;  %s6195_s7 = smul.u32 13, %s7829_s30 }
  0x1e   : > { %v2220_v31 = vrot.slane %v2218_v24, 1  ;;  %v2223_v32 = vrot.slane %v2221_v25, 2  ;;  %v2231_v34 = vrot.slane %v2229_v27, 2  ;;  %v426_v39 = vrot.slane %v424_v22, 1  ;;  %s4681_s27 = sshll.u32 %s361_s26, 1 }
  0x1f   : > { %v414_v23 = vor.u32 %v413_v15, %v409_v10  ;;  %v2237_v42 = vrot.slane %v2235_v29, 1  ;;  %v2240_v43 = vrot.slane %v2238_v36, 2  ;;  %v432_v49 = vshll.u32 %v6540_v40, 16  ;;  %v6594_v19 = vld [vmem:[%s6483_s13 + $0x28] ss:$0 sps:$4 sm:$0x11]   ;;  %s343_s8 = sadd.s32 %s6195_s7, %s6477_s6  ;;  %s363_s30 = scalar_lea.vmem %s7793_s5, %s4681_s27 }
  0x20   : > { %v2224_v37 = vor.u32 %v2223_v32, %v2220_v31  ;;  %v2232_v41 = vor.u32 %v2231_v34, %v2228_v33  ;;  %v427_v47 = vsel %vm407_vm2, %v422_v38, %v426_v39  ;;  %v2244_v51 = vshrl.u32 %v6543_v44, 16  ;;  %s4678_s6 = sshll.u32 %s343_s8, 2  ;;  %v2490_v31 = vld [vmem:[%s6499_s25 + $0xc] sm:$0xf]  ;;  %v6616_v32 = vld [vmem:[%s6499_s25 + $0x10] sm:$0xff]   ;;  %v6626_v34 = vld [vmem:[%s6499_s25 + $0x18] sm:$0xff]  }
  0x21   : > { %v419_v30 = vsel %vm407_vm2, %v414_v23, %v418_v16  ;;  %v2241_v50 = vor.u32 %v2240_v43, %v2237_v42  ;;  %v2247_v52 = vshll.u32 %v6543_v44, 16  ;;  %v430_v53 = vor.u32 %v428_v48, %v426_v39  ;;  %s6621_s14 = scalar_lea.vmem %s7790_s2, %s4678_s6  ;;  %v6636_v42 = vld [vmem:[%s6499_s25 + $0x20] sm:$0xff]  }
  0x22   : > { %5089 = vmatmul.mubr.msk.bf16.vlgmr.msra.gmra.mrb[0].mxu1 %vm452_vm3, %v419_v30  ;;  %v2233_v46 = vsel %vm909_vm4, %v2224_v37, %v2232_v41  ;;  %v434_v54 = vrot.slane %v432_v49, 1  ;;  %v2246_v57 = vrot.slane %v2244_v51, 1  ;;  %v4700_v60 = vcombine.low %v631_v59, %v6488_v6  ;;  %v6660_v51 = vld [vmem:[%s6499_s25 + $0x28] sm:$0xff]  }
  0x23   : > { %5092 = vmatprep.mubr.msk.bf16.mxu1 %vm6385_vm1, %v6384_v2  ;;  %5109 = vmatpush3.bf16.msra.mxu1 %v556_v28  ;;  %v2242_v56 = vsel %vm909_vm4, %v2232_v41, %v2241_v50  ;;  %v2249_v58 = vrot.slane %v2247_v52, 2  ;;  %v639_v61 = vrot.slane %v6494_v8, 1  ;;  %v436_v62 = vshrl.u32 %v6540_v40, 16  ;;  %v2802_v28 = vld [vmem:[%s6499_s25 + $0x8] sm:$0x8] }
  0x24   : > { %5130 = vmatprep.subr.bf16.mxu1 %v6384_v2  ;;  %5375 = vmatmul.mubr.msk.bf16.vlgmr.msra.gmra.mrb[0].mxu0 %vm452_vm3, %v2233_v46  ;;  %v641_v63 = vrot.slane %v6502_v9, 1  ;;  %v435_v0 = vsel %vm407_vm2, %v430_v53, %v434_v54  ;;  %v440_v1 = vshll.u32 %v6562_v55, 16  ;;  %v638_v3 = vrot.slane %v4700_v60, 1  ;;  %v6271_v53 = vld [vmem:[%s6499_s25 + $0x24] sm:$0xff]  }
  0x25   : > { %5395 = vmatpush3.bf16.msra.mxu0 %v2404_v45  ;;  %5378 = vmatprep.mubr.msk.bf16.mxu0 %vm6385_vm1, %v6384_v2  ;;  %v643_v5 = vrot.slane %v6540_v40, 1  ;;  %v6576_v6 = vor.u32 %v2249_v58, %v2246_v57  ;;  %v438_v15 = vor.u32 %v436_v62, %v434_v54  ;;  %v4808_v22 = vcombine.low %v2371_v11, %v6509_v14  ;;  %v4814_v14 = vld [vmem:[%s7791_s3 + $0x3c] sm:$0xf]  ;;  %v4699_v45 = vld [vmem:[%s7791_s3 + $0x8] sm:$0xf] }
  0x26   : > { %5416 = vmatprep.subr.bf16.mxu0 %v6384_v2  ;;  %v6579_v10 = vsel %vm637_vm5, %v639_v61, %v641_v63  ;;  %v6583_v12 = vsel %vm637_vm5, %v638_v3, %v639_v61  ;;  %v442_v16 = vrot.slane %v440_v1, 1  ;;  %v444_v24 = vshrl.u32 %v6562_v55, 16  ;;  %v2489_v59 = vld [vmem:[%s6499_s25 + $0x8] sm:$0xc]  ;;  %v6709_v1 = vld [vmem:[%s6483_s13 + $0xc] sm:$0xff]  }
  0x27   : > { %v6588_v13 = vsel %vm637_vm5, %v641_v63, %v643_v5  ;;  %v2251_v21 = vsel %vm909_vm4, %v2241_v50, %v6576_v6  ;;  %v448_v25 = vshll.u32 %v6594_v19, 16  ;;  %v2377_v26 = vrot.slane %v4808_v22, 2  ;;  %v6713_v3 = vld [vmem:[%s6483_s13 + $0x8] sm:$0xf]  ;;  %v1064_v11 = vld [vmem:[%s6483_s13 + $0x4] sm:$0xc] }
  0x28   : > { %v443_v23 = vsel %vm407_vm2, %v438_v15, %v442_v16  ;;  %v2378_v27 = vrot.slane %v6515_v18, 2  ;;  %v446_v29 = vor.u32 %v444_v24, %v442_v16  ;;  %v2557_v33 = vsel %vm468_vm0, %v4814_v14, 0 }
  0x29   : > { %v450_v30 = vrot.slane %v448_v25, 1  ;;  %v4834_v35 = vcombine.low %v2802_v28, %v2490_v31  ;;  %v2809_v36 = vrot.slane %v6616_v32, 3  ;;  %v2811_v39 = vrot.slane %v6626_v34, 3  ;;  %v4706_v25 = vld [vmem:[%s7791_s3 + $0xc] sm:$0xf] }
  0x2a   : > { %5093 = vmatmul.mubr.msk.bf16.gmra.mrb[4].mxu1 %vm452_vm3, %v427_v47  ;;  %v2379_v18 = vsel %vm1070_vm6, %v2377_v26, %v2378_v27  ;;  %v2380_v41 = vrot.slane %v6521_v20, 2  ;;  %v2813_v47 = vrot.slane %v6636_v42, 3  ;;  %v665_v48 = vsel %vm468_vm0, %v4699_v45, 0  ;;  %v6734_v26 = vld [vmem:[%s6483_s13 + $0x14] sm:$0xff]  }
  0x2b   : > { %5096 = vmatprep.mubr.msk.bf16.mxu1 %vm6385_vm1, %v6384_v2  ;;  %v2808_v37 = vrot.slane %v4834_v35, 3  ;;  %v451_v38 = vsel %vm407_vm2, %v446_v29, %v450_v30  ;;  %v6646_v46 = vsel %vm1503_vm7, %v2809_v36, %v2811_v39  ;;  %v2382_v50 = vrot.slane %v6543_v44, 2 }
  0x2c   : > { %5379 = vmatmul.mubr.msk.bf16.gmra.mrb[4].mxu0 %vm452_vm3, %v2242_v56  ;;  %v2381_v20 = vsel %vm1070_vm6, %v2378_v27, %v2380_v41  ;;  %v6655_v49 = vsel %vm1503_vm7, %v2811_v39, %v2813_v47  ;;  %v2815_v52 = vrot.slane %v6660_v51, 3  ;;  %v6272_v56 = vld [vmem:[%s6499_s25 + $0x2c] ss:$0 sps:$4 sm:$0x33]   ;;  %v4815_v60 = vcombine.low %v2489_v59, %v2490_v31  ;;  %v6752_v31 = vld [vmem:[%s6483_s13 + $0x1c] sm:$0xff]  }
  0x2d   : > { %5382 = vmatprep.mubr.msk.bf16.mxu0 %vm6385_vm1, %v6384_v2  ;;  %v6639_v43 = vsel %vm1503_vm7, %v2808_v37, %v2809_v36  ;;  %v2383_v54 = vsel %vm1070_vm6, %v2380_v41, %v2382_v50  ;;  %v2386_v58 = vrot.slane %v6272_v56, 2  ;;  %v2531_v62 = vrot.slane %v6616_v32, 2  ;;  %v6279_v36 = vld [vmem:[%s6499_s25 + $0x30] ss:$0 sps:$4 sm:$0x33]  }
  0x2e   : > { %v6675_v44 = vsel %vm1503_vm7, %v2813_v47, %v2815_v52  ;;  %v2530_v61 = vrot.slane %v4815_v60, 2  ;;  %v2533_v15 = vrot.slane %v6626_v34, 2  ;;  %v4726_v16 = vcombine.low %v1064_v11, %v6713_v3  ;;  %v4833_v56 = vld [vmem:[%s7791_s3 + $0x44] sm:$0xf] }
  0x2f   : > { %v1074_v27 = vrot.slane %v6734_v26, 2  ;;  %v2535_v14 = vrot.slane %v6636_v42, 2  ;;  %v818_v28 = vsel %vm468_vm0, %v4706_v25, 0  ;;  %v2649_v37 = vshrl.u32 %v4815_v60, 16  ;;  %v750_v59 = vld [vmem:[%s6483_s13 + $0x4] sm:$0xe] }
  0x30   : > { %v2532_v63 = vsel %vm1070_vm6, %v2530_v61, %v2531_v62  ;;  %v1071_v22 = vrot.slane %v4726_v16, 2  ;;  %v2652_v39 = vshll.u32 %v4815_v60, 16  ;;  %v2657_v41 = vshrl.u32 %v6616_v32, 16 }
  0x31   : > { %v2536_v30 = vsel %vm1070_vm6, %v2533_v15, %v2535_v14  ;;  %v2660_v45 = vshll.u32 %v6616_v32, 16  ;;  %v2651_v47 = vrot.slane %v2649_v37, 2  ;;  %v6802_v60 = vcombine.low %v750_v59, %v6713_v3 }
  0x32   : > { %5097 = vmatmul.mubr.msk.bf16.gmra.mrb[8].mxu1 %vm452_vm3, %v435_v0  ;;  %v794_v25 = vrot.slane %v6734_v26, 1 }
  0x33   : > { %5100 = vmatprep.mubr.msk.bf16.mxu1 %vm6385_vm1, %v6384_v2 }
  0x34   : > { %5383 = vmatmul.mubr.msk.bf16.gmra.mrb[8].mxu0 %vm452_vm3, %v2251_v21  ;;  %v1072_v21 = vrot.slane %v6709_v1, 2 }
  0x35   : > { %5396 = vmatprep.mubr.msk.bf16.mxu0 %vm6385_vm1, %v6384_v2 }
  0x36   : > { %v6728_v24 = vsel %vm1070_vm6, %v1071_v22, %v1072_v21  ;;  %v6743_v29 = vsel %vm1070_vm6, %v1072_v21, %v1074_v27  ;;  %v2684_v22 = vshrl.u32 %v6660_v51, 16 }
  0x3a   : > { %5101 = vmatmul.mubr.msk.bf16.gmra.mrb[12].mxu1 %vm452_vm3, %v443_v23  ;;  %v2534_v23 = vsel %vm1070_vm6, %v2531_v62, %v2533_v15  ;;  %v2678_v62 = vshll.u32 %v6636_v42, 16 }
  0x3b   : > { %5104 = vmatprep.mubr.msk.bf16.mxu1 %vm6385_vm1, %v6384_v2 }
  0x3c   : > { %5397 = vmatmul.mubr.msk.bf16.vlgmr.msra.gmra.mrb[0].mxu0 %vm452_vm3, %v2379_v18  ;;  %v1076_v18 = vrot.slane %v6752_v31, 2  ;;  %v2680_v11 = vrot.slane %v2678_v62, 3 }
  0x3d   : > { %5417 = vmatpush3.bf16.msra.mxu0 %v2557_v33  ;;  %5400 = vmatprep.mubr.msk.bf16.mxu0 %vm6385_vm1, %v6384_v2  ;;  %v2537_v33 = vrot.slane %v6660_v51, 2 }
  0x3e   : > { %5438 = vmatprep.subr.bf16.mxu0 %v6384_v2 }
  0x3f   : > { %v2538_v35 = vsel %vm1070_vm6, %v2535_v14, %v2537_v33  ;;  %v2686_v14 = vrot.slane %v2684_v22, 2 }
  0x42   : > { %5105 = vmatmul.mubr.msk.bf16.gmra.mrb[16].mxu1 %vm452_vm3, %v451_v38  ;;  %v2539_v38 = vrot.slane %v6279_v36, 2 }
  0x43   : > { %5110 = vmatprep.mubr.msk.bf16.mxu1 %vm6385_vm1, %v6384_v2 }
  0x44   : > { %5401 = vmatmul.mubr.msk.bf16.gmra.mrb[4].mxu0 %vm452_vm3, %v2381_v20  ;;  %v2540_v20 = vsel %vm1070_vm6, %v2537_v33, %v2539_v38  ;;  %v796_v38 = vrot.slane %v6752_v31, 1 }
  0x45   : > { %5404 = vmatprep.mubr.msk.bf16.mxu0 %vm6385_vm1, %v6384_v2 }
  0x4a   : > { %5111 = vmatmul.mubr.msk.bf16.vlgmr.msra.gmra.mrb[0].mxu1 %vm452_vm3, %v6491_v7  ;;  %v2384_v7 = vrot.slane %v6271_v53, 2  ;;  %v2662_v53 = vrot.slane %v2660_v45, 3 }
  0x4b   : > { %5114 = vmatprep.mubr.msk.bf16.mxu1 %vm6385_vm1, %v6384_v2  ;;  %5131 = vmatpush3.bf16.msra.mxu1 %v665_v48  ;;  %v2654_v48 = vrot.slane %v2652_v39, 3 }
  0x4c   : > { %5152 = vmatprep.subr.bf16.mxu1 %v6384_v2  ;;  %5405 = vmatmul.mubr.msk.bf16.gmra.mrb[8].mxu0 %vm452_vm3, %v2383_v54  ;;  %v2385_v57 = vsel %vm1070_vm6, %v2382_v50, %v2384_v7  ;;  %v2659_v50 = vrot.slane %v2657_v41, 2 }
  0x4d   : > { %5408 = vmatprep.mubr.msk.bf16.mxu0 %vm6385_vm1, %v6384_v2 }
  0x4e   : > { %v2663_v54 = vor.u32 %v2662_v53, %v2659_v50  ;;  %v6287_v53 = vld [vmem:[%s6483_s13 + $0x2c] ss:$0 sps:$4 sm:$0x11]  }
  0x52   : > { %5115 = vmatmul.mubr.msk.bf16.gmra.mrb[4].mxu1 %vm452_vm3, %v6494_v8  ;;  %v2387_v8 = vsel %vm1070_vm6, %v2384_v7, %v2386_v58  ;;  %v2669_v7 = vshll.u32 %v6626_v34, 16 }
  0x53   : > { %5118 = vmatprep.mubr.msk.bf16.mxu1 %vm6385_vm1, %v6384_v2 }
  0x54   : > { %5409 = vmatmul.mubr.msk.bf16.gmra.mrb[12].mxu0 %vm452_vm3, %v2385_v57  ;;  %v2671_v58 = vrot.slane %v2669_v7, 3  ;;  %v914_v7 = vshll.u32 %v6802_v60, 16 }
  0x55   : > { %5412 = vmatprep.mubr.msk.bf16.mxu0 %vm6385_vm1, %v6384_v2 }
  0x56   : > { %v916_v59 = vrot.slane %v914_v7, 2 }
  0x5a   : > { %5119 = vmatmul.mubr.msk.bf16.gmra.mrb[8].mxu1 %vm452_vm3, %v6502_v9  ;;  %v4826_v9 = vld [vmem:[%s7791_s3 + $0x40] sm:$0xf] }
  0x5b   : > { %5122 = vmatprep.mubr.msk.bf16.mxu1 %vm6385_vm1, %v6384_v2  ;;  %v2717_v0 = vsel %vm468_vm0, %v4826_v9, 0  ;;  %v791_v9 = vrot.slane %v6802_v60, 1 }
  0x5c   : > { %5413 = vmatmul.mubr.msk.bf16.gmra.mrb[16].mxu0 %vm452_vm3, %v2387_v8  ;;  %v2835_v8 = vsel %vm468_vm0, %v4833_v56, 0  ;;  %v919_v56 = vshrl.u32 %v6709_v1, 16 }
  0x5d   : > { %5418 = vmatprep.mubr.msk.bf16.mxu0 %vm6385_vm1, %v6384_v2 }
  0x62   : > { %5123 = vmatmul.mubr.msk.bf16.gmra.mrb[12].mxu1 %vm452_vm3, %v6540_v40  ;;  %v647_v40 = vrot.slane %v6594_v19, 1  ;;  %v2675_v19 = vshrl.u32 %v6636_v42, 16  ;;  %v4718_v42 = vld [vmem:[%s7791_s3 + $0x10] sm:$0xf] }
  0x63   : > { %5126 = vmatprep.mubr.msk.bf16.mxu1 %vm6385_vm1, %v6384_v2  ;;  %v979_v21 = vsel %vm468_vm0, %v4718_v42, 0 }
  0x64   : > { %5419 = vmatmul.mubr.msk.bf16.vlgmr.msra.gmra.mrb[0].mxu0 %vm452_vm3, %v2532_v63  ;;  %v792_v63 = vrot.slane %v6709_v1, 1  ;;  %v2677_v3 = vrot.slane %v2675_v19, 2  ;;  %v4725_v19 = vld [vmem:[%s7791_s3 + $0x14] sm:$0xf] }
  0x65   : > { %5439 = vmatpush3.bf16.msra.mxu0 %v2717_v0  ;;  %5422 = vmatprep.mubr.msk.bf16.mxu0 %vm6385_vm1, %v6384_v2 }
  0x66   : > { %5460 = vmatprep.subr.bf16.mxu0 %v6384_v2  ;;  %v793_v15 = vsel %vm637_vm5, %v791_v9, %v792_v63  ;;  %v2681_v16 = vor.u32 %v2680_v11, %v2677_v3  ;;  %v795_v33 = vsel %vm637_vm5, %v792_v63, %v794_v25  ;;  %v937_v3 = vshrl.u32 %v6752_v31, 16 }
  0x68   : > { %v939_v42 = vrot.slane %v937_v3, 1 }
  0x6a   : > { %5127 = vmatmul.mubr.msk.bf16.gmra.mrb[16].mxu1 %vm452_vm3, %v6562_v55 }
  0x6b   : > { %5132 = vmatprep.mubr.msk.bf16.mxu1 %vm6385_vm1, %v6384_v2 }
  0x6c   : > { %5423 = vmatmul.mubr.msk.bf16.gmra.mrb[4].mxu0 %vm452_vm3, %v2534_v23  ;;  %v2687_v23 = vshll.u32 %v6660_v51, 16 }
  0x6d   : > { %5426 = vmatprep.mubr.msk.bf16.mxu0 %vm6385_vm1, %v6384_v2 }
  0x72   : > { %5133 = vmatmul.mubr.msk.bf16.vlgmr.msra.gmra.mrb[0].mxu1 %vm452_vm3, %v6583_v12  ;;  %v6762_v12 = vsel %vm1070_vm6, %v1074_v27, %v1076_v18 }
  0x73   : > { %5136 = vmatprep.mubr.msk.bf16.mxu1 %vm6385_vm1, %v6384_v2  ;;  %5153 = vmatpush3.bf16.msra.mxu1 %v818_v28  ;;  %v2689_v28 = vrot.slane %v2687_v23, 3 }
  0x74   : > { %5174 = vmatprep.subr.bf16.mxu1 %v6384_v2  ;;  %5427 = vmatmul.mubr.msk.bf16.gmra.mrb[8].mxu0 %vm452_vm3, %v2536_v30  ;;  %v6831_v30 = vld [vmem:[%s6499_s25 + $0x30] ss:$0 sps:$4 sm:$0x77]  }
  0x75   : > { %5430 = vmatprep.mubr.msk.bf16.mxu0 %vm6385_vm1, %v6384_v2  ;;  %v2693_v36 = vshrl.u32 %v6831_v30, 16  ;;  %v2696_v37 = vshll.u32 %v6831_v30, 16 }
  0x77   : > { %v2695_v41 = vrot.slane %v2693_v36, 2  ;;  %v2698_v45 = vrot.slane %v2696_v37, 3 }
  0x7a   : > { %5137 = vmatmul.mubr.msk.bf16.gmra.mrb[4].mxu1 %vm452_vm3, %v6579_v10  ;;  %v645_v10 = vrot.slane %v6562_v55, 1  ;;  %v2666_v55 = vshrl.u32 %v6626_v34, 16 }
  0x7b   : > { %5140 = vmatprep.mubr.msk.bf16.mxu1 %vm6385_vm1, %v6384_v2 }
  0x7c   : > { %5431 = vmatmul.mubr.msk.bf16.gmra.mrb[12].mxu0 %vm452_vm3, %v2538_v35  ;;  %v646_v32 = vsel %vm637_vm5, %v643_v5, %v645_v10  ;;  %v2668_v57 = vrot.slane %v2666_v55, 2  ;;  %v648_v34 = vsel %vm637_vm5, %v645_v10, %v647_v40  ;;  %v2690_v35 = vor.u32 %v2689_v28, %v2686_v14 }
  0x7d   : > { %5434 = vmatprep.mubr.msk.bf16.mxu0 %vm6385_vm1, %v6384_v2  ;;  %v797_v10 = vsel %vm637_vm5, %v794_v25, %v796_v38  ;;  %v911_v55 = vshrl.u32 %v6802_v60, 16  ;;  %v922_v40 = vshll.u32 %v6709_v1, 16  ;;  %v2817_v14 = vrot.slane %v6831_v30, 3 }
  0x7e   : > { %v2672_v61 = vor.u32 %v2671_v58, %v2668_v57  ;;  %v2691_v39 = vsel %vm1342_vm8, %v2681_v16, %v2690_v35 }
  0x7f   : > { %v913_v58 = vrot.slane %v911_v55, 1  ;;  %v6294_v55 = vld [vmem:[%s6621_s14 + $0x20] sm:$0xff]  }
  0x80   : > { %v2673_v0 = vsel %vm1342_vm8, %v2663_v54, %v2672_v61  ;;  %v2682_v27 = vsel %vm1342_vm8, %v2672_v61, %v2681_v16  ;;  %v928_v61 = vshrl.u32 %v6734_v26, 16 }
  0x81   : > { %v917_v1 = vor.u32 %v916_v59, %v913_v58  ;;  %v6993_v58 = vld [vmem:[%s6621_s14 + $0x10] sm:$0xff]  }
  0x82   : > { %5141 = vmatmul.mubr.msk.bf16.gmra.mrb[8].mxu1 %vm452_vm3, %v6588_v13  ;;  %v2655_v13 = vor.u32 %v2654_v48, %v2651_v47  ;;  %v6848_v47 = vld [vmem:[%s6483_s13 + $0x24] sm:$0xff]   ;;  %v930_v9 = vrot.slane %v928_v61, 1 }
  0x83   : > { %5144 = vmatprep.mubr.msk.bf16.mxu1 %vm6385_vm1, %v6384_v2  ;;  %v798_v48 = vrot.slane %v6848_v47, 1  ;;  %v949_v22 = vshll.u32 %v6848_v47, 16 }
  0x84   : > { %5435 = vmatmul.mubr.msk.bf16.gmra.mrb[16].mxu0 %vm452_vm3, %v2540_v20  ;;  %v2664_v5 = vsel %vm1342_vm8, %v2655_v13, %v2663_v54  ;;  %v2699_v20 = vor.u32 %v2698_v45, %v2695_v41  ;;  %v4840_v13 = vld [vmem:[%s7791_s3 + $0x48] sm:$0xf]  ;;  %v800_v54 = vrot.slane %v6287_v53, 1  ;;  %v6965_v53 = vld [vmem:[%s6621_s14 + $0x4] sm:$0xf] }
  0x85   : > { %5440 = vmatprep.mubr.msk.bf16.mxu0 %vm6385_vm1, %v6384_v2  ;;  %v951_v25 = vrot.slane %v949_v22, 2  ;;  %v6290_v45 = vld [vmem:[%s6621_s14 + $0x8] sm:$0xff]  }
  0x86   : > { %v2700_v50 = vsel %vm1342_vm8, %v2690_v35, %v2699_v20  ;;  %v801_v57 = vsel %vm637_vm5, %v798_v48, %v800_v54  ;;  %v2818_v35 = vsel %vm1503_vm7, %v2815_v52, %v2817_v14 }
  0x8a   : > { %5145 = vmatmul.mubr.msk.bf16.gmra.mrb[12].mxu1 %vm452_vm3, %v646_v32  ;;  %v799_v32 = vsel %vm637_vm5, %v796_v38, %v798_v48  ;;  %v4851_v38 = vld [vmem:[%s7791_s3 + $0x4c] sm:$0xf]  ;;  %v6292_v48 = vld [vmem:[%s6621_s14 + $0x10] sm:$0xff]  }
  0x8b   : > { %5148 = vmatprep.mubr.msk.bf16.mxu1 %vm6385_vm1, %v6384_v2  ;;  %v3159_v52 = vsel %vm468_vm0, %v4851_v38, 0 }
  0x8c   : > { %5441 = vmatmul.mubr.msk.bf16.vlgmr.msra.gmra.mrb[0].mxu0 %vm452_vm3, %v2664_v5  ;;  %v2973_v5 = vsel %vm468_vm0, %v4840_v13, 0  ;;  %v6977_v13 = vld [vmem:[%s6621_s14 + $0x8] sm:$0xff]  }
  0x8d   : > { %5461 = vmatpush3.bf16.msra.mxu0 %v2835_v8  ;;  %5444 = vmatprep.mubr.msk.bf16.mxu0 %vm6385_vm1, %v6384_v2  ;;  %v921_v8 = vrot.slane %v919_v56, 1  ;;  %v3111_v59 = vshrl.u32 %v6977_v13, 16 }
  0x8e   : > { %5482 = vmatprep.subr.bf16.mxu0 %v6384_v2 }
  0x92   : > { %5149 = vmatmul.mubr.msk.bf16.gmra.mrb[16].mxu1 %vm452_vm3, %v648_v34  ;;  %v924_v34 = vrot.slane %v922_v40, 2  ;;  %v3107_v40 = vshll.u32 %v6977_v13, 16 }
  0x93   : > { %5154 = vmatprep.mubr.msk.bf16.mxu1 %vm6385_vm1, %v6384_v2 }
  0x94   : > { %5445 = vmatmul.mubr.msk.bf16.gmra.mrb[4].mxu0 %vm452_vm3, %v2673_v0  ;;  %v925_v60 = vor.u32 %v924_v34, %v921_v8  ;;  %v1098_v0 = vsel %vm468_vm0, %v4725_v19, 0  ;;  %v3115_v8 = vshll.u32 %v6993_v58, 16  ;;  %v1183_v34 = vld [vmem:[%s6483_s13 + $0x8] sm:$0xc]  ;;  %v7016_v19 = vld [vmem:[%s6483_s13 + $0x10] sm:$0xff]  }
  0x95   : > { %5448 = vmatprep.mubr.msk.bf16.mxu0 %vm6385_vm1, %v6384_v2 }
  0x96   : > { %v926_v62 = vsel %vm909_vm4, %v917_v1, %v925_v60  ;;  %v7007_v1 = vld [vmem:[%s6483_s13 + $0xc] sm:$0xf] }
  0x9a   : > { %5155 = vmatmul.mubr.msk.bf16.vlgmr.msra.gmra.mrb[0].mxu1 %vm452_vm3, %v793_v15 }
  0x9b   : > { %5158 = vmatprep.mubr.msk.bf16.mxu1 %vm6385_vm1, %v6384_v2  ;;  %5175 = vmatpush3.bf16.msra.mxu1 %v979_v21  ;;  %v946_v21 = vshrl.u32 %v6848_v47, 16 }
  0x9c   : > { %5196 = vmatprep.subr.bf16.mxu1 %v6384_v2  ;;  %5449 = vmatmul.mubr.msk.bf16.gmra.mrb[8].mxu0 %vm452_vm3, %v2682_v27  ;;  %v6913_v27 = vld [vmem:[%s6483_s13 + $0x2c] ss:$0 sps:$4 sm:$0x33]  }
  0x9d   : > { %5452 = vmatprep.mubr.msk.bf16.mxu0 %vm6385_vm1, %v6384_v2  ;;  %v948_v23 = vrot.slane %v946_v21, 1 }
  0x9f   : > { %v952_v28 = vor.u32 %v951_v25, %v948_v23  ;;  %v7044_v23 = vld [vmem:[%s6621_s14 + $0x20] sm:$0xff]  }
  0xa2   : > { %5159 = vmatmul.mubr.msk.bf16.gmra.mrb[4].mxu1 %vm452_vm3, %v795_v33  ;;  %v958_v33 = vshll.u32 %v6913_v27, 16 }
  0xa3   : > { %5162 = vmatprep.mubr.msk.bf16.mxu1 %vm6385_vm1, %v6384_v2 }
  0xa4   : > { %5453 = vmatmul.mubr.msk.bf16.gmra.mrb[12].mxu0 %vm452_vm3, %v2691_v39  ;;  %v960_v37 = vrot.slane %v958_v33, 2  ;;  %v6288_v39 = vld [vmem:[%s6621_s14] sm:$0xff]  }
  0xa5   : > { %5456 = vmatprep.mubr.msk.bf16.mxu0 %vm6385_vm1, %v6384_v2  ;;  %v7057_v33 = vld [vmem:[%s6483_s13 + $0x20] sm:$0xff]  }
  0xaa   : > { %5163 = vmatmul.mubr.msk.bf16.gmra.mrb[8].mxu1 %vm452_vm3, %v797_v10  ;;  %v4732_v10 = vld [vmem:[%s7791_s3 + $0x18] sm:$0xf] }
  0xab   : > { %5166 = vmatprep.mubr.msk.bf16.mxu1 %vm6385_vm1, %v6384_v2  ;;  %v1251_v20 = vsel %vm468_vm0, %v4732_v10, 0 }
  0xac   : > { %5457 = vmatmul.mubr.msk.bf16.gmra.mrb[16].mxu0 %vm452_vm3, %v2700_v50  ;;  %v3058_v50 = vld [vmem:[%s6621_s14] sm:$0xf] }
  0xad   : > { %5462 = vmatprep.mubr.msk.bf16.mxu0 %vm6385_vm1, %v6384_v2 }
  0xb2   : > { %5167 = vmatmul.mubr.msk.bf16.gmra.mrb[12].mxu1 %vm452_vm3, %v799_v32  ;;  %v4852_v32 = vcombine.low %v3058_v50, %v6965_v53 }
  0xb3   : > { %5170 = vmatprep.mubr.msk.bf16.mxu1 %vm6385_vm1, %v6384_v2 }
  0xb4   : > { %5463 = vmatmul.mubr.msk.bf16.vlgmr.msra.gmra.mrb[0].mxu0 %vm452_vm3, %v6639_v43  ;;  %v931_v43 = vshll.u32 %v6734_v26, 16  ;;  %v3102_v54 = vshll.u32 %v4852_v32, 16  ;;  %v3100_v7 = vshrl.u32 %v4852_v32, 16  ;;  %v6307_v32 = vld [vmem:[%s6483_s13 + $0x30] ss:$0 sps:$4 sm:$0x33]  }
  0xb5   : > { %5483 = vmatpush3.bf16.msra.mxu0 %v2973_v5  ;;  %5466 = vmatprep.mubr.msk.bf16.mxu0 %vm6385_vm1, %v6384_v2 }
  0xb6   : > { %5504 = vmatprep.subr.bf16.mxu0 %v6384_v2  ;;  %v933_v63 = vrot.slane %v931_v43, 2  ;;  %v3104_v56 = vrot.slane %v3102_v54, 1  ;;  %v7013_v43 = vcombine.low %v1183_v34, %v7007_v1  ;;  %v3253_v34 = vrot.slane %v6993_v58, 1 }
  0xb8   : > { %v934_v26 = vor.u32 %v933_v63, %v930_v9  ;;  %v3117_v9 = vrot.slane %v3115_v8, 1  ;;  %v7021_v63 = vld [vmem:[%s6621_s14 + $0x18] sm:$0xff]  }
  0xb9   : > { %v3127_v14 = vshrl.u32 %v7021_v63, 16 }
  0xba   : > { %5171 = vmatmul.mubr.msk.bf16.gmra.mrb[16].mxu1 %vm452_vm3, %v801_v57  ;;  %v935_v11 = vsel %vm909_vm4, %v925_v60, %v934_v26  ;;  %v3109_v57 = vrot.slane %v3107_v40, 1  ;;  %v1347_v40 = vshll.u32 %v7013_v43, 16 }
  0xbb   : > { %5176 = vmatprep.mubr.msk.bf16.mxu1 %vm6385_vm1, %v6384_v2 }
  0xbc   : > { %5467 = vmatmul.mubr.msk.bf16.gmra.mrb[4].mxu0 %vm452_vm3, %v6646_v46  ;;  %v940_v46 = vshll.u32 %v6752_v31, 16  ;;  %v1080_v31 = vrot.slane %v6913_v27, 2 }
  0xbd   : > { %5470 = vmatprep.mubr.msk.bf16.mxu0 %vm6385_vm1, %v6384_v2 }
  0xbe   : > { %v942_v15 = vrot.slane %v940_v46, 2  ;;  %v3119_v46 = vshrl.u32 %v6993_v58, 16 }
  0xc0   : > { %v943_v16 = vor.u32 %v942_v15, %v939_v42  ;;  %v4744_v42 = vld [vmem:[%s7791_s3 + $0x1c] sm:$0xf]  ;;  %v3121_v21 = vor.u32 %v3119_v46, %v3117_v9  ;;  %v3255_v46 = vrot.slane %v7021_v63, 1 }
  0xc2   : > { %5177 = vmatmul.mubr.msk.bf16.vlgmr.msra.gmra.mrb[0].mxu1 %vm452_vm3, %v926_v62  ;;  %v953_v36 = vsel %vm909_vm4, %v943_v16, %v952_v28  ;;  %v3113_v62 = vor.u32 %v3111_v59, %v3109_v57 }
  0xc3   : > { %5180 = vmatprep.mubr.msk.bf16.mxu1 %vm6385_vm1, %v6384_v2  ;;  %5197 = vmatpush3.bf16.msra.mxu1 %v1098_v0  ;;  %v1224_v0 = vrot.slane %v7013_v43, 2 }
  0xc4   : > { %5218 = vmatprep.subr.bf16.mxu1 %v6384_v2  ;;  %5471 = vmatmul.mubr.msk.bf16.gmra.mrb[8].mxu0 %vm452_vm3, %v6655_v49  ;;  %v944_v49 = vsel %vm909_vm4, %v934_v26, %v943_v16  ;;  %v1225_v26 = vrot.slane %v7016_v19, 2  ;;  %v3118_v3 = vsel %vm407_vm2, %v3113_v62, %v3117_v9  ;;  %v7038_v16 = vld [vmem:[%s6483_s13 + $0x18] sm:$0xff]  }
  0xc5   : > { %5474 = vmatprep.mubr.msk.bf16.mxu0 %vm6385_vm1, %v6384_v2  ;;  %v1227_v25 = vrot.slane %v7038_v16, 2  ;;  %v1364_v62 = vshll.u32 %v7038_v16, 16 }
  0xc6   : > { %v1226_v15 = vsel %vm1070_vm6, %v1224_v0, %v1225_v26  ;;  %v4751_v0 = vld [vmem:[%s7791_s3 + $0x20] sm:$0xf] }
  0xca   : > { %5181 = vmatmul.mubr.msk.bf16.gmra.mrb[4].mxu1 %vm452_vm3, %v935_v11  ;;  %v3123_v11 = vshll.u32 %v7021_v63, 16 }
  0xcb   : > { %5184 = vmatprep.mubr.msk.bf16.mxu1 %vm6385_vm1, %v6384_v2 }
  0xcc   : > { %5475 = vmatmul.mubr.msk.bf16.gmra.mrb[12].mxu0 %vm452_vm3, %v6675_v44  ;;  %v955_v44 = vshrl.u32 %v6913_v27, 16  ;;  %v3125_v22 = vrot.slane %v3123_v11, 1  ;;  %v1531_v11 = vsel %vm468_vm0, %v4751_v0, 0 }
  0xcd   : > { %5478 = vmatprep.mubr.msk.bf16.mxu0 %vm6385_vm1, %v6384_v2 }
  0xce   : > { %v957_v30 = vrot.slane %v955_v44, 1  ;;  %v3126_v27 = vsel %vm407_vm2, %v3121_v21, %v3125_v22  ;;  %v1228_v44 = vsel %vm1070_vm6, %v1225_v26, %v1227_v25  ;;  %v1373_v21 = vshll.u32 %v7057_v33, 16 }
  0xd0   : > { %v961_v51 = vor.u32 %v960_v37, %v957_v30  ;;  %v7062_v30 = vld [vmem:[%s6621_s14 + $0x28] ss:$0 sps:$4 sm:$0x11]   ;;  %v1229_v37 = vrot.slane %v7057_v33, 2 }
  0xd2   : > { %5185 = vmatmul.mubr.msk.bf16.gmra.mrb[8].mxu1 %vm452_vm3, %v944_v49  ;;  %v962_v41 = vsel %vm909_vm4, %v952_v28, %v961_v51  ;;  %v1412_v49 = vsel %vm468_vm0, %v4744_v42, 0  ;;  %v3131_v28 = vshll.u32 %v7044_v23, 16  ;;  %v3139_v51 = vshll.u32 %v7062_v30, 16 }
  0xd3   : > { %5188 = vmatprep.mubr.msk.bf16.mxu1 %vm6385_vm1, %v6384_v2 }
  0xd4   : > { %5479 = vmatmul.mubr.msk.bf16.gmra.mrb[16].mxu0 %vm452_vm3, %v2818_v35  ;;  %v3129_v35 = vor.u32 %v3127_v14, %v3125_v22  ;;  %v3141_v10 = vrot.slane %v3139_v51, 1  ;;  %v3256_v22 = vsel %vm637_vm5, %v3253_v34, %v3255_v46  ;;  %v3362_v51 = vld [vmem:[%s6621_s14 + $0x4] sm:$0xe] }
  0xd5   : > { %5484 = vmatprep.mubr.msk.bf16.mxu0 %vm6385_vm1, %v6384_v2 }
  0xda   : > { %5189 = vmatmul.mubr.msk.bf16.gmra.mrb[12].mxu1 %vm452_vm3, %v953_v36  ;;  %v3133_v36 = vrot.slane %v3131_v28, 1 }
  0xdb   : > { %5192 = vmatprep.mubr.msk.bf16.mxu1 %vm6385_vm1, %v6384_v2 }
  0xdc   : > { %5485 = vmatmul.mubr.msk.bf16.vlgmr.msra.gmra.mrb[0].mxu0 %vm452_vm3, %v6288_v39  ;;  %v3134_v38 = vsel %vm407_vm2, %v3129_v35, %v3133_v36  ;;  %v3135_v39 = vshrl.u32 %v7044_v23, 16 }
  0xdd   : > { %5505 = vmatpush3.bf16.msra.mxu0 %v3159_v52  ;;  %5488 = vmatprep.mubr.msk.bf16.mxu0 %vm6385_vm1, %v6384_v2  ;;  %v1230_v52 = vsel %vm1070_vm6, %v1227_v25, %v1229_v37  ;;  %v1375_v25 = vrot.slane %v1373_v21, 3 }
  0xde   : > { %5526 = vmatprep.subr.bf16.mxu0 %v6384_v2 }
  0xe2   : > { %5193 = vmatmul.mubr.msk.bf16.gmra.mrb[16].mxu1 %vm452_vm3, %v962_v41  ;;  %v7074_v41 = vld [vmem:[%s6483_s13 + $0x28] sm:$0xff]  }
  0xe3   : > { %5198 = vmatprep.mubr.msk.bf16.mxu1 %vm6385_vm1, %v6384_v2  ;;  %v1379_v28 = vshrl.u32 %v7074_v41, 16 }
  0xe4   : > { %5489 = vmatmul.mubr.msk.bf16.gmra.mrb[4].mxu0 %vm452_vm3, %v6290_v45  ;;  %v3137_v45 = vor.u32 %v3135_v39, %v3133_v36  ;;  %v3259_v39 = vrot.slane %v7062_v30, 1  ;;  %v7164_v30 = vld [vmem:[%s6621_s14 + $0xc] sm:$0xff]  }
  0xe5   : > { %5492 = vmatprep.mubr.msk.bf16.mxu0 %vm6385_vm1, %v6384_v2  ;;  %v3533_v21 = vshll.u32 %v7164_v30, 16 }
  0xe6   : > { %v3142_v50 = vsel %vm407_vm2, %v3137_v45, %v3141_v10 }
  0xea   : > { %5199 = vmatmul.mubr.msk.bf16.vlgmr.msra.gmra.mrb[0].mxu1 %vm452_vm3, %v6728_v24  ;;  %v6293_v24 = vld [vmem:[%s6621_s14 + $0x18] sm:$0xff]  }
  0xeb   : > { %5202 = vmatprep.mubr.msk.bf16.mxu1 %vm6385_vm1, %v6384_v2  ;;  %5219 = vmatpush3.bf16.msra.mxu1 %v1251_v20  ;;  %v3244_v20 = vld [vmem:[%s6621_s14] sm:$0xe] }
  0xec   : > { %5240 = vmatprep.subr.bf16.mxu1 %v6384_v2  ;;  %5493 = vmatmul.mubr.msk.bf16.gmra.mrb[8].mxu0 %vm452_vm3, %v6292_v48  ;;  %v1231_v48 = vrot.slane %v7074_v41, 2 }
  0xed   : > { %5496 = vmatprep.mubr.msk.bf16.mxu0 %vm6385_vm1, %v6384_v2 }
  0xee   : > { %v1232_v54 = vsel %vm1070_vm6, %v1229_v37, %v1231_v48  ;;  %v1381_v37 = vrot.slane %v1379_v28, 2 }
  0xf2   : > { %5203 = vmatmul.mubr.msk.bf16.gmra.mrb[4].mxu1 %vm452_vm3, %v6743_v29  ;;  %v1078_v29 = vrot.slane %v6848_v47, 2  ;;  %v4863_v47 = vld [vmem:[%s7791_s3 + $0x50] sm:$0xf] }
  0xf3   : > { %5206 = vmatprep.mubr.msk.bf16.mxu1 %vm6385_vm1, %v6384_v2  ;;  %v3277_v60 = vsel %vm468_vm0, %v4863_v47, 0 }
  0xf4   : > { %5497 = vmatmul.mubr.msk.bf16.gmra.mrb[12].mxu0 %vm452_vm3, %v6293_v24  ;;  %v1079_v5 = vsel %vm1070_vm6, %v1076_v18, %v1078_v29  ;;  %v1081_v61 = vsel %vm1070_vm6, %v1078_v29, %v1080_v31  ;;  %v4864_v24 = vcombine.low %v3244_v20, %v6965_v53  ;;  %v3251_v29 = vrot.slane %v6977_v13, 1 }
  0xf5   : > { %5500 = vmatprep.mubr.msk.bf16.mxu0 %vm6385_vm1, %v6384_v2  ;;  %v1344_v53 = vshrl.u32 %v7013_v43, 16  ;;  %v1361_v43 = vshrl.u32 %v7038_v16, 16 }
  0xf6   : > { %v3254_v9 = vsel %vm637_vm5, %v3251_v29, %v3253_v34 }
  0xf7   : > { %v1346_v31 = vrot.slane %v1344_v53, 2  ;;  %v1363_v26 = vrot.slane %v1361_v43, 2 }
  0xfa   : > { %5207 = vmatmul.mubr.msk.bf16.gmra.mrb[8].mxu1 %vm452_vm3, %v6762_v12  ;;  %v3105_v12 = vor.u32 %v3104_v56, %v3100_v7  ;;  %v4870_v7 = vld [vmem:[%s7791_s3 + $0x54] sm:$0xf]  ;;  %v1233_v56 = vrot.slane %v6307_v32, 2 }
  0xfb   : > { %5210 = vmatprep.mubr.msk.bf16.mxu1 %vm6385_vm1, %v6384_v2 }
  0xfc   : > { %5501 = vmatmul.mubr.msk.bf16.gmra.mrb[16].mxu0 %vm452_vm3, %v6294_v55  ;;  %v3110_v18 = vsel %vm407_vm2, %v3105_v12, %v3109_v57  ;;  %v3250_v55 = vrot.slane %v4864_v24, 1  ;;  %v1355_v12 = vshll.u32 %v7016_v19, 16  ;;  %v3430_v57 = vsel %vm468_vm0, %v4870_v7, 0  ;;  %v4882_v7 = vld [vmem:[%s7791_s3 + $0x58] sm:$0xf] }
  0xfd   : > { %5506 = vmatprep.mubr.msk.bf16.mxu0 %vm6385_vm1, %v6384_v2  ;;  %v1234_v47 = vsel %vm1070_vm6, %v1231_v48, %v1233_v56 }
  0xfe   : > { %v3252_v13 = vsel %vm637_vm5, %v3250_v55, %v3251_v29  ;;  %v1357_v8 = vrot.slane %v1355_v12, 3  ;;  %v3404_v29 = vrot.slane %v7164_v30, 1  ;;  %v3590_v12 = vsel %vm468_vm0, %v4882_v7, 0 }
 0x102   : > { %5211 = vmatmul.mubr.msk.bf16.gmra.mrb[12].mxu1 %vm452_vm3, %v1079_v5  ;;  %v1352_v5 = vshrl.u32 %v7016_v19, 16 }
 0x103   : > { %5214 = vmatprep.mubr.msk.bf16.mxu1 %vm6385_vm1, %v6384_v2 }
 0x104   : > { %5507 = vmatmul.mubr.msk.bf16.vlgmr.msra.gmra.mrb[0].mxu0 %vm452_vm3, %v3110_v18  ;;  %v1349_v18 = vrot.slane %v1347_v40, 3  ;;  %v1354_v59 = vrot.slane %v1352_v5, 2  ;;  %v7180_v40 = vld [vmem:[%s6621_s14 + $0x14] sm:$0xff]   ;;  %v1497_v5 = vld [vmem:[%s6483_s13 + $0x8] sm:$0x8] }
 0x105   : > { %5527 = vmatpush3.bf16.msra.mxu0 %v3277_v60  ;;  %5510 = vmatprep.mubr.msk.bf16.mxu0 %vm6385_vm1, %v6384_v2 }
 0x106   : > { %5548 = vmatprep.subr.bf16.mxu0 %v6384_v2  ;;  %v1350_v60 = vor.u32 %v1349_v18, %v1346_v31  ;;  %v1505_v18 = vrot.slane %v7016_v19, 3 }
 0x10a   : > { %5215 = vmatmul.mubr.msk.bf16.gmra.mrb[16].mxu1 %vm452_vm3, %v1081_v61  ;;  %v1358_v61 = vor.u32 %v1357_v8, %v1354_v59  ;;  %v4758_v8 = vld [vmem:[%s7791_s3 + $0x24] sm:$0xf] }
 0x10b   : > { %5220 = vmatprep.mubr.msk.bf16.mxu1 %vm6385_vm1, %v6384_v2  ;;  %v1669_v19 = vsel %vm468_vm0, %v4758_v8, 0 }
 0x10c   : > { %5511 = vmatmul.mubr.msk.bf16.gmra.mrb[4].mxu0 %vm452_vm3, %v3118_v3  ;;  %v1359_v58 = vsel %vm1342_vm8, %v1350_v60, %v1358_v61  ;;  %v1366_v3 = vrot.slane %v1364_v62, 3  ;;  %v7214_v62 = vld [vmem:[%s6621_s14 + $0x24] sm:$0xff]  }
 0x10d   : > { %5514 = vmatprep.mubr.msk.bf16.mxu0 %vm6385_vm1, %v6384_v2  ;;  %v3410_v0 = vrot.slane %v7214_v62, 1 }
 0x10e   : > { %v1367_v42 = vor.u32 %v1366_v3, %v1363_v26 }
 0x110   : > { %v1368_v63 = vsel %vm1342_vm8, %v1358_v61, %v1367_v42  ;;  %v1507_v61 = vrot.slane %v7038_v16, 3  ;;  %v1509_v16 = vrot.slane %v7057_v33, 3 }
 0x112   : > { %5221 = vmatmul.mubr.msk.bf16.vlgmr.msra.gmra.mrb[0].mxu1 %vm452_vm3, %v1226_v15  ;;  %v1370_v15 = vshrl.u32 %v7057_v33, 16  ;;  %v1510_v3 = vsel %vm1503_vm7, %v1507_v61, %v1509_v16 }
 0x113   : > { %5224 = vmatprep.mubr.msk.bf16.mxu1 %vm6385_vm1, %v6384_v2  ;;  %5241 = vmatpush3.bf16.msra.mxu1 %v1412_v49 }
 0x114   : > { %5262 = vmatprep.subr.bf16.mxu1 %v6384_v2  ;;  %5515 = vmatmul.mubr.msk.bf16.gmra.mrb[8].mxu0 %vm452_vm3, %v3126_v27  ;;  %v1372_v49 = vrot.slane %v1370_v15, 2  ;;  %v3257_v27 = vrot.slane %v7044_v23, 1  ;;  %v7145_v23 = vld [vmem:[%s6483_s13 + $0x30] ss:$0 sps:$4 sm:$0x77]   ;;  %v3530_v15 = vshrl.u32 %v7164_v30, 16 }
 0x115   : > { %5518 = vmatprep.mubr.msk.bf16.mxu0 %vm6385_vm1, %v6384_v2  ;;  %v1388_v10 = vshrl.u32 %v7145_v23, 16  ;;  %v1391_v20 = vshll.u32 %v7145_v23, 16 }
 0x116   : > { %v1376_v14 = vor.u32 %v1375_v25, %v1372_v49  ;;  %v3258_v35 = vsel %vm637_vm5, %v3255_v46, %v3257_v27  ;;  %v3260_v48 = vsel %vm637_vm5, %v3257_v27, %v3259_v39  ;;  %v3532_v25 = vrot.slane %v3530_v15, 1 }
 0x117   : > { %v1390_v32 = vrot.slane %v1388_v10, 2  ;;  %v3535_v27 = vrot.slane %v3533_v21, 2 }
 0x118   : > { %v1377_v36 = vsel %vm1342_vm8, %v1367_v42, %v1376_v14 }
 0x11a   : > { %5225 = vmatmul.mubr.msk.bf16.gmra.mrb[4].mxu1 %vm452_vm3, %v1228_v44  ;;  %v1382_v44 = vshll.u32 %v7074_v41, 16 }
 0x11b   : > { %5228 = vmatprep.mubr.msk.bf16.mxu1 %vm6385_vm1, %v6384_v2 }
 0x11c   : > { %5519 = vmatmul.mubr.msk.bf16.gmra.mrb[12].mxu0 %vm452_vm3, %v3134_v38  ;;  %v1384_v38 = vrot.slane %v1382_v44, 3  ;;  %v3536_v44 = vor.u32 %v3535_v27, %v3532_v25  ;;  %v3684_v25 = vrot.slane %v7180_v40, 2 }
 0x11d   : > { %5522 = vmatprep.mubr.msk.bf16.mxu0 %vm6385_vm1, %v6384_v2 }
 0x11e   : > { %v1385_v45 = vor.u32 %v1384_v38, %v1381_v37  ;;  %v1513_v37 = vrot.slane %v7145_v23, 3 }
 0x120   : > { %v1386_v24 = vsel %vm1342_vm8, %v1376_v14, %v1385_v45 }
 0x122   : > { %5229 = vmatmul.mubr.msk.bf16.gmra.mrb[8].mxu1 %vm452_vm3, %v1230_v52  ;;  %v7152_v52 = vld [vmem:[%s6621_s14 + $0x8] sm:$0xf] }
 0x123   : > { %5232 = vmatprep.mubr.msk.bf16.mxu1 %vm6385_vm1, %v6384_v2 }
 0x124   : > { %5523 = vmatmul.mubr.msk.bf16.gmra.mrb[16].mxu0 %vm452_vm3, %v3142_v50  ;;  %v7161_v50 = vcombine.low %v3362_v51, %v7152_v52 }
 0x125   : > { %5528 = vmatprep.mubr.msk.bf16.mxu0 %vm6385_vm1, %v6384_v2 }
 0x126   : > { %v3403_v55 = vrot.slane %v7161_v50, 1  ;;  %v3525_v42 = vshll.u32 %v7161_v50, 16 }
 0x128   : > { %v3405_v53 = vsel %vm637_vm5, %v3403_v55, %v3404_v29  ;;  %v3527_v49 = vrot.slane %v3525_v42, 2  ;;  %v6316_v55 = vld [vmem:[%s6499_s25] sm:$0xff]   ;;  %v7322_v42 = vld [vmem:[%s6499_s25 + $0x8] sm:$0xff]  }
 0x12a   : > { %5233 = vmatmul.mubr.msk.bf16.gmra.mrb[12].mxu1 %vm452_vm3, %v1232_v54  ;;  %v1393_v54 = vrot.slane %v1391_v20, 3 }
 0x12b   : > { %5236 = vmatprep.mubr.msk.bf16.mxu1 %vm6385_vm1, %v6384_v2 }
 0x12c   : > { %5529 = vmatmul.mubr.msk.bf16.vlgmr.msra.gmra.mrb[0].mxu0 %vm452_vm3, %v3252_v13  ;;  %v1394_v56 = vor.u32 %v1393_v54, %v1390_v32  ;;  %v4769_v54 = vld [vmem:[%s7791_s3 + $0x28] sm:$0xf] }
 0x12d   : > { %5549 = vmatpush3.bf16.msra.mxu0 %v3430_v57  ;;  %5532 = vmatprep.mubr.msk.bf16.mxu0 %vm6385_vm1, %v6384_v2  ;;  %v4752_v57 = vcombine.low %v1497_v5, %v7007_v1  ;;  %v7197_v1 = vld [vmem:[%s6621_s14 + $0x1c] sm:$0xff]   ;;  %v1855_v7 = vsel %vm468_vm0, %v4769_v54, 0 }
 0x12e   : > { %5570 = vmatprep.subr.bf16.mxu0 %v6384_v2  ;;  %v1395_v13 = vsel %vm1342_vm8, %v1385_v45, %v1394_v56  ;;  %v3408_v60 = vrot.slane %v7197_v1, 1  ;;  %v3551_v23 = vshll.u32 %v7197_v1, 16  ;;  %v3557_v56 = vshrl.u32 %v7214_v62, 16 }
 0x12f   : > { %v1504_v31 = vrot.slane %v4752_v57, 3  ;;  %v7282_v57 = vld [vmem:[%s6621_s14 + $0x2c] ss:$0 sps:$4 sm:$0x33]  }
 0x130   : > { %v3411_v26 = vsel %vm637_vm5, %v3408_v60, %v3410_v0  ;;  %v3553_v32 = vrot.slane %v3551_v23, 2  ;;  %v3688_v23 = vrot.slane %v7214_v62, 2 }
 0x131   : > { %v1506_v34 = vsel %vm1503_vm7, %v1504_v31, %v1505_v18 }
 0x132   : > { %5237 = vmatmul.mubr.msk.bf16.gmra.mrb[16].mxu1 %vm452_vm3, %v1234_v47  ;;  %v3406_v47 = vrot.slane %v7180_v40, 1 }
 0x133   : > { %5242 = vmatprep.mubr.msk.bf16.mxu1 %vm6385_vm1, %v6384_v2 }
 0x134   : > { %5533 = vmatmul.mubr.msk.bf16.gmra.mrb[4].mxu0 %vm452_vm3, %v3254_v9  ;;  %v3407_v59 = vsel %vm637_vm5, %v3404_v29, %v3406_v47  ;;  %v3409_v43 = vsel %vm637_vm5, %v3406_v47, %v3408_v60  ;;  %v1508_v9 = vsel %vm1503_vm7, %v1505_v18, %v1507_v61  ;;  %v6317_v47 = vld [vmem:[%s6499_s25 + $0x8] sm:$0xff]   ;;  %v3566_v18 = vshrl.u32 %v7282_v57, 16 }
 0x135   : > { %5536 = vmatprep.mubr.msk.bf16.mxu0 %vm6385_vm1, %v6384_v2 }
 0x13a   : > { %5243 = vmatmul.mubr.msk.bf16.vlgmr.msra.gmra.mrb[0].mxu1 %vm452_vm3, %v1359_v58  ;;  %v6315_v58 = vld [vmem:[%s6621_s14 + $0x2c] ss:$0 sps:$4 sm:$0x11]  }
 0x13b   : > { %5246 = vmatprep.mubr.msk.bf16.mxu1 %vm6385_vm1, %v6384_v2  ;;  %5263 = vmatpush3.bf16.msra.mxu1 %v1531_v11  ;;  %v3412_v46 = vrot.slane %v6315_v58, 1  ;;  %v3522_v11 = vshrl.u32 %v7161_v50, 16  ;;  %v7307_v58 = vld [vmem:[%s6499_s25 + $0x4] sm:$0xf] }
 0x13c   : > { %5284 = vmatprep.subr.bf16.mxu1 %v6384_v2  ;;  %5537 = vmatmul.mubr.msk.bf16.gmra.mrb[8].mxu0 %vm452_vm3, %v3256_v22  ;;  %v1511_v22 = vrot.slane %v7074_v41, 3  ;;  %v4889_v41 = vld [vmem:[%s7791_s3 + $0x5c] sm:$0xf] }
 0x13d   : > { %5540 = vmatprep.mubr.msk.bf16.mxu0 %vm6385_vm1, %v6384_v2  ;;  %v3413_v33 = vsel %vm637_vm5, %v3410_v0, %v3412_v46  ;;  %v3708_v45 = vsel %vm468_vm0, %v4889_v41, 0 }
 0x13e   : > { %v1512_v14 = vsel %vm1503_vm7, %v1509_v16, %v1511_v22  ;;  %v1514_v10 = vsel %vm1503_vm7, %v1511_v22, %v1513_v37  ;;  %v1754_v16 = vld [vmem:[%s6499_s25] sm:$0xf]  ;;  %v3686_v37 = vrot.slane %v7197_v1, 2 }
 0x13f   : > { %v6322_v22 = vld [vmem:[%s6499_s25 + $0x20] sm:$0xff]  }
 0x140   : > { %v3689_v54 = vsel %vm1070_vm6, %v3686_v37, %v3688_v23 }
 0x142   : > { %5247 = vmatmul.mubr.msk.bf16.gmra.mrb[4].mxu1 %vm452_vm3, %v1368_v63  ;;  %v3524_v63 = vrot.slane %v3522_v11, 1  ;;  %v3682_v11 = vrot.slane %v7164_v30, 2 }
 0x143   : > { %5250 = vmatprep.mubr.msk.bf16.mxu1 %vm6385_vm1, %v6384_v2 }
 0x144   : > { %5541 = vmatmul.mubr.msk.bf16.gmra.mrb[12].mxu0 %vm452_vm3, %v3258_v35  ;;  %v3528_v28 = vor.u32 %v3527_v49, %v3524_v63  ;;  %v3539_v35 = vshrl.u32 %v7180_v40, 16  ;;  %v1803_v49 = vshll.u32 %v7322_v42, 16 }
 0x145   : > { %5544 = vmatprep.mubr.msk.bf16.mxu0 %vm6385_vm1, %v6384_v2 }
 0x146   : > { %v3537_v38 = vsel %vm909_vm4, %v3528_v28, %v3536_v44  ;;  %v3541_v39 = vrot.slane %v3539_v35, 1  ;;  %v7337_v28 = vld [vmem:[%s6499_s25 + $0x10] sm:$0xff]   ;;  %v4781_v35 = vld [vmem:[%s7791_s3 + $0x2c] sm:$0xf] }
 0x147   : > { %v1811_v41 = vshll.u32 %v7337_v28, 16 }
 0x14a   : > { %5251 = vmatmul.mubr.msk.bf16.gmra.mrb[8].mxu1 %vm452_vm3, %v1377_v36  ;;  %v3542_v36 = vshll.u32 %v7180_v40, 16 }
 0x14b   : > { %5254 = vmatprep.mubr.msk.bf16.mxu1 %vm6385_vm1, %v6384_v2 }
 0x14c   : > { %5545 = vmatmul.mubr.msk.bf16.gmra.mrb[16].mxu0 %vm452_vm3, %v3260_v48  ;;  %v3544_v51 = vrot.slane %v3542_v36, 2  ;;  %v3548_v48 = vshrl.u32 %v7197_v1, 16  ;;  %v1807_v36 = vshrl.u32 %v7322_v42, 16 }
 0x14d   : > { %5550 = vmatprep.mubr.msk.bf16.mxu0 %vm6385_vm1, %v6384_v2 }
 0x14e   : > { %v3545_v20 = vor.u32 %v3544_v51, %v3541_v39  ;;  %v1813_v51 = vrot.slane %v1811_v41, 1 }
 0x150   : > { %v3546_v50 = vsel %vm909_vm4, %v3536_v44, %v3545_v20  ;;  %v3685_v44 = vsel %vm1070_vm6, %v3682_v11, %v3684_v25 }
 0x152   : > { %5255 = vmatmul.mubr.msk.bf16.gmra.mrb[12].mxu1 %vm452_vm3, %v1386_v24  ;;  %v3550_v24 = vrot.slane %v3548_v48, 1 }
 0x153   : > { %5258 = vmatprep.mubr.msk.bf16.mxu1 %vm6385_vm1, %v6384_v2 }
 0x154   : > { %5551 = vmatmul.mubr.msk.bf16.vlgmr.msra.gmra.mrb[0].mxu0 %vm452_vm3, %v3405_v53  ;;  %v3554_v29 = vor.u32 %v3553_v32, %v3550_v24  ;;  %v3560_v53 = vshll.u32 %v7214_v62, 16  ;;  %v7370_v32 = vld [vmem:[%s6499_s25 + $0x20] sm:$0xff]  }
 0x155   : > { %5571 = vmatpush3.bf16.msra.mxu0 %v3590_v12  ;;  %5554 = vmatprep.mubr.msk.bf16.mxu0 %vm6385_vm1, %v6384_v2  ;;  %v3559_v12 = vrot.slane %v3557_v56, 1  ;;  %v1827_v62 = vshll.u32 %v7370_v32, 16  ;;  %v3793_v56 = vld [vmem:[%s6621_s14 + $0x8] sm:$0xc] }
 0x156   : > { %5592 = vmatprep.subr.bf16.mxu0 %v6384_v2  ;;  %v3555_v5 = vsel %vm909_vm4, %v3545_v20, %v3554_v29  ;;  %v1815_v20 = vshrl.u32 %v7337_v28, 16 }
 0x15a   : > { %5259 = vmatmul.mubr.msk.bf16.gmra.mrb[16].mxu1 %vm452_vm3, %v1395_v13  ;;  %v3562_v13 = vrot.slane %v3560_v53, 2  ;;  %v7382_v53 = vld [vmem:[%s6621_s14 + $0xc] sm:$0xf] }
 0x15b   : > { %5264 = vmatprep.mubr.msk.bf16.mxu1 %vm6385_vm1, %v6384_v2 }
 0x15c   : > { %5555 = vmatmul.mubr.msk.bf16.gmra.mrb[4].mxu0 %vm452_vm3, %v3407_v59  ;;  %v3563_v31 = vor.u32 %v3562_v13, %v3559_v12  ;;  %v3569_v59 = vshll.u32 %v7282_v57, 16  ;;  %v1829_v12 = vrot.slane %v1827_v62, 1  ;;  %v7388_v13 = vld [vmem:[%s6499_s25 + $0x28] ss:$0 sps:$4 sm:$0x11]  }
 0x15d   : > { %5558 = vmatprep.mubr.msk.bf16.mxu0 %vm6385_vm1, %v6384_v2 }
 0x15e   : > { %v3564_v8 = vsel %vm909_vm4, %v3554_v29, %v3563_v31  ;;  %v3571_v60 = vrot.slane %v3569_v59, 2  ;;  %v1831_v59 = vshrl.u32 %v7370_v32, 16 }
 0x162   : > { %5265 = vmatmul.mubr.msk.bf16.vlgmr.msra.gmra.mrb[0].mxu1 %vm452_vm3, %v1506_v34  ;;  %v3568_v34 = vrot.slane %v3566_v18, 1 }
 0x163   : > { %5268 = vmatprep.mubr.msk.bf16.mxu1 %vm6385_vm1, %v6384_v2  ;;  %5285 = vmatpush3.bf16.msra.mxu1 %v1669_v19  ;;  %v6318_v19 = vld [vmem:[%s6499_s25 + $0x10] sm:$0xff]  }
 0x164   : > { %5306 = vmatprep.subr.bf16.mxu1 %v6384_v2  ;;  %5559 = vmatmul.mubr.msk.bf16.gmra.mrb[8].mxu0 %vm452_vm3, %v3409_v43  ;;  %v3572_v61 = vor.u32 %v3571_v60, %v3568_v34  ;;  %v3675_v43 = vld [vmem:[%s6621_s14 + $0x4] sm:$0xc] }
 0x165   : > { %5562 = vmatprep.mubr.msk.bf16.mxu0 %vm6385_vm1, %v6384_v2  ;;  %v4890_v0 = vcombine.low %v3675_v43, %v7152_v52  ;;  %v4896_v52 = vld [vmem:[%s7791_s3 + $0x60] sm:$0xf] }
 0x167   : > { %v3681_v46 = vrot.slane %v4890_v0, 2  ;;  %v7413_v0 = vld [vmem:[%s6621_s14 + $0x18] sm:$0xff]  }
 0x169   : > { %v3683_v21 = vsel %vm1070_vm6, %v3681_v46, %v3682_v11  ;;  %v3837_v11 = vrot.slane %v7413_v0, 2 }
 0x16a   : > { %5269 = vmatmul.mubr.msk.bf16.gmra.mrb[4].mxu1 %vm452_vm3, %v1508_v9  ;;  %v3573_v9 = vsel %vm909_vm4, %v3563_v31, %v3572_v61  ;;  %v7392_v31 = vcombine.low %v3793_v56, %v7382_v53  ;;  %v1833_v61 = vor.u32 %v1831_v59, %v1829_v12  ;;  %v6339_v59 = vld [vmem:[%s6499_s25 + $0xc] sm:$0xff]  }
 0x16b   : > { %5272 = vmatprep.mubr.msk.bf16.mxu1 %vm6385_vm1, %v6384_v2 }
 0x16c   : > { %5563 = vmatmul.mubr.msk.bf16.gmra.mrb[12].mxu0 %vm452_vm3, %v3411_v26  ;;  %v6320_v26 = vld [vmem:[%s6499_s25 + $0x18] sm:$0xff]   ;;  %v3834_v34 = vrot.slane %v7392_v31, 2  ;;  %v3953_v41 = vshrl.u32 %v7392_v31, 16 }
 0x16d   : > { %5566 = vmatprep.mubr.msk.bf16.mxu0 %vm6385_vm1, %v6384_v2 }
 0x172   : > { %5273 = vmatmul.mubr.msk.bf16.gmra.mrb[8].mxu1 %vm452_vm3, %v1510_v3  ;;  %v4770_v3 = vcombine.low %v1754_v16, %v7307_v58  ;;  %v1940_v16 = vld [vmem:[%s6499_s25] sm:$0xe] }
 0x173   : > { %5276 = vmatprep.mubr.msk.bf16.mxu1 %vm6385_vm1, %v6384_v2  ;;  %v4782_v46 = vcombine.low %v1940_v16, %v7307_v58  ;;  %v7430_v58 = vld [vmem:[%s6621_s14 + $0x20] sm:$0xff]  }
 0x174   : > { %5567 = vmatmul.mubr.msk.bf16.gmra.mrb[16].mxu0 %vm452_vm3, %v3413_v33  ;;  %v1798_v15 = vshll.u32 %v4770_v3, 16  ;;  %v3861_v33 = vsel %vm468_vm0, %v4896_v52, 0  ;;  %v1796_v30 = vshrl.u32 %v4770_v3, 16 }
 0x175   : > { %5572 = vmatprep.mubr.msk.bf16.mxu0 %vm6385_vm1, %v6384_v2  ;;  %v1946_v52 = vrot.slane %v4782_v46, 1 }
 0x176   : > { %v1800_v63 = vrot.slane %v1798_v15, 1  ;;  %v1947_v15 = vrot.slane %v7322_v42, 1 }
 0x178   : > { %v1801_v27 = vor.u32 %v1800_v63, %v1796_v30  ;;  %v3839_v30 = vrot.slane %v7430_v58, 2  ;;  %v1949_v63 = vrot.slane %v7337_v28, 1 }
 0x17a   : > { %5277 = vmatmul.mubr.msk.bf16.gmra.mrb[12].mxu1 %vm452_vm3, %v1512_v14  ;;  %v1805_v14 = vrot.slane %v1803_v49, 1  ;;  %v3840_v49 = vsel %vm1070_vm6, %v3837_v11, %v3839_v30 }
 0x17b   : > { %5280 = vmatprep.mubr.msk.bf16.mxu1 %vm6385_vm1, %v6384_v2 }
 0x17c   : > { %5573 = vmatmul.mubr.msk.bf16.vlgmr.msra.gmra.mrb[0].mxu0 %vm452_vm3, %v3537_v38  ;;  %v1806_v40 = vsel %vm407_vm2, %v1801_v27, %v1805_v14  ;;  %v1973_v38 = vsel %vm468_vm0, %v4781_v35, 0  ;;  %v1809_v39 = vor.u32 %v1807_v36, %v1805_v14  ;;  %v1950_v27 = vsel %vm637_vm5, %v1947_v15, %v1949_v63 }
 0x17d   : > { %5593 = vmatpush3.bf16.msra.mxu0 %v3708_v45  ;;  %5576 = vmatprep.mubr.msk.bf16.mxu0 %vm6385_vm1, %v6384_v2  ;;  %v7355_v45 = vld [vmem:[%s6499_s25 + $0x18] sm:$0xff]  }
 0x17e   : > { %5614 = vmatprep.subr.bf16.mxu0 %v6384_v2  ;;  %v1814_v1 = vsel %vm407_vm2, %v1809_v39, %v1813_v51  ;;  %v1819_v48 = vshll.u32 %v7355_v45, 16  ;;  %v1823_v29 = vshrl.u32 %v7355_v45, 16  ;;  %v1951_v28 = vrot.slane %v7355_v45, 1 }
 0x17f   : > { %v1953_v45 = vrot.slane %v7370_v32, 1  ;;  %v4915_v32 = vld [vmem:[%s7791_s3 + $0x68] sm:$0xf] }
 0x180   : > { %v1821_v24 = vrot.slane %v1819_v48, 1 }
 0x182   : > { %5281 = vmatmul.mubr.msk.bf16.gmra.mrb[16].mxu1 %vm452_vm3, %v1514_v10  ;;  %v3687_v10 = vsel %vm1070_vm6, %v3684_v25, %v3686_v37  ;;  %v7447_v25 = vld [vmem:[%s6621_s14 + $0x28] sm:$0xff]   ;;  %v3956_v37 = vshll.u32 %v7392_v31, 16  ;;  %v3979_v31 = vshrl.u32 %v7430_v58, 16 }
 0x183   : > { %5286 = vmatprep.mubr.msk.bf16.mxu1 %vm6385_vm1, %v6384_v2  ;;  %v3841_v14 = vrot.slane %v7447_v25, 2  ;;  %v3991_v16 = vshll.u32 %v7447_v25, 16 }
 0x184   : > { %5577 = vmatmul.mubr.msk.bf16.gmra.mrb[4].mxu0 %vm452_vm3, %v3546_v50  ;;  %v1817_v50 = vor.u32 %v1815_v20, %v1813_v51 }
 0x185   : > { %5580 = vmatprep.mubr.msk.bf16.mxu0 %vm6385_vm1, %v6384_v2  ;;  %v3842_v35 = vsel %vm1070_vm6, %v3839_v30, %v3841_v14 }
 0x18a   : > { %5287 = vmatmul.mubr.msk.bf16.vlgmr.msra.gmra.mrb[0].mxu1 %vm452_vm3, %v6316_v55  ;;  %v1822_v55 = vsel %vm407_vm2, %v1817_v50, %v1821_v24 }
 0x18b   : > { %5290 = vmatprep.mubr.msk.bf16.mxu1 %vm6385_vm1, %v6384_v2  ;;  %5307 = vmatpush3.bf16.msra.mxu1 %v1855_v7  ;;  %v3690_v7 = vrot.slane %v7282_v57, 2  ;;  %v7395_v57 = vld [vmem:[%s6621_s14 + $0x10] sm:$0xff]  }
 0x18c   : > { %5328 = vmatprep.subr.bf16.mxu1 %v6384_v2  ;;  %5581 = vmatmul.mubr.msk.bf16.gmra.mrb[8].mxu0 %vm452_vm3, %v3555_v5  ;;  %v1825_v5 = vor.u32 %v1823_v29, %v1821_v24  ;;  %v3835_v60 = vrot.slane %v7395_v57, 2  ;;  %v3964_v39 = vshll.u32 %v7395_v57, 16  ;;  %v1955_v29 = vrot.slane %v7388_v13, 1 }
 0x18d   : > { %5584 = vmatprep.mubr.msk.bf16.mxu0 %vm6385_vm1, %v6384_v2 }
 0x18e   : > { %v1830_v18 = vsel %vm407_vm2, %v1825_v5, %v1829_v12  ;;  %v3966_v48 = vrot.slane %v3964_v39, 3  ;;  %v4139_v5 = vsel %vm468_vm0, %v4915_v32, 0  ;;  %v1956_v12 = vsel %vm637_vm5, %v1953_v45, %v1955_v29 }
 0x18f   : > { %v4113_v39 = vrot.slane %v7395_v57, 3 }
 0x192   : > { %5291 = vmatmul.mubr.msk.bf16.gmra.mrb[4].mxu1 %vm452_vm3, %v6317_v47  ;;  %v3691_v47 = vsel %vm1070_vm6, %v3688_v23, %v3690_v7  ;;  %v1954_v23 = vsel %vm637_vm5, %v1951_v28, %v1953_v45 }
 0x193   : > { %5294 = vmatprep.mubr.msk.bf16.mxu1 %vm6385_vm1, %v6384_v2 }
 0x194   : > { %5585 = vmatmul.mubr.msk.bf16.gmra.mrb[12].mxu0 %vm452_vm3, %v3564_v8  ;;  %v1835_v8 = vshll.u32 %v7388_v13, 16  ;;  %v2099_v13 = vrot.slane %v6512_v17, 1  ;;  %v6340_v17 = vld [vmem:[%s6499_s25 + $0x14] sm:$0xff]  }
 0x195   : > { %5588 = vmatprep.mubr.msk.bf16.mxu0 %vm6385_vm1, %v6384_v2 }
 0x196   : > { %v1837_v43 = vrot.slane %v1835_v8, 1  ;;  %v2100_v8 = vrot.slane %v6339_v59, 1 }
 0x198   : > { %v1838_v3 = vsel %vm407_vm2, %v1833_v61, %v1837_v43  ;;  %v2101_v61 = vsel %vm637_vm5, %v2099_v13, %v2100_v8 }
 0x19a   : > { %5295 = vmatmul.mubr.msk.bf16.gmra.mrb[8].mxu1 %vm452_vm3, %v6318_v19  ;;  %v4908_v19 = vld [vmem:[%s7791_s3 + $0x64] sm:$0xf] }
 0x19b   : > { %5298 = vmatprep.mubr.msk.bf16.mxu1 %vm6385_vm1, %v6384_v2 }
 0x19c   : > { %5589 = vmatmul.mubr.msk.bf16.gmra.mrb[16].mxu0 %vm452_vm3, %v3573_v9  ;;  %v3836_v9 = vsel %vm1070_vm6, %v3834_v34, %v3835_v60 }
 0x19d   : > { %5594 = vmatprep.mubr.msk.bf16.mxu0 %vm6385_vm1, %v6384_v2 }
 0x1a2   : > { %5299 = vmatmul.mubr.msk.bf16.gmra.mrb[12].mxu1 %vm452_vm3, %v6320_v26  ;;  %v4021_v26 = vsel %vm468_vm0, %v4908_v19, 0 }
 0x1a3   : > { %5302 = vmatprep.mubr.msk.bf16.mxu1 %vm6385_vm1, %v6384_v2 }
 0x1a4   : > { %5595 = vmatmul.mubr.msk.bf16.vlgmr.msra.gmra.mrb[0].mxu0 %vm452_vm3, %v3683_v21  ;;  %v3838_v21 = vsel %vm1070_vm6, %v3835_v60, %v3837_v11  ;;  %v3981_v60 = vrot.slane %v3979_v31, 2  ;;  %v3993_v11 = vrot.slane %v3991_v16, 3  ;;  %v4234_v31 = vlaneseq }
 0x1a5   : > { %5615 = vmatpush3.bf16.msra.mxu0 %v3861_v33  ;;  %5598 = vmatprep.mubr.msk.bf16.mxu0 %vm6385_vm1, %v6384_v2  ;;  %v4788_v33 = vld [vmem:[%s7791_s3 + $0x30] sm:$0xf] }
 0x1a6   : > { %5636 = vmatprep.subr.bf16.mxu0 %v6384_v2  ;;  %v2126_v42 = vsel %vm468_vm0, %v4788_v33, 0 }
 0x1aa   : > { %5303 = vmatmul.mubr.msk.bf16.gmra.mrb[16].mxu1 %vm452_vm3, %v6322_v22  ;;  %v1948_v22 = vsel %vm637_vm5, %v1946_v52, %v1947_v15  ;;  %v7514_v52 = vld [vmem:[%s6621_s14 + $0x30] ss:$0 sps:$4 sm:$0x77]  }
 0x1ab   : > { %5308 = vmatprep.mubr.msk.bf16.mxu1 %vm6385_vm1, %v6384_v2  ;;  %v3997_v33 = vshrl.u32 %v7514_v52, 16 }
 0x1ac   : > { %5599 = vmatmul.mubr.msk.bf16.gmra.mrb[4].mxu0 %vm452_vm3, %v3685_v44  ;;  %v6335_v44 = vld [vmem:[%s6621_s14 + $0x30] ss:$0 sps:$4 sm:$0x33]  }
 0x1ad   : > { %5602 = vmatprep.mubr.msk.bf16.mxu0 %vm6385_vm1, %v6384_v2  ;;  %v3843_v36 = vrot.slane %v6335_v44, 2  ;;  %v6342_v44 = vld [vmem:[%s6499_s25 + $0x24] sm:$0xff]  }
 0x1ae   : > { %v2253_v45 = vshrl.u32 %v6342_v44, 16 }
 0x1af   : > { %v3844_v51 = vsel %vm1070_vm6, %v3841_v14, %v3843_v36 }
 0x1b2   : > { %5309 = vmatmul.mubr.msk.bf16.vlgmr.msra.gmra.mrb[0].mxu1 %vm452_vm3, %v1806_v40  ;;  %v1952_v40 = vsel %vm637_vm5, %v1949_v63, %v1951_v28  ;;  %v3999_v63 = vrot.slane %v3997_v33, 2  ;;  %v4106_v28 = vld [vmem:[%s6621_s14 + $0x8] sm:$0x8]  ;;  %s6196_s14 = smul.u32 10, %s7831_s18 }
 0x1b3   : > { %5312 = vmatprep.mubr.msk.bf16.mxu1 %vm6385_vm1, %v6384_v2  ;;  %5329 = vmatpush3.bf16.msra.mxu1 %v1973_v38  ;;  %v3961_v38 = vshrl.u32 %v7395_v57, 16  ;;  %v4916_v36 = vcombine.low %v4106_v28, %v7382_v53  ;;  %v2256_v53 = vshll.u32 %v6342_v44, 16  ;;  %v4115_v57 = vrot.slane %v7413_v0, 3 }
 0x1b4   : > { %5350 = vmatprep.subr.bf16.mxu1 %v6384_v2  ;;  %5603 = vmatmul.mubr.msk.bf16.gmra.mrb[8].mxu0 %vm452_vm3, %v3687_v10  ;;  %v3955_v10 = vrot.slane %v3953_v41, 2 }
 0x1b5   : > { %5606 = vmatprep.mubr.msk.bf16.mxu0 %vm6385_vm1, %v6384_v2  ;;  %v3963_v20 = vrot.slane %v3961_v38, 2  ;;  %v4112_v38 = vrot.slane %v4916_v36, 3 }
 0x1b7   : > { %v3967_v24 = vor.u32 %v3966_v48, %v3963_v20  ;;  %v2255_v20 = vrot.slane %v2253_v45, 1  ;;  %v2258_v48 = vrot.slane %v2256_v53, 2 }
 0x1ba   : > { %5313 = vmatmul.mubr.msk.bf16.gmra.mrb[4].mxu1 %vm452_vm3, %v1814_v1  ;;  %v3958_v1 = vrot.slane %v3956_v37, 3  ;;  %v6338_v37 = vld [vmem:[%s6499_s25 + $0x2c] ss:$0 sps:$4 sm:$0x11]  }
 0x1bb   : > { %5316 = vmatprep.mubr.msk.bf16.mxu1 %vm6385_vm1, %v6384_v2 }
 0x1bc   : > { %5607 = vmatmul.mubr.msk.bf16.gmra.mrb[12].mxu0 %vm452_vm3, %v3689_v54  ;;  %v3959_v50 = vor.u32 %v3958_v1, %v3955_v10  ;;  %v3970_v54 = vshrl.u32 %v7413_v0, 16  ;;  %v4114_v10 = vsel %vm1503_vm7, %v4112_v38, %v4113_v39 }
 0x1bd   : > { %5610 = vmatprep.mubr.msk.bf16.mxu0 %vm6385_vm1, %v6384_v2 }
 0x1be   : > { %v3968_v62 = vsel %vm1342_vm8, %v3959_v50, %v3967_v24  ;;  %v3972_v7 = vrot.slane %v3970_v54, 2  ;;  %v6343_v50 = vld [vmem:[%s6499_s25 + $0x2c] ss:$0 sps:$4 sm:$0x33]  }
 0x1bf   : > { %v2265_v54 = vshll.u32 %v6343_v50, 16 }
 0x1c2   : > { %5317 = vmatmul.mubr.msk.bf16.gmra.mrb[8].mxu1 %vm452_vm3, %v1822_v55  ;;  %v3973_v55 = vshll.u32 %v7413_v0, 16  ;;  %v4117_v0 = vrot.slane %v7430_v58, 3 }
 0x1c3   : > { %5320 = vmatprep.mubr.msk.bf16.mxu1 %vm6385_vm1, %v6384_v2 }
 0x1c4   : > { %5611 = vmatmul.mubr.msk.bf16.gmra.mrb[16].mxu0 %vm452_vm3, %v3691_v47  ;;  %v3975_v56 = vrot.slane %v3973_v55, 3  ;;  %v4116_v55 = vsel %vm1503_vm7, %v4113_v39, %v4115_v57 }
 0x1c5   : > { %5616 = vmatprep.mubr.msk.bf16.mxu0 %vm6385_vm1, %v6384_v2 }
 0x1c6   : > { %v3976_v47 = vor.u32 %v3975_v56, %v3972_v7  ;;  %v4118_v56 = vsel %vm1503_vm7, %v4115_v57, %v4117_v0 }
 0x1c8   : > { %v3977_v34 = vsel %vm1342_vm8, %v3967_v24, %v3976_v47  ;;  %v2262_v24 = vshrl.u32 %v6343_v50, 16 }
 0x1ca   : > { %5321 = vmatmul.mubr.msk.bf16.gmra.mrb[12].mxu1 %vm452_vm3, %v1830_v18  ;;  %v3982_v18 = vshll.u32 %v7430_v58, 16  ;;  %v2264_v29 = vrot.slane %v2262_v24, 1 }
 0x1cb   : > { %5324 = vmatprep.mubr.msk.bf16.mxu1 %vm6385_vm1, %v6384_v2 }
 0x1cc   : > { %5617 = vmatmul.mubr.msk.bf16.vlgmr.msra.gmra.mrb[0].mxu0 %vm452_vm3, %v3836_v9  ;;  %v3984_v19 = vrot.slane %v3982_v18, 3  ;;  %v3988_v9 = vshrl.u32 %v7447_v25, 16  ;;  %v7581_v18 = vshrl.u32 %v4234_v31, 7 }
 0x1cd   : > { %5637 = vmatpush3.bf16.msra.mxu0 %v4021_v26  ;;  %5620 = vmatprep.mubr.msk.bf16.mxu0 %vm6385_vm1, %v6384_v2  ;;  %v2102_v26 = vrot.slane %v6340_v17, 1 }
 0x1ce   : > { %5658 = vmatprep.subr.bf16.mxu0 %v6384_v2  ;;  %v3985_v43 = vor.u32 %v3984_v19, %v3981_v60  ;;  %v3990_v46 = vrot.slane %v3988_v9, 2  ;;  %v4238_v9 = vadd.s32 24, %v7581_v18 }
 0x1cf   : > { %v2103_v15 = vsel %vm637_vm5, %v2100_v8, %v2102_v26  ;;  %v7587_v59 = vmul.u32.u64.low 3435973837, %v7581_v18  ;;  %v7588_v8 = vmul.u32.u64.high 3435973837, %v7581_v18, %v7587_v59 }
 0x1d0   : > { %v7679_v59 = vadd.s32 72, %v7581_v18 }
 0x1d2   : > { %5325 = vmatmul.mubr.msk.bf16.gmra.mrb[16].mxu1 %vm452_vm3, %v1838_v3  ;;  %v3986_v3 = vsel %vm1342_vm8, %v3976_v47, %v3985_v43 }
 0x1d3   : > { %5330 = vmatprep.mubr.msk.bf16.mxu1 %vm6385_vm1, %v6384_v2 }
 0x1d4   : > { %5621 = vmatmul.mubr.msk.bf16.gmra.mrb[4].mxu0 %vm452_vm3, %v3838_v21  ;;  %v3994_v21 = vor.u32 %v3993_v11, %v3990_v46 }
 0x1d5   : > { %5624 = vmatprep.mubr.msk.bf16.mxu0 %vm6385_vm1, %v6384_v2 }
 0x1da   : > { %5331 = vmatmul.mubr.msk.bf16.vlgmr.msra.gmra.mrb[0].mxu1 %vm452_vm3, %v1948_v22  ;;  %v6341_v22 = vld [vmem:[%s6499_s25 + $0x1c] sm:$0xff]   ;;  %s6197_s25 = smul.u32 160, %s7825_s19 }
 0x1db   : > { %5334 = vmatprep.mubr.msk.bf16.mxu1 %vm6385_vm1, %v6384_v2  ;;  %5351 = vmatpush3.bf16.msra.mxu1 %v2126_v42  ;;  %v2104_v30 = vrot.slane %v6341_v22, 1  ;;  %v3995_v42 = vsel %vm1342_vm8, %v3985_v43, %v3994_v21  ;;  %v4237_v43 = vadd.s32 16, %v7581_v18 }
 0x1dc   : > { %5680 = vmatprep.subr.bf16.mxu1 %v6384_v2  ;;  %5625 = vmatmul.mubr.msk.bf16.gmra.mrb[8].mxu0 %vm452_vm3, %v3840_v49  ;;  %s353_s13 = sadd.s32 %s6197_s25, %s6196_s14 }
 0x1dd   : > { %5628 = vmatprep.mubr.msk.bf16.mxu0 %vm6385_vm1, %v6384_v2  ;;  %v7597_v16 = vmul.u32.u64.low 3435973837, %v4237_v43  ;;  %v7598_v17 = vmul.u32.u64.high 3435973837, %v4237_v43, %v7597_v16  ;;  %s4679_s11 = sshll.u32 %s353_s13, 3 }
 0x1de   : > { %s7667_s16 = scalar_lea.vmem %s7792_s4, %s4679_s11 }
 0x1e2   : > { %5335 = vmatmul.mubr.msk.bf16.gmra.mrb[4].mxu1 %vm452_vm3, %v1950_v27  ;;  %v2105_v27 = vsel %vm637_vm5, %v2102_v26, %v2104_v30 }
 0x1e3   : > { %5338 = vmatprep.mubr.msk.bf16.mxu1 %vm6385_vm1, %v6384_v2 }
 0x1e4   : > { %5629 = vmatmul.mubr.msk.bf16.gmra.mrb[12].mxu0 %vm452_vm3, %v3842_v35  ;;  %v2106_v35 = vrot.slane %v6342_v44, 1 }
 0x1e5   : > { %5632 = vmatprep.mubr.msk.bf16.mxu0 %vm6385_vm1, %v6384_v2 }
 0x1e6   : > { %v2107_v41 = vsel %vm637_vm5, %v2104_v30, %v2106_v35  ;;  %v7612_v30 = vadd.s32 40, %v7581_v18 }
 0x1ea   : > { %5339 = vmatmul.mubr.msk.bf16.gmra.mrb[8].mxu1 %vm452_vm3, %v1952_v40 }
 0x1eb   : > { %5342 = vmatprep.mubr.msk.bf16.mxu1 %vm6385_vm1, %v6384_v2 }
 0x1ec   : > { %5633 = vmatmul.mubr.msk.bf16.gmra.mrb[16].mxu0 %vm452_vm3, %v3844_v51  ;;  %v2108_v51 = vrot.slane %v6338_v37, 1 }
 0x1ed   : > { %5638 = vmatprep.mubr.msk.bf16.mxu0 %vm6385_vm1, %v6384_v2 }
 0x1ee   : > { %v2109_v1 = vsel %vm637_vm5, %v2106_v35, %v2108_v51  ;;  %v7634_v51 = vadd.s32 48, %v7581_v18 }
 0x1f2   : > { %5343 = vmatmul.mubr.msk.bf16.gmra.mrb[12].mxu1 %vm452_vm3, %v1954_v23  ;;  %v2259_v23 = vor.u32 %v2258_v48, %v2255_v20 }
 0x1f3   : > { %5346 = vmatprep.mubr.msk.bf16.mxu1 %vm6385_vm1, %v6384_v2 }
 0x1f4   : > { %5639 = vmatmul.mubr.msk.bf16.vlgmr.msra.gmra.mrb[0].mxu0 %vm452_vm3, %v3968_v62  ;;  %v2260_v32 = vsel %vm909_vm4, %v6576_v6, %v2259_v23  ;;  %v2267_v62 = vrot.slane %v2265_v54, 2  ;;  %v4119_v6 = vrot.slane %v7447_v25, 3  ;;  %v4236_v25 = vadd.s32 8, %v7581_v18 }
 0x1f5   : > { %5659 = vmatpush3.bf16.msra.mxu0 %v4139_v5  ;;  %5642 = vmatprep.mubr.msk.bf16.mxu0 %vm6385_vm1, %v6384_v2 }
 0x1f6   : > { %v2268_v7 = vor.u32 %v2267_v62, %v2264_v29  ;;  %v4120_v58 = vsel %vm1503_vm7, %v4117_v0, %v4119_v6  ;;  %v7592_v60 = vmul.u32.u64.low 3435973837, %v4236_v25  ;;  %v7593_v19 = vmul.u32.u64.high 3435973837, %v4236_v25, %v7592_v60 }
 0x1f8   : > { %v2269_v5 = vsel %vm909_vm4, %v2259_v23, %v2268_v7  ;;  %v7645_v57 = vmul.u32.u64.low 3435973837, %v7634_v51  ;;  %v7646_v23 = vmul.u32.u64.high 3435973837, %v7634_v51, %v7645_v57 }
 0x1fa   : > { %5347 = vmatmul.mubr.msk.bf16.gmra.mrb[16].mxu1 %vm452_vm3, %v1956_v12  ;;  %v4121_v12 = vrot.slane %v7514_v52, 3 }
 0x1fb   : > { %5352 = vmatprep.mubr.msk.bf16.mxu1 %vm6385_vm1, %v6384_v2 }
 0x1fc   : > { %5643 = vmatmul.mubr.msk.bf16.gmra.mrb[4].mxu0 %vm452_vm3, %v3977_v34  ;;  %v4122_v47 = vsel %vm1503_vm7, %v4119_v6, %v4121_v12 }
 0x1fd   : > { %5646 = vmatprep.mubr.msk.bf16.mxu0 %vm6385_vm1, %v6384_v2 }
 0x202   : > { %5353 = vmatmul.mubr.msk.bf16.vlgmr.msra.gmra.mrb[0].mxu1 %vm452_vm3, %v2101_v61 }
 0x203   : > { %5356 = vmatprep.mubr.msk.bf16.mxu1 %vm6385_vm1, %v6384_v2  ;;  %5681 = vmatpush3.bf16.msra.mxu1 %v6460_v4  ;;  %v4000_v4 = vshll.u32 %v7514_v52, 16  ;;  %v4262_v52 = vshrl.u32 %v7593_v19, 3  ;;  %v4317_v19 = vshrl.u32 %v7646_v23, 3 }
 0x204   : > { %5647 = vmatmul.mubr.msk.bf16.gmra.mrb[8].mxu0 %vm452_vm3, %v3986_v3  ;;  %v4251_v3 = vshrl.u32 %v7588_v8, 3 }
 0x205   : > { %5650 = vmatprep.mubr.msk.bf16.mxu0 %vm6385_vm1, %v6384_v2  ;;  %v4002_v49 = vrot.slane %v4000_v4, 3  ;;  %v4239_v4 = vadd.s32 32, %v7581_v18 }
 0x206   : > { %v4252_v22 = vmul.u32 10, %v4251_v3 }
 0x207   : > { %v4003_v14 = vor.u32 %v4002_v49, %v3999_v63  ;;  %v4273_v63 = vshrl.u32 %v7598_v17, 3 }
 0x208   : > { %v4253_v28 = vsub.s32 %v7581_v18, %v4252_v22 }
 0x209   : > { %v4004_v40 = vsel %vm1342_vm8, %v3994_v21, %v4003_v14  ;;  %v4274_v39 = vmul.u32 10, %v4273_v63 }
 0x20a   : > { %5357 = vmatmul.mubr.msk.bf16.gmra.mrb[4].mxu1 %vm452_vm3, %v2103_v15  ;;  %v7606_v15 = vmul.u32.u64.low 3435973837, %v4238_v9  ;;  %v7607_v21 = vmul.u32.u64.high 3435973837, %v4238_v9, %v7606_v15  ;;  %vm4355_vm9 = vcmp.ne.s32.totalorder %v4253_v28, 0  ;;  %vm4365_vm10 = vcmp.lt.s32.totalorder %v4253_v28, 0 }
 0x20b   : > { %5360 = vmatprep.mubr.msk.bf16.mxu1 %vm6385_vm1, %v6384_v2  ;;  %v4385_v45 = vadd.s32 10, %v4253_v28  ;;  %vm7639_vm13 = vmand %vm4365_vm10, %vm4355_vm9  ;;  %v4275_v20 = vsub.s32 %v4237_v43, %v4274_v39 }
 0x20c   : > { %5651 = vmatmul.mubr.msk.bf16.gmra.mrb[12].mxu0 %vm452_vm3, %v3995_v42  ;;  %v4263_v42 = vmul.u32 10, %v4262_v52  ;;  %v4284_v37 = vshrl.u32 %v7607_v21, 3 }
 0x20d   : > { %5654 = vmatprep.mubr.msk.bf16.mxu0 %vm6385_vm1, %v6384_v2  ;;  %vm4357_vm15 = vcmp.ne.s32.totalorder %v4275_v20, 0  ;;  %vm4367_vm0 = vcmp.lt.s32.totalorder %v4275_v20, 0 }
 0x20e   : > { %v4285_v53 = vmul.u32 10, %v4284_v37  ;;  %vm7674_vm2 = vmand %vm4367_vm0, %vm4357_vm15 }
 0x212   : > { %5361 = vmatmul.mubr.msk.bf16.gmra.mrb[8].mxu1 %vm452_vm3, %v2105_v27  ;;  %v7618_v49 = vmul.u32.u64.low 3435973837, %v4239_v4  ;;  %v7619_v27 = vmul.u32.u64.high 3435973837, %v4239_v4, %v7618_v49 }
 0x213   : > { %5364 = vmatprep.mubr.msk.bf16.mxu1 %vm6385_vm1, %v6384_v2 }
 0x214   : > { %5655 = vmatmul.mubr.msk.bf16.gmra.mrb[16].mxu0 %vm452_vm3, %v4004_v40  ;;  %v7625_v35 = vmul.u32.u64.low 3435973837, %v7612_v30  ;;  %v7626_v40 = vmul.u32.u64.high 3435973837, %v7612_v30, %v7625_v35  ;;  %v4295_v48 = vshrl.u32 %v7619_v27, 3 }
 0x215   : > { %5660 = vmatprep.mubr.msk.bf16.mxu0 %vm6385_vm1, %v6384_v2 }
 0x216   : > { %v4306_v54 = vshrl.u32 %v7626_v40, 3  ;;  %v4296_v0 = vmul.u32 10, %v4295_v48 }
 0x218   : > { %v4307_v12 = vmul.u32 10, %v4306_v54  ;;  %v7681_v60 = vsub.s32 %v4239_v4, %v4296_v0 }
 0x21a   : > { %5365 = vmatmul.mubr.msk.bf16.gmra.mrb[12].mxu1 %vm452_vm3, %v2107_v41  ;;  %v4264_v41 = vsub.s32 %v4236_v25, %v4263_v42  ;;  %v4308_v3 = vsub.s32 %v7612_v30, %v4307_v12  ;;  %vm4359_vm7 = vcmp.ne.s32.totalorder %v7681_v60, 0  ;;  %vm4369_vm8 = vcmp.lt.s32.totalorder %v7681_v60, 0 }
 0x21b   : > { %5368 = vmatprep.mubr.msk.bf16.mxu1 %vm6385_vm1, %v6384_v2  ;;  %v4318_v30 = vmul.u32 10, %v4317_v19  ;;  %v4389_v49 = vadd.s32 10, %v7681_v60 }
 0x21c   : > { %5661 = vmatmul.mubr.msk.bf16.vlgmr.msra.gmra.mrb[0].mxu0 %vm452_vm3, %v4114_v10  ;;  %vm4356_vm11 = vcmp.ne.s32.totalorder %v4264_v41, 0  ;;  %vm4366_vm12 = vcmp.lt.s32.totalorder %v4264_v41, 0  ;;  %v7637_v10 = vadd.s32 56, %v7581_v18  ;;  %v4386_v50 = vadd.s32 10, %v4264_v41 }
 0x21d   : > { %5664 = vmatprep.mubr.msk.bf16.mxu0 %vm6385_vm1, %v6384_v2  ;;  %vm7648_vm14 = vmand %vm4366_vm12, %vm4356_vm11  ;;  %vm4360_vm10 = vcmp.ne.s32.totalorder %v4308_v3, 0  ;;  %vm4370_vm11 = vcmp.lt.s32.totalorder %v4308_v3, 0 }
 0x21e   : > { %v7656_v29 = vmul.u32.u64.low 3435973837, %v7637_v10  ;;  %v7657_v62 = vmul.u32.u64.high 3435973837, %v7637_v10, %v7656_v29  ;;  %v4396_v7 = vsel %vm7648_vm14, %v4386_v50, %v4264_v41  ;;  %v4390_v41 = vadd.s32 10, %v4308_v3  ;;  %vm7726_vm14 = vmand %vm4370_vm11, %vm4360_vm10 }
 0x21f   : > { %vm4406_vm5 = vcmp.lt.s32.totalorder %v4396_v7, 8 }
 0x220   : > { %v4328_v52 = vshrl.u32 %v7657_v62, 3  ;;  %v4400_v62 = vsel %vm7726_vm14, %v4390_v41, %v4308_v3 }
 0x222   : > { %5369 = vmatmul.mubr.msk.bf16.gmra.mrb[16].mxu1 %vm452_vm3, %v2109_v1 }
 0x223   : > { %5386 = vmatprep.mubr.msk.bf16.mxu1 %vm6385_vm1, %v6384_v2 }
 0x224   : > { %5665 = vmatmul.mubr.msk.bf16.gmra.mrb[4].mxu0 %vm452_vm3, %v4116_v55  ;;  %v4395_v55 = vsel %vm7639_vm13, %v4385_v45, %v4253_v28  ;;  %vm7716_vm13 = vmand %vm4369_vm8, %vm4359_vm7  ;;  %v4319_v45 = vsub.s32 %v7634_v51, %v4318_v30 }
 0x225   : > { %5668 = vmatprep.mubr.msk.bf16.mxu0 %vm6385_vm1, %v6384_v2 }
 0x226   : > { %vm4361_vm15 = vcmp.ne.s32.totalorder %v4319_v45, 0  ;;  %vm4371_vm0 = vcmp.lt.s32.totalorder %v4319_v45, 0  ;;  %v4391_v6 = vadd.s32 10, %v4319_v45 }
 0x22a   : > { %5387 = vmatmul.mubr.msk.bf16.vlgmr.msra.gmra.mrb[12].mxu1 %vm452_vm3, %v2260_v32  ;;  %v4286_v32 = vsub.s32 %v4238_v9, %v4285_v53 }
 0x22b   : > { %5390 = vmatprep.mubr.msk.bf16.mxu1 %vm6385_vm1, %v6384_v2 }
 0x22c   : > { %5669 = vmatmul.mubr.msk.bf16.gmra.mrb[8].mxu0 %vm452_vm3, %v4118_v56  ;;  %v7662_v56 = vadd.s32 64, %v7581_v18  ;;  %vm4368_vm4 = vcmp.lt.s32.totalorder %v4286_v32, 0 }
 0x22d   : > { %5672 = vmatprep.mubr.msk.bf16.mxu0 %vm6385_vm1, %v6384_v2 }
 0x22e   : > { %v7689_v9 = vmul.u32.u64.low 3435973837, %v7662_v56  ;;  %v7690_v16 = vmul.u32.u64.high 3435973837, %v7662_v56, %v7689_v9 }
 0x230   : > { %v4339_v53 = vshrl.u32 %v7690_v16, 3 }
 0x232   : > { %5391 = vmatmul.mubr.msk.bf16.gmra.mrb[16].mxu1 %vm452_vm3, %v2269_v5  ;;  %v4340_v0 = vmul.u32 10, %v4339_v53 }
 0x234   : > { %5673 = vmatmul.mubr.msk.bf16.gmra.mrb[12].mxu0 %vm452_vm3, %v4120_v58  ;;  %v4387_v58 = vadd.s32 10, %v4275_v20 }
 0x235   : > { %5676 = vmatprep.mubr.msk.bf16.mxu0 %vm6385_vm1, %v6384_v2  ;;  %vm7669_vm1 = vcmp.lt.s32.totalorder %v4395_v55, 8 }
 0x236   : > { %v4397_v18 = vsel %vm7674_vm2, %v4387_v58, %v4275_v20 }
 0x237   : > { %vm4407_vm9 = vcmp.lt.s32.totalorder %v4397_v18, 8 }
 0x23c   : > { %5677 = vmatmul.mubr.msk.bf16.gmra.mrb[16].mxu0 %vm452_vm3, %v4122_v47  ;;  %vm4358_vm3 = vcmp.ne.s32.totalorder %v4286_v32, 0 }
 0x23d   : > { %vm7695_vm6 = vmand %vm4368_vm4, %vm4358_vm3  ;;  %vm4410_vm4 = vcmp.lt.s32.totalorder %v4400_v62, 8 }
 0x2d5   : > { %v7584_v13 = vpop.f32.mrb[0].mxu1 }
 0x2d6   : > { %v5354_v34 = vpop.f32.mrb[1].mxu1 }
 0x2d7   : > { %v7590_v2 = vpop.f32.mrb[2].mxu1  ;;  %v4388_v34 = vadd.s32 10, %v4286_v32 }
 0x2d8   : > { %v5355_v61 = vpop.f32.mrb[3].mxu1 }
 0x2d9   : > { %v4398_v22 = vsel %vm7695_vm6, %v4388_v34, %v4286_v32 }
 0x2da   : > { %vm4408_vm12 = vcmp.lt.s32.totalorder %v4398_v22, 8 }
 0x2dd   : > { %v7600_v26 = vpop.f32.mrb[4].mxu1 }
 0x2de   : > { %v5358_v46 = vpop.f32.mrb[5].mxu1 }
 0x2df   : > { %v7603_v11 = vpop.f32.mrb[6].mxu1 }
 0x2e0   : > { %v5359_v33 = vpop.f32.mrb[7].mxu1 }
 0x2e5   : > { %v7621_v14 = vpop.f32.mrb[8].mxu1 }
 0x2e6   : > { %v5362_v44 = vpop.f32.mrb[9].mxu1 }
 0x2e7   : > { %v7628_v36 = vpop.f32.mrb[10].mxu1  ;;  %v4329_v44 = vmul.u32 10, %v4328_v52 }
 0x2e8   : > { %v5363_v38 = vpop.f32.mrb[11].mxu1 }
 0x2e9   : > { %v4330_v51 = vsub.s32 %v7637_v10, %v4329_v44 }
 0x2eb   : > { %vm4362_vm2 = vcmp.ne.s32.totalorder %v4330_v51, 0  ;;  %vm4372_vm3 = vcmp.lt.s32.totalorder %v4330_v51, 0  ;;  %v4392_v19 = vadd.s32 10, %v4330_v51 }
 0x2ec   : > { %vm7748_vm6 = vmand %vm4372_vm3, %vm4362_vm2 }
 0x2ef   : > { %v4175_v5 = vpop.f32.mrb[0].mxu0 }
 0x2f0   : > { %v5682_v47 = vadd.f32 %v4175_v5, %v7584_v13  ;;  %v5662_v31 = vpop.f32.mrb[1].mxu0 }
 0x2f1   : > { %v4178_v8 = vpop.f32.mrb[2].mxu0 }
 0x2f2   : > { %4224 = vst [vmem:[%s7667_s16] sm:$0xff] %v5682_v47  ;;  %v4435_v13 = vsel %vm7669_vm1, %v5682_v47, 0.0  ;;  %v5683_v61 = vadd.f32 %v4178_v8, %v7590_v2  ;;  %v5663_v43 = vpop.f32.mrb[3].mxu0  ;;  %v7703_v2 = vmul.u32.u64.low 3435973837, %v7679_v59  ;;  %v7704_v15 = vmul.u32.u64.high 3435973837, %v7679_v59, %v7703_v2 }
 0x2f3   : > { %v4461_v21 = vmul.f32 %v4435_v13, %v4435_v13  ;;  %v4402_v2 = vsel %vm7748_vm6, %v4392_v19, %v4330_v51 }
 0x2f4   : > { %4225 = vst [vmem:[%s7667_s16 + $0x8] sm:$0xff] %v5683_v61  ;;  %v4436_v46 = vsel %vm4406_vm5, %v5683_v61, 0.0  ;;  %v4350_v24 = vshrl.u32 %v7704_v15, 3  ;;  %vm7739_vm5 = vmand %vm4371_vm0, %vm4361_vm15 }
 0x2f5   : > { %v4445_v33 = vadd.f32 %v4436_v46, %v4435_v13  ;;  %v4462_v4 = vmul.f32 %v4436_v46, %v4436_v46  ;;  %v4401_v18 = vsel %vm7739_vm5, %v4391_v6, %v4319_v45 }
 0x2f6   : > { %v4351_v12 = vmul.u32 10, %v4350_v24 }
 0x2f7   : > { %v4471_v42 = vadd.f32 %v4462_v4, %v4461_v21  ;;  %v4183_v63 = vpop.f32.mrb[4].mxu0 }
 0x2f8   : > { %v5684_v27 = vadd.f32 %v4183_v63, %v7600_v26  ;;  %v5666_v28 = vpop.f32.mrb[5].mxu0  ;;  %v4352_v17 = vsub.s32 %v7679_v59, %v4351_v12 }
 0x2f9   : > { %v4186_v35 = vpop.f32.mrb[6].mxu0 }
 0x2fa   : > { %4226 = vst [vmem:[%s7667_s16 + $0x10] sm:$0xff] %v5684_v27  ;;  %v4437_v37 = vsel %vm4407_vm9, %v5684_v27, 0.0  ;;  %v5685_v26 = vadd.f32 %v4186_v35, %v7603_v11  ;;  %v5667_v38 = vpop.f32.mrb[7].mxu0  ;;  %v4399_v11 = vsel %vm7716_vm13, %v4389_v49, %v7681_v60  ;;  %vm4411_vm9 = vcmp.lt.s32.totalorder %v4401_v18, 8 }
 0x2fb   : > { %v4446_v1 = vadd.f32 %v4445_v33, %v4437_v37  ;;  %v4463_v20 = vmul.f32 %v4437_v37, %v4437_v37  ;;  %vm4409_vm1 = vcmp.lt.s32.totalorder %v4399_v11, 8  ;;  %vm4364_vm10 = vcmp.ne.s32.totalorder %v4352_v17, 0 }
 0x2fc   : > { %4227 = vst [vmem:[%s7667_s16 + $0x18] sm:$0xff] %v5685_v26  ;;  %v4438_v23 = vsel %vm4408_vm12, %v5685_v26, 0.0  ;;  %vm4374_vm11 = vcmp.lt.s32.totalorder %v4352_v17, 0  ;;  %vm4412_vm12 = vcmp.lt.s32.totalorder %v4402_v2, 8  ;;  %v4394_v27 = vadd.s32 10, %v4352_v17 }
 0x2fd   : > { %v2346_v39 = vpop.f32.mrb[12].mxu1  ;;  %v4472_v54 = vadd.f32 %v4471_v42, %v4463_v20  ;;  %v4447_v55 = vadd.f32 %v4446_v1, %v4438_v23  ;;  %v4464_v32 = vmul.f32 %v4438_v23, %v4438_v23  ;;  %vm4384_vm14 = vmand %vm4374_vm11, %vm4364_vm10 }
 0x2fe   : > { %v5388_v48 = vpop.f32.mrb[13].mxu1  ;;  %v4404_v38 = vsel %vm4384_vm14, %v4394_v27, %v4352_v17 }
 0x2ff   : > { %v2349_v50 = vpop.f32.mrb[14].mxu1  ;;  %v4473_v7 = vadd.f32 %v4472_v54, %v4464_v32  ;;  %v4191_v5 = vpop.f32.mrb[8].mxu0  ;;  %vm4414_vm0 = vcmp.lt.s32.totalorder %v4404_v38, 8 }
 0x300   : > { %v5389_v29 = vpop.f32.mrb[15].mxu1  ;;  %v5686_v58 = vadd.f32 %v4191_v5, %v7621_v14  ;;  %v5670_v10 = vpop.f32.mrb[9].mxu0  ;;  %v4341_v14 = vsub.s32 %v7662_v56, %v4340_v0 }
 0x301   : > { %v4194_v47 = vpop.f32.mrb[10].mxu0 }
 0x302   : > { %4228 = vst [vmem:[%s7667_s16 + $0x20] sm:$0xff] %v5686_v58  ;;  %v4439_v25 = vsel %vm4409_vm1, %v5686_v58, 0.0  ;;  %v5687_v8 = vadd.f32 %v4194_v47, %v7628_v36  ;;  %v5671_v34 = vpop.f32.mrb[11].mxu0  ;;  %vm4363_vm7 = vcmp.ne.s32.totalorder %v4341_v14, 0  ;;  %vm4373_vm8 = vcmp.lt.s32.totalorder %v4341_v14, 0 }
 0x303   : > { %v4448_v13 = vadd.f32 %v4447_v55, %v4439_v25  ;;  %v4465_v61 = vmul.f32 %v4439_v25, %v4439_v25  ;;  %v4393_v22 = vadd.s32 10, %v4341_v14  ;;  %vm7758_vm13 = vmand %vm4373_vm8, %vm4363_vm7 }
 0x304   : > { %4229 = vst [vmem:[%s7667_s16 + $0x28] sm:$0xff] %v5687_v8  ;;  %v4440_v16 = vsel %vm4410_vm4, %v5687_v8, 0.0 }
 0x305   : > { %v2354_v60 = vpop.f32.mrb[16].mxu1  ;;  %v4474_v3 = vadd.f32 %v4473_v7, %v4465_v61  ;;  %v4449_v46 = vadd.f32 %v4448_v13, %v4440_v16  ;;  %v4466_v56 = vmul.f32 %v4440_v16, %v4440_v16  ;;  %v4403_v40 = vsel %vm7758_vm13, %v4393_v22, %v4341_v14 }
 0x306   : > { %v5392_v43 = vpop.f32.mrb[17].mxu1  ;;  %vm4413_vm15 = vcmp.lt.s32.totalorder %v4403_v40, 8 }
 0x307   : > { %v2357_v36 = vpop.f32.mrb[18].mxu1  ;;  %v4475_v15 = vadd.f32 %v4474_v3, %v4466_v56  ;;  %v4199_v21 = vpop.f32.mrb[12].mxu0 }
 0x308   : > { %v5393_v52 = vpop.f32.mrb[19].mxu1  ;;  %v5688_v33 = vadd.f32 %v4199_v21, %v2346_v39  ;;  %v5674_v4 = vpop.f32.mrb[13].mxu0 }
 0x309   : > { %v4202_v59 = vpop.f32.mrb[14].mxu0 }
 0x30a   : > { %4230 = vst [vmem:[%s7667_s16 + $0x30] sm:$0xff] %v5688_v33  ;;  %v4441_v42 = vsel %vm4411_vm9, %v5688_v33, 0.0  ;;  %v5689_v63 = vadd.f32 %v4202_v59, %v2349_v50  ;;  %v5675_v49 = vpop.f32.mrb[15].mxu0 }
 0x30b   : > { %v4450_v28 = vadd.f32 %v4449_v46, %v4441_v42  ;;  %v4467_v44 = vmul.f32 %v4441_v42, %v4441_v42 }
 0x30c   : > { %4231 = vst [vmem:[%s7667_s16 + $0x38] sm:$0xff] %v5689_v63  ;;  %v4442_v35 = vsel %vm4412_vm12, %v5689_v63, 0.0 }
 0x30d   : > { %v4476_v41 = vadd.f32 %v4475_v15, %v4467_v44  ;;  %v4451_v37 = vadd.f32 %v4450_v28, %v4442_v35  ;;  %v4468_v26 = vmul.f32 %v4442_v35, %v4442_v35 }
 0x30f   : > { %v4477_v39 = vadd.f32 %v4476_v41, %v4468_v26  ;;  %v4207_v45 = vpop.f32.mrb[16].mxu0 }
 0x310   : > { %v5690_v53 = vadd.f32 %v4207_v45, %v2354_v60  ;;  %v5678_v1 = vpop.f32.mrb[17].mxu0 }
 0x311   : > { %v4210_v20 = vpop.f32.mrb[18].mxu0 }
 0x312   : > { %4232 = vst [vmem:[%s7667_s16 + $0x40] sm:$0xff] %v5690_v53  ;;  %v4443_v48 = vsel %vm4413_vm15, %v5690_v53, 0.0  ;;  %v5691_v57 = vadd.f32 %v4210_v20, %v2357_v36  ;;  %v5679_v23 = vpop.f32.mrb[19].mxu0 }
 0x313   : > { %v4452_v11 = vadd.f32 %v4451_v37, %v4443_v48  ;;  %v4469_v50 = vmul.f32 %v4443_v48, %v4443_v48 }
 0x314   : > { %4233 = vst [vmem:[%s7667_s16 + $0x48] sm:$0xff] %v5691_v57  ;;  %v4444_v51 = vsel %vm4414_vm0, %v5691_v57, 0.0 }
 0x315   : > { %v4478_v24 = vadd.f32 %v4477_v39, %v4469_v50  ;;  %v4453_v54 = vadd.f32 %v4452_v11, %v4444_v51  ;;  %v4470_v55 = vmul.f32 %v4444_v51, %v4444_v51 }
 0x317   : > { %v4454_v32 = vrot.slane %v4453_v54, 4  ;;  %v4479_v29 = vadd.f32 %v4478_v24, %v4470_v55 }
 0x319   : > { %v4455_v62 = vadd.f32 %v4454_v32, %v4453_v54  ;;  %v4480_v0 = vrot.slane %v4479_v29, 4 }
 0x31b   : > { %v4456_v7 = vrot.slane %v4455_v62, 2  ;;  %v4481_v5 = vadd.f32 %v4480_v0, %v4479_v29 }
 0x31d   : > { %v4457_v6 = vadd.f32 %v4456_v7, %v4455_v62  ;;  %v4482_v58 = vrot.slane %v4481_v5, 2 }
 0x31f   : > { %v4458_v10 = vrot.slane %v4457_v6, 1  ;;  %v4483_v12 = vadd.f32 %v4482_v58, %v4481_v5 }
 0x321   : > { %v4459_v47 = vadd.f32 %v4458_v10, %v4457_v6  ;;  %v4484_v31 = vrot.slane %v4483_v12, 1 }
 0x323   : > { %4460 = vst [vmem:[%s363_s30] sm:$0x1] %v4459_v47  ;;  %v4485_v25 = vadd.f32 %v4484_v31, %v4483_v12 }
 0x325   : > { %4486 = vst [vmem:[%s363_s30 + $0x1] sm:$0x1] %v4485_v25 }
 0x326 PF: > { %s16_s22 = sadd.s32 1, %s6382_s22   ;;  %s7814_s18 = smov %s6374_s20 }
 0x327   : > { %p13_p10 = scmp.ge.s32.totalorder %s16_s22, 34   ;;  %s7815_s19 = smov %s6378_s21 }
 0x328   : > { %s7816_s20 = smov %s7819_s23  ;;  %s7817_s21 = smov %s7823_s24 }
 0x329   :  { %15 = sbr.rel (!%p13_p10) target bundleno = 3 (0x3), region = 110 }

</bundles_post_ra>
